<compile_context>
chip_gen: v7x
topology: tpu7x:2x2x1
jax: 0.10.0
libtpu: 0.0.40
codegen_flags: <defaults>
</compile_context>

<pallas_src>
import functools

import jax
import jax.numpy as jnp
from jax import lax
from jax.experimental import pallas as pl
from jax.experimental.pallas import tpu as pltpu


# The head's Linear(15*103*32, 1024) forces the input spatial size: 60 x 412.
H0, W0 = 60, 412
FC1_K = 15 * 103 * 32          # 49440 features (PyTorch NCHW flatten)
FC1_TK = 3584                  # 28 * 128
FC1_KP = FC1_TK * 14           # 50176 = K padded to a multiple of tk
FC1_TN = 512                   # 2 N-blocks -> both v7x TensorCores get work


# ----------------------------------------------------------------------------
# Conv2d (+ folded BatchNorm + ReLU [+ vertical half of MaxPool2d(2)]) kernel.
# One image per grid step; row loop inside the kernel; taps accumulated with
# per-tap MXU dots -> no patch materialization in HBM.
# ----------------------------------------------------------------------------
def _conv_rowmm_kernel(x_ref, w_ref, s_ref, b_ref, o_ref, *, kh, kw, pool):
    # x_ref: (Hin, Cin, Win) bf16, spatially zero-padded input
    #        (Hin = conv_rows + kh - 1, Win = Wout + kw - 1,
    #         conv_rows = 2*Hout if pool else Hout).
    # w_ref: (Cout, kh*kw*Cin) bf16, tap-major columns in (dy, dx, ci) order.
    # s_ref, b_ref: (Cout, 1) f32 folded BN scale / (conv bias + BN shift).
    # o_ref: (Hout, Cout, Wout) bf16.
    hout, cout, wout = o_ref.shape
    cin = x_ref.shape[1]

    w = w_ref[...]
    s = s_ref[...]
    b = b_ref[...]
    # Per-tap (Cout, Cin) weight slices, hoisted out of the row loop.
    wts = [w[:, t * cin:(t + 1) * cin] for t in range(kh * kw)]

    def conv_row(r):
        # r = top padded-input row of this conv output row's window.
        acc = None
        for dy in range(kh):
            row = x_ref[pl.ds(r + dy, 1), :, :][0]          # (Cin, Win) bf16
            for dx in range(kw):
                chunk = row[:, dx:dx + wout]                 # (Cin, Wout)
                d = jnp.dot(wts[dy * kw + dx], chunk,
                            preferred_element_type=jnp.float32)  # (Cout, Wout)
                acc = d if acc is None else acc + d
        return jnp.maximum(acc * s + b, 0.0)                 # fused BN + ReLU

    def body(i, carry):
        if pool:  # fused vertical half of the 2x2 max pool
            y = jnp.maximum(conv_row(2 * i), conv_row(2 * i + 1))
        else:
            y = conv_row(i)
        o_ref[pl.ds(i, 1), :, :] = y[None].astype(o_ref.dtype)
        return carry

    lax.fori_loop(0, hout, body, 0)


def conv_rowmm(x, p, *, kh, kw, pool):
    """x: (N, Hin, Cin, Win) bf16 padded activations; p: {'w','s','b'}."""
    N, Hin, Cin, Win = x.shape
    cout = p["w"].shape[0]
    wout = Win - (kw - 1)
    conv_rows = Hin - (kh - 1)
    hout = conv_rows // 2 if pool else conv_rows
    kern = functools.partial(_conv_rowmm_kernel, kh=kh, kw=kw, pool=pool)
    return pl.pallas_call(
        kern,
        out_shape=jax.ShapeDtypeStruct((N, hout, cout, wout), jnp.bfloat16),
        grid=(N,),
        in_specs=[
            pl.BlockSpec((None, Hin, Cin, Win), lambda n: (n, 0, 0, 0)),
            pl.BlockSpec(p["w"].shape, lambda n: (0, 0)),
            pl.BlockSpec(p["s"].shape, lambda n: (0, 0)),
            pl.BlockSpec(p["b"].shape, lambda n: (0, 0)),
        ],
        out_specs=pl.BlockSpec((None, hout, cout, wout), lambda n: (n, 0, 0, 0)),
        compiler_params=pltpu.CompilerParams(
            dimension_semantics=("parallel",)),   # independent images (v7x: 2 TCs)
    )(x, p["w"], p["s"], p["b"])


# ----------------------------------------------------------------------------
# Fused matmul + per-column affine + optional ReLU (fc1 / fc2).
# ----------------------------------------------------------------------------
def _matmul_affine_acc_kernel(a_ref, b_ref, s_ref, c_ref, o_ref, acc_ref, *, relu):
    @pl.when(pl.program_id(2) == 0)
    def _():
        acc_ref[...] = jnp.zeros_like(acc_ref)

    acc_ref[...] += jnp.dot(a_ref[...], b_ref[...],
                            preferred_element_type=jnp.float32)

    @pl.when(pl.program_id(2) == pl.num_programs(2) - 1)
    def _():
        y = acc_ref[...] * s_ref[...] + c_ref[...]
        if relu:
            y = jnp.maximum(y, 0.0)
        o_ref[...] = y.astype(o_ref.dtype)


def _matmul_affine_k1_kernel(a_ref, b_ref, s_ref, c_ref, o_ref, *, relu):
    # Single K-block specialization: no scratch accumulator, no pl.when gates.
    y = jnp.dot(a_ref[...], b_ref[...], preferred_element_type=jnp.float32)
    y = y * s_ref[...] + c_ref[...]
    if relu:
        y = jnp.maximum(y, 0.0)
    o_ref[...] = y.astype(o_ref.dtype)


def matmul_affine(a, b, scale, bias, *, relu, tk, tn):
    """out = maybe_relu((a @ b) * scale + bias); scale/bias per out-column."""
    M, K = a.shape
    K2, N = b.shape
    assert K == K2 and K % tk == 0 and N % tn == 0
    s = scale.reshape(1, N).astype(jnp.float32)
    c = bias.reshape(1, N).astype(jnp.float32)
    kblocks, nblocks = K // tk, N // tn
    if kblocks == 1:
        kernel = functools.partial(_matmul_affine_k1_kernel, relu=relu)
        scratch = []
    else:
        kernel = functools.partial(_matmul_affine_acc_kernel, relu=relu)
        scratch = [pltpu.VMEM((M, tn), jnp.float32)]
    return pl.pallas_call(
        kernel,
        out_shape=jax.ShapeDtypeStruct((M, N), jnp.float32),
        grid=(1, nblocks, kblocks),
        in_specs=[
            pl.BlockSpec((M, tk), lambda i, j, k: (0, k)),
            pl.BlockSpec((tk, tn), lambda i, j, k: (k, j)),
            pl.BlockSpec((1, tn), lambda i, j, k: (0, j)),
            pl.BlockSpec((1, tn), lambda i, j, k: (0, j)),
        ],
        out_specs=pl.BlockSpec((M, tn), lambda i, j, k: (0, j)),
        scratch_shapes=scratch,
        compiler_params=pltpu.CompilerParams(
            dimension_semantics=("parallel", "parallel", "arbitrary")),
    )(a, b, s, c)


# ----------------------------------------------------------------------------
# Parameters: random torch-layout f32 params + kernel-ready forms.
# ----------------------------------------------------------------------------
def init_params(key):
    eps = 1e-5
    keys = jax.random.split(key, 7)

    def conv_bn_raw(k, cin, cout, ksz):
        ks = jax.random.split(k, 6)
        w = jax.random.normal(ks[0], (cout, cin, ksz, ksz), jnp.float32) * 0.05
        b = jax.random.normal(ks[1], (cout,), jnp.float32) * 0.05
        gamma = 1.0 + 0.1 * jax.random.normal(ks[2], (cout,), jnp.float32)
        beta = 0.1 * jax.random.normal(ks[3], (cout,), jnp.float32)
        rmean = 0.1 * jax.random.normal(ks[4], (cout,), jnp.float32)
        rvar = jnp.abs(1.0 + 0.1 * jax.random.normal(ks[5], (cout,), jnp.float32))
        scale = gamma / jnp.sqrt(rvar + eps)          # folded BN scale
        bias = (b - rmean) * scale + beta             # folded conv-bias + shift
        return {"w": w, "scale": scale, "bias": bias}

    raw = {
        "conv1": conv_bn_raw(keys[0], 1, 16, 7),
        "conv2": conv_bn_raw(keys[1], 16, 16, 3),
        "conv3": conv_bn_raw(keys[2], 16, 16, 3),
        "conv4": conv_bn_raw(keys[3], 16, 32, 3),
        "fc1_w": jax.random.normal(keys[4], (1024, FC1_K), jnp.float32) * 0.01,
        "fc1_b": jax.random.normal(keys[5], (1024,), jnp.float32) * 0.01,
        "fc2_w": jax.random.normal(keys[6], (4, 1024), jnp.float32) * 0.01,
        "fc2_b": jnp.zeros((4,), jnp.float32),
    }

    def conv_kernel_form(rc, extra_taps=0):
        w = rc["w"]                                    # (Cout, Cin, kh, kw)
        cout, cin, kh, kw = w.shape
        w2d = jnp.transpose(w, (0, 2, 3, 1)).reshape(cout, kh * kw * cin)
        if extra_taps:
            w2d = jnp.concatenate(
                [w2d, jnp.zeros((cout, extra_taps), w2d.dtype)], axis=1)
        return {"w": w2d.astype(jnp.bfloat16),
                "s": rc["scale"].reshape(cout, 1),
                "b": rc["bias"].reshape(cout, 1)}

    # fc1: permute columns from PyTorch (c,h,w) order to the kernel's (h,c,w)
    # flatten order, transpose to (K, N), zero-pad K, cast to bf16 -- all ONCE.
    w1 = raw["fc1_w"].reshape(1024, 32, 15, 103).transpose(0, 2, 1, 3)
    w1 = w1.reshape(1024, FC1_K).T                     # (49440, 1024)
    w1 = jnp.pad(w1, ((0, FC1_KP - FC1_K), (0, 0))).astype(jnp.bfloat16)

    kp = {
        "conv1": conv_kernel_form(raw["conv1"], extra_taps=7),   # 49 taps -> 56
        "conv2": conv_kernel_form(raw["conv2"]),
        "conv3": conv_kernel_form(raw["conv3"]),
        "conv4": conv_kernel_form(raw["conv4"]),
        "fc1": {"w": w1, "s": jnp.ones((1024,), jnp.float32), "b": raw["fc1_b"]},
        "fc2": {"w": raw["fc2_w"].T, "s": jnp.ones((4,), jnp.float32),
                "b": raw["fc2_b"]},
    }
    return kp, raw


# ----------------------------------------------------------------------------
# Forward pass (Pallas kernels + cheap XLA glue: pads, conv1 tap stack,
# horizontal half of each 2x2 max pool, flatten).
# ----------------------------------------------------------------------------
def forward(x_nchw, kp):
    N = x_nchw.shape[0]
    xb = x_nchw[:, 0].astype(jnp.bfloat16)                     # (N, 60, 412)

    # conv1 (7x7, Cin=1): small XLA tap stack (bf16, ~5 MB) -> "1x1 conv" kernel.
    xp = jnp.pad(xb, ((0, 0), (3, 3), (3, 3)))                 # (N, 66, 418)
    taps = [(dy, dx) for dy in range(7) for dx in range(7)] + [(0, 0)] * 7
    p1 = jnp.stack([xp[:, dy:dy + H0, dx:dx + W0] for dy, dx in taps], axis=2)
    y = conv_rowmm(p1, kp["conv1"], kh=1, kw=1, pool=False)    # (N, 60, 16, 412)

    # conv2 (+ vertical half of maxpool)
    y = jnp.pad(y, ((0, 0), (1, 1), (0, 0), (1, 1)))           # (N, 62, 16, 414)
    y = conv_rowmm(y, kp["conv2"], kh=3, kw=3, pool=True)      # (N, 30, 16, 412)
    y = jnp.maximum(y[..., 0::2], y[..., 1::2])                # (N, 30, 16, 206)

    # conv3
    y = jnp.pad(y, ((0, 0), (1, 1), (0, 0), (1, 1)))           # (N, 32, 16, 208)
    y = conv_rowmm(y, kp["conv3"], kh=3, kw=3, pool=False)     # (N, 30, 16, 206)

    # conv4 (+ vertical half of maxpool)
    y = jnp.pad(y, ((0, 0), (1, 1), (0, 0), (1, 1)))           # (N, 32, 16, 208)
    y = conv_rowmm(y, kp["conv4"], kh=3, kw=3, pool=True)      # (N, 15, 32, 206)
    y = jnp.maximum(y[..., 0::2], y[..., 1::2])                # (N, 15, 32, 103)

    # Flatten in (h, c, w) order -- the fc1 weight was permuted to match.
    fea = y.reshape(N, FC1_K)
    fea = jnp.pad(fea, ((0, 0), (0, FC1_KP - FC1_K)))          # (N, 50176) bf16

    h = matmul_affine(fea, kp["fc1"]["w"], kp["fc1"]["s"], kp["fc1"]["b"],
                      relu=True, tk=FC1_TK, tn=FC1_TN)         # (N, 1024) f32
    out = matmul_affine(h, kp["fc2"]["w"], kp["fc2"]["s"], kp["fc2"]["b"],
                        relu=False, tk=1024, tn=4)             # (N, 4)
    return out


# ----------------------------------------------------------------------------
# Pure-JAX reference (same bf16 casts) for a correctness check.
# ----------------------------------------------------------------------------
def reference_forward(x_nchw, raw):
    bf16, f32 = jnp.bfloat16, jnp.float32

    def conv_bn_relu(y, c, pad):
        out = lax.conv_general_dilated(
            y, c["w"].astype(bf16), window_strides=(1, 1),
            padding=((pad, pad), (pad, pad)),
            dimension_numbers=("NCHW", "OIHW", "NCHW"),
            preferred_element_type=f32)
        out = out * c["scale"][None, :, None, None] + c["bias"][None, :, None, None]
        return jnp.maximum(out, 0.0).astype(bf16)

    def maxpool2(y):
        y = jnp.maximum(y[:, :, 0::2, :], y[:, :, 1::2, :])
        return jnp.maximum(y[..., 0::2], y[..., 1::2])

    y = x_nchw.astype(bf16)
    y = conv_bn_relu(y, raw["conv1"], 3)
    y = conv_bn_relu(y, raw["conv2"], 1)
    y = maxpool2(y)
    y = conv_bn_relu(y, raw["conv3"], 1)
    y = conv_bn_relu(y, raw["conv4"], 1)
    y = maxpool2(y)
    fea = y.reshape(y.shape[0], -1)                            # NCHW flatten
    h = jnp.dot(fea, raw["fc1_w"].astype(bf16).T,
                preferred_element_type=f32) + raw["fc1_b"]
    h = jnp.maximum(h, 0.0)
    return jnp.dot(h, raw["fc2_w"].T, preferred_element_type=f32) + raw["fc2_b"]


if __name__ == "__main__":
    key = jax.random.PRNGKey(0)
    pkey, xkey = jax.random.split(key)
    kp, raw = init_params(pkey)
    # Input NCHW: head's Linear(15*103*32, 1024) implies H=60, W=412, C=1.
    x = jax.random.normal(xkey, (2, 1, H0, W0), jnp.float32)

    out = jax.jit(forward)(x, kp)
    out = jax.block_until_ready(out)
    assert out.shape == (2, 4), out.shape
    assert bool(jnp.all(jnp.isfinite(out)))

    ref = jax.block_until_ready(jax.jit(reference_forward)(x, raw))
    err = float(jnp.max(jnp.abs(out - ref)))
    tol = 2e-2 * (float(jnp.max(jnp.abs(ref))) + 1.0)
    assert err <= tol, (err, tol)

    print("KERNEL_OK")
</pallas_src>

<mosaic_0001>
module attributes {stable_mosaic.version = 11 : i64} {
  func.func @_conv_rowmm_kernel(%arg0: i32, %arg1: memref<1x60x56x412xbf16, #tpu.memory_space<vmem>>, %arg2: memref<16x56xbf16, #tpu.memory_space<vmem>>, %arg3: memref<16x1xf32, #tpu.memory_space<vmem>>, %arg4: memref<16x1xf32, #tpu.memory_space<vmem>>, %arg5: memref<1x60x16x412xbf16, #tpu.memory_space<vmem>>) attributes {dimension_semantics = [#tpu.dimension_semantics<parallel>], iteration_bounds = array<i64: 2>, scalar_prefetch = 0 : i64, scratch_operands = 0 : i64, tpu.core_type = #tpu.core_type<tc>, window_params = [{transform_indices = @transform_0, window_bounds = array<i64: 1, 60, 56, 412>}, {pipeline_mode = #tpu.pipeline_mode<synchronous>, transform_indices = @transform_1, window_bounds = array<i64: 16, 56>}, {pipeline_mode = #tpu.pipeline_mode<synchronous>, transform_indices = @transform_2, window_bounds = array<i64: 16, 1>}, {pipeline_mode = #tpu.pipeline_mode<synchronous>, transform_indices = @transform_3, window_bounds = array<i64: 16, 1>}, {transform_indices = @transform_4, window_bounds = array<i64: 1, 60, 16, 412>}]} {
    %c0 = arith.constant 0 : index
    %c0_0 = arith.constant 0 : index
    %0 = vector.load %arg2[%c0, %c0_0] : memref<16x56xbf16, #tpu.memory_space<vmem>>, vector<16x56xbf16>
    %c0_1 = arith.constant 0 : index
    %c0_2 = arith.constant 0 : index
    %1 = vector.load %arg3[%c0_1, %c0_2] : memref<16x1xf32, #tpu.memory_space<vmem>>, vector<16x1xf32>
    %c0_3 = arith.constant 0 : index
    %c0_4 = arith.constant 0 : index
    %2 = vector.load %arg4[%c0_3, %c0_4] : memref<16x1xf32, #tpu.memory_space<vmem>>, vector<16x1xf32>
    %c0_i32 = arith.constant 0 : i32
    %c60_i32 = arith.constant 60 : i32
    %3 = arith.addi %c0_i32, %c60_i32 : i32
    %c1_i32 = arith.constant 1 : i32
    scf.for %arg6 = %c0_i32 to %3 step %c1_i32  : i32 {
      %c0_i32_6 = arith.constant 0 : i32
      %4 = arith.addi %arg6, %c0_i32_6 : i32
      %c0_7 = arith.constant 0 : index
      %5 = arith.index_cast %4 : i32 to index
      %c0_8 = arith.constant 0 : index
      %c0_9 = arith.constant 0 : index
      %6 = vector.load %arg1[%c0_7, %5, %c0_8, %c0_9] : memref<1x60x56x412xbf16, #tpu.memory_space<vmem>>, vector<1x1x56x412xbf16>
      %7 = vector.shape_cast %6 : vector<1x1x56x412xbf16> to vector<1x56x412xbf16>
      %8 = vector.shape_cast %7 : vector<1x56x412xbf16> to vector<56x412xbf16>
      %cst = arith.constant dense<0.000000e+00> : vector<16x412xf32>
      %9 = tpu.matmul %0, %8, %cst {dimension_numbers = #tpu.dot_dimension_numbers<[1], [0], [0], [1], [0, 0, 1, 1], [], []>} : vector<16x56xbf16>, vector<56x412xbf16>, vector<16x412xf32> -> vector<16x412xf32>
      %10 = vector.broadcast %1 : vector<16x1xf32> to vector<16x412xf32>
      %11 = arith.mulf %9, %10 : vector<16x412xf32>
      %12 = vector.broadcast %2 : vector<16x1xf32> to vector<16x412xf32>
      %13 = arith.addf %11, %12 : vector<16x412xf32>
      %cst_10 = arith.constant 0.000000e+00 : f32
      %14 = vector.broadcast %cst_10 : f32 to vector<16x412xf32>
      %15 = arith.maximumf %13, %14 : vector<16x412xf32>
      %16 = vector.shape_cast %15 : vector<16x412xf32> to vector<1x16x412xf32>
      %17 = arith.truncf %16 : vector<1x16x412xf32> to vector<1x16x412xbf16>
      %c0_11 = arith.constant 0 : index
      %18 = arith.index_cast %arg6 : i32 to index
      %c0_12 = arith.constant 0 : index
      %c0_13 = arith.constant 0 : index
      %19 = vector.load %arg5[%c0_11, %18, %c0_12, %c0_13] : memref<1x60x16x412xbf16, #tpu.memory_space<vmem>>, vector<1x1x16x412xbf16>
      %20 = vector.shape_cast %19 : vector<1x1x16x412xbf16> to vector<1x16x412xbf16>
      %21 = vector.shape_cast %17 : vector<1x16x412xbf16> to vector<1x1x16x412xbf16>
      tpu.vector_store %arg5[%c0_11, %18, %c0_12, %c0_13], %21 {strides = array<i32>} : memref<1x60x16x412xbf16, #tpu.memory_space<vmem>>, vector<1x1x16x412xbf16>,
    }
    %c60_i32_5 = arith.constant 60 : i32
    return
  }
  func.func @transform_0(%arg0: i32) -> (i32, i32, i32, i32) {
    %c0_i32 = arith.constant 0 : i32
    %c0_i32_0 = arith.constant 0 : i32
    %c0_i32_1 = arith.constant 0 : i32
    %c0_i32_2 = arith.constant 0 : i32
    return %arg0, %c0_i32, %c0_i32_0, %c0_i32_1 : i32, i32, i32, i32
  }
  func.func @transform_1(%arg0: i32) -> (i32, i32) {
    %c0_i32 = arith.constant 0 : i32
    %c0_i32_0 = arith.constant 0 : i32
    %c0_i32_1 = arith.constant 0 : i32
    return %c0_i32, %c0_i32_0 : i32, i32
  }
  func.func @transform_2(%arg0: i32) -> (i32, i32) {
    %c0_i32 = arith.constant 0 : i32
    %c0_i32_0 = arith.constant 0 : i32
    %c0_i32_1 = arith.constant 0 : i32
    return %c0_i32, %c0_i32_0 : i32, i32
  }
  func.func @transform_3(%arg0: i32) -> (i32, i32) {
    %c0_i32 = arith.constant 0 : i32
    %c0_i32_0 = arith.constant 0 : i32
    %c0_i32_1 = arith.constant 0 : i32
    return %c0_i32, %c0_i32_0 : i32, i32
  }
  func.func @transform_4(%arg0: i32) -> (i32, i32, i32, i32) {
    %c0_i32 = arith.constant 0 : i32
    %c0_i32_0 = arith.constant 0 : i32
    %c0_i32_1 = arith.constant 0 : i32
    %c0_i32_2 = arith.constant 0 : i32
    return %arg0, %c0_i32, %c0_i32_0, %c0_i32_1 : i32, i32, i32, i32
  }
}

module attributes {stable_mosaic.version = 11 : i64} {
  func.func @_conv_rowmm_kernel(%arg0: i32, %arg1: memref<1x62x16x414xbf16, #tpu.memory_space<vmem>>, %arg2: memref<16x144xbf16, #tpu.memory_space<vmem>>, %arg3: memref<16x1xf32, #tpu.memory_space<vmem>>, %arg4: memref<16x1xf32, #tpu.memory_space<vmem>>, %arg5: memref<1x30x16x412xbf16, #tpu.memory_space<vmem>>) attributes {dimension_semantics = [#tpu.dimension_semantics<parallel>], iteration_bounds = array<i64: 2>, scalar_prefetch = 0 : i64, scratch_operands = 0 : i64, tpu.core_type = #tpu.core_type<tc>, window_params = [{transform_indices = @transform_0, window_bounds = array<i64: 1, 62, 16, 414>}, {pipeline_mode = #tpu.pipeline_mode<synchronous>, transform_indices = @transform_1, window_bounds = array<i64: 16, 144>}, {pipeline_mode = #tpu.pipeline_mode<synchronous>, transform_indices = @transform_2, window_bounds = array<i64: 16, 1>}, {pipeline_mode = #tpu.pipeline_mode<synchronous>, transform_indices = @transform_3, window_bounds = array<i64: 16, 1>}, {transform_indices = @transform_4, window_bounds = array<i64: 1, 30, 16, 412>}]} {
    %c0 = arith.constant 0 : index
    %c0_0 = arith.constant 0 : index
    %0 = vector.load %arg2[%c0, %c0_0] : memref<16x144xbf16, #tpu.memory_space<vmem>>, vector<16x144xbf16>
    %c0_1 = arith.constant 0 : index
    %c0_2 = arith.constant 0 : index
    %1 = vector.load %arg3[%c0_1, %c0_2] : memref<16x1xf32, #tpu.memory_space<vmem>>, vector<16x1xf32>
    %c0_3 = arith.constant 0 : index
    %c0_4 = arith.constant 0 : index
    %2 = vector.load %arg4[%c0_3, %c0_4] : memref<16x1xf32, #tpu.memory_space<vmem>>, vector<16x1xf32>
    %3 = vector.extract_strided_slice %0 {offsets = [0, 0], sizes = [16, 16], strides = [1, 1]} : vector<16x144xbf16> to vector<16x16xbf16>
    %4 = vector.extract_strided_slice %0 {offsets = [0, 16], sizes = [16, 16], strides = [1, 1]} : vector<16x144xbf16> to vector<16x16xbf16>
    %5 = vector.extract_strided_slice %0 {offsets = [0, 32], sizes = [16, 16], strides = [1, 1]} : vector<16x144xbf16> to vector<16x16xbf16>
    %6 = vector.extract_strided_slice %0 {offsets = [0, 48], sizes = [16, 16], strides = [1, 1]} : vector<16x144xbf16> to vector<16x16xbf16>
    %7 = vector.extract_strided_slice %0 {offsets = [0, 64], sizes = [16, 16], strides = [1, 1]} : vector<16x144xbf16> to vector<16x16xbf16>
    %8 = vector.extract_strided_slice %0 {offsets = [0, 80], sizes = [16, 16], strides = [1, 1]} : vector<16x144xbf16> to vector<16x16xbf16>
    %9 = vector.extract_strided_slice %0 {offsets = [0, 96], sizes = [16, 16], strides = [1, 1]} : vector<16x144xbf16> to vector<16x16xbf16>
    %10 = vector.extract_strided_slice %0 {offsets = [0, 112], sizes = [16, 16], strides = [1, 1]} : vector<16x144xbf16> to vector<16x16xbf16>
    %11 = vector.extract_strided_slice %0 {offsets = [0, 128], sizes = [16, 16], strides = [1, 1]} : vector<16x144xbf16> to vector<16x16xbf16>
    %c0_i32 = arith.constant 0 : i32
    %c30_i32 = arith.constant 30 : i32
    %12 = arith.addi %c0_i32, %c30_i32 : i32
    %c1_i32 = arith.constant 1 : i32
    scf.for %arg6 = %c0_i32 to %12 step %c1_i32  : i32 {
      %c2_i32 = arith.constant 2 : i32
      %13 = arith.muli %c2_i32, %arg6 : i32
      %c0_i32_6 = arith.constant 0 : i32
      %14 = arith.addi %13, %c0_i32_6 : i32
      %c0_7 = arith.constant 0 : index
      %15 = arith.index_cast %14 : i32 to index
      %c0_8 = arith.constant 0 : index
      %c0_9 = arith.constant 0 : index
      %16 = vector.load %arg1[%c0_7, %15, %c0_8, %c0_9] : memref<1x62x16x414xbf16, #tpu.memory_space<vmem>>, vector<1x1x16x414xbf16>
      %17 = vector.shape_cast %16 : vector<1x1x16x414xbf16> to vector<1x16x414xbf16>
      %18 = vector.shape_cast %17 : vector<1x16x414xbf16> to vector<16x414xbf16>
      %19 = vector.extract_strided_slice %18 {offsets = [0, 0], sizes = [16, 412], strides = [1, 1]} : vector<16x414xbf16> to vector<16x412xbf16>
      %cst = arith.constant dense<0.000000e+00> : vector<16x412xf32>
      %20 = tpu.matmul %3, %19, %cst {dimension_numbers = #tpu.dot_dimension_numbers<[1], [0], [0], [1], [0, 0, 1, 1], [], []>} : vector<16x16xbf16>, vector<16x412xbf16>, vector<16x412xf32> -> vector<16x412xf32>
      %21 = vector.extract_strided_slice %18 {offsets = [0, 1], sizes = [16, 412], strides = [1, 1]} : vector<16x414xbf16> to vector<16x412xbf16>
      %cst_10 = arith.constant dense<0.000000e+00> : vector<16x412xf32>
      %22 = tpu.matmul %4, %21, %cst_10 {dimension_numbers = #tpu.dot_dimension_numbers<[1], [0], [0], [1], [0, 0, 1, 1], [], []>} : vector<16x16xbf16>, vector<16x412xbf16>, vector<16x412xf32> -> vector<16x412xf32>
      %23 = arith.addf %20, %22 : vector<16x412xf32>
      %24 = vector.extract_strided_slice %18 {offsets = [0, 2], sizes = [16, 412], strides = [1, 1]} : vector<16x414xbf16> to vector<16x412xbf16>
      %cst_11 = arith.constant dense<0.000000e+00> : vector<16x412xf32>
      %25 = tpu.matmul %5, %24, %cst_11 {dimension_numbers = #tpu.dot_dimension_numbers<[1], [0], [0], [1], [0, 0, 1, 1], [], []>} : vector<16x16xbf16>, vector<16x412xbf16>, vector<16x412xf32> -> vector<16x412xf32>
      %26 = arith.addf %23, %25 : vector<16x412xf32>
      %c1_i32_12 = arith.constant 1 : i32
      %27 = arith.addi %13, %c1_i32_12 : i32
      %c0_13 = arith.constant 0 : index
      %28 = arith.index_cast %27 : i32 to index
      %c0_14 = arith.constant 0 : index
      %c0_15 = arith.constant 0 : index
      %29 = vector.load %arg1[%c0_13, %28, %c0_14, %c0_15] : memref<1x62x16x414xbf16, #tpu.memory_space<vmem>>, vector<1x1x16x414xbf16>
      %30 = vector.shape_cast %29 : vector<1x1x16x414xbf16> to vector<1x16x414xbf16>
      %31 = vector.shape_cast %30 : vector<1x16x414xbf16> to vector<16x414xbf16>
      %32 = vector.extract_strided_slice %31 {offsets = [0, 0], sizes = [16, 412], strides = [1, 1]} : vector<16x414xbf16> to vector<16x412xbf16>
      %cst_16 = arith.constant dense<0.000000e+00> : vector<16x412xf32>
      %33 = tpu.matmul %6, %32, %cst_16 {dimension_numbers = #tpu.dot_dimension_numbers<[1], [0], [0], [1], [0, 0, 1, 1], [], []>} : vector<16x16xbf16>, vector<16x412xbf16>, vector<16x412xf32> -> vector<16x412xf32>
      %34 = arith.addf %26, %33 : vector<16x412xf32>
      %35 = vector.extract_strided_slice %31 {offsets = [0, 1], sizes = [16, 412], strides = [1, 1]} : vector<16x414xbf16> to vector<16x412xbf16>
      %cst_17 = arith.constant dense<0.000000e+00> : vector<16x412xf32>
      %36 = tpu.matmul %7, %35, %cst_17 {dimension_numbers = #tpu.dot_dimension_numbers<[1], [0], [0], [1], [0, 0, 1, 1], [], []>} : vector<16x16xbf16>, vector<16x412xbf16>, vector<16x412xf32> -> vector<16x412xf32>
      %37 = arith.addf %34, %36 : vector<16x412xf32>
      %38 = vector.extract_strided_slice %31 {offsets = [0, 2], sizes = [16, 412], strides = [1, 1]} : vector<16x414xbf16> to vector<16x412xbf16>
      %cst_18 = arith.constant dense<0.000000e+00> : vector<16x412xf32>
      %39 = tpu.matmul %8, %38, %cst_18 {dimension_numbers = #tpu.dot_dimension_numbers<[1], [0], [0], [1], [0, 0, 1, 1], [], []>} : vector<16x16xbf16>, vector<16x412xbf16>, vector<16x412xf32> -> vector<16x412xf32>
      %40 = arith.addf %37, %39 : vector<16x412xf32>
      %c2_i32_19 = arith.constant 2 : i32
      %41 = arith.addi %13, %c2_i32_19 : i32
      %c0_20 = arith.constant 0 : index
      %42 = arith.index_cast %41 : i32 to index
      %c0_21 = arith.constant 0 : index
      %c0_22 = arith.constant 0 : index
      %43 = vector.load %arg1[%c0_20, %42, %c0_21, %c0_22] : memref<1x62x16x414xbf16, #tpu.memory_space<vmem>>, vector<1x1x16x414xbf16>
      %44 = vector.shape_cast %43 : vector<1x1x16x414xbf16> to vector<1x16x414xbf16>
      %45 = vector.shape_cast %44 : vector<1x16x414xbf16> to vector<16x414xbf16>
      %46 = vector.extract_strided_slice %45 {offsets = [0, 0], sizes = [16, 412], strides = [1, 1]} : vector<16x414xbf16> to vector<16x412xbf16>
      %cst_23 = arith.constant dense<0.000000e+00> : vector<16x412xf32>
      %47 = tpu.matmul %9, %46, %cst_23 {dimension_numbers = #tpu.dot_dimension_numbers<[1], [0], [0], [1], [0, 0, 1, 1], [], []>} : vector<16x16xbf16>, vector<16x412xbf16>, vector<16x412xf32> -> vector<16x412xf32>
      %48 = arith.addf %40, %47 : vector<16x412xf32>
      %49 = vector.extract_strided_slice %45 {offsets = [0, 1], sizes = [16, 412], strides = [1, 1]} : vector<16x414xbf16> to vector<16x412xbf16>
      %cst_24 = arith.constant dense<0.000000e+00> : vector<16x412xf32>
      %50 = tpu.matmul %10, %49, %cst_24 {dimension_numbers = #tpu.dot_dimension_numbers<[1], [0], [0], [1], [0, 0, 1, 1], [], []>} : vector<16x16xbf16>, vector<16x412xbf16>, vector<16x412xf32> -> vector<16x412xf32>
      %51 = arith.addf %48, %50 : vector<16x412xf32>
      %52 = vector.extract_strided_slice %45 {offsets = [0, 2], sizes = [16, 412], strides = [1, 1]} : vector<16x414xbf16> to vector<16x412xbf16>
      %cst_25 = arith.constant dense<0.000000e+00> : vector<16x412xf32>
      %53 = tpu.matmul %11, %52, %cst_25 {dimension_numbers = #tpu.dot_dimension_numbers<[1], [0], [0], [1], [0, 0, 1, 1], [], []>} : vector<16x16xbf16>, vector<16x412xbf16>, vector<16x412xf32> -> vector<16x412xf32>
      %54 = arith.addf %51, %53 : vector<16x412xf32>
      %55 = vector.broadcast %1 : vector<16x1xf32> to vector<16x412xf32>
      %56 = arith.mulf %54, %55 : vector<16x412xf32>
      %57 = vector.broadcast %2 : vector<16x1xf32> to vector<16x412xf32>
      %58 = arith.addf %56, %57 : vector<16x412xf32>
      %cst_26 = arith.constant 0.000000e+00 : f32
      %59 = vector.broadcast %cst_26 : f32 to vector<16x412xf32>
      %60 = arith.maximumf %58, %59 : vector<16x412xf32>
      %c2_i32_27 = arith.constant 2 : i32
      %61 = arith.muli %c2_i32_27, %arg6 : i32
      %c1_i32_28 = arith.constant 1 : i32
      %62 = arith.addi %61, %c1_i32_28 : i32
      %c0_i32_29 = arith.constant 0 : i32
      %63 = arith.addi %62, %c0_i32_29 : i32
      %c0_30 = arith.constant 0 : index
      %64 = arith.index_cast %63 : i32 to index
      %c0_31 = arith.constant 0 : index
      %c0_32 = arith.constant 0 : index
      %65 = vector.load %arg1[%c0_30, %64, %c0_31, %c0_32] : memref<1x62x16x414xbf16, #tpu.memory_space<vmem>>, vector<1x1x16x414xbf16>
      %66 = vector.shape_cast %65 : vector<1x1x16x414xbf16> to vector<1x16x414xbf16>
      %67 = vector.shape_cast %66 : vector<1x16x414xbf16> to vector<16x414xbf16>
      %68 = vector.extract_strided_slice %67 {offsets = [0, 0], sizes = [16, 412], strides = [1, 1]} : vector<16x414xbf16> to vector<16x412xbf16>
      %cst_33 = arith.constant dense<0.000000e+00> : vector<16x412xf32>
      %69 = tpu.matmul %3, %68, %cst_33 {dimension_numbers = #tpu.dot_dimension_numbers<[1], [0], [0], [1], [0, 0, 1, 1], [], []>} : vector<16x16xbf16>, vector<16x412xbf16>, vector<16x412xf32> -> vector<16x412xf32>
      %70 = vector.extract_strided_slice %67 {offsets = [0, 1], sizes = [16, 412], strides = [1, 1]} : vector<16x414xbf16> to vector<16x412xbf16>
      %cst_34 = arith.constant dense<0.000000e+00> : vector<16x412xf32>
      %71 = tpu.matmul %4, %70, %cst_34 {dimension_numbers = #tpu.dot_dimension_numbers<[1], [0], [0], [1], [0, 0, 1, 1], [], []>} : vector<16x16xbf16>, vector<16x412xbf16>, vector<16x412xf32> -> vector<16x412xf32>
      %72 = arith.addf %69, %71 : vector<16x412xf32>
      %73 = vector.extract_strided_slice %67 {offsets = [0, 2], sizes = [16, 412], strides = [1, 1]} : vector<16x414xbf16> to vector<16x412xbf16>
      %cst_35 = arith.constant dense<0.000000e+00> : vector<16x412xf32>
      %74 = tpu.matmul %5, %73, %cst_35 {dimension_numbers = #tpu.dot_dimension_numbers<[1], [0], [0], [1], [0, 0, 1, 1], [], []>} : vector<16x16xbf16>, vector<16x412xbf16>, vector<16x412xf32> -> vector<16x412xf32>
      %75 = arith.addf %72, %74 : vector<16x412xf32>
      %c1_i32_36 = arith.constant 1 : i32
      %76 = arith.addi %62, %c1_i32_36 : i32
      %c0_37 = arith.constant 0 : index
      %77 = arith.index_cast %76 : i32 to index
      %c0_38 = arith.constant 0 : index
      %c0_39 = arith.constant 0 : index
      %78 = vector.load %arg1[%c0_37, %77, %c0_38, %c0_39] : memref<1x62x16x414xbf16, #tpu.memory_space<vmem>>, vector<1x1x16x414xbf16>
      %79 = vector.shape_cast %78 : vector<1x1x16x414xbf16> to vector<1x16x414xbf16>
      %80 = vector.shape_cast %79 : vector<1x16x414xbf16> to vector<16x414xbf16>
      %81 = vector.extract_strided_slice %80 {offsets = [0, 0], sizes = [16, 412], strides = [1, 1]} : vector<16x414xbf16> to vector<16x412xbf16>
      %cst_40 = arith.constant dense<0.000000e+00> : vector<16x412xf32>
      %82 = tpu.matmul %6, %81, %cst_40 {dimension_numbers = #tpu.dot_dimension_numbers<[1], [0], [0], [1], [0, 0, 1, 1], [], []>} : vector<16x16xbf16>, vector<16x412xbf16>, vector<16x412xf32> -> vector<16x412xf32>
      %83 = arith.addf %75, %82 : vector<16x412xf32>
      %84 = vector.extract_strided_slice %80 {offsets = [0, 1], sizes = [16, 412], strides = [1, 1]} : vector<16x414xbf16> to vector<16x412xbf16>
      %cst_41 = arith.constant dense<0.000000e+00> : vector<16x412xf32>
      %85 = tpu.matmul %7, %84, %cst_41 {dimension_numbers = #tpu.dot_dimension_numbers<[1], [0], [0], [1], [0, 0, 1, 1], [], []>} : vector<16x16xbf16>, vector<16x412xbf16>, vector<16x412xf32> -> vector<16x412xf32>
      %86 = arith.addf %83, %85 : vector<16x412xf32>
      %87 = vector.extract_strided_slice %80 {offsets = [0, 2], sizes = [16, 412], strides = [1, 1]} : vector<16x414xbf16> to vector<16x412xbf16>
      %cst_42 = arith.constant dense<0.000000e+00> : vector<16x412xf32>
      %88 = tpu.matmul %8, %87, %cst_42 {dimension_numbers = #tpu.dot_dimension_numbers<[1], [0], [0], [1], [0, 0, 1, 1], [], []>} : vector<16x16xbf16>, vector<16x412xbf16>, vector<16x412xf32> -> vector<16x412xf32>
      %89 = arith.addf %86, %88 : vector<16x412xf32>
      %c2_i32_43 = arith.constant 2 : i32
      %90 = arith.addi %62, %c2_i32_43 : i32
      %c0_44 = arith.constant 0 : index
      %91 = arith.index_cast %90 : i32 to index
      %c0_45 = arith.constant 0 : index
      %c0_46 = arith.constant 0 : index
      %92 = vector.load %arg1[%c0_44, %91, %c0_45, %c0_46] : memref<1x62x16x414xbf16, #tpu.memory_space<vmem>>, vector<1x1x16x414xbf16>
      %93 = vector.shape_cast %92 : vector<1x1x16x414xbf16> to vector<1x16x414xbf16>
      %94 = vector.shape_cast %93 : vector<1x16x414xbf16> to vector<16x414xbf16>
      %95 = vector.extract_strided_slice %94 {offsets = [0, 0], sizes = [16, 412], strides = [1, 1]} : vector<16x414xbf16> to vector<16x412xbf16>
      %cst_47 = arith.constant dense<0.000000e+00> : vector<16x412xf32>
      %96 = tpu.matmul %9, %95, %cst_47 {dimension_numbers = #tpu.dot_dimension_numbers<[1], [0], [0], [1], [0, 0, 1, 1], [], []>} : vector<16x16xbf16>, vector<16x412xbf16>, vector<16x412xf32> -> vector<16x412xf32>
      %97 = arith.addf %89, %96 : vector<16x412xf32>
      %98 = vector.extract_strided_slice %94 {offsets = [0, 1], sizes = [16, 412], strides = [1, 1]} : vector<16x414xbf16> to vector<16x412xbf16>
      %cst_48 = arith.constant dense<0.000000e+00> : vector<16x412xf32>
      %99 = tpu.matmul %10, %98, %cst_48 {dimension_numbers = #tpu.dot_dimension_numbers<[1], [0], [0], [1], [0, 0, 1, 1], [], []>} : vector<16x16xbf16>, vector<16x412xbf16>, vector<16x412xf32> -> vector<16x412xf32>
      %100 = arith.addf %97, %99 : vector<16x412xf32>
      %101 = vector.extract_strided_slice %94 {offsets = [0, 2], sizes = [16, 412], strides = [1, 1]} : vector<16x414xbf16> to vector<16x412xbf16>
      %cst_49 = arith.constant dense<0.000000e+00> : vector<16x412xf32>
      %102 = tpu.matmul %11, %101, %cst_49 {dimension_numbers = #tpu.dot_dimension_numbers<[1], [0], [0], [1], [0, 0, 1, 1], [], []>} : vector<16x16xbf16>, vector<16x412xbf16>, vector<16x412xf32> -> vector<16x412xf32>
      %103 = arith.addf %100, %102 : vector<16x412xf32>
      %104 = vector.broadcast %1 : vector<16x1xf32> to vector<16x412xf32>
      %105 = arith.mulf %103, %104 : vector<16x412xf32>
      %106 = vector.broadcast %2 : vector<16x1xf32> to vector<16x412xf32>
      %107 = arith.addf %105, %106 : vector<16x412xf32>
      %cst_50 = arith.constant 0.000000e+00 : f32
      %108 = vector.broadcast %cst_50 : f32 to vector<16x412xf32>
      %109 = arith.maximumf %107, %108 : vector<16x412xf32>
      %110 = arith.maximumf %60, %109 : vector<16x412xf32>
      %111 = vector.shape_cast %110 : vector<16x412xf32> to vector<1x16x412xf32>
      %112 = arith.truncf %111 : vector<1x16x412xf32> to vector<1x16x412xbf16>
      %c0_51 = arith.constant 0 : index
      %113 = arith.index_cast %arg6 : i32 to index
      %c0_52 = arith.constant 0 : index
      %c0_53 = arith.constant 0 : index
      %114 = vector.load %arg5[%c0_51, %113, %c0_52, %c0_53] : memref<1x30x16x412xbf16, #tpu.memory_space<vmem>>, vector<1x1x16x412xbf16>
      %115 = vector.shape_cast %114 : vector<1x1x16x412xbf16> to vector<1x16x412xbf16>
      %116 = vector.shape_cast %112 : vector<1x16x412xbf16> to vector<1x1x16x412xbf16>
      tpu.vector_store %arg5[%c0_51, %113, %c0_52, %c0_53], %116 {strides = array<i32>} : memref<1x30x16x412xbf16, #tpu.memory_space<vmem>>, vector<1x1x16x412xbf16>,
    }
    %c30_i32_5 = arith.constant 30 : i32
    return
  }
  func.func @transform_0(%arg0: i32) -> (i32, i32, i32, i32) {
    %c0_i32 = arith.constant 0 : i32
    %c0_i32_0 = arith.constant 0 : i32
    %c0_i32_1 = arith.constant 0 : i32
    %c0_i32_2 = arith.constant 0 : i32
    return %arg0, %c0_i32, %c0_i32_0, %c0_i32_1 : i32, i32, i32, i32
  }
  func.func @transform_1(%arg0: i32) -> (i32, i32) {
    %c0_i32 = arith.constant 0 : i32
    %c0_i32_0 = arith.constant 0 : i32
    %c0_i32_1 = arith.constant 0 : i32
    return %c0_i32, %c0_i32_0 : i32, i32
  }
  func.func @transform_2(%arg0: i32) -> (i32, i32) {
    %c0_i32 = arith.constant 0 : i32
    %c0_i32_0 = arith.constant 0 : i32
    %c0_i32_1 = arith.constant 0 : i32
    return %c0_i32, %c0_i32_0 : i32, i32
  }
  func.func @transform_3(%arg0: i32) -> (i32, i32) {
    %c0_i32 = arith.constant 0 : i32
    %c0_i32_0 = arith.constant 0 : i32
    %c0_i32_1 = arith.constant 0 : i32
    return %c0_i32, %c0_i32_0 : i32, i32
  }
  func.func @transform_4(%arg0: i32) -> (i32, i32, i32, i32) {
    %c0_i32 = arith.constant 0 : i32
    %c0_i32_0 = arith.constant 0 : i32
    %c0_i32_1 = arith.constant 0 : i32
    %c0_i32_2 = arith.constant 0 : i32
    return %arg0, %c0_i32, %c0_i32_0, %c0_i32_1 : i32, i32, i32, i32
  }
}

module attributes {stable_mosaic.version = 11 : i64} {
  func.func @_conv_rowmm_kernel(%arg0: i32, %arg1: memref<1x32x16x208xbf16, #tpu.memory_space<vmem>>, %arg2: memref<16x144xbf16, #tpu.memory_space<vmem>>, %arg3: memref<16x1xf32, #tpu.memory_space<vmem>>, %arg4: memref<16x1xf32, #tpu.memory_space<vmem>>, %arg5: memref<1x30x16x206xbf16, #tpu.memory_space<vmem>>) attributes {dimension_semantics = [#tpu.dimension_semantics<parallel>], iteration_bounds = array<i64: 2>, scalar_prefetch = 0 : i64, scratch_operands = 0 : i64, tpu.core_type = #tpu.core_type<tc>, window_params = [{transform_indices = @transform_0, window_bounds = array<i64: 1, 32, 16, 208>}, {pipeline_mode = #tpu.pipeline_mode<synchronous>, transform_indices = @transform_1, window_bounds = array<i64: 16, 144>}, {pipeline_mode = #tpu.pipeline_mode<synchronous>, transform_indices = @transform_2, window_bounds = array<i64: 16, 1>}, {pipeline_mode = #tpu.pipeline_mode<synchronous>, transform_indices = @transform_3, window_bounds = array<i64: 16, 1>}, {transform_indices = @transform_4, window_bounds = array<i64: 1, 30, 16, 206>}]} {
    %c0 = arith.constant 0 : index
    %c0_0 = arith.constant 0 : index
    %0 = vector.load %arg2[%c0, %c0_0] : memref<16x144xbf16, #tpu.memory_space<vmem>>, vector<16x144xbf16>
    %c0_1 = arith.constant 0 : index
    %c0_2 = arith.constant 0 : index
    %1 = vector.load %arg3[%c0_1, %c0_2] : memref<16x1xf32, #tpu.memory_space<vmem>>, vector<16x1xf32>
    %c0_3 = arith.constant 0 : index
    %c0_4 = arith.constant 0 : index
    %2 = vector.load %arg4[%c0_3, %c0_4] : memref<16x1xf32, #tpu.memory_space<vmem>>, vector<16x1xf32>
    %3 = vector.extract_strided_slice %0 {offsets = [0, 0], sizes = [16, 16], strides = [1, 1]} : vector<16x144xbf16> to vector<16x16xbf16>
    %4 = vector.extract_strided_slice %0 {offsets = [0, 16], sizes = [16, 16], strides = [1, 1]} : vector<16x144xbf16> to vector<16x16xbf16>
    %5 = vector.extract_strided_slice %0 {offsets = [0, 32], sizes = [16, 16], strides = [1, 1]} : vector<16x144xbf16> to vector<16x16xbf16>
    %6 = vector.extract_strided_slice %0 {offsets = [0, 48], sizes = [16, 16], strides = [1, 1]} : vector<16x144xbf16> to vector<16x16xbf16>
    %7 = vector.extract_strided_slice %0 {offsets = [0, 64], sizes = [16, 16], strides = [1, 1]} : vector<16x144xbf16> to vector<16x16xbf16>
    %8 = vector.extract_strided_slice %0 {offsets = [0, 80], sizes = [16, 16], strides = [1, 1]} : vector<16x144xbf16> to vector<16x16xbf16>
    %9 = vector.extract_strided_slice %0 {offsets = [0, 96], sizes = [16, 16], strides = [1, 1]} : vector<16x144xbf16> to vector<16x16xbf16>
    %10 = vector.extract_strided_slice %0 {offsets = [0, 112], sizes = [16, 16], strides = [1, 1]} : vector<16x144xbf16> to vector<16x16xbf16>
    %11 = vector.extract_strided_slice %0 {offsets = [0, 128], sizes = [16, 16], strides = [1, 1]} : vector<16x144xbf16> to vector<16x16xbf16>
    %c0_i32 = arith.constant 0 : i32
    %c30_i32 = arith.constant 30 : i32
    %12 = arith.addi %c0_i32, %c30_i32 : i32
    %c1_i32 = arith.constant 1 : i32
    scf.for %arg6 = %c0_i32 to %12 step %c1_i32  : i32 {
      %c0_i32_6 = arith.constant 0 : i32
      %13 = arith.addi %arg6, %c0_i32_6 : i32
      %c0_7 = arith.constant 0 : index
      %14 = arith.index_cast %13 : i32 to index
      %c0_8 = arith.constant 0 : index
      %c0_9 = arith.constant 0 : index
      %15 = vector.load %arg1[%c0_7, %14, %c0_8, %c0_9] : memref<1x32x16x208xbf16, #tpu.memory_space<vmem>>, vector<1x1x16x208xbf16>
      %16 = vector.shape_cast %15 : vector<1x1x16x208xbf16> to vector<1x16x208xbf16>
      %17 = vector.shape_cast %16 : vector<1x16x208xbf16> to vector<16x208xbf16>
      %18 = vector.extract_strided_slice %17 {offsets = [0, 0], sizes = [16, 206], strides = [1, 1]} : vector<16x208xbf16> to vector<16x206xbf16>
      %cst = arith.constant dense<0.000000e+00> : vector<16x206xf32>
      %19 = tpu.matmul %3, %18, %cst {dimension_numbers = #tpu.dot_dimension_numbers<[1], [0], [0], [1], [0, 0, 1, 1], [], []>} : vector<16x16xbf16>, vector<16x206xbf16>, vector<16x206xf32> -> vector<16x206xf32>
      %20 = vector.extract_strided_slice %17 {offsets = [0, 1], sizes = [16, 206], strides = [1, 1]} : vector<16x208xbf16> to vector<16x206xbf16>
      %cst_10 = arith.constant dense<0.000000e+00> : vector<16x206xf32>
      %21 = tpu.matmul %4, %20, %cst_10 {dimension_numbers = #tpu.dot_dimension_numbers<[1], [0], [0], [1], [0, 0, 1, 1], [], []>} : vector<16x16xbf16>, vector<16x206xbf16>, vector<16x206xf32> -> vector<16x206xf32>
      %22 = arith.addf %19, %21 : vector<16x206xf32>
      %23 = vector.extract_strided_slice %17 {offsets = [0, 2], sizes = [16, 206], strides = [1, 1]} : vector<16x208xbf16> to vector<16x206xbf16>
      %cst_11 = arith.constant dense<0.000000e+00> : vector<16x206xf32>
      %24 = tpu.matmul %5, %23, %cst_11 {dimension_numbers = #tpu.dot_dimension_numbers<[1], [0], [0], [1], [0, 0, 1, 1], [], []>} : vector<16x16xbf16>, vector<16x206xbf16>, vector<16x206xf32> -> vector<16x206xf32>
      %25 = arith.addf %22, %24 : vector<16x206xf32>
      %c1_i32_12 = arith.constant 1 : i32
      %26 = arith.addi %arg6, %c1_i32_12 : i32
      %c0_13 = arith.constant 0 : index
      %27 = arith.index_cast %26 : i32 to index
      %c0_14 = arith.constant 0 : index
      %c0_15 = arith.constant 0 : index
      %28 = vector.load %arg1[%c0_13, %27, %c0_14, %c0_15] : memref<1x32x16x208xbf16, #tpu.memory_space<vmem>>, vector<1x1x16x208xbf16>
      %29 = vector.shape_cast %28 : vector<1x1x16x208xbf16> to vector<1x16x208xbf16>
      %30 = vector.shape_cast %29 : vector<1x16x208xbf16> to vector<16x208xbf16>
      %31 = vector.extract_strided_slice %30 {offsets = [0, 0], sizes = [16, 206], strides = [1, 1]} : vector<16x208xbf16> to vector<16x206xbf16>
      %cst_16 = arith.constant dense<0.000000e+00> : vector<16x206xf32>
      %32 = tpu.matmul %6, %31, %cst_16 {dimension_numbers = #tpu.dot_dimension_numbers<[1], [0], [0], [1], [0, 0, 1, 1], [], []>} : vector<16x16xbf16>, vector<16x206xbf16>, vector<16x206xf32> -> vector<16x206xf32>
      %33 = arith.addf %25, %32 : vector<16x206xf32>
      %34 = vector.extract_strided_slice %30 {offsets = [0, 1], sizes = [16, 206], strides = [1, 1]} : vector<16x208xbf16> to vector<16x206xbf16>
      %cst_17 = arith.constant dense<0.000000e+00> : vector<16x206xf32>
      %35 = tpu.matmul %7, %34, %cst_17 {dimension_numbers = #tpu.dot_dimension_numbers<[1], [0], [0], [1], [0, 0, 1, 1], [], []>} : vector<16x16xbf16>, vector<16x206xbf16>, vector<16x206xf32> -> vector<16x206xf32>
      %36 = arith.addf %33, %35 : vector<16x206xf32>
      %37 = vector.extract_strided_slice %30 {offsets = [0, 2], sizes = [16, 206], strides = [1, 1]} : vector<16x208xbf16> to vector<16x206xbf16>
      %cst_18 = arith.constant dense<0.000000e+00> : vector<16x206xf32>
      %38 = tpu.matmul %8, %37, %cst_18 {dimension_numbers = #tpu.dot_dimension_numbers<[1], [0], [0], [1], [0, 0, 1, 1], [], []>} : vector<16x16xbf16>, vector<16x206xbf16>, vector<16x206xf32> -> vector<16x206xf32>
      %39 = arith.addf %36, %38 : vector<16x206xf32>
      %c2_i32 = arith.constant 2 : i32
      %40 = arith.addi %arg6, %c2_i32 : i32
      %c0_19 = arith.constant 0 : index
      %41 = arith.index_cast %40 : i32 to index
      %c0_20 = arith.constant 0 : index
      %c0_21 = arith.constant 0 : index
      %42 = vector.load %arg1[%c0_19, %41, %c0_20, %c0_21] : memref<1x32x16x208xbf16, #tpu.memory_space<vmem>>, vector<1x1x16x208xbf16>
      %43 = vector.shape_cast %42 : vector<1x1x16x208xbf16> to vector<1x16x208xbf16>
      %44 = vector.shape_cast %43 : vector<1x16x208xbf16> to vector<16x208xbf16>
      %45 = vector.extract_strided_slice %44 {offsets = [0, 0], sizes = [16, 206], strides = [1, 1]} : vector<16x208xbf16> to vector<16x206xbf16>
      %cst_22 = arith.constant dense<0.000000e+00> : vector<16x206xf32>
      %46 = tpu.matmul %9, %45, %cst_22 {dimension_numbers = #tpu.dot_dimension_numbers<[1], [0], [0], [1], [0, 0, 1, 1], [], []>} : vector<16x16xbf16>, vector<16x206xbf16>, vector<16x206xf32> -> vector<16x206xf32>
      %47 = arith.addf %39, %46 : vector<16x206xf32>
      %48 = vector.extract_strided_slice %44 {offsets = [0, 1], sizes = [16, 206], strides = [1, 1]} : vector<16x208xbf16> to vector<16x206xbf16>
      %cst_23 = arith.constant dense<0.000000e+00> : vector<16x206xf32>
      %49 = tpu.matmul %10, %48, %cst_23 {dimension_numbers = #tpu.dot_dimension_numbers<[1], [0], [0], [1], [0, 0, 1, 1], [], []>} : vector<16x16xbf16>, vector<16x206xbf16>, vector<16x206xf32> -> vector<16x206xf32>
      %50 = arith.addf %47, %49 : vector<16x206xf32>
      %51 = vector.extract_strided_slice %44 {offsets = [0, 2], sizes = [16, 206], strides = [1, 1]} : vector<16x208xbf16> to vector<16x206xbf16>
      %cst_24 = arith.constant dense<0.000000e+00> : vector<16x206xf32>
      %52 = tpu.matmul %11, %51, %cst_24 {dimension_numbers = #tpu.dot_dimension_numbers<[1], [0], [0], [1], [0, 0, 1, 1], [], []>} : vector<16x16xbf16>, vector<16x206xbf16>, vector<16x206xf32> -> vector<16x206xf32>
      %53 = arith.addf %50, %52 : vector<16x206xf32>
      %54 = vector.broadcast %1 : vector<16x1xf32> to vector<16x206xf32>
      %55 = arith.mulf %53, %54 : vector<16x206xf32>
      %56 = vector.broadcast %2 : vector<16x1xf32> to vector<16x206xf32>
      %57 = arith.addf %55, %56 : vector<16x206xf32>
      %cst_25 = arith.constant 0.000000e+00 : f32
      %58 = vector.broadcast %cst_25 : f32 to vector<16x206xf32>
      %59 = arith.maximumf %57, %58 : vector<16x206xf32>
      %60 = vector.shape_cast %59 : vector<16x206xf32> to vector<1x16x206xf32>
      %61 = arith.truncf %60 : vector<1x16x206xf32> to vector<1x16x206xbf16>
      %c0_26 = arith.constant 0 : index
      %62 = arith.index_cast %arg6 : i32 to index
      %c0_27 = arith.constant 0 : index
      %c0_28 = arith.constant 0 : index
      %63 = vector.load %arg5[%c0_26, %62, %c0_27, %c0_28] : memref<1x30x16x206xbf16, #tpu.memory_space<vmem>>, vector<1x1x16x206xbf16>
      %64 = vector.shape_cast %63 : vector<1x1x16x206xbf16> to vector<1x16x206xbf16>
      %65 = vector.shape_cast %61 : vector<1x16x206xbf16> to vector<1x1x16x206xbf16>
      tpu.vector_store %arg5[%c0_26, %62, %c0_27, %c0_28], %65 {strides = array<i32>} : memref<1x30x16x206xbf16, #tpu.memory_space<vmem>>, vector<1x1x16x206xbf16>,
    }
    %c30_i32_5 = arith.constant 30 : i32
    return
  }
  func.func @transform_0(%arg0: i32) -> (i32, i32, i32, i32) {
    %c0_i32 = arith.constant 0 : i32
    %c0_i32_0 = arith.constant 0 : i32
    %c0_i32_1 = arith.constant 0 : i32
    %c0_i32_2 = arith.constant 0 : i32
    return %arg0, %c0_i32, %c0_i32_0, %c0_i32_1 : i32, i32, i32, i32
  }
  func.func @transform_1(%arg0: i32) -> (i32, i32) {
    %c0_i32 = arith.constant 0 : i32
    %c0_i32_0 = arith.constant 0 : i32
    %c0_i32_1 = arith.constant 0 : i32
    return %c0_i32, %c0_i32_0 : i32, i32
  }
  func.func @transform_2(%arg0: i32) -> (i32, i32) {
    %c0_i32 = arith.constant 0 : i32
    %c0_i32_0 = arith.constant 0 : i32
    %c0_i32_1 = arith.constant 0 : i32
    return %c0_i32, %c0_i32_0 : i32, i32
  }
  func.func @transform_3(%arg0: i32) -> (i32, i32) {
    %c0_i32 = arith.constant 0 : i32
    %c0_i32_0 = arith.constant 0 : i32
    %c0_i32_1 = arith.constant 0 : i32
    return %c0_i32, %c0_i32_0 : i32, i32
  }
  func.func @transform_4(%arg0: i32) -> (i32, i32, i32, i32) {
    %c0_i32 = arith.constant 0 : i32
    %c0_i32_0 = arith.constant 0 : i32
    %c0_i32_1 = arith.constant 0 : i32
    %c0_i32_2 = arith.constant 0 : i32
    return %arg0, %c0_i32, %c0_i32_0, %c0_i32_1 : i32, i32, i32, i32
  }
}

module attributes {stable_mosaic.version = 11 : i64} {
  func.func @_conv_rowmm_kernel(%arg0: i32, %arg1: memref<1x32x16x208xbf16, #tpu.memory_space<vmem>>, %arg2: memref<32x144xbf16, #tpu.memory_space<vmem>>, %arg3: memref<32x1xf32, #tpu.memory_space<vmem>>, %arg4: memref<32x1xf32, #tpu.memory_space<vmem>>, %arg5: memref<1x15x32x206xbf16, #tpu.memory_space<vmem>>) attributes {dimension_semantics = [#tpu.dimension_semantics<parallel>], iteration_bounds = array<i64: 2>, scalar_prefetch = 0 : i64, scratch_operands = 0 : i64, tpu.core_type = #tpu.core_type<tc>, window_params = [{transform_indices = @transform_0, window_bounds = array<i64: 1, 32, 16, 208>}, {pipeline_mode = #tpu.pipeline_mode<synchronous>, transform_indices = @transform_1, window_bounds = array<i64: 32, 144>}, {pipeline_mode = #tpu.pipeline_mode<synchronous>, transform_indices = @transform_2, window_bounds = array<i64: 32, 1>}, {pipeline_mode = #tpu.pipeline_mode<synchronous>, transform_indices = @transform_3, window_bounds = array<i64: 32, 1>}, {transform_indices = @transform_4, window_bounds = array<i64: 1, 15, 32, 206>}]} {
    %c0 = arith.constant 0 : index
    %c0_0 = arith.constant 0 : index
    %0 = vector.load %arg2[%c0, %c0_0] : memref<32x144xbf16, #tpu.memory_space<vmem>>, vector<32x144xbf16>
    %c0_1 = arith.constant 0 : index
    %c0_2 = arith.constant 0 : index
    %1 = vector.load %arg3[%c0_1, %c0_2] : memref<32x1xf32, #tpu.memory_space<vmem>>, vector<32x1xf32>
    %c0_3 = arith.constant 0 : index
    %c0_4 = arith.constant 0 : index
    %2 = vector.load %arg4[%c0_3, %c0_4] : memref<32x1xf32, #tpu.memory_space<vmem>>, vector<32x1xf32>
    %3 = vector.extract_strided_slice %0 {offsets = [0, 0], sizes = [32, 16], strides = [1, 1]} : vector<32x144xbf16> to vector<32x16xbf16>
    %4 = vector.extract_strided_slice %0 {offsets = [0, 16], sizes = [32, 16], strides = [1, 1]} : vector<32x144xbf16> to vector<32x16xbf16>
    %5 = vector.extract_strided_slice %0 {offsets = [0, 32], sizes = [32, 16], strides = [1, 1]} : vector<32x144xbf16> to vector<32x16xbf16>
    %6 = vector.extract_strided_slice %0 {offsets = [0, 48], sizes = [32, 16], strides = [1, 1]} : vector<32x144xbf16> to vector<32x16xbf16>
    %7 = vector.extract_strided_slice %0 {offsets = [0, 64], sizes = [32, 16], strides = [1, 1]} : vector<32x144xbf16> to vector<32x16xbf16>
    %8 = vector.extract_strided_slice %0 {offsets = [0, 80], sizes = [32, 16], strides = [1, 1]} : vector<32x144xbf16> to vector<32x16xbf16>
    %9 = vector.extract_strided_slice %0 {offsets = [0, 96], sizes = [32, 16], strides = [1, 1]} : vector<32x144xbf16> to vector<32x16xbf16>
    %10 = vector.extract_strided_slice %0 {offsets = [0, 112], sizes = [32, 16], strides = [1, 1]} : vector<32x144xbf16> to vector<32x16xbf16>
    %11 = vector.extract_strided_slice %0 {offsets = [0, 128], sizes = [32, 16], strides = [1, 1]} : vector<32x144xbf16> to vector<32x16xbf16>
    %c0_i32 = arith.constant 0 : i32
    %c15_i32 = arith.constant 15 : i32
    %12 = arith.addi %c0_i32, %c15_i32 : i32
    %c1_i32 = arith.constant 1 : i32
    scf.for %arg6 = %c0_i32 to %12 step %c1_i32  : i32 {
      %c2_i32 = arith.constant 2 : i32
      %13 = arith.muli %c2_i32, %arg6 : i32
      %c0_i32_6 = arith.constant 0 : i32
      %14 = arith.addi %13, %c0_i32_6 : i32
      %c0_7 = arith.constant 0 : index
      %15 = arith.index_cast %14 : i32 to index
      %c0_8 = arith.constant 0 : index
      %c0_9 = arith.constant 0 : index
      %16 = vector.load %arg1[%c0_7, %15, %c0_8, %c0_9] : memref<1x32x16x208xbf16, #tpu.memory_space<vmem>>, vector<1x1x16x208xbf16>
      %17 = vector.shape_cast %16 : vector<1x1x16x208xbf16> to vector<1x16x208xbf16>
      %18 = vector.shape_cast %17 : vector<1x16x208xbf16> to vector<16x208xbf16>
      %19 = vector.extract_strided_slice %18 {offsets = [0, 0], sizes = [16, 206], strides = [1, 1]} : vector<16x208xbf16> to vector<16x206xbf16>
      %cst = arith.constant dense<0.000000e+00> : vector<32x206xf32>
      %20 = tpu.matmul %3, %19, %cst {dimension_numbers = #tpu.dot_dimension_numbers<[1], [0], [0], [1], [0, 0, 1, 1], [], []>} : vector<32x16xbf16>, vector<16x206xbf16>, vector<32x206xf32> -> vector<32x206xf32>
      %21 = vector.extract_strided_slice %18 {offsets = [0, 1], sizes = [16, 206], strides = [1, 1]} : vector<16x208xbf16> to vector<16x206xbf16>
      %cst_10 = arith.constant dense<0.000000e+00> : vector<32x206xf32>
      %22 = tpu.matmul %4, %21, %cst_10 {dimension_numbers = #tpu.dot_dimension_numbers<[1], [0], [0], [1], [0, 0, 1, 1], [], []>} : vector<32x16xbf16>, vector<16x206xbf16>, vector<32x206xf32> -> vector<32x206xf32>
      %23 = arith.addf %20, %22 : vector<32x206xf32>
      %24 = vector.extract_strided_slice %18 {offsets = [0, 2], sizes = [16, 206], strides = [1, 1]} : vector<16x208xbf16> to vector<16x206xbf16>
      %cst_11 = arith.constant dense<0.000000e+00> : vector<32x206xf32>
      %25 = tpu.matmul %5, %24, %cst_11 {dimension_numbers = #tpu.dot_dimension_numbers<[1], [0], [0], [1], [0, 0, 1, 1], [], []>} : vector<32x16xbf16>, vector<16x206xbf16>, vector<32x206xf32> -> vector<32x206xf32>
      %26 = arith.addf %23, %25 : vector<32x206xf32>
      %c1_i32_12 = arith.constant 1 : i32
      %27 = arith.addi %13, %c1_i32_12 : i32
      %c0_13 = arith.constant 0 : index
      %28 = arith.index_cast %27 : i32 to index
      %c0_14 = arith.constant 0 : index
      %c0_15 = arith.constant 0 : index
      %29 = vector.load %arg1[%c0_13, %28, %c0_14, %c0_15] : memref<1x32x16x208xbf16, #tpu.memory_space<vmem>>, vector<1x1x16x208xbf16>
      %30 = vector.shape_cast %29 : vector<1x1x16x208xbf16> to vector<1x16x208xbf16>
      %31 = vector.shape_cast %30 : vector<1x16x208xbf16> to vector<16x208xbf16>
      %32 = vector.extract_strided_slice %31 {offsets = [0, 0], sizes = [16, 206], strides = [1, 1]} : vector<16x208xbf16> to vector<16x206xbf16>
      %cst_16 = arith.constant dense<0.000000e+00> : vector<32x206xf32>
      %33 = tpu.matmul %6, %32, %cst_16 {dimension_numbers = #tpu.dot_dimension_numbers<[1], [0], [0], [1], [0, 0, 1, 1], [], []>} : vector<32x16xbf16>, vector<16x206xbf16>, vector<32x206xf32> -> vector<32x206xf32>
      %34 = arith.addf %26, %33 : vector<32x206xf32>
      %35 = vector.extract_strided_slice %31 {offsets = [0, 1], sizes = [16, 206], strides = [1, 1]} : vector<16x208xbf16> to vector<16x206xbf16>
      %cst_17 = arith.constant dense<0.000000e+00> : vector<32x206xf32>
      %36 = tpu.matmul %7, %35, %cst_17 {dimension_numbers = #tpu.dot_dimension_numbers<[1], [0], [0], [1], [0, 0, 1, 1], [], []>} : vector<32x16xbf16>, vector<16x206xbf16>, vector<32x206xf32> -> vector<32x206xf32>
      %37 = arith.addf %34, %36 : vector<32x206xf32>
      %38 = vector.extract_strided_slice %31 {offsets = [0, 2], sizes = [16, 206], strides = [1, 1]} : vector<16x208xbf16> to vector<16x206xbf16>
      %cst_18 = arith.constant dense<0.000000e+00> : vector<32x206xf32>
      %39 = tpu.matmul %8, %38, %cst_18 {dimension_numbers = #tpu.dot_dimension_numbers<[1], [0], [0], [1], [0, 0, 1, 1], [], []>} : vector<32x16xbf16>, vector<16x206xbf16>, vector<32x206xf32> -> vector<32x206xf32>
      %40 = arith.addf %37, %39 : vector<32x206xf32>
      %c2_i32_19 = arith.constant 2 : i32
      %41 = arith.addi %13, %c2_i32_19 : i32
      %c0_20 = arith.constant 0 : index
      %42 = arith.index_cast %41 : i32 to index
      %c0_21 = arith.constant 0 : index
      %c0_22 = arith.constant 0 : index
      %43 = vector.load %arg1[%c0_20, %42, %c0_21, %c0_22] : memref<1x32x16x208xbf16, #tpu.memory_space<vmem>>, vector<1x1x16x208xbf16>
      %44 = vector.shape_cast %43 : vector<1x1x16x208xbf16> to vector<1x16x208xbf16>
      %45 = vector.shape_cast %44 : vector<1x16x208xbf16> to vector<16x208xbf16>
      %46 = vector.extract_strided_slice %45 {offsets = [0, 0], sizes = [16, 206], strides = [1, 1]} : vector<16x208xbf16> to vector<16x206xbf16>
      %cst_23 = arith.constant dense<0.000000e+00> : vector<32x206xf32>
      %47 = tpu.matmul %9, %46, %cst_23 {dimension_numbers = #tpu.dot_dimension_numbers<[1], [0], [0], [1], [0, 0, 1, 1], [], []>} : vector<32x16xbf16>, vector<16x206xbf16>, vector<32x206xf32> -> vector<32x206xf32>
      %48 = arith.addf %40, %47 : vector<32x206xf32>
      %49 = vector.extract_strided_slice %45 {offsets = [0, 1], sizes = [16, 206], strides = [1, 1]} : vector<16x208xbf16> to vector<16x206xbf16>
      %cst_24 = arith.constant dense<0.000000e+00> : vector<32x206xf32>
      %50 = tpu.matmul %10, %49, %cst_24 {dimension_numbers = #tpu.dot_dimension_numbers<[1], [0], [0], [1], [0, 0, 1, 1], [], []>} : vector<32x16xbf16>, vector<16x206xbf16>, vector<32x206xf32> -> vector<32x206xf32>
      %51 = arith.addf %48, %50 : vector<32x206xf32>
      %52 = vector.extract_strided_slice %45 {offsets = [0, 2], sizes = [16, 206], strides = [1, 1]} : vector<16x208xbf16> to vector<16x206xbf16>
      %cst_25 = arith.constant dense<0.000000e+00> : vector<32x206xf32>
      %53 = tpu.matmul %11, %52, %cst_25 {dimension_numbers = #tpu.dot_dimension_numbers<[1], [0], [0], [1], [0, 0, 1, 1], [], []>} : vector<32x16xbf16>, vector<16x206xbf16>, vector<32x206xf32> -> vector<32x206xf32>
      %54 = arith.addf %51, %53 : vector<32x206xf32>
      %55 = vector.broadcast %1 : vector<32x1xf32> to vector<32x206xf32>
      %56 = arith.mulf %54, %55 : vector<32x206xf32>
      %57 = vector.broadcast %2 : vector<32x1xf32> to vector<32x206xf32>
      %58 = arith.addf %56, %57 : vector<32x206xf32>
      %cst_26 = arith.constant 0.000000e+00 : f32
      %59 = vector.broadcast %cst_26 : f32 to vector<32x206xf32>
      %60 = arith.maximumf %58, %59 : vector<32x206xf32>
      %c2_i32_27 = arith.constant 2 : i32
      %61 = arith.muli %c2_i32_27, %arg6 : i32
      %c1_i32_28 = arith.constant 1 : i32
      %62 = arith.addi %61, %c1_i32_28 : i32
      %c0_i32_29 = arith.constant 0 : i32
      %63 = arith.addi %62, %c0_i32_29 : i32
      %c0_30 = arith.constant 0 : index
      %64 = arith.index_cast %63 : i32 to index
      %c0_31 = arith.constant 0 : index
      %c0_32 = arith.constant 0 : index
      %65 = vector.load %arg1[%c0_30, %64, %c0_31, %c0_32] : memref<1x32x16x208xbf16, #tpu.memory_space<vmem>>, vector<1x1x16x208xbf16>
      %66 = vector.shape_cast %65 : vector<1x1x16x208xbf16> to vector<1x16x208xbf16>
      %67 = vector.shape_cast %66 : vector<1x16x208xbf16> to vector<16x208xbf16>
      %68 = vector.extract_strided_slice %67 {offsets = [0, 0], sizes = [16, 206], strides = [1, 1]} : vector<16x208xbf16> to vector<16x206xbf16>
      %cst_33 = arith.constant dense<0.000000e+00> : vector<32x206xf32>
      %69 = tpu.matmul %3, %68, %cst_33 {dimension_numbers = #tpu.dot_dimension_numbers<[1], [0], [0], [1], [0, 0, 1, 1], [], []>} : vector<32x16xbf16>, vector<16x206xbf16>, vector<32x206xf32> -> vector<32x206xf32>
      %70 = vector.extract_strided_slice %67 {offsets = [0, 1], sizes = [16, 206], strides = [1, 1]} : vector<16x208xbf16> to vector<16x206xbf16>
      %cst_34 = arith.constant dense<0.000000e+00> : vector<32x206xf32>
      %71 = tpu.matmul %4, %70, %cst_34 {dimension_numbers = #tpu.dot_dimension_numbers<[1], [0], [0], [1], [0, 0, 1, 1], [], []>} : vector<32x16xbf16>, vector<16x206xbf16>, vector<32x206xf32> -> vector<32x206xf32>
      %72 = arith.addf %69, %71 : vector<32x206xf32>
      %73 = vector.extract_strided_slice %67 {offsets = [0, 2], sizes = [16, 206], strides = [1, 1]} : vector<16x208xbf16> to vector<16x206xbf16>
      %cst_35 = arith.constant dense<0.000000e+00> : vector<32x206xf32>
      %74 = tpu.matmul %5, %73, %cst_35 {dimension_numbers = #tpu.dot_dimension_numbers<[1], [0], [0], [1], [0, 0, 1, 1], [], []>} : vector<32x16xbf16>, vector<16x206xbf16>, vector<32x206xf32> -> vector<32x206xf32>
      %75 = arith.addf %72, %74 : vector<32x206xf32>
      %c1_i32_36 = arith.constant 1 : i32
      %76 = arith.addi %62, %c1_i32_36 : i32
      %c0_37 = arith.constant 0 : index
      %77 = arith.index_cast %76 : i32 to index
      %c0_38 = arith.constant 0 : index
      %c0_39 = arith.constant 0 : index
      %78 = vector.load %arg1[%c0_37, %77, %c0_38, %c0_39] : memref<1x32x16x208xbf16, #tpu.memory_space<vmem>>, vector<1x1x16x208xbf16>
      %79 = vector.shape_cast %78 : vector<1x1x16x208xbf16> to vector<1x16x208xbf16>
      %80 = vector.shape_cast %79 : vector<1x16x208xbf16> to vector<16x208xbf16>
      %81 = vector.extract_strided_slice %80 {offsets = [0, 0], sizes = [16, 206], strides = [1, 1]} : vector<16x208xbf16> to vector<16x206xbf16>
      %cst_40 = arith.constant dense<0.000000e+00> : vector<32x206xf32>
      %82 = tpu.matmul %6, %81, %cst_40 {dimension_numbers = #tpu.dot_dimension_numbers<[1], [0], [0], [1], [0, 0, 1, 1], [], []>} : vector<32x16xbf16>, vector<16x206xbf16>, vector<32x206xf32> -> vector<32x206xf32>
      %83 = arith.addf %75, %82 : vector<32x206xf32>
      %84 = vector.extract_strided_slice %80 {offsets = [0, 1], sizes = [16, 206], strides = [1, 1]} : vector<16x208xbf16> to vector<16x206xbf16>
      %cst_41 = arith.constant dense<0.000000e+00> : vector<32x206xf32>
      %85 = tpu.matmul %7, %84, %cst_41 {dimension_numbers = #tpu.dot_dimension_numbers<[1], [0], [0], [1], [0, 0, 1, 1], [], []>} : vector<32x16xbf16>, vector<16x206xbf16>, vector<32x206xf32> -> vector<32x206xf32>
      %86 = arith.addf %83, %85 : vector<32x206xf32>
      %87 = vector.extract_strided_slice %80 {offsets = [0, 2], sizes = [16, 206], strides = [1, 1]} : vector<16x208xbf16> to vector<16x206xbf16>
      %cst_42 = arith.constant dense<0.000000e+00> : vector<32x206xf32>
      %88 = tpu.matmul %8, %87, %cst_42 {dimension_numbers = #tpu.dot_dimension_numbers<[1], [0], [0], [1], [0, 0, 1, 1], [], []>} : vector<32x16xbf16>, vector<16x206xbf16>, vector<32x206xf32> -> vector<32x206xf32>
      %89 = arith.addf %86, %88 : vector<32x206xf32>
      %c2_i32_43 = arith.constant 2 : i32
      %90 = arith.addi %62, %c2_i32_43 : i32
      %c0_44 = arith.constant 0 : index
      %91 = arith.index_cast %90 : i32 to index
      %c0_45 = arith.constant 0 : index
      %c0_46 = arith.constant 0 : index
      %92 = vector.load %arg1[%c0_44, %91, %c0_45, %c0_46] : memref<1x32x16x208xbf16, #tpu.memory_space<vmem>>, vector<1x1x16x208xbf16>
      %93 = vector.shape_cast %92 : vector<1x1x16x208xbf16> to vector<1x16x208xbf16>
      %94 = vector.shape_cast %93 : vector<1x16x208xbf16> to vector<16x208xbf16>
      %95 = vector.extract_strided_slice %94 {offsets = [0, 0], sizes = [16, 206], strides = [1, 1]} : vector<16x208xbf16> to vector<16x206xbf16>
      %cst_47 = arith.constant dense<0.000000e+00> : vector<32x206xf32>
      %96 = tpu.matmul %9, %95, %cst_47 {dimension_numbers = #tpu.dot_dimension_numbers<[1], [0], [0], [1], [0, 0, 1, 1], [], []>} : vector<32x16xbf16>, vector<16x206xbf16>, vector<32x206xf32> -> vector<32x206xf32>
      %97 = arith.addf %89, %96 : vector<32x206xf32>
      %98 = vector.extract_strided_slice %94 {offsets = [0, 1], sizes = [16, 206], strides = [1, 1]} : vector<16x208xbf16> to vector<16x206xbf16>
      %cst_48 = arith.constant dense<0.000000e+00> : vector<32x206xf32>
      %99 = tpu.matmul %10, %98, %cst_48 {dimension_numbers = #tpu.dot_dimension_numbers<[1], [0], [0], [1], [0, 0, 1, 1], [], []>} : vector<32x16xbf16>, vector<16x206xbf16>, vector<32x206xf32> -> vector<32x206xf32>
      %100 = arith.addf %97, %99 : vector<32x206xf32>
      %101 = vector.extract_strided_slice %94 {offsets = [0, 2], sizes = [16, 206], strides = [1, 1]} : vector<16x208xbf16> to vector<16x206xbf16>
      %cst_49 = arith.constant dense<0.000000e+00> : vector<32x206xf32>
      %102 = tpu.matmul %11, %101, %cst_49 {dimension_numbers = #tpu.dot_dimension_numbers<[1], [0], [0], [1], [0, 0, 1, 1], [], []>} : vector<32x16xbf16>, vector<16x206xbf16>, vector<32x206xf32> -> vector<32x206xf32>
      %103 = arith.addf %100, %102 : vector<32x206xf32>
      %104 = vector.broadcast %1 : vector<32x1xf32> to vector<32x206xf32>
      %105 = arith.mulf %103, %104 : vector<32x206xf32>
      %106 = vector.broadcast %2 : vector<32x1xf32> to vector<32x206xf32>
      %107 = arith.addf %105, %106 : vector<32x206xf32>
      %cst_50 = arith.constant 0.000000e+00 : f32
      %108 = vector.broadcast %cst_50 : f32 to vector<32x206xf32>
      %109 = arith.maximumf %107, %108 : vector<32x206xf32>
      %110 = arith.maximumf %60, %109 : vector<32x206xf32>
      %111 = vector.shape_cast %110 : vector<32x206xf32> to vector<1x32x206xf32>
      %112 = arith.truncf %111 : vector<1x32x206xf32> to vector<1x32x206xbf16>
      %c0_51 = arith.constant 0 : index
      %113 = arith.index_cast %arg6 : i32 to index
      %c0_52 = arith.constant 0 : index
      %c0_53 = arith.constant 0 : index
      %114 = vector.load %arg5[%c0_51, %113, %c0_52, %c0_53] : memref<1x15x32x206xbf16, #tpu.memory_space<vmem>>, vector<1x1x32x206xbf16>
      %115 = vector.shape_cast %114 : vector<1x1x32x206xbf16> to vector<1x32x206xbf16>
      %116 = vector.shape_cast %112 : vector<1x32x206xbf16> to vector<1x1x32x206xbf16>
      tpu.vector_store %arg5[%c0_51, %113, %c0_52, %c0_53], %116 {strides = array<i32>} : memref<1x15x32x206xbf16, #tpu.memory_space<vmem>>, vector<1x1x32x206xbf16>,
    }
    %c15_i32_5 = arith.constant 15 : i32
    return
  }
  func.func @transform_0(%arg0: i32) -> (i32, i32, i32, i32) {
    %c0_i32 = arith.constant 0 : i32
    %c0_i32_0 = arith.constant 0 : i32
    %c0_i32_1 = arith.constant 0 : i32
    %c0_i32_2 = arith.constant 0 : i32
    return %arg0, %c0_i32, %c0_i32_0, %c0_i32_1 : i32, i32, i32, i32
  }
  func.func @transform_1(%arg0: i32) -> (i32, i32) {
    %c0_i32 = arith.constant 0 : i32
    %c0_i32_0 = arith.constant 0 : i32
    %c0_i32_1 = arith.constant 0 : i32
    return %c0_i32, %c0_i32_0 : i32, i32
  }
  func.func @transform_2(%arg0: i32) -> (i32, i32) {
    %c0_i32 = arith.constant 0 : i32
    %c0_i32_0 = arith.constant 0 : i32
    %c0_i32_1 = arith.constant 0 : i32
    return %c0_i32, %c0_i32_0 : i32, i32
  }
  func.func @transform_3(%arg0: i32) -> (i32, i32) {
    %c0_i32 = arith.constant 0 : i32
    %c0_i32_0 = arith.constant 0 : i32
    %c0_i32_1 = arith.constant 0 : i32
    return %c0_i32, %c0_i32_0 : i32, i32
  }
  func.func @transform_4(%arg0: i32) -> (i32, i32, i32, i32) {
    %c0_i32 = arith.constant 0 : i32
    %c0_i32_0 = arith.constant 0 : i32
    %c0_i32_1 = arith.constant 0 : i32
    %c0_i32_2 = arith.constant 0 : i32
    return %arg0, %c0_i32, %c0_i32_0, %c0_i32_1 : i32, i32, i32, i32
  }
}

module attributes {stable_mosaic.version = 11 : i64} {
  func.func @_matmul_affine_acc_kernel(%arg0: i32, %arg1: i32, %arg2: i32, %arg3: memref<2x3584xbf16, #tpu.memory_space<vmem>>, %arg4: memref<3584x512xbf16, #tpu.memory_space<vmem>>, %arg5: memref<1x512xf32, #tpu.memory_space<vmem>>, %arg6: memref<1x512xf32, #tpu.memory_space<vmem>>, %arg7: memref<2x512xf32, #tpu.memory_space<vmem>>, %arg8: memref<2x512xf32, #tpu.memory_space<vmem>>) attributes {dimension_semantics = [#tpu.dimension_semantics<parallel>, #tpu.dimension_semantics<parallel>, #tpu.dimension_semantics<arbitrary>], iteration_bounds = array<i64: 1, 2, 14>, scalar_prefetch = 0 : i64, scratch_operands = 1 : i64, tpu.core_type = #tpu.core_type<tc>, window_params = [{transform_indices = @transform_0, window_bounds = array<i64: 2, 3584>}, {transform_indices = @transform_1, window_bounds = array<i64: 3584, 512>}, {transform_indices = @transform_2, window_bounds = array<i64: 1, 512>}, {transform_indices = @transform_3, window_bounds = array<i64: 1, 512>}, {transform_indices = @transform_4, window_bounds = array<i64: 2, 512>}]} {
    %c0_i32 = arith.constant 0 : i32
    %0 = arith.cmpi eq, %arg2, %c0_i32 : i32
    %1 = arith.extui %0 : i1 to i32
    %c0_i32_0 = arith.constant 0 : i32
    %2 = arith.cmpi ne, %1, %c0_i32_0 : i32
    scf.if %2 {
      %cst_9 = arith.constant 0.000000e+00 : f32
      %12 = vector.broadcast %cst_9 : f32 to vector<2x512xf32>
      %c0_10 = arith.constant 0 : index
      %c0_11 = arith.constant 0 : index
      %13 = vector.load %arg8[%c0_10, %c0_11] : memref<2x512xf32, #tpu.memory_space<vmem>>, vector<2x512xf32>
      tpu.vector_store %arg8[%c0_10, %c0_11], %12 {strides = array<i32>} : memref<2x512xf32, #tpu.memory_space<vmem>>, vector<2x512xf32>,
    } else {
    }
    %c0 = arith.constant 0 : index
    %c0_1 = arith.constant 0 : index
    %3 = vector.load %arg8[%c0, %c0_1] : memref<2x512xf32, #tpu.memory_space<vmem>>, vector<2x512xf32>
    %c0_2 = arith.constant 0 : index
    %c0_3 = arith.constant 0 : index
    %4 = vector.load %arg3[%c0_2, %c0_3] : memref<2x3584xbf16, #tpu.memory_space<vmem>>, vector<2x3584xbf16>
    %c0_4 = arith.constant 0 : index
    %c0_5 = arith.constant 0 : index
    %5 = vector.load %arg4[%c0_4, %c0_5] : memref<3584x512xbf16, #tpu.memory_space<vmem>>, vector<3584x512xbf16>
    %cst = arith.constant dense<0.000000e+00> : vector<2x512xf32>
    %6 = tpu.matmul %4, %5, %cst {dimension_numbers = #tpu.dot_dimension_numbers<[1], [0], [0], [1], [0, 0, 1, 1], [], []>} : vector<2x3584xbf16>, vector<3584x512xbf16>, vector<2x512xf32> -> vector<2x512xf32>
    %7 = arith.addf %3, %6 : vector<2x512xf32>
    %c0_6 = arith.constant 0 : index
    %c0_7 = arith.constant 0 : index
    %8 = vector.load %arg8[%c0_6, %c0_7] : memref<2x512xf32, #tpu.memory_space<vmem>>, vector<2x512xf32>
    tpu.vector_store %arg8[%c0_6, %c0_7], %7 {strides = array<i32>} : memref<2x512xf32, #tpu.memory_space<vmem>>, vector<2x512xf32>,
    %c13_i32 = arith.constant 13 : i32
    %9 = arith.cmpi eq, %arg2, %c13_i32 : i32
    %10 = arith.extui %9 : i1 to i32
    %c0_i32_8 = arith.constant 0 : i32
    %11 = arith.cmpi ne, %10, %c0_i32_8 : i32
    scf.if %11 {
      %c0_9 = arith.constant 0 : index
      %c0_10 = arith.constant 0 : index
      %12 = vector.load %arg8[%c0_9, %c0_10] : memref<2x512xf32, #tpu.memory_space<vmem>>, vector<2x512xf32>
      %c0_11 = arith.constant 0 : index
      %c0_12 = arith.constant 0 : index
      %13 = vector.load %arg5[%c0_11, %c0_12] : memref<1x512xf32, #tpu.memory_space<vmem>>, vector<1x512xf32>
      %14 = vector.broadcast %13 : vector<1x512xf32> to vector<2x512xf32>
      %15 = arith.mulf %12, %14 : vector<2x512xf32>
      %c0_13 = arith.constant 0 : index
      %c0_14 = arith.constant 0 : index
      %16 = vector.load %arg6[%c0_13, %c0_14] : memref<1x512xf32, #tpu.memory_space<vmem>>, vector<1x512xf32>
      %17 = vector.broadcast %16 : vector<1x512xf32> to vector<2x512xf32>
      %18 = arith.addf %15, %17 : vector<2x512xf32>
      %cst_15 = arith.constant 0.000000e+00 : f32
      %19 = vector.broadcast %cst_15 : f32 to vector<2x512xf32>
      %20 = arith.maximumf %18, %19 : vector<2x512xf32>
      %c0_16 = arith.constant 0 : index
      %c0_17 = arith.constant 0 : index
      %21 = vector.load %arg7[%c0_16, %c0_17] : memref<2x512xf32, #tpu.memory_space<vmem>>, vector<2x512xf32>
      tpu.vector_store %arg7[%c0_16, %c0_17], %20 {strides = array<i32>} : memref<2x512xf32, #tpu.memory_space<vmem>>, vector<2x512xf32>,
    } else {
    }
    return
  }
  func.func @transform_0(%arg0: i32, %arg1: i32, %arg2: i32) -> (i32, i32) {
    %c0_i32 = arith.constant 0 : i32
    %c0_i32_0 = arith.constant 0 : i32
    return %c0_i32, %arg2 : i32, i32
  }
  func.func @transform_1(%arg0: i32, %arg1: i32, %arg2: i32) -> (i32, i32) {
    %c0_i32 = arith.constant 0 : i32
    return %arg2, %arg1 : i32, i32
  }
  func.func @transform_2(%arg0: i32, %arg1: i32, %arg2: i32) -> (i32, i32) {
    %c0_i32 = arith.constant 0 : i32
    %c0_i32_0 = arith.constant 0 : i32
    return %c0_i32, %arg1 : i32, i32
  }
  func.func @transform_3(%arg0: i32, %arg1: i32, %arg2: i32) -> (i32, i32) {
    %c0_i32 = arith.constant 0 : i32
    %c0_i32_0 = arith.constant 0 : i32
    return %c0_i32, %arg1 : i32, i32
  }
  func.func @transform_4(%arg0: i32, %arg1: i32, %arg2: i32) -> (i32, i32) {
    %c0_i32 = arith.constant 0 : i32
    %c0_i32_0 = arith.constant 0 : i32
    return %c0_i32, %arg1 : i32, i32
  }
}

module attributes {stable_mosaic.version = 11 : i64} {
  func.func @_matmul_affine_k1_kernel(%arg0: i32, %arg1: i32, %arg2: i32, %arg3: memref<2x1024xf32, #tpu.memory_space<vmem>>, %arg4: memref<1024x4xf32, #tpu.memory_space<vmem>>, %arg5: memref<1x4xf32, #tpu.memory_space<vmem>>, %arg6: memref<1x4xf32, #tpu.memory_space<vmem>>, %arg7: memref<2x4xf32, #tpu.memory_space<vmem>>) attributes {dimension_semantics = [#tpu.dimension_semantics<parallel>, #tpu.dimension_semantics<parallel>, #tpu.dimension_semantics<arbitrary>], iteration_bounds = array<i64: 1, 1, 1>, scalar_prefetch = 0 : i64, scratch_operands = 0 : i64, tpu.core_type = #tpu.core_type<tc>, window_params = [{transform_indices = @transform_0, window_bounds = array<i64: 2, 1024>}, {transform_indices = @transform_1, window_bounds = array<i64: 1024, 4>}, {transform_indices = @transform_2, window_bounds = array<i64: 1, 4>}, {transform_indices = @transform_3, window_bounds = array<i64: 1, 4>}, {transform_indices = @transform_4, window_bounds = array<i64: 2, 4>}]} {
    %c0 = arith.constant 0 : index
    %c0_0 = arith.constant 0 : index
    %0 = vector.load %arg3[%c0, %c0_0] : memref<2x1024xf32, #tpu.memory_space<vmem>>, vector<2x1024xf32>
    %c0_1 = arith.constant 0 : index
    %c0_2 = arith.constant 0 : index
    %1 = vector.load %arg4[%c0_1, %c0_2] : memref<1024x4xf32, #tpu.memory_space<vmem>>, vector<1024x4xf32>
    %cst = arith.constant dense<0.000000e+00> : vector<2x4xf32>
    %2 = tpu.matmul %0, %1, %cst {dimension_numbers = #tpu.dot_dimension_numbers<[1], [0], [0], [1], [0, 0, 1, 1], [], []>} : vector<2x1024xf32>, vector<1024x4xf32>, vector<2x4xf32> -> vector<2x4xf32>
    %c0_3 = arith.constant 0 : index
    %c0_4 = arith.constant 0 : index
    %3 = vector.load %arg5[%c0_3, %c0_4] : memref<1x4xf32, #tpu.memory_space<vmem>>, vector<1x4xf32>
    %4 = vector.broadcast %3 : vector<1x4xf32> to vector<2x4xf32>
    %5 = arith.mulf %2, %4 : vector<2x4xf32>
    %c0_5 = arith.constant 0 : index
    %c0_6 = arith.constant 0 : index
    %6 = vector.load %arg6[%c0_5, %c0_6] : memref<1x4xf32, #tpu.memory_space<vmem>>, vector<1x4xf32>
    %7 = vector.broadcast %6 : vector<1x4xf32> to vector<2x4xf32>
    %8 = arith.addf %5, %7 : vector<2x4xf32>
    %c0_7 = arith.constant 0 : index
    %c0_8 = arith.constant 0 : index
    %9 = vector.load %arg7[%c0_7, %c0_8] : memref<2x4xf32, #tpu.memory_space<vmem>>, vector<2x4xf32>
    tpu.vector_store %arg7[%c0_7, %c0_8], %8 {strides = array<i32>} : memref<2x4xf32, #tpu.memory_space<vmem>>, vector<2x4xf32>,
    return
  }
  func.func @transform_0(%arg0: i32, %arg1: i32, %arg2: i32) -> (i32, i32) {
    %c0_i32 = arith.constant 0 : i32
    %c0_i32_0 = arith.constant 0 : i32
    return %c0_i32, %arg2 : i32, i32
  }
  func.func @transform_1(%arg0: i32, %arg1: i32, %arg2: i32) -> (i32, i32) {
    %c0_i32 = arith.constant 0 : i32
    return %arg2, %arg1 : i32, i32
  }
  func.func @transform_2(%arg0: i32, %arg1: i32, %arg2: i32) -> (i32, i32) {
    %c0_i32 = arith.constant 0 : i32
    %c0_i32_0 = arith.constant 0 : i32
    return %c0_i32, %arg1 : i32, i32
  }
  func.func @transform_3(%arg0: i32, %arg1: i32, %arg2: i32) -> (i32, i32) {
    %c0_i32 = arith.constant 0 : i32
    %c0_i32_0 = arith.constant 0 : i32
    return %c0_i32, %arg1 : i32, i32
  }
  func.func @transform_4(%arg0: i32, %arg1: i32, %arg2: i32) -> (i32, i32) {
    %c0_i32 = arith.constant 0 : i32
    %c0_i32_0 = arith.constant 0 : i32
    return %c0_i32, %arg1 : i32, i32
  }
}

</mosaic_0001>

<bundles_post_ra>
// kernel: forward.6
= control target key start
LH: loop header
LB: loop body
LE: loop exit
PB: predicated region body
PF: predicated region fallthrough
CT: control target
= control target key end

     0   :  { %s675_s15 = smov 0   ;;  %s750_s0 = inlined_call_operand.vmem [shape: bf16[2,60,56,412], index: 0, kind: input, shape index: {}]   ;;  %s751_s1 = inlined_call_operand.vmem [shape: bf16[16,56], index: 1, kind: input, shape index: {}]   ;;  %s752_s2 = inlined_call_operand.vmem [shape: f32[16,1], index: 2, kind: input, shape index: {}]   ;;  %s753_s3 = inlined_call_operand.vmem [shape: f32[16,1], index: 3, kind: input, shape index: {}]   ;;  %s754_s4 = inlined_call_operand.vmem [shape: bf16[2,60,16,412], index: 4, kind: output, shape index: {}]  }
   0x1 LB: > { %s547_s16 = sadd.s32 4294967295, %s643_s15   ;;  %p551_p0 = scmp.ge.s32.totalorder %s643_s15, 1  ;;  %s643_s15 = sphi %s675_s15, %s14_s15  }
   0x2   : > { %p162_p1 = scmp.lt.s32.totalorder %s643_s15, 3 }
   0x4   : > { %p163_p2 = pnand %p551_p0, %p162_p1 }
   0x5   : > { %p188_p3 = scmp.lt.s32.totalorder (!%p163_p2), %s547_s16, 1  ;;  %v686_v0 = vld [vmem:[%s751_s1] sm:$0xf] (!%p163_p2)  ;;  %v691_v1 = vld [vmem:[%s751_s1 + $0x4] sm:$0xf] (!%p163_p2)  ;;  %v701_v3 = vld [vmem:[%s752_s2 + $0x8] sm:$0xff] (!%p163_p2) }
   0x6   : > { %166 = sbr.rel (%p163_p2) target bundleno = 262 (0x106), region = 36  ;;  %v696_v2 = vld [vmem:[%s752_s2] sm:$0xff] (!%p163_p2)  ;;  %v711_v5 = vld [vmem:[%s753_s3 + $0x8] sm:$0xff] (!%p163_p2)  ;;  %s723_s11 = smov (!%p163_p2), 0  }
   0x7   : > { %v706_v4 = vld [vmem:[%s753_s3] sm:$0xff] (!%p163_p2) }
   0xd   : > { %s756_s16 = smov (!%p188_p3, %s547_s16), 1 }
   0xe   : > { %s590_s29 = smul.u32 6720, %s756_s16 }
   0xf   : > { %s591_s30 = smul.u32 1920, %s756_s16 }
  0x10   : > { %s716_s7 = scalar_lea.vmem %s750_s0, %s590_s29 }
  0x11   : > { %s721_s10 = scalar_lea.vmem %s754_s4, %s591_s30 }
  0x12 LB: >> { %v649_v6 = vmov 0   ;;  %s584_s12 = smul.u32 112, %s647_s11  ;;  %vm307_vm0 = vcmask 1043456   ;;  %v555_v27 = vcombine.low %v686_v0, %v691_v1  ;;  %vm303_vm1 = vcmask 457728   ;;  %s589_s14 = sshll.u32 %s647_s11, 5  ;;  %s647_s11 = sphi %s723_s11, %s210_s11  }
  0x13   : >> { %352 = vmatprep.mubr.bf16.mxu0 %v649_v6  ;;  %395 = vmatprep.mubr.bf16.mxu1 %v649_v6  ;;  %vm478_vm2 = vcmask 228356   ;;  %s476_s16 = scalar_lea.vmem %s721_s10, %s589_s14  ;;  %s210_s11 = sadd.s32 1, %s647_s11  }
  0x14   : >> { %609 = vset.pattern.permute.xlu0 %v649_v6  ;;  %610 = vset.pattern.permute.xlu1 %v649_v6  ;;  %s213_s13 = scalar_lea.vmem %s716_s7, %s584_s12  ;;  %vm479_vm3 = vmor %vm478_vm2, %vm307_vm0  ;;  %p207_p4 = scmp.ge.s32.totalorder %s210_s11, 60  }
  0x15   : >> { %408 = vperm.xlu0 %609, %v696_v2   ;;  %426 = vperm.xlu1 %610, %v706_v4   ;;  %v611_v7 = vld [vmem:[%s213_s13 + $0x4] ss:$16 sps:$4 sm:$0xff]   ;;  %v613_v8 = vld [vmem:[%s213_s13 + $0xc] ss:$16 sps:$4 sm:$0xff]   ;;  %v615_v9 = vld [vmem:[%s213_s13] ss:$16 sps:$4 sm:$0xff]  }
  0x16   : >> { %320 = vmatprep.subr.bf16.mxu0 %v611_v7  ;;  %v616_v10 = vld [vmem:[%s213_s13 + $0x8] ss:$16 sps:$4 sm:$0xff]   ;;  %363 = vmatprep.subr.bf16.mxu1 %v613_v8  ;;  %v617_v11 = vld [vmem:[%s213_s13 + $0x24] ss:$16 sps:$4 sm:$0xff]   ;;  %v619_v12 = vld [vmem:[%s213_s13 + $0x2c] ss:$16 sps:$4 sm:$0xff]  }
  0x17   : >> { %321 = vmatpush1.bf16.msra.mxu0 %v615_v9  ;;  %364 = vmatpush1.bf16.msra.mxu1 %v616_v10  ;;  %v621_v13 = vld [vmem:[%s213_s13 + $0x20] ss:$16 sps:$4 sm:$0xff]   ;;  %v622_v14 = vld [vmem:[%s213_s13 + $0x28] ss:$16 sps:$4 sm:$0xff]   ;;  %v623_v15 = vld [vmem:[%s213_s13 + $0x44] ss:$16 sps:$4 sm:$0xff]  }
  0x18   : >> { %322 = vmatprep.subr.bf16.mxu0 %v617_v11  ;;  %365 = vmatprep.subr.bf16.mxu1 %v619_v12  ;;  %v625_v16 = vld [vmem:[%s213_s13 + $0x4c] ss:$16 sps:$4 sm:$0xff]   ;;  %v627_v17 = vld [vmem:[%s213_s13 + $0x40] ss:$16 sps:$4 sm:$0xff]   ;;  %v628_v18 = vld [vmem:[%s213_s13 + $0x48] ss:$16 sps:$4 sm:$0xff]  }
  0x19   : >> { %413 = vperm.xlu0 %609, %v701_v3   ;;  %431 = vperm.xlu1 %610, %v711_v5   ;;  %v226_v19 = vld [vmem:[%s213_s13 + $0x60] sm:$0xff]  ;;  %v227_v20 = vld [vmem:[%s213_s13 + $0x68] sm:$0xff] }
  0x1a   : >> { %v569_v21 = vcombine.high %v226_v19, %v226_v19  ;;  %v571_v22 = vcombine.high %v227_v20, %v227_v20  ;;  %v568_v23 = vcombine.low %v226_v19, %v226_v19  ;;  %v570_v24 = vcombine.low %v227_v20, %v227_v20 }
  0x1b   : >> { %323 = vmatpush1.bf16.msra.mxu0 %v621_v13  ;;  %366 = vmatpush1.bf16.msra.mxu1 %v622_v14 }
  0x1c   : >> { %324 = vmatprep.subr.bf16.mxu0 %v623_v15  ;;  %367 = vmatprep.subr.bf16.mxu1 %v625_v16  ;;  %v309_v25 = vsel %vm307_vm0, %v568_v23, 0  ;;  %v315_v26 = vsel %vm307_vm0, %v570_v24, 0 }
  0x1f   : >> { %325 = vmatpush1.bf16.msra.mxu0 %v627_v17  ;;  %368 = vmatpush1.bf16.msra.mxu1 %v628_v18 }
  0x20   : >> { %572 = vmatprep.subr.msk.bf16.mxu0 %vm307_vm0, %v569_v21  ;;  %574 = vmatprep.subr.msk.bf16.mxu1 %vm307_vm0, %v571_v22 }
  0x23   : >> { %327 = vmatpush1.bf16.msra.mxu0 %v309_v25  ;;  %370 = vmatpush1.bf16.msra.mxu1 %v315_v26 }
  0x26   : >> { %573 = vmatmul.mubr.msk.bf16.vlgmr.msra.gmra.mrb[0].mxu0 %vm303_vm1, %v555_v27  ;;  %575 = vmatmul.mubr.msk.bf16.vlgmr.msra.gmra.mrb[0].mxu1 %vm303_vm1, %v555_v27 }
  0x94   : >> { %v409_v28 = vpop.permute.xlu0 %408  ;;  %v427_v29 = vpop.permute.xlu1 %426 }
  0x98   : >> { %v414_v30 = vpop.permute.xlu0 %413  ;;  %v432_v47 = vpop.permute.xlu1 %431 }
  0xf9   : >> { %v354_v31 = vpop.f32.mrb[0].mxu0  ;;  %v397_v32 = vpop.f32.mrb[0].mxu1 }
  0xfa   : >> { %v416_v33 = vmul.f32 %v409_v28, %v354_v31  ;;  %v418_v34 = vmul.f32 %v409_v28, %v397_v32  ;;  %v356_v35 = vpop.f32.mrb[1].mxu0  ;;  %v399_v36 = vpop.f32.mrb[1].mxu1 }
  0xfb   : >> { %v417_v37 = vmul.f32 %v409_v28, %v356_v35  ;;  %v419_v38 = vmul.f32 %v409_v28, %v399_v36  ;;  %v358_v39 = vpop.f32.mrb[2].mxu0  ;;  %v401_v40 = vpop.f32.mrb[2].mxu1 }
  0xfc   : >> { %v434_v41 = vadd.f32 %v427_v29, %v416_v33  ;;  %v436_v42 = vadd.f32 %v427_v29, %v418_v34  ;;  %v420_v43 = vmul.f32 %v414_v30, %v358_v39  ;;  %v422_v44 = vmul.f32 %v414_v30, %v401_v40  ;;  %v360_v45 = vpop.f32.mrb[3].mxu0  ;;  %v403_v46 = vpop.f32.mrb[3].mxu1 }
  0xfd   : >> { %v435_v48 = vadd.f32 %v427_v29, %v417_v37  ;;  %v437_v49 = vadd.f32 %v427_v29, %v419_v38  ;;  %v421_v50 = vmul.f32 %v414_v30, %v360_v45  ;;  %v423_v51 = vmul.f32 %v414_v30, %v403_v46 }
  0xfe   : >> { %v442_v52 = vmax.f32 %v434_v41, 0.0  ;;  %v444_v53 = vmax.f32 %v436_v42, 0.0  ;;  %v438_v54 = vadd.f32 %v432_v47, %v420_v43  ;;  %v440_v55 = vadd.f32 %v432_v47, %v422_v44 }
  0xff   : >> { %v443_v56 = vmax.f32 %v435_v48, 0.0  ;;  %v445_v57 = vmax.f32 %v437_v49, 0.0  ;;  %v439_v58 = vadd.f32 %v432_v47, %v421_v50  ;;  %v441_v59 = vadd.f32 %v432_v47, %v423_v51  ;;  %209 = sbr.rel (!%p207_p4) target bundleno = 18 (0x12), region = 75 }
 0x100   : >> { %v446_v60 = vmax.f32 %v438_v54, 0.0  ;;  %v448_v61 = vmax.f32 %v440_v55, 0.0 }
 0x101   : >> { %v585_v62 = vpack.c.bf16 %v443_v56, %v442_v52  ;;  %v586_v63 = vpack.c.bf16 %v445_v57, %v444_v53  ;;  %v447_v6 = vmax.f32 %v439_v58, 0.0  ;;  %v449_v7 = vmax.f32 %v441_v59, 0.0 }
 0x103   : >> { %477 = vst [vmem:[%s476_s16] sm:$0xff] %v585_v62  ;;  %480 = vst.msk [vmem:[%s476_s16 + $0x8] sm:$0xff] %vm479_vm3, %v586_v63  ;;  %v587_v8 = vpack.c.bf16 %v447_v6, %v446_v60  ;;  %v588_v9 = vpack.c.bf16 %v449_v7, %v448_v61 }
 0x105   : >> { %481 = vst [vmem:[%s476_s16 + $0x10] sm:$0xff] %v587_v8  ;;  %482 = vst.msk [vmem:[%s476_s16 + $0x18] sm:$0xff] %vm479_vm3, %v588_v9 }
 0x106 PF: > { %s14_s15 = sadd.s32 1, %s643_s15  }
 0x107   : > { %p11_p5 = scmp.ge.s32.totalorder %s14_s15, 4  }
 0x109   :  { %13 = sbr.rel (!%p11_p5) target bundleno = 1 (0x1), region = 86 }

// kernel: forward.7
= control target key start
LH: loop header
LB: loop body
LE: loop exit
PB: predicated region body
PF: predicated region fallthrough
CT: control target
= control target key end

     0   :  { %s2674_s15 = smov 0   ;;  %s3082_s0 = inlined_call_operand.vmem [shape: bf16[2,62,16,414], index: 0, kind: input, shape index: {}]   ;;  %s3083_s1 = inlined_call_operand.vmem [shape: bf16[16,144], index: 1, kind: input, shape index: {}]   ;;  %s3084_s2 = inlined_call_operand.vmem [shape: f32[16,1], index: 2, kind: input, shape index: {}]   ;;  %s3085_s3 = inlined_call_operand.vmem [shape: f32[16,1], index: 3, kind: input, shape index: {}]   ;;  %s3086_s4 = inlined_call_operand.vmem [shape: bf16[2,30,16,412], index: 4, kind: output, shape index: {}]  }
   0x1 LB: > { %s2341_s16 = sadd.s32 4294967295, %s2633_s15   ;;  %p2345_p0 = scmp.ge.s32.totalorder %s2633_s15, 1  ;;  %s2633_s15 = sphi %s2674_s15, %s14_s15  }
   0x2   : > { %p162_p1 = scmp.lt.s32.totalorder %s2633_s15, 3 }
   0x4   : > { %p163_p2 = pnand %p2345_p0, %p162_p1 }
   0x5   : > { %p188_p3 = scmp.lt.s32.totalorder (!%p163_p2), %s2341_s16, 1  ;;  %v2685_v0 = vld [vmem:[%s3083_s1] sm:$0xff] (!%p163_p2)  ;;  %v2690_v1 = vld [vmem:[%s3083_s1 + $0x8] sm:$0xff] (!%p163_p2)  ;;  %s2722_s11 = smov (!%p163_p2), 0  }
   0x6   : > { %166 = sbr.rel (%p163_p2) target bundleno = 571 (0x23b), region = 36  ;;  %v2695_v2 = vld [vmem:[%s3084_s2] sm:$0xff] (!%p163_p2)  ;;  %v2700_v3 = vld [vmem:[%s3084_s2 + $0x8] sm:$0xff] (!%p163_p2) }
   0x7   : > { %v2705_v4 = vld [vmem:[%s3085_s3] sm:$0xff] (!%p163_p2)  ;;  %v2710_v5 = vld [vmem:[%s3085_s3 + $0x8] sm:$0xff] (!%p163_p2) }
   0xd   : > { %s3088_s16 = smov (!%p188_p3, %s2341_s16), 1 }
   0xe   : > { %s2569_s29 = smul.u32 1984, %s3088_s16 }
   0xf   : > { %s2570_s30 = smul.u32 960, %s3088_s16 }
  0x10   : > { %s2715_s7 = scalar_lea.vmem %s3082_s0, %s2569_s29 }
  0x11   : > { %s2720_s10 = scalar_lea.vmem %s3086_s4, %s2570_s30 }
  0x12 LB: >> { %v2639_v6 = vmov 0   ;;  %s2432_s12 = sshll.u32 %s2637_s11, 6  ;;  %s2640_s14 = smov 127   ;;  %v2755_v11 = vcombine.low %v2685_v0, %v2690_v1  ;;  %vm250_vm0 = vcmask 1039360   ;;  %vm258_vm1 = vcmask 130048   ;;  %s2637_s11 = sphi %s2722_s11, %s210_s11  }
  0x13   : >> { %337 = vmatprep.mubr.bf16.mxu1 %v2639_v6  ;;  %294 = vmatprep.mubr.bf16.mxu0 %v2639_v6  ;;  %s2733_s13 = scalar_lea.vmem %s2715_s7, %s2432_s12  ;;  %s2641_s16 = smov 112   ;;  %vm451_vm2 = vcmask 1031168   ;;  %vm2259_vm3 = vcmask 1043456   ;;  %vm2260_vm4 = vcmask 228356  }
  0x14   : >> { %2597 = vset.pattern.permute.xlu1 %v2639_v6  ;;  %2598 = vset.pattern.permute.xlu0 %v2639_v6  ;;  %v2736_v7 = vld [vmem:[%s2733_s13 + $0x4] ss:$16 sps:$4 sm:$0xff]   ;;  %v2739_v8 = vld [vmem:[%s2733_s13] ss:$16 sps:$4 sm:$0xff]   ;;  %v2744_v9 = vld [vmem:[%s2733_s13 + $0x8] ss:$16 sps:$4 sm:$0xff]  }
  0x15   : >> { %244 = vrot.lane.b32.xlu0 %v2736_v7, %s2640_s14  ;;  %242 = vrot.lane.b32.xlu1 %v2739_v8, %s2640_s14  ;;  %v2749_v10 = vld [vmem:[%s2733_s13 + $0xc] ss:$16 sps:$4 sm:$0xff]   ;;  %s2642_s17 = smov 126   ;;  %s2643_s18 = smov 96   ;;  %v2770_v12 = vld [vmem:[%s2733_s13 + $0x24] ss:$16 sps:$4 sm:$0xff]   ;;  %vm2261_vm5 = vmor %vm2260_vm4, %vm2259_vm3 }
  0x16   : >> { %s2644_s19 = smov 80   ;;  %v2774_v13 = vld [vmem:[%s2733_s13 + $0x28] ss:$16 sps:$4 sm:$0xff]   ;;  %v2779_v14 = vld [vmem:[%s2733_s13 + $0x20] ss:$16 sps:$4 sm:$0xff]   ;;  %s2645_s20 = smov 64  }
  0x17   : >> { %v2784_v15 = vld [vmem:[%s2733_s13 + $0x2c] ss:$16 sps:$4 sm:$0xff]   ;;  %s2646_s21 = smov 48   ;;  %v2801_v16 = vld [vmem:[%s2733_s13 + $0x44] ss:$16 sps:$4 sm:$0xff]   ;;  %s2647_s22 = smov 32  }
  0x18   : >> { %v2805_v17 = vld [vmem:[%s2733_s13 + $0x48] ss:$16 sps:$4 sm:$0xff]   ;;  %v2810_v18 = vld [vmem:[%s2733_s13 + $0x40] ss:$16 sps:$4 sm:$0xff]   ;;  %v2815_v19 = vld [vmem:[%s2733_s13 + $0x4c] ss:$16 sps:$4 sm:$0xff]  }
  0x19   : >> { %246 = vrot.lane.b32.xlu0 %v2744_v9, %s2640_s14  ;;  %248 = vrot.lane.b32.xlu1 %v2749_v10, %s2640_s14  ;;  %s2648_s23 = smov 16   ;;  %v2829_v20 = vld [vmem:[%s2733_s13 + $0x64] ss:$16 sps:$4 sm:$0xff]   ;;  %v2834_v21 = vld [vmem:[%s2733_s13 + $0x68] ss:$16 sps:$4 sm:$0xff]   ;;  %s2440_s24 = sshll.u32 %s2637_s11, 5 }
  0x1a   : >> { %v2839_v22 = vld [vmem:[%s2733_s13 + $0x60] ss:$16 sps:$4 sm:$0xff]   ;;  %v2844_v23 = vld [vmem:[%s2733_s13 + $0x6c] ss:$16 sps:$4 sm:$0xff]   ;;  %s2257_s25 = scalar_lea.vmem %s2720_s10, %s2440_s24  ;;  %s210_s11 = sadd.s32 1, %s2637_s11  }
  0x1b   : >> { %p207_p4 = scmp.ge.s32.totalorder %s210_s11, 30  }
  0x1d   : >> { %224 = vrot.lane.b32.xlu0 %v2755_v11, %s2641_s16  ;;  %445 = vrot.lane.b32.xlu1 %v2736_v7, %s2642_s17 }
  0x21   : >> { %447 = vrot.lane.b32.xlu0 %v2744_v9, %s2642_s17  ;;  %443 = vrot.lane.b32.xlu1 %v2739_v8, %s2642_s17 }
  0x25   : >> { %449 = vrot.lane.b32.xlu0 %v2749_v10, %s2642_s17  ;;  %441 = vrot.lane.b32.xlu1 %v2755_v11, %s2643_s18 }
  0x29   : >> { %564 = vrot.lane.b32.xlu0 %v2755_v11, %s2644_s19  ;;  %687 = vrot.lane.b32.xlu1 %v2770_v12, %s2640_s14 }
  0x2d   : >> { %689 = vrot.lane.b32.xlu0 %v2774_v13, %s2640_s14  ;;  %685 = vrot.lane.b32.xlu1 %v2779_v14, %s2640_s14 }
  0x31   : >> { %691 = vrot.lane.b32.xlu0 %v2784_v15, %s2640_s14  ;;  %683 = vrot.lane.b32.xlu1 %v2755_v11, %s2645_s20 }
  0x35   : >> { %801 = vrot.lane.b32.xlu0 %v2770_v12, %s2642_s17  ;;  %803 = vrot.lane.b32.xlu1 %v2774_v13, %s2642_s17 }
  0x39   : >> { %799 = vrot.lane.b32.xlu0 %v2779_v14, %s2642_s17  ;;  %805 = vrot.lane.b32.xlu1 %v2784_v15, %s2642_s17 }
  0x3d   : >> { %797 = vrot.lane.b32.xlu0 %v2755_v11, %s2646_s21  ;;  %919 = vrot.lane.b32.xlu1 %v2755_v11, %s2647_s22 }
  0x41   : >> { %1042 = vrot.lane.b32.xlu0 %v2801_v16, %s2640_s14  ;;  %1044 = vrot.lane.b32.xlu1 %v2805_v17, %s2640_s14 }
  0x45   : >> { %1040 = vrot.lane.b32.xlu0 %v2810_v18, %s2640_s14  ;;  %1046 = vrot.lane.b32.xlu1 %v2815_v19, %s2640_s14 }
  0x49   : >> { %1038 = vrot.lane.b32.xlu0 %v2755_v11, %s2648_s23  ;;  %1157 = vrot.lane.b32.xlu1 %v2801_v16, %s2642_s17 }
  0x4d   : >> { %1159 = vrot.lane.b32.xlu0 %v2805_v17, %s2642_s17  ;;  %1155 = vrot.lane.b32.xlu1 %v2810_v18, %s2642_s17 }
  0x51   : >> { %1161 = vrot.lane.b32.xlu0 %v2815_v19, %s2642_s17  ;;  %1983 = vrot.lane.b32.xlu1 %v2829_v20, %s2640_s14 }
  0x55   : >> { %1985 = vrot.lane.b32.xlu0 %v2834_v21, %s2640_s14  ;;  %1981 = vrot.lane.b32.xlu1 %v2839_v22, %s2640_s14 }
  0x59   : >> { %1987 = vrot.lane.b32.xlu0 %v2844_v23, %s2640_s14  ;;  %2092 = vrot.lane.b32.xlu1 %v2829_v20, %s2642_s17 }
  0x5d   : >> { %2094 = vrot.lane.b32.xlu0 %v2834_v21, %s2642_s17  ;;  %2090 = vrot.lane.b32.xlu1 %v2839_v22, %s2642_s17 }
  0x61   : >> { %2096 = vrot.lane.b32.xlu0 %v2844_v23, %s2642_s17  ;;  %1269 = vperm.xlu1 %2597, %v2695_v2  }
  0x65   : >> { %1274 = vperm.xlu0 %2598, %v2700_v3   ;;  %1287 = vperm.xlu1 %2597, %v2705_v4  }
  0x69   : >> { %1292 = vperm.xlu1 %2597, %v2710_v5  }
  0x87   : >> { %v245_v24 = vpop.permute.xlu0 %244  ;;  %v243_v25 = vpop.permute.xlu1 %242 }
  0x88   : >> { %v251_v30 = vsel %vm250_vm0, %v243_v25, %v245_v24 }
  0x8b   : >> { %v247_v26 = vpop.permute.xlu0 %246  ;;  %v249_v27 = vpop.permute.xlu1 %248 }
  0x8c   : >> { %v252_v28 = vsel %vm250_vm0, %v245_v24, %v247_v26  ;;  %305 = vmatprep.subr.bf16.mxu1 %v249_v27  ;;  %v253_v29 = vsel %vm250_vm0, %v247_v26, %v249_v27 }
  0x8d   : >> { %262 = vmatprep.subr.bf16.mxu0 %v252_v28  ;;  %306 = vmatpush1.bf16.msra.mxu1 %v253_v29  ;;  %v2987_v29 = vcombine.high %v2685_v0, %v2690_v1 }
  0x8e   : >> { %263 = vmatpush1.bf16.msra.mxu0 %v251_v30  ;;  %398 = vmatprep.subr.bf16.mxu1 %v2749_v10 }
  0x8f   : >> { %v2865_v31 = vpop.permute.xlu0 %224  ;;  %355 = vmatprep.subr.bf16.mxu0 %v2736_v7  ;;  %v446_v32 = vpop.permute.xlu1 %445 }
  0x90   : >> { %2357 = vmatmul.mubr.msk.bf16.vlgmr.msra.gmra.mrb[0].mxu1 %vm258_vm1, %v2865_v31 }
  0x91   : >> { %2356 = vmatmul.mubr.msk.bf16.vlgmr.msra.gmra.mrb[0].mxu0 %vm258_vm1, %v2865_v31  ;;  %399 = vmatpush1.bf16.msra.mxu1 %v2744_v9 }
  0x92   : >> { %356 = vmatpush1.bf16.msra.mxu0 %v2739_v8  ;;  %430 = vmatprep.mubr.bf16.mxu1 %v2639_v6 }
  0x93   : >> { %v448_v33 = vpop.permute.xlu0 %447  ;;  %387 = vmatprep.mubr.bf16.mxu0 %v2639_v6  ;;  %v444_v35 = vpop.permute.xlu1 %443 }
  0x94   : >> { %v453_v34 = vsel %vm451_vm2, %v446_v32, %v448_v33  ;;  %v452_v39 = vsel %vm451_vm2, %v444_v35, %v446_v32 }
  0x95   : >> { %462 = vmatprep.subr.bf16.mxu0 %v453_v34 }
  0x97   : >> { %v450_v36 = vpop.permute.xlu0 %449  ;;  %v2878_v37 = vpop.permute.xlu1 %441 }
  0x98   : >> { %505 = vmatprep.subr.bf16.mxu1 %v450_v36  ;;  %v454_v38 = vsel %vm451_vm2, %v448_v33, %v450_v36 }
  0x9b   : >> { %v2886_v40 = vpop.permute.xlu0 %564  ;;  %v688_v41 = vpop.permute.xlu1 %687 }
  0x9c   : >> { %2359 = vmatmul.mubr.msk.bf16.vlgmr.msra.gmra.mrb[0].mxu1 %vm258_vm1, %v2755_v11 }
  0x9d   : >> { %2358 = vmatmul.mubr.msk.bf16.vlgmr.msra.gmra.mrb[0].mxu0 %vm258_vm1, %v2755_v11  ;;  %506 = vmatpush1.bf16.msra.mxu1 %v454_v38 }
  0x9e   : >> { %463 = vmatpush1.bf16.msra.mxu0 %v452_v39  ;;  %537 = vmatprep.mubr.bf16.mxu1 %v2639_v6 }
  0x9f   : >> { %494 = vmatprep.mubr.bf16.mxu0 %v2639_v6  ;;  %589 = vmatprep.subr.bf16.mxu0 %v2770_v12  ;;  %v690_v42 = vpop.permute.xlu0 %689  ;;  %v686_v43 = vpop.permute.xlu1 %685 }
  0xa0   : >> { %632 = vmatprep.subr.bf16.mxu1 %v2784_v15  ;;  %v2893_v44 = vsel %vm250_vm0, %v688_v41, %v690_v42  ;;  %v2910_v48 = vsel %vm250_vm0, %v686_v43, %v688_v41 }
  0xa3   : >> { %v2899_v45 = vpop.permute.xlu0 %691  ;;  %v2901_v46 = vpop.permute.xlu1 %683 }
  0xa4   : >> { %v2914_v49 = vsel %vm250_vm0, %v690_v42, %v2899_v45 }
  0xa7   : >> { %v804_v47 = vpop.permute.xlu1 %803  ;;  %v802_v50 = vpop.permute.xlu0 %801 }
  0xa8   : >> { %2361 = vmatmul.mubr.msk.bf16.vlgmr.msra.gmra.mrb[0].mxu1 %vm258_vm1, %v2878_v37  ;;  %v2917_v51 = vsel %vm451_vm2, %v802_v50, %v804_v47 }
  0xa9   : >> { %2360 = vmatmul.mubr.msk.bf16.vlgmr.msra.gmra.mrb[0].mxu0 %vm258_vm1, %v2878_v37  ;;  %633 = vmatpush1.bf16.msra.mxu1 %v2774_v13 }
  0xaa   : >> { %590 = vmatpush1.bf16.msra.mxu0 %v2779_v14  ;;  %664 = vmatprep.mubr.bf16.mxu1 %v2639_v6 }
  0xab   : >> { %703 = vmatprep.subr.bf16.mxu0 %v2893_v44  ;;  %746 = vmatprep.subr.bf16.mxu1 %v2899_v45  ;;  %v2923_v52 = vpop.permute.xlu1 %805  ;;  %v800_v53 = vpop.permute.xlu0 %799 }
  0xac   : >> { %621 = vmatprep.mubr.bf16.mxu0 %v2639_v6  ;;  %v2934_v55 = vsel %vm451_vm2, %v800_v53, %v802_v50  ;;  %v2938_v56 = vsel %vm451_vm2, %v804_v47, %v2923_v52 }
  0xaf   : >> { %v2931_v54 = vpop.permute.xlu0 %797  ;;  %v2944_v57 = vpop.permute.xlu1 %919 }
  0xb3   : >> { %v1043_v58 = vpop.permute.xlu0 %1042  ;;  %v1045_v59 = vpop.permute.xlu1 %1044 }
  0xb4   : >> { %2373 = vmatmul.mubr.msk.bf16.vlgmr.msra.gmra.mrb[0].mxu1 %vm258_vm1, %v2886_v40  ;;  %v2953_v61 = vsel %vm250_vm0, %v1043_v58, %v1045_v59 }
  0xb5   : >> { %2372 = vmatmul.mubr.msk.bf16.vlgmr.msra.gmra.mrb[0].mxu0 %vm258_vm1, %v2886_v40  ;;  %747 = vmatpush1.bf16.msra.mxu1 %v2914_v49 }
  0xb6   : >> { %704 = vmatpush1.bf16.msra.mxu0 %v2910_v48  ;;  %778 = vmatprep.mubr.bf16.mxu1 %v2639_v6 }
  0xb7   : >> { %817 = vmatprep.subr.bf16.mxu0 %v2917_v51  ;;  %860 = vmatprep.subr.bf16.mxu1 %v2923_v52  ;;  %v1041_v60 = vpop.permute.xlu0 %1040  ;;  %v1047_v62 = vpop.permute.xlu1 %1046 }
  0xb8   : >> { %735 = vmatprep.mubr.bf16.mxu0 %v2639_v6  ;;  %v1048_v8 = vsel %vm250_vm0, %v1041_v60, %v1043_v58  ;;  %v1050_v9 = vsel %vm250_vm0, %v1045_v59, %v1047_v62 }
  0xbb   : >> { %v2959_v63 = vpop.permute.xlu0 %1038  ;;  %v1158_v10 = vpop.permute.xlu1 %1157 }
  0xbf   : >> { %v1160_v7 = vpop.permute.xlu0 %1159  ;;  %v1156_v26 = vpop.permute.xlu1 %1155 }
  0xc0   : >> { %2375 = vmatmul.mubr.msk.bf16.vlgmr.msra.gmra.mrb[0].mxu1 %vm258_vm1, %v2901_v46  ;;  %v1164_v24 = vsel %vm451_vm2, %v1158_v10, %v1160_v7  ;;  %v1163_v27 = vsel %vm451_vm2, %v1156_v26, %v1158_v10 }
  0xc1   : >> { %2374 = vmatmul.mubr.msk.bf16.vlgmr.msra.gmra.mrb[0].mxu0 %vm258_vm1, %v2901_v46  ;;  %861 = vmatpush1.bf16.msra.mxu1 %v2938_v56 }
  0xc2   : >> { %818 = vmatpush1.bf16.msra.mxu0 %v2934_v55  ;;  %892 = vmatprep.mubr.bf16.mxu1 %v2639_v6 }
  0xc3   : >> { %849 = vmatprep.mubr.bf16.mxu0 %v2639_v6  ;;  %944 = vmatprep.subr.bf16.mxu0 %v2801_v16  ;;  %v1162_v25 = vpop.permute.xlu0 %1161 }
  0xc4   : >> { %987 = vmatprep.subr.bf16.mxu1 %v2815_v19  ;;  %v1165_v28 = vsel %vm451_vm2, %v1160_v7, %v1162_v25 }
  0xcc   : >> { %2377 = vmatmul.mubr.msk.bf16.vlgmr.msra.gmra.mrb[0].mxu1 %vm258_vm1, %v2931_v54 }
  0xcd   : >> { %2376 = vmatmul.mubr.msk.bf16.vlgmr.msra.gmra.mrb[0].mxu0 %vm258_vm1, %v2931_v54  ;;  %988 = vmatpush1.bf16.msra.mxu1 %v2805_v17 }
  0xce   : >> { %945 = vmatpush1.bf16.msra.mxu0 %v2810_v18  ;;  %1019 = vmatprep.mubr.bf16.mxu1 %v2639_v6 }
  0xcf   : >> { %1058 = vmatprep.subr.bf16.mxu0 %v2953_v61  ;;  %1101 = vmatprep.subr.bf16.mxu1 %v1047_v62 }
  0xd0   : >> { %976 = vmatprep.mubr.bf16.mxu0 %v2639_v6 }
  0xd8   : >> { %2389 = vmatmul.mubr.msk.bf16.vlgmr.msra.gmra.mrb[0].mxu1 %vm258_vm1, %v2944_v57 }
  0xd9   : >> { %2388 = vmatmul.mubr.msk.bf16.vlgmr.msra.gmra.mrb[0].mxu0 %vm258_vm1, %v2944_v57  ;;  %1102 = vmatpush1.bf16.msra.mxu1 %v1050_v9 }
  0xda   : >> { %1059 = vmatpush1.bf16.msra.mxu0 %v1048_v8  ;;  %1133 = vmatprep.mubr.bf16.mxu1 %v2639_v6 }
  0xdb   : >> { %1173 = vmatprep.subr.bf16.mxu0 %v1164_v24  ;;  %1216 = vmatprep.subr.bf16.mxu1 %v1162_v25 }
  0xdc   : >> { %1090 = vmatprep.mubr.bf16.mxu0 %v2639_v6 }
  0xe4   : >> { %2391 = vmatmul.mubr.msk.bf16.vlgmr.msra.gmra.mrb[0].mxu1 %vm258_vm1, %v2959_v63 }
  0xe5   : >> { %2390 = vmatmul.mubr.msk.bf16.vlgmr.msra.gmra.mrb[0].mxu0 %vm258_vm1, %v2959_v63  ;;  %1217 = vmatpush1.bf16.msra.mxu1 %v1165_v28 }
  0xe6   : >> { %1174 = vmatpush1.bf16.msra.mxu0 %v1163_v27  ;;  %1354 = vmatprep.subr.bf16.mxu1 %v2899_v45 }
  0xe7   : >> { %1311 = vmatprep.subr.bf16.mxu0 %v2893_v44  ;;  %1248 = vmatprep.mubr.bf16.mxu1 %v2639_v6 }
  0xe8   : >> { %1205 = vmatprep.mubr.bf16.mxu0 %v2639_v6 }
  0xf0   : >> { %2394 = vmatmul.mubr.msk.bf16.vlgmr.msra.gmra.mrb[0].mxu1 %vm258_vm1, %v2987_v29 }
  0xf1   : >> { %2393 = vmatmul.mubr.msk.bf16.vlgmr.msra.gmra.mrb[0].mxu0 %vm258_vm1, %v2987_v29  ;;  %1355 = vmatpush1.bf16.msra.mxu1 %v2914_v49 }
  0xf2   : >> { %1312 = vmatpush1.bf16.msra.mxu0 %v2910_v48  ;;  %1386 = vmatprep.mubr.bf16.mxu1 %v2639_v6 }
  0xf3   : >> { %1440 = vmatprep.subr.bf16.mxu1 %v2784_v15  ;;  %1343 = vmatprep.mubr.bf16.mxu0 %v2639_v6 }
  0xf4   : >> { %1397 = vmatprep.subr.bf16.mxu0 %v2770_v12  ;;  %v1984_v12 = vpop.permute.xlu1 %1983 }
  0xf8   : >> { %2396 = vmatmul.mubr.msk.bf16.vlgmr.msra.gmra.mrb[4].mxu1 %vm258_vm1, %v2865_v31  ;;  %v1982_v15 = vpop.permute.xlu1 %1981 }
  0xf9   : >> { %2395 = vmatmul.mubr.msk.bf16.vlgmr.msra.gmra.mrb[4].mxu0 %vm258_vm1, %v2865_v31  ;;  %1441 = vmatpush1.bf16.msra.mxu1 %v2774_v13 }
  0xfa   : >> { %1398 = vmatpush1.bf16.msra.mxu0 %v2779_v14  ;;  %1526 = vmatprep.subr.bf16.mxu1 %v2923_v52 }
  0xfb   : >> { %1483 = vmatprep.subr.bf16.mxu0 %v2917_v51  ;;  %1472 = vmatprep.mubr.bf16.mxu1 %v2639_v6 }
  0xfc   : >> { %1429 = vmatprep.mubr.bf16.mxu0 %v2639_v6 }
 0x104   : >> { %2398 = vmatmul.mubr.msk.bf16.vlgmr.msra.gmra.mrb[4].mxu1 %vm258_vm1, %v2755_v11 }
 0x105   : >> { %2397 = vmatmul.mubr.msk.bf16.vlgmr.msra.gmra.mrb[4].mxu0 %vm258_vm1, %v2755_v11  ;;  %1527 = vmatpush1.bf16.msra.mxu1 %v2938_v56  ;;  %v1986_v11 = vpop.permute.xlu0 %1985 }
 0x106   : >> { %1484 = vmatpush1.bf16.msra.mxu0 %v2934_v55  ;;  %1558 = vmatprep.mubr.bf16.mxu1 %v2639_v6  ;;  %v1990_v13 = vsel %vm250_vm0, %v1984_v12, %v1986_v11 }
 0x107   : >> { %1620 = vmatprep.subr.bf16.mxu1 %v2815_v19  ;;  %1515 = vmatprep.mubr.bf16.mxu0 %v2639_v6  ;;  %v2093_v19 = vpop.permute.xlu1 %2092 }
 0x108   : >> { %1577 = vmatprep.subr.bf16.mxu0 %v2801_v16 }
 0x109   : >> { %v1988_v14 = vpop.permute.xlu0 %1987 }
 0x10d   : >> { %v2095_v16 = vpop.permute.xlu0 %2094 }
 0x110   : >> { %2400 = vmatmul.mubr.msk.bf16.vlgmr.msra.gmra.mrb[4].mxu1 %vm258_vm1, %v2878_v37 }
 0x111   : >> { %2399 = vmatmul.mubr.msk.bf16.vlgmr.msra.gmra.mrb[4].mxu0 %vm258_vm1, %v2878_v37  ;;  %1621 = vmatpush1.bf16.msra.mxu1 %v2805_v17  ;;  %v1991_v17 = vsel %vm250_vm0, %v1986_v11, %v1988_v14 }
 0x112   : >> { %1578 = vmatpush1.bf16.msra.mxu0 %v2810_v18  ;;  %1714 = vmatprep.subr.bf16.mxu1 %v1047_v62  ;;  %v1989_v18 = vsel %vm250_vm0, %v1982_v15, %v1984_v12 }
 0x113   : >> { %1671 = vmatprep.subr.bf16.mxu0 %v2953_v61  ;;  %1652 = vmatprep.mubr.bf16.mxu1 %v2639_v6 }
 0x114   : >> { %1609 = vmatprep.mubr.bf16.mxu0 %v2639_v6 }
 0x11c   : >> { %2402 = vmatmul.mubr.msk.bf16.vlgmr.msra.gmra.mrb[4].mxu1 %vm258_vm1, %v2886_v40 }
 0x11d   : >> { %2401 = vmatmul.mubr.msk.bf16.vlgmr.msra.gmra.mrb[4].mxu0 %vm258_vm1, %v2886_v40  ;;  %1715 = vmatpush1.bf16.msra.mxu1 %v1050_v9 }
 0x11e   : >> { %1672 = vmatpush1.bf16.msra.mxu0 %v1048_v8  ;;  %1808 = vmatprep.subr.bf16.mxu1 %v1162_v25 }
 0x11f   : >> { %1765 = vmatprep.subr.bf16.mxu0 %v1164_v24  ;;  %1746 = vmatprep.mubr.bf16.mxu1 %v2639_v6 }
 0x120   : >> { %1703 = vmatprep.mubr.bf16.mxu0 %v2639_v6 }
 0x128   : >> { %2404 = vmatmul.mubr.msk.bf16.vlgmr.msra.gmra.mrb[4].mxu1 %vm258_vm1, %v2901_v46 }
 0x129   : >> { %2403 = vmatmul.mubr.msk.bf16.vlgmr.msra.gmra.mrb[4].mxu0 %vm258_vm1, %v2901_v46  ;;  %1809 = vmatpush1.bf16.msra.mxu1 %v1165_v28 }
 0x12a   : >> { %1766 = vmatpush1.bf16.msra.mxu0 %v1163_v27  ;;  %1840 = vmatprep.mubr.bf16.mxu1 %v2639_v6 }
 0x12b   : >> { %1797 = vmatprep.mubr.bf16.mxu0 %v2639_v6  ;;  %1887 = vmatprep.subr.bf16.mxu0 %v2829_v20  ;;  %v2099_v20 = vsel %vm451_vm2, %v2093_v19, %v2095_v16 }
 0x12c   : >> { %1930 = vmatprep.subr.bf16.mxu1 %v2844_v23 }
 0x134   : >> { %2406 = vmatmul.mubr.msk.bf16.vlgmr.msra.gmra.mrb[4].mxu1 %vm258_vm1, %v2931_v54 }
 0x135   : >> { %2405 = vmatmul.mubr.msk.bf16.vlgmr.msra.gmra.mrb[4].mxu0 %vm258_vm1, %v2931_v54  ;;  %1931 = vmatpush1.bf16.msra.mxu1 %v2834_v21  ;;  %v2097_v21 = vpop.permute.xlu0 %2096 }
 0x136   : >> { %1888 = vmatpush1.bf16.msra.mxu0 %v2839_v22  ;;  %1962 = vmatprep.mubr.bf16.mxu1 %v2639_v6  ;;  %v2091_v22 = vpop.permute.xlu1 %2090  ;;  %v2100_v23 = vsel %vm451_vm2, %v2095_v16, %v2097_v21 }
 0x137   : >> { %1996 = vmatprep.subr.bf16.mxu0 %v1990_v13  ;;  %2039 = vmatprep.subr.bf16.mxu1 %v1988_v14  ;;  %v2098_v30 = vsel %vm451_vm2, %v2091_v22, %v2093_v19 }
 0x138   : >> { %1919 = vmatprep.mubr.bf16.mxu0 %v2639_v6 }
 0x139   : >> { %v1275_v41 = vpop.permute.xlu0 %1274 }
 0x13a   : >> { %v1270_v39 = vpop.permute.xlu1 %1269 }
 0x13e   : >> { %v1288_v40 = vpop.permute.xlu1 %1287 }
 0x140   : >> { %2418 = vmatmul.mubr.msk.bf16.vlgmr.msra.gmra.mrb[4].mxu1 %vm258_vm1, %v2944_v57 }
 0x141   : >> { %2417 = vmatmul.mubr.msk.bf16.vlgmr.msra.gmra.mrb[4].mxu0 %vm258_vm1, %v2944_v57  ;;  %2040 = vmatpush1.bf16.msra.mxu1 %v1991_v17 }
 0x142   : >> { %1997 = vmatpush1.bf16.msra.mxu0 %v1989_v18  ;;  %2071 = vmatprep.mubr.bf16.mxu1 %v2639_v6  ;;  %v1293_v49 = vpop.permute.xlu1 %1292 }
 0x143   : >> { %2105 = vmatprep.subr.bf16.mxu0 %v2099_v20  ;;  %2148 = vmatprep.subr.bf16.mxu1 %v2097_v21 }
 0x144   : >> { %2028 = vmatprep.mubr.bf16.mxu0 %v2639_v6 }
 0x14c   : >> { %2420 = vmatmul.mubr.msk.bf16.vlgmr.msra.gmra.mrb[4].mxu1 %vm258_vm1, %v2959_v63 }
 0x14d   : >> { %2419 = vmatmul.mubr.msk.bf16.vlgmr.msra.gmra.mrb[4].mxu0 %vm258_vm1, %v2959_v63  ;;  %2149 = vmatpush1.bf16.msra.mxu1 %v2100_v23 }
 0x14e   : >> { %2106 = vmatpush1.bf16.msra.mxu0 %v2098_v30  ;;  %2180 = vmatprep.mubr.bf16.mxu1 %v2639_v6 }
 0x14f   : >> { %2137 = vmatprep.mubr.bf16.mxu0 %v2639_v6 }
 0x158   : >> { %2422 = vmatmul.mubr.msk.bf16.vlgmr.msra.gmra.mrb[4].mxu1 %vm258_vm1, %v2987_v29 }
 0x159   : >> { %2421 = vmatmul.mubr.msk.bf16.vlgmr.msra.gmra.mrb[4].mxu0 %vm258_vm1, %v2987_v29 }
 0x1c3   : >> { %v1250_v31 = vpop.f32.mrb[0].mxu1 }
 0x1c4   : >> { %v1207_v32 = vpop.f32.mrb[0].mxu0  ;;  %v1252_v33 = vpop.f32.mrb[1].mxu1  ;;  %v1279_v42 = vmul.f32 %v1270_v39, %v1250_v31 }
 0x1c5   : >> { %v1209_v34 = vpop.f32.mrb[1].mxu0  ;;  %v1254_v35 = vpop.f32.mrb[2].mxu1  ;;  %v1277_v43 = vmul.f32 %v1270_v39, %v1207_v32  ;;  %v1280_v6 = vmul.f32 %v1270_v39, %v1252_v33 }
 0x1c6   : >> { %v1211_v36 = vpop.f32.mrb[2].mxu0  ;;  %v1256_v37 = vpop.f32.mrb[3].mxu1  ;;  %v1278_v44 = vmul.f32 %v1270_v39, %v1209_v34  ;;  %v1283_v45 = vmul.f32 %v1275_v41, %v1254_v35  ;;  %v1297_v53 = vadd.f32 %v1288_v40, %v1279_v42 }
 0x1c7   : >> { %v1213_v38 = vpop.f32.mrb[3].mxu0  ;;  %v1281_v46 = vmul.f32 %v1275_v41, %v1211_v36  ;;  %v1284_v47 = vmul.f32 %v1275_v41, %v1256_v37  ;;  %v1295_v50 = vadd.f32 %v1288_v40, %v1277_v43  ;;  %v1298_v51 = vadd.f32 %v1288_v40, %v1280_v6 }
 0x1c8   : >> { %v1282_v48 = vmul.f32 %v1275_v41, %v1213_v38  ;;  %v1296_v52 = vadd.f32 %v1288_v40, %v1278_v44  ;;  %v1301_v54 = vadd.f32 %v1293_v49, %v1283_v45  ;;  %v1305_v61 = vmax.f32 %v1297_v53, 0.0 }
 0x1c9   : >> { %v1299_v55 = vadd.f32 %v1293_v49, %v1281_v46  ;;  %v1302_v56 = vadd.f32 %v1293_v49, %v1284_v47  ;;  %v1303_v58 = vmax.f32 %v1295_v50, 0.0  ;;  %v1306_v59 = vmax.f32 %v1298_v51, 0.0 }
 0x1ca   : >> { %v1300_v57 = vadd.f32 %v1293_v49, %v1282_v48  ;;  %v1304_v60 = vmax.f32 %v1296_v52, 0.0  ;;  %v1309_v24 = vmax.f32 %v1301_v54, 0.0 }
 0x1cb   : >> { %v1307_v25 = vmax.f32 %v1299_v55, 0.0  ;;  %v1310_v11 = vmax.f32 %v1302_v56, 0.0 }
 0x1cc   : >> { %v1308_v12 = vmax.f32 %v1300_v57, 0.0 }
 0x22b   : >> { %v2182_v62 = vpop.f32.mrb[4].mxu1 }
 0x22c   : >> { %v2139_v63 = vpop.f32.mrb[4].mxu0  ;;  %v2201_v7 = vmul.f32 %v2182_v62, %v1270_v39  ;;  %v2184_v9 = vpop.f32.mrb[5].mxu1 }
 0x22d   : >> { %v2199_v8 = vmul.f32 %v2139_v63, %v1270_v39  ;;  %v2141_v10 = vpop.f32.mrb[5].mxu0  ;;  %v2202_v26 = vmul.f32 %v2184_v9, %v1270_v39  ;;  %v2186_v28 = vpop.f32.mrb[6].mxu1 }
 0x22e   : >> { %v2200_v27 = vmul.f32 %v2141_v10, %v1270_v39  ;;  %v2143_v29 = vpop.f32.mrb[6].mxu0  ;;  %v2209_v13 = vadd.f32 %v2201_v7, %v1288_v40  ;;  %v2205_v15 = vmul.f32 %v2186_v28, %v1275_v41  ;;  %v2188_v17 = vpop.f32.mrb[7].mxu1 }
 0x22f   : >> { %v2207_v14 = vadd.f32 %v2199_v8, %v1288_v40  ;;  %v2203_v16 = vmul.f32 %v2143_v29, %v1275_v41  ;;  %v2145_v18 = vpop.f32.mrb[7].mxu0  ;;  %v2210_v19 = vadd.f32 %v2202_v26, %v1288_v40  ;;  %v2206_v21 = vmul.f32 %v2188_v17, %v1275_v41 }
 0x230   : >> { %v2208_v20 = vadd.f32 %v2200_v27, %v1288_v40  ;;  %v2204_v22 = vmul.f32 %v2145_v18, %v1275_v41  ;;  %v2217_v23 = vmax.f32 %v2209_v13, 0.0  ;;  %v2213_v31 = vadd.f32 %v2205_v15, %v1293_v49 }
 0x231   : >> { %v2215_v30 = vmax.f32 %v2207_v14, 0.0  ;;  %v2211_v32 = vadd.f32 %v2203_v16, %v1293_v49  ;;  %v2218_v33 = vmax.f32 %v2210_v19, 0.0  ;;  %v2214_v35 = vadd.f32 %v2206_v21, %v1293_v49 }
 0x232   : >> { %v2216_v34 = vmax.f32 %v2208_v20, 0.0  ;;  %v2212_v36 = vadd.f32 %v2204_v22, %v1293_v49  ;;  %v2225_v37 = vmax.f32 %v1305_v61, %v2217_v23  ;;  %v2221_v39 = vmax.f32 %v2213_v31, 0.0 }
 0x233   : >> { %v2223_v38 = vmax.f32 %v1303_v58, %v2215_v30  ;;  %v2219_v42 = vmax.f32 %v2211_v32, 0.0  ;;  %v2226_v43 = vmax.f32 %v1306_v59, %v2218_v33  ;;  %v2222_v44 = vmax.f32 %v2214_v35, 0.0 }
 0x234   : >> { %v2224_v6 = vmax.f32 %v1304_v60, %v2216_v34  ;;  %v2220_v40 = vmax.f32 %v2212_v36, 0.0  ;;  %v2229_v41 = vmax.f32 %v1309_v24, %v2221_v39  ;;  %209 = sbr.rel (!%p207_p4) target bundleno = 18 (0x12), region = 78 }
 0x235   : >> { %v2227_v45 = vmax.f32 %v1307_v25, %v2219_v42  ;;  %v2437_v46 = vpack.c.bf16 %v2226_v43, %v2225_v37  ;;  %v2230_v48 = vmax.f32 %v1310_v11, %v2222_v44 }
 0x236   : >> { %v2436_v47 = vpack.c.bf16 %v2224_v6, %v2223_v38  ;;  %v2228_v50 = vmax.f32 %v1308_v12, %v2220_v40 }
 0x237   : >> { %2262 = vst.msk [vmem:[%s2257_s25 + $0x8] sm:$0xff] %vm2261_vm5, %v2437_v46  ;;  %v2439_v49 = vpack.c.bf16 %v2230_v48, %v2229_v41 }
 0x238   : >> { %2258 = vst [vmem:[%s2257_s25] sm:$0xff] %v2436_v47  ;;  %v2438_v51 = vpack.c.bf16 %v2228_v50, %v2227_v45 }
 0x239   : >> { %2264 = vst.msk [vmem:[%s2257_s25 + $0x18] sm:$0xff] %vm2261_vm5, %v2439_v49 }
 0x23a   : >> { %2263 = vst [vmem:[%s2257_s25 + $0x10] sm:$0xff] %v2438_v51 }
 0x23b PF: > { %s14_s15 = sadd.s32 1, %s2633_s15  }
 0x23c   : > { %p11_p5 = scmp.ge.s32.totalorder %s14_s15, 4  }
 0x23e   :  { %13 = sbr.rel (!%p11_p5) target bundleno = 1 (0x1), region = 89 }

// kernel: forward.8
= control target key start
LH: loop header
LB: loop body
LE: loop exit
PB: predicated region body
PF: predicated region fallthrough
CT: control target
= control target key end

     0   :  { %s1052_s15 = smov 0   ;;  %s1172_s0 = inlined_call_operand.vmem [shape: bf16[2,32,16,208], index: 0, kind: input, shape index: {}]   ;;  %s1173_s1 = inlined_call_operand.vmem [shape: bf16[16,144], index: 1, kind: input, shape index: {}]   ;;  %s1174_s2 = inlined_call_operand.vmem [shape: f32[16,1], index: 2, kind: input, shape index: {}]   ;;  %s1175_s3 = inlined_call_operand.vmem [shape: f32[16,1], index: 3, kind: input, shape index: {}]   ;;  %s1176_s4 = inlined_call_operand.vmem [shape: bf16[2,30,16,206], index: 4, kind: output, shape index: {}]  }
   0x1 LB: > { %s888_s16 = sadd.s32 4294967295, %s1011_s15   ;;  %p892_p0 = scmp.ge.s32.totalorder %s1011_s15, 1  ;;  %s1011_s15 = sphi %s1052_s15, %s14_s15  }
   0x2   : > { %p162_p1 = scmp.lt.s32.totalorder %s1011_s15, 3 }
   0x4   : > { %p163_p2 = pnand %p892_p0, %p162_p1 }
   0x5   : > { %p188_p3 = scmp.lt.s32.totalorder (!%p163_p2), %s888_s16, 1  ;;  %v1063_v0 = vld [vmem:[%s1173_s1] sm:$0xff] (!%p163_p2)  ;;  %v1068_v1 = vld [vmem:[%s1173_s1 + $0x8] sm:$0xff] (!%p163_p2)  ;;  %s1100_s11 = smov (!%p163_p2), 0  }
   0x6   : > { %166 = sbr.rel (%p163_p2) target bundleno = 417 (0x1a1), region = 36  ;;  %v1073_v2 = vld [vmem:[%s1174_s2] sm:$0xff] (!%p163_p2)  ;;  %v1078_v3 = vld [vmem:[%s1174_s2 + $0x8] sm:$0xff] (!%p163_p2) }
   0x7   : > { %v1083_v4 = vld [vmem:[%s1175_s3] sm:$0xff] (!%p163_p2)  ;;  %v1088_v5 = vld [vmem:[%s1175_s3 + $0x8] sm:$0xff] (!%p163_p2) }
   0xd   : > { %s1178_s16 = smov (!%p188_p3, %s888_s16), 1 }
   0xe   : > { %s926_s29 = sshll.u32 %s1178_s16, 9  ;;  %s963_s30 = smul.u32 480, %s1178_s16 }
   0xf   : > { %s1093_s7 = scalar_lea.vmem %s1172_s0, %s926_s29 }
  0x10   : > { %s1098_s10 = scalar_lea.vmem %s1176_s4, %s963_s30 }
  0x11 LB: >> { %v1107_v6 = vcombine.low %v1063_v0, %v1068_v1  ;;  %v1017_v7 = vmov 0   ;;  %s1018_s12 = smov 64   ;;  %s927_s13 = sshll.u32 %s1015_s11, 4  ;;  %vm235_vm0 = vcmask 1039360   ;;  %vm239_vm1 = vcmask 130048   ;;  %s1015_s11 = sphi %s1100_s11, %s210_s11  }
  0x12   : >> { %506 = vmatprep.mubr.bf16.mxu0 %v1017_v7  ;;  %275 = vmatprep.mubr.bf16.mxu1 %v1017_v7  ;;  %s213_s14 = scalar_lea.vmem %s1093_s7, %s927_s13  ;;  %s1019_s16 = smov 127   ;;  %vm340_vm2 = vcmask 1031168   ;;  %v919_v39 = vcombine.high %v1063_v0, %v1068_v1  ;;  %vm813_vm3 = vcmask 1043456   ;;  %vm814_vm4 = vcmask 637956  }
  0x13   : >> { %462 = vrot.lane.b32.xlu1 %v1107_v6, %s1018_s12  ;;  %991 = vset.pattern.permute.xlu0 %v1017_v7  ;;  %v1118_v8 = vld [vmem:[%s213_s14 + $0x10] ss:$8 sps:$4 sm:$0xff]   ;;  %v1121_v9 = vld [vmem:[%s213_s14 + $0x14] ss:$8 sps:$4 sm:$0xff]   ;;  %v995_v10 = vld [vmem:[%s213_s14] ss:$8 sps:$4 sm:$0xff]   ;;  %s812_s24 = scalar_lea.vmem %s1098_s10, %s927_s13 }
  0x14   : >> { %990 = vset.pattern.permute.xlu1 %v1017_v7  ;;  %464 = vrot.lane.b32.xlu0 %v1118_v8, %s1019_s16  ;;  %v997_v11 = vld [vmem:[%s213_s14 + $0x4] ss:$8 sps:$4 sm:$0xff]   ;;  %s1020_s17 = smov 126   ;;  %s1021_s18 = smov 112   ;;  %v998_v13 = vld [vmem:[%s213_s14 + $0x20] ss:$8 sps:$4 sm:$0xff]   ;;  %vm815_vm5 = vmor %vm814_vm4, %vm813_vm3 }
  0x15   : >> { %s1022_s19 = smov 32   ;;  %s1023_s20 = smov 48   ;;  %v1000_v12 = vld [vmem:[%s213_s14 + $0x24] ss:$8 sps:$4 sm:$0xff]  }
  0x16   : >> { %s1024_s21 = smov 16   ;;  %s1025_s22 = smov 96  }
  0x17   : >> { %231 = vrot.lane.b32.xlu1 %v995_v10, %s1019_s16  ;;  %s1026_s23 = smov 80   ;;  %s210_s11 = sadd.s32 1, %s1015_s11  }
  0x18   : >> { %466 = vrot.lane.b32.xlu0 %v1121_v9, %s1019_s16  ;;  %p207_p4 = scmp.ge.s32.totalorder %s210_s11, 30  }
  0x1b   : >> { %523 = vrot.lane.b32.xlu1 %v1118_v8, %s1020_s17 }
  0x1c   : >> { %233 = vrot.lane.b32.xlu0 %v997_v11, %s1019_s16 }
  0x1f   : >> { %221 = vrot.lane.b32.xlu1 %v1107_v6, %s1021_s18 }
  0x20   : >> { %525 = vrot.lane.b32.xlu0 %v1121_v9, %s1020_s17 }
  0x23   : >> { %586 = vrot.lane.b32.xlu1 %v1107_v6, %s1022_s19 }
  0x24   : >> { %521 = vrot.lane.b32.xlu0 %v1107_v6, %s1023_s20 }
  0x27   : >> { %338 = vrot.lane.b32.xlu1 %v997_v11, %s1020_s17 }
  0x28   : >> { %336 = vrot.lane.b32.xlu0 %v995_v10, %s1020_s17 }
  0x2b   : >> { %652 = vrot.lane.b32.xlu1 %v1000_v12, %s1019_s16 }
  0x2c   : >> { %650 = vrot.lane.b32.xlu0 %v998_v13, %s1019_s16 }
  0x2f   : >> { %648 = vrot.lane.b32.xlu1 %v1107_v6, %s1024_s21 }
  0x30   : >> { %334 = vrot.lane.b32.xlu0 %v1107_v6, %s1025_s22 }
  0x33   : >> { %712 = vrot.lane.b32.xlu1 %v1000_v12, %s1020_s17 }
  0x34   : >> { %710 = vrot.lane.b32.xlu0 %v998_v13, %s1020_s17 }
  0x37   : >> { %769 = vperm.xlu1 %990, %v1073_v2  }
  0x38   : >> { %400 = vrot.lane.b32.xlu0 %v1107_v6, %s1026_s23 }
  0x3b   : >> { %783 = vperm.xlu1 %990, %v1083_v4  }
  0x3c   : >> { %774 = vperm.xlu0 %991, %v1078_v3  }
  0x3f   : >> { %788 = vperm.xlu1 %990, %v1088_v5  }
  0x85   : >> { %v463_v14 = vpop.permute.xlu1 %462 }
  0x86   : >> { %v465_v15 = vpop.permute.xlu0 %464 }
  0x89   : >> { %v232_v16 = vpop.permute.xlu1 %231 }
  0x8a   : >> { %v467_v17 = vpop.permute.xlu0 %466 }
  0x8b   : >> { %474 = vmatprep.subr.bf16.mxu0 %v467_v17  ;;  %v468_v18 = vsel %vm235_vm0, %v465_v15, %v467_v17 }
  0x8c   : >> { %475 = vmatpush1.bf16.msra.mxu0 %v468_v18 }
  0x8d   : >> { %v524_v19 = vpop.permute.xlu1 %523 }
  0x8e   : >> { %v234_v20 = vpop.permute.xlu0 %233 }
  0x8f   : >> { %243 = vmatprep.subr.bf16.mxu1 %v234_v20  ;;  %910 = vmatmul.mubr.msk.bf16.vlgmr.msra.gmra.mrb[0].mxu0 %vm239_vm1, %v463_v14  ;;  %v236_v21 = vsel %vm235_vm0, %v232_v16, %v234_v20 }
  0x90   : >> { %244 = vmatpush1.bf16.msra.mxu1 %v236_v21  ;;  %565 = vmatprep.mubr.bf16.mxu0 %v1017_v7 }
  0x91   : >> { %v222_v22 = vpop.permute.xlu1 %221  ;;  %291 = vmatprep.subr.bf16.mxu1 %v997_v11 }
  0x92   : >> { %v526_v23 = vpop.permute.xlu0 %525 }
  0x93   : >> { %v527_v24 = vsel %vm340_vm2, %v524_v19, %v526_v23  ;;  %901 = vmatmul.mubr.msk.bf16.vlgmr.msra.gmra.mrb[0].mxu1 %vm239_vm1, %v222_v22  ;;  %533 = vmatprep.subr.bf16.mxu0 %v526_v23 }
  0x94   : >> { %534 = vmatpush1.bf16.msra.mxu0 %v527_v24  ;;  %292 = vmatpush1.bf16.msra.mxu1 %v995_v10 }
  0x95   : >> { %v587_v25 = vpop.permute.xlu1 %586  ;;  %323 = vmatprep.mubr.bf16.mxu1 %v1017_v7  ;;  %601 = vmatprep.subr.bf16.mxu0 %v1000_v12 }
  0x96   : >> { %v522_v26 = vpop.permute.xlu0 %521 }
  0x99   : >> { %v339_v27 = vpop.permute.xlu1 %338 }
  0x9a   : >> { %347 = vmatprep.subr.bf16.mxu1 %v339_v27  ;;  %v337_v28 = vpop.permute.xlu0 %336 }
  0x9b   : >> { %911 = vmatmul.mubr.msk.bf16.vlgmr.msra.gmra.mrb[0].mxu0 %vm239_vm1, %v522_v26  ;;  %v341_v30 = vsel %vm340_vm2, %v337_v28, %v339_v27 }
  0x9c   : >> { %602 = vmatpush1.bf16.msra.mxu0 %v998_v13  ;;  %633 = vmatprep.mubr.bf16.mxu0 %v1017_v7 }
  0x9d   : >> { %v653_v29 = vpop.permute.xlu1 %652 }
  0x9e   : >> { %660 = vmatprep.subr.bf16.mxu0 %v653_v29  ;;  %v651_v31 = vpop.permute.xlu0 %650 }
  0x9f   : >> { %902 = vmatmul.mubr.msk.bf16.vlgmr.msra.gmra.mrb[0].mxu1 %vm239_vm1, %v1107_v6  ;;  %v654_v33 = vsel %vm235_vm0, %v651_v31, %v653_v29 }
  0xa0   : >> { %348 = vmatpush1.bf16.msra.mxu1 %v341_v30  ;;  %379 = vmatprep.mubr.bf16.mxu1 %v1017_v7 }
  0xa1   : >> { %415 = vmatprep.subr.bf16.mxu1 %v1121_v9  ;;  %v649_v32 = vpop.permute.xlu1 %648 }
  0xa2   : >> { %v335_v35 = vpop.permute.xlu0 %334 }
  0xa5   : >> { %v713_v34 = vpop.permute.xlu1 %712 }
  0xa6   : >> { %v711_v36 = vpop.permute.xlu0 %710 }
  0xa7   : >> { %917 = vmatmul.mubr.msk.bf16.vlgmr.msra.gmra.mrb[0].mxu0 %vm239_vm1, %v587_v25  ;;  %v714_v37 = vsel %vm340_vm2, %v711_v36, %v713_v34 }
  0xa8   : >> { %661 = vmatpush1.bf16.msra.mxu0 %v654_v33  ;;  %692 = vmatprep.mubr.bf16.mxu0 %v1017_v7 }
  0xa9   : >> { %720 = vmatprep.subr.bf16.mxu0 %v713_v34 }
  0xaa   : >> { %v401_v38 = vpop.permute.xlu0 %400 }
  0xab   : >> { %903 = vmatmul.mubr.msk.bf16.vlgmr.msra.gmra.mrb[0].mxu1 %vm239_vm1, %v335_v35 }
  0xac   : >> { %416 = vmatpush1.bf16.msra.mxu1 %v1118_v8  ;;  %447 = vmatprep.mubr.bf16.mxu1 %v1017_v7 }
  0xb3   : >> { %918 = vmatmul.mubr.msk.bf16.vlgmr.msra.gmra.mrb[0].mxu0 %vm239_vm1, %v649_v32 }
  0xb4   : >> { %721 = vmatpush1.bf16.msra.mxu0 %v714_v37  ;;  %752 = vmatprep.mubr.bf16.mxu0 %v1017_v7 }
  0xb6   : >> { %v770_v43 = vpop.permute.xlu1 %769 }
  0xb7   : >> { %909 = vmatmul.mubr.msk.bf16.vlgmr.msra.gmra.mrb[0].mxu1 %vm239_vm1, %v401_v38 }
  0xba   : >> { %v784_v46 = vpop.permute.xlu1 %783 }
  0xbb   : >> { %v775_v51 = vpop.permute.xlu0 %774 }
  0xbe   : >> { %v789_v61 = vpop.permute.xlu1 %788 }
  0xbf   : >> { %920 = vmatmul.mubr.msk.bf16.vlgmr.msra.gmra.mrb[0].mxu0 %vm239_vm1, %v919_v39 }
 0x18a   : >> { %v449_v40 = vpop.f32.mrb[0].mxu1 }
 0x18b   : >> { %v451_v41 = vpop.f32.mrb[1].mxu1 }
 0x18c   : >> { %v453_v42 = vpop.f32.mrb[2].mxu1 }
 0x18d   : >> { %v455_v44 = vpop.f32.mrb[3].mxu1 }
 0x192   : >> { %v754_v45 = vpop.f32.mrb[0].mxu0 }
 0x193   : >> { %v931_v47 = vadd.f32 %v754_v45, %v449_v40  ;;  %v756_v48 = vpop.f32.mrb[1].mxu0 }
 0x194   : >> { %v932_v49 = vadd.f32 %v756_v48, %v451_v41  ;;  %v758_v50 = vpop.f32.mrb[2].mxu0 }
 0x195   : >> { %v777_v52 = vmul.f32 %v931_v47, %v770_v43  ;;  %v933_v53 = vadd.f32 %v758_v50, %v453_v42  ;;  %v760_v54 = vpop.f32.mrb[3].mxu0 }
 0x196   : >> { %v778_v55 = vmul.f32 %v932_v49, %v770_v43  ;;  %v934_v56 = vadd.f32 %v760_v54, %v455_v44 }
 0x197   : >> { %v791_v57 = vadd.f32 %v784_v46, %v777_v52  ;;  %v779_v58 = vmul.f32 %v933_v53, %v775_v51 }
 0x198   : >> { %v792_v59 = vadd.f32 %v784_v46, %v778_v55  ;;  %v780_v60 = vmul.f32 %v934_v56, %v775_v51 }
 0x199   : >> { %v795_v62 = vmax.f32 %v791_v57, 0.0  ;;  %v793_v63 = vadd.f32 %v789_v61, %v779_v58 }
 0x19a   : >> { %v796_v6 = vmax.f32 %v792_v59, 0.0  ;;  %v794_v7 = vadd.f32 %v789_v61, %v780_v60  ;;  %209 = sbr.rel (!%p207_p4) target bundleno = 17 (0x11), region = 77 }
 0x19b   : >> { %v797_v8 = vmax.f32 %v793_v63, 0.0 }
 0x19c   : >> { %v928_v9 = vpack.c.bf16 %v796_v6, %v795_v62  ;;  %v798_v10 = vmax.f32 %v794_v7, 0.0 }
 0x19e   : >> { %816 = vst.msk [vmem:[%s812_s24] sm:$0xff] %vm815_vm5, %v928_v9  ;;  %v929_v11 = vpack.c.bf16 %v798_v10, %v797_v8 }
 0x1a0   : >> { %817 = vst.msk [vmem:[%s812_s24 + $0x8] sm:$0xff] %vm815_vm5, %v929_v11 }
 0x1a1 PF: > { %s14_s15 = sadd.s32 1, %s1011_s15  }
 0x1a2   : > { %p11_p5 = scmp.ge.s32.totalorder %s14_s15, 4  }
 0x1a4   :  { %13 = sbr.rel (!%p11_p5) target bundleno = 1 (0x1), region = 88 }

// kernel: forward.9
= control target key start
LH: loop header
LB: loop body
LE: loop exit
PB: predicated region body
PF: predicated region fallthrough
CT: control target
= control target key end

     0   :  { %s2020_s15 = smov 0   ;;  %s2336_s0 = inlined_call_operand.vmem [shape: bf16[2,32,16,208], index: 0, kind: input, shape index: {}]   ;;  %s2337_s1 = inlined_call_operand.vmem [shape: bf16[32,144], index: 1, kind: input, shape index: {}]   ;;  %s2338_s2 = inlined_call_operand.vmem [shape: f32[32,1], index: 2, kind: input, shape index: {}]   ;;  %s2339_s3 = inlined_call_operand.vmem [shape: f32[32,1], index: 3, kind: input, shape index: {}]   ;;  %s2340_s4 = inlined_call_operand.vmem [shape: bf16[2,15,32,206], index: 4, kind: output, shape index: {}]  }
   0x1 LB: > { %s1710_s16 = sadd.s32 4294967295, %s1979_s15   ;;  %p1714_p0 = scmp.ge.s32.totalorder %s1979_s15, 1  ;;  %s1979_s15 = sphi %s2020_s15, %s14_s15  }
   0x2   : > { %p162_p1 = scmp.lt.s32.totalorder %s1979_s15, 3 }
   0x4   : > { %p163_p2 = pnand %p1714_p0, %p162_p1 }
   0x5   : > { %p188_p3 = scmp.lt.s32.totalorder (!%p163_p2), %s1710_s16, 1  ;;  %v2031_v0 = vld [vmem:[%s2337_s1] sm:$0xff] (!%p163_p2)  ;;  %v2036_v1 = vld [vmem:[%s2337_s1 + $0x8] sm:$0xff] (!%p163_p2)  ;;  %v2041_v2 = vld [vmem:[%s2337_s1 + $0x10] sm:$0xff] (!%p163_p2)  ;;  %s2098_s25 = smov (!%p163_p2), 0  }
   0x6   : > { %166 = sbr.rel (%p163_p2) target bundleno = 508 (0x1fc), region = 36  ;;  %v2046_v3 = vld [vmem:[%s2337_s1 + $0x18] sm:$0xff] (!%p163_p2)  ;;  %v2051_v4 = vld [vmem:[%s2338_s2] sm:$0xff] (!%p163_p2)  ;;  %v2056_v5 = vld [vmem:[%s2338_s2 + $0x8] sm:$0xff] (!%p163_p2) }
   0x7   : > { %v2061_v6 = vld [vmem:[%s2338_s2 + $0x10] sm:$0xff] (!%p163_p2)  ;;  %v2066_v7 = vld [vmem:[%s2338_s2 + $0x18] sm:$0xff] (!%p163_p2)  ;;  %v2071_v8 = vld [vmem:[%s2339_s3] sm:$0xff] (!%p163_p2) }
   0x8   : > { %v2076_v9 = vld [vmem:[%s2339_s3 + $0x8] sm:$0xff] (!%p163_p2)  ;;  %v2081_v10 = vld [vmem:[%s2339_s3 + $0x10] sm:$0xff] (!%p163_p2)  ;;  %v2086_v11 = vld [vmem:[%s2339_s3 + $0x18] sm:$0xff] (!%p163_p2) }
   0xd   : > { %s2344_s16 = smov (!%p188_p3, %s1710_s16), 1 }
   0xe   : > { %s1789_s17 = sshll.u32 %s2344_s16, 9  ;;  %s1928_s18 = smul.u32 480, %s2344_s16 }
   0xf   : > { %s2091_s21 = scalar_lea.vmem %s2336_s0, %s1789_s17 }
  0x10   : > { %s2096_s24 = scalar_lea.vmem %s2340_s4, %s1928_s18 }
  0x11 LB: >> { %v1985_v12 = vmov 0   ;;  %s1791_s16 = sshll.u32 %s1983_s25, 5  ;;  %s1986_s27 = smov 127   ;;  %v2133_v17 = vcombine.low %v2041_v2, %v2046_v3  ;;  %v2139_v18 = vcombine.low %v2031_v0, %v2036_v1  ;;  %vm249_vm0 = vcmask 1039360   ;;  %s1983_s25 = sphi %s2098_s25, %s216_s25  }
  0x12   : >> { %292 = vmatprep.mubr.bf16.mxu0 %v1985_v12  ;;  %1037 = vmatprep.mubr.bf16.mxu1 %v1985_v12  ;;  %s2111_s26 = scalar_lea.vmem %s2091_s21, %s1791_s16  ;;  %s1987_s28 = smov 112   ;;  %vm253_vm1 = vcmask 130048   ;;  %vm382_vm2 = vcmask 1031168   ;;  %v1753_v61 = vcombine.high %v2031_v0, %v2036_v1  ;;  %v1754_v62 = vcombine.high %v2041_v2, %v2046_v3 }
  0x13   : >> { %1956 = vset.pattern.permute.xlu1 %v1985_v12  ;;  %1955 = vset.pattern.permute.xlu0 %v1985_v12  ;;  %v2114_v13 = vld [vmem:[%s2111_s26 + $0x10] ss:$8 sps:$4 sm:$0xff]   ;;  %v2117_v14 = vld [vmem:[%s2111_s26] ss:$8 sps:$4 sm:$0xff]   ;;  %v2122_v15 = vld [vmem:[%s2111_s26 + $0x14] ss:$8 sps:$4 sm:$0xff]   ;;  %s2306_s10 = scalar_lea.vmem %s2096_s24, %s1791_s16 }
  0x14   : >> { %544 = vrot.lane.b32.xlu1 %v2114_v13, %s1986_s27  ;;  %245 = vrot.lane.b32.xlu0 %v2117_v14, %s1986_s27  ;;  %v2127_v16 = vld [vmem:[%s2111_s26 + $0x4] ss:$8 sps:$4 sm:$0xff]   ;;  %s1988_s29 = smov 126   ;;  %s1989_s30 = smov 96   ;;  %v2159_v20 = vld [vmem:[%s2111_s26 + $0x20] ss:$8 sps:$4 sm:$0xff]  }
  0x15   : >> { %s1990_s5 = smov 80   ;;  %v2155_v19 = vld [vmem:[%s2111_s26 + $0x24] ss:$8 sps:$4 sm:$0xff]   ;;  %s1991_s6 = smov 64   ;;  %v2175_v21 = vld [vmem:[%s2111_s26 + $0x34] ss:$8 sps:$4 sm:$0xff]  }
  0x16   : >> { %s1992_s7 = smov 48   ;;  %s1993_s8 = smov 32   ;;  %v2179_v22 = vld [vmem:[%s2111_s26 + $0x30] ss:$8 sps:$4 sm:$0xff]   ;;  %vm1627_vm3 = vcmask 1043456   ;;  %vm1628_vm4 = vcmask 637956  }
  0x17   : >> { %s1994_s9 = smov 16   ;;  %vm2310_vm5 = vmor %vm1628_vm4, %vm1627_vm3  ;;  %s216_s25 = sadd.s32 1, %s1983_s25  }
  0x18   : >> { %546 = vrot.lane.b32.xlu1 %v2122_v15, %s1986_s27  ;;  %247 = vrot.lane.b32.xlu0 %v2127_v16, %s1986_s27  ;;  %p213_p4 = scmp.ge.s32.totalorder %s216_s25, 15  }
  0x1c   : >> { %235 = vrot.lane.b32.xlu1 %v2133_v17, %s1987_s28  ;;  %233 = vrot.lane.b32.xlu0 %v2139_v18, %s1987_s28 }
  0x20   : >> { %380 = vrot.lane.b32.xlu1 %v2127_v16, %s1988_s29  ;;  %378 = vrot.lane.b32.xlu0 %v2117_v14, %s1988_s29 }
  0x24   : >> { %624 = vrot.lane.b32.xlu1 %v2122_v15, %s1988_s29  ;;  %622 = vrot.lane.b32.xlu0 %v2114_v13, %s1988_s29 }
  0x28   : >> { %376 = vrot.lane.b32.xlu1 %v2133_v17, %s1989_s30  ;;  %374 = vrot.lane.b32.xlu0 %v2139_v18, %s1989_s30 }
  0x2c   : >> { %461 = vrot.lane.b32.xlu1 %v2133_v17, %s1990_s5  ;;  %459 = vrot.lane.b32.xlu0 %v2139_v18, %s1990_s5 }
  0x30   : >> { %789 = vrot.lane.b32.xlu1 %v2155_v19, %s1986_s27  ;;  %787 = vrot.lane.b32.xlu0 %v2159_v20, %s1986_s27 }
  0x34   : >> { %542 = vrot.lane.b32.xlu1 %v2133_v17, %s1991_s6  ;;  %540 = vrot.lane.b32.xlu0 %v2139_v18, %s1991_s6 }
  0x38   : >> { %869 = vrot.lane.b32.xlu1 %v2155_v19, %s1988_s29  ;;  %867 = vrot.lane.b32.xlu0 %v2159_v20, %s1988_s29 }
  0x3c   : >> { %620 = vrot.lane.b32.xlu1 %v2133_v17, %s1992_s7  ;;  %618 = vrot.lane.b32.xlu0 %v2139_v18, %s1992_s7 }
  0x40   : >> { %704 = vrot.lane.b32.xlu1 %v2133_v17, %s1993_s8  ;;  %702 = vrot.lane.b32.xlu0 %v2139_v18, %s1993_s8 }
  0x44   : >> { %1434 = vrot.lane.b32.xlu1 %v2175_v21, %s1986_s27  ;;  %1432 = vrot.lane.b32.xlu0 %v2179_v22, %s1986_s27 }
  0x48   : >> { %785 = vrot.lane.b32.xlu1 %v2133_v17, %s1994_s9  ;;  %783 = vrot.lane.b32.xlu0 %v2139_v18, %s1994_s9 }
  0x4c   : >> { %1502 = vrot.lane.b32.xlu1 %v2175_v21, %s1988_s29  ;;  %1500 = vrot.lane.b32.xlu0 %v2179_v22, %s1988_s29 }
  0x50   : >> { %948 = vperm.xlu1 %1956, %v2056_v5   ;;  %943 = vperm.xlu0 %1955, %v2051_v4  }
  0x54   : >> { %953 = vperm.xlu1 %1956, %v2061_v6   ;;  %958 = vperm.xlu0 %1955, %v2066_v7  }
  0x58   : >> { %971 = vperm.xlu1 %1956, %v2071_v8   ;;  %976 = vperm.xlu0 %1955, %v2076_v9  }
  0x5c   : >> { %981 = vperm.xlu1 %1956, %v2081_v10   ;;  %986 = vperm.xlu0 %1955, %v2086_v11  }
  0x86   : >> { %v545_v23 = vpop.permute.xlu1 %544  ;;  %v246_v24 = vpop.permute.xlu0 %245 }
  0x8a   : >> { %v547_v25 = vpop.permute.xlu1 %546  ;;  %v248_v26 = vpop.permute.xlu0 %247 }
  0x8b   : >> { %1005 = vmatprep.subr.bf16.mxu1 %v547_v25  ;;  %v2200_v27 = vsel %vm249_vm0, %v545_v23, %v547_v25  ;;  %260 = vmatprep.subr.bf16.mxu0 %v248_v26  ;;  %v250_v28 = vsel %vm249_vm0, %v246_v24, %v248_v26 }
  0x8c   : >> { %1006 = vmatpush1.bf16.msra.mxu1 %v2200_v27  ;;  %261 = vmatpush1.bf16.msra.mxu0 %v250_v28 }
  0x8d   : >> { %1058 = vmatprep.subr.bf16.mxu1 %v2122_v15  ;;  %321 = vmatprep.subr.bf16.mxu0 %v2127_v16 }
  0x8e   : >> { %v236_v29 = vpop.permute.xlu1 %235  ;;  %v234_v30 = vpop.permute.xlu0 %233 }
  0x8f   : >> { %1725 = vmatmul.mubr.msk.bf16.vlgmr.msra.gmra.mrb[0].mxu0 %vm253_vm1, %v234_v30  ;;  %1757 = vmatmul.mubr.msk.bf16.vlgmr.msra.gmra.mrb[0].mxu1 %vm253_vm1, %v234_v30 }
  0x90   : >> { %322 = vmatpush1.bf16.msra.mxu0 %v2117_v14  ;;  %1059 = vmatpush1.bf16.msra.mxu1 %v2114_v13 }
  0x91   : >> { %302 = vmatprep.mubr.bf16.mxu0 %v1985_v12  ;;  %1047 = vmatprep.mubr.bf16.mxu1 %v1985_v12 }
  0x92   : >> { %v381_v31 = vpop.permute.xlu1 %380  ;;  %v379_v32 = vpop.permute.xlu0 %378 }
  0x93   : >> { %392 = vmatprep.subr.bf16.mxu0 %v381_v31  ;;  %v383_v35 = vsel %vm382_vm2, %v379_v32, %v381_v31 }
  0x96   : >> { %v625_v33 = vpop.permute.xlu1 %624  ;;  %v623_v34 = vpop.permute.xlu0 %622 }
  0x97   : >> { %1111 = vmatprep.subr.bf16.mxu1 %v625_v33  ;;  %1726 = vmatmul.mubr.msk.bf16.gmra.mrb[4].mxu0 %vm253_vm1, %v236_v29  ;;  %v626_v36 = vsel %vm382_vm2, %v623_v34, %v625_v33 }
  0x98   : >> { %1758 = vmatmul.mubr.msk.bf16.gmra.mrb[4].mxu1 %vm253_vm1, %v236_v29  ;;  %353 = vmatprep.mubr.bf16.mxu0 %v1985_v12 }
  0x99   : >> { %1090 = vmatprep.mubr.bf16.mxu1 %v1985_v12 }
  0x9a   : >> { %v377_v37 = vpop.permute.xlu1 %376  ;;  %v375_v39 = vpop.permute.xlu0 %374 }
  0x9e   : >> { %v462_v38 = vpop.permute.xlu1 %461  ;;  %v460_v41 = vpop.permute.xlu0 %459 }
  0x9f   : >> { %1727 = vmatmul.mubr.msk.bf16.vlgmr.msra.gmra.mrb[0].mxu0 %vm253_vm1, %v2139_v18 }
  0xa0   : >> { %1759 = vmatmul.mubr.msk.bf16.vlgmr.msra.gmra.mrb[0].mxu1 %vm253_vm1, %v2139_v18  ;;  %393 = vmatpush1.bf16.msra.mxu0 %v383_v35 }
  0xa1   : >> { %1112 = vmatpush1.bf16.msra.mxu1 %v626_v36  ;;  %363 = vmatprep.mubr.bf16.mxu0 %v1985_v12 }
  0xa2   : >> { %1100 = vmatprep.mubr.bf16.mxu1 %v1985_v12  ;;  %479 = vmatprep.subr.bf16.mxu0 %v2122_v15  ;;  %v790_v40 = vpop.permute.xlu1 %789  ;;  %v788_v43 = vpop.permute.xlu0 %787 }
  0xa3   : >> { %1172 = vmatprep.subr.bf16.mxu1 %v2155_v19  ;;  %v791_v44 = vsel %vm249_vm0, %v788_v43, %v790_v40 }
  0xa6   : >> { %v543_v42 = vpop.permute.xlu1 %542  ;;  %v541_v46 = vpop.permute.xlu0 %540 }
  0xa7   : >> { %1728 = vmatmul.mubr.msk.bf16.gmra.mrb[4].mxu0 %vm253_vm1, %v2133_v17 }
  0xa8   : >> { %1760 = vmatmul.mubr.msk.bf16.gmra.mrb[4].mxu1 %vm253_vm1, %v2133_v17  ;;  %424 = vmatprep.mubr.bf16.mxu0 %v1985_v12 }
  0xa9   : >> { %1143 = vmatprep.mubr.bf16.mxu1 %v1985_v12 }
  0xaa   : >> { %v870_v45 = vpop.permute.xlu1 %869  ;;  %v868_v47 = vpop.permute.xlu0 %867 }
  0xab   : >> { %v871_v48 = vsel %vm382_vm2, %v868_v47, %v870_v45 }
  0xae   : >> { %v621_v49 = vpop.permute.xlu1 %620  ;;  %v619_v51 = vpop.permute.xlu0 %618 }
  0xaf   : >> { %1729 = vmatmul.mubr.msk.bf16.vlgmr.msra.gmra.mrb[0].mxu0 %vm253_vm1, %v375_v39 }
  0xb0   : >> { %1761 = vmatmul.mubr.msk.bf16.vlgmr.msra.gmra.mrb[0].mxu1 %vm253_vm1, %v375_v39  ;;  %480 = vmatpush1.bf16.msra.mxu0 %v2114_v13 }
  0xb1   : >> { %1173 = vmatpush1.bf16.msra.mxu1 %v2159_v20  ;;  %557 = vmatprep.subr.bf16.mxu0 %v547_v25 }
  0xb2   : >> { %434 = vmatprep.mubr.bf16.mxu0 %v1985_v12  ;;  %1153 = vmatprep.mubr.bf16.mxu1 %v1985_v12  ;;  %v705_v50 = vpop.permute.xlu1 %704  ;;  %v703_v53 = vpop.permute.xlu0 %702 }
  0xb3   : >> { %1233 = vmatprep.subr.bf16.mxu1 %v790_v40 }
  0xb6   : >> { %v1435_v52 = vpop.permute.xlu1 %1434  ;;  %v1433_v55 = vpop.permute.xlu0 %1432 }
  0xb7   : >> { %1730 = vmatmul.mubr.msk.bf16.gmra.mrb[4].mxu0 %vm253_vm1, %v377_v37  ;;  %v1436_v56 = vsel %vm249_vm0, %v1433_v55, %v1435_v52 }
  0xb8   : >> { %1762 = vmatmul.mubr.msk.bf16.gmra.mrb[4].mxu1 %vm253_vm1, %v377_v37  ;;  %511 = vmatprep.mubr.bf16.mxu0 %v1985_v12 }
  0xb9   : >> { %1204 = vmatprep.mubr.bf16.mxu1 %v1985_v12 }
  0xba   : >> { %v786_v54 = vpop.permute.xlu1 %785  ;;  %v784_v58 = vpop.permute.xlu0 %783 }
  0xbe   : >> { %v1503_v57 = vpop.permute.xlu1 %1502  ;;  %v1501_v59 = vpop.permute.xlu0 %1500 }
  0xbf   : >> { %1737 = vmatmul.mubr.msk.bf16.vlgmr.msra.gmra.mrb[0].mxu0 %vm253_vm1, %v460_v41  ;;  %v1504_v60 = vsel %vm382_vm2, %v1501_v59, %v1503_v57 }
  0xc0   : >> { %1763 = vmatmul.mubr.msk.bf16.vlgmr.msra.gmra.mrb[0].mxu1 %vm253_vm1, %v460_v41  ;;  %558 = vmatpush1.bf16.msra.mxu0 %v2200_v27 }
  0xc1   : >> { %1234 = vmatpush1.bf16.msra.mxu1 %v791_v44  ;;  %635 = vmatprep.subr.bf16.mxu0 %v625_v33 }
  0xc2   : >> { %521 = vmatprep.mubr.bf16.mxu0 %v1985_v12  ;;  %1214 = vmatprep.mubr.bf16.mxu1 %v1985_v12 }
  0xc3   : >> { %1294 = vmatprep.subr.bf16.mxu1 %v870_v45 }
  0xc7   : >> { %1738 = vmatmul.mubr.msk.bf16.gmra.mrb[4].mxu0 %vm253_vm1, %v462_v38 }
  0xc8   : >> { %1764 = vmatmul.mubr.msk.bf16.gmra.mrb[4].mxu1 %vm253_vm1, %v462_v38  ;;  %589 = vmatprep.mubr.bf16.mxu0 %v1985_v12 }
  0xc9   : >> { %1265 = vmatprep.mubr.bf16.mxu1 %v1985_v12 }
  0xcf   : >> { %1739 = vmatmul.mubr.msk.bf16.vlgmr.msra.gmra.mrb[0].mxu0 %vm253_vm1, %v541_v46  ;;  %v949_v63 = vpop.permute.xlu1 %948  ;;  %v944_v13 = vpop.permute.xlu0 %943 }
  0xd0   : >> { %1765 = vmatmul.mubr.msk.bf16.vlgmr.msra.gmra.mrb[0].mxu1 %vm253_vm1, %v541_v46  ;;  %636 = vmatpush1.bf16.msra.mxu0 %v626_v36 }
  0xd1   : >> { %1295 = vmatpush1.bf16.msra.mxu1 %v871_v48  ;;  %599 = vmatprep.mubr.bf16.mxu0 %v1985_v12 }
  0xd2   : >> { %1275 = vmatprep.mubr.bf16.mxu1 %v1985_v12  ;;  %722 = vmatprep.subr.bf16.mxu0 %v2155_v19 }
  0xd3   : >> { %1371 = vmatprep.subr.bf16.mxu1 %v2175_v21  ;;  %v954_v14 = vpop.permute.xlu1 %953  ;;  %v2301_v15 = vpop.permute.xlu0 %958 }
  0xd7   : >> { %1740 = vmatmul.mubr.msk.bf16.gmra.mrb[4].mxu0 %vm253_vm1, %v543_v42  ;;  %v972_v16 = vpop.permute.xlu1 %971  ;;  %v977_v32 = vpop.permute.xlu0 %976 }
  0xd8   : >> { %1766 = vmatmul.mubr.msk.bf16.gmra.mrb[4].mxu1 %vm253_vm1, %v543_v42  ;;  %667 = vmatprep.mubr.bf16.mxu0 %v1985_v12 }
  0xd9   : >> { %1326 = vmatprep.mubr.bf16.mxu1 %v1985_v12 }
  0xdb   : >> { %v982_v46 = vpop.permute.xlu1 %981 }
  0xdf   : >> { %1741 = vmatmul.mubr.msk.bf16.vlgmr.msra.gmra.mrb[0].mxu0 %vm253_vm1, %v619_v51 }
  0xe0   : >> { %1767 = vmatmul.mubr.msk.bf16.vlgmr.msra.gmra.mrb[0].mxu1 %vm253_vm1, %v619_v51  ;;  %723 = vmatpush1.bf16.msra.mxu0 %v2159_v20 }
  0xe1   : >> { %1372 = vmatpush1.bf16.msra.mxu1 %v2179_v22  ;;  %800 = vmatprep.subr.bf16.mxu0 %v790_v40 }
  0xe2   : >> { %677 = vmatprep.mubr.bf16.mxu0 %v1985_v12  ;;  %1336 = vmatprep.mubr.bf16.mxu1 %v1985_v12 }
  0xe3   : >> { %1439 = vmatprep.subr.bf16.mxu1 %v1435_v52 }
  0xe7   : >> { %1742 = vmatmul.mubr.msk.bf16.gmra.mrb[4].mxu0 %vm253_vm1, %v621_v49 }
  0xe8   : >> { %1768 = vmatmul.mubr.msk.bf16.gmra.mrb[4].mxu1 %vm253_vm1, %v621_v49  ;;  %754 = vmatprep.mubr.bf16.mxu0 %v1985_v12 }
  0xe9   : >> { %1403 = vmatprep.mubr.bf16.mxu1 %v1985_v12 }
  0xef   : >> { %1749 = vmatmul.mubr.msk.bf16.vlgmr.msra.gmra.mrb[0].mxu0 %vm253_vm1, %v703_v53 }
  0xf0   : >> { %1775 = vmatmul.mubr.msk.bf16.vlgmr.msra.gmra.mrb[0].mxu1 %vm253_vm1, %v703_v53  ;;  %801 = vmatpush1.bf16.msra.mxu0 %v791_v44 }
  0xf1   : >> { %1440 = vmatpush1.bf16.msra.mxu1 %v1436_v56  ;;  %880 = vmatprep.subr.bf16.mxu0 %v870_v45 }
  0xf2   : >> { %764 = vmatprep.mubr.bf16.mxu0 %v1985_v12  ;;  %1413 = vmatprep.mubr.bf16.mxu1 %v1985_v12 }
  0xf3   : >> { %1507 = vmatprep.subr.bf16.mxu1 %v1503_v57 }
  0xf7   : >> { %1750 = vmatmul.mubr.msk.bf16.gmra.mrb[4].mxu0 %vm253_vm1, %v705_v50 }
  0xf8   : >> { %1776 = vmatmul.mubr.msk.bf16.gmra.mrb[4].mxu1 %vm253_vm1, %v705_v50  ;;  %832 = vmatprep.mubr.bf16.mxu0 %v1985_v12 }
  0xf9   : >> { %1471 = vmatprep.mubr.bf16.mxu1 %v1985_v12 }
  0xff   : >> { %1751 = vmatmul.mubr.msk.bf16.vlgmr.msra.gmra.mrb[0].mxu0 %vm253_vm1, %v784_v58 }
 0x100   : >> { %1777 = vmatmul.mubr.msk.bf16.vlgmr.msra.gmra.mrb[0].mxu1 %vm253_vm1, %v784_v58  ;;  %881 = vmatpush1.bf16.msra.mxu0 %v871_v48 }
 0x101   : >> { %1508 = vmatpush1.bf16.msra.mxu1 %v1504_v60  ;;  %842 = vmatprep.mubr.bf16.mxu0 %v1985_v12 }
 0x102   : >> { %1481 = vmatprep.mubr.bf16.mxu1 %v1985_v12 }
 0x107   : >> { %1752 = vmatmul.mubr.msk.bf16.gmra.mrb[4].mxu0 %vm253_vm1, %v786_v54 }
 0x108   : >> { %1778 = vmatmul.mubr.msk.bf16.gmra.mrb[4].mxu1 %vm253_vm1, %v786_v54  ;;  %912 = vmatprep.mubr.bf16.mxu0 %v1985_v12 }
 0x109   : >> { %1539 = vmatprep.mubr.bf16.mxu1 %v1985_v12 }
 0x10f   : >> { %1755 = vmatmul.mubr.msk.bf16.vlgmr.msra.gmra.mrb[0].mxu0 %vm253_vm1, %v1753_v61 }
 0x110   : >> { %1779 = vmatmul.mubr.msk.bf16.vlgmr.msra.gmra.mrb[0].mxu1 %vm253_vm1, %v1753_v61  ;;  %922 = vmatprep.mubr.bf16.mxu0 %v1985_v12 }
 0x111   : >> { %1549 = vmatprep.mubr.bf16.mxu1 %v1985_v12 }
 0x117   : >> { %1756 = vmatmul.mubr.msk.bf16.gmra.mrb[4].mxu0 %vm253_vm1, %v1754_v62 }
 0x118   : >> { %1780 = vmatmul.mubr.msk.bf16.gmra.mrb[4].mxu1 %vm253_vm1, %v1754_v62 }
 0x1e2   : >> { %v914_v17 = vpop.f32.mrb[0].mxu0 }
 0x1e3   : >> { %v1541_v18 = vpop.f32.mrb[0].mxu1  ;;  %v961_v19 = vmul.f32 %v944_v13, %v914_v17  ;;  %v916_v21 = vpop.f32.mrb[1].mxu0 }
 0x1e4   : >> { %v1568_v20 = vmul.f32 %v1541_v18, %v944_v13  ;;  %v1543_v22 = vpop.f32.mrb[1].mxu1  ;;  %v962_v12 = vmul.f32 %v944_v13, %v916_v21  ;;  %v918_v24 = vpop.f32.mrb[2].mxu0 }
 0x1e5   : >> { %v1569_v23 = vmul.f32 %v1543_v22, %v944_v13  ;;  %v1545_v25 = vpop.f32.mrb[2].mxu1  ;;  %v989_v26 = vadd.f32 %v972_v16, %v961_v19  ;;  %v963_v28 = vmul.f32 %v949_v63, %v918_v24  ;;  %v920_v30 = vpop.f32.mrb[3].mxu0 }
 0x1e6   : >> { %v1576_v27 = vadd.f32 %v1568_v20, %v972_v16  ;;  %v1570_v29 = vmul.f32 %v1545_v25, %v949_v63  ;;  %v1547_v31 = vpop.f32.mrb[3].mxu1  ;;  %v990_v33 = vadd.f32 %v972_v16, %v962_v12  ;;  %v964_v35 = vmul.f32 %v949_v63, %v920_v30  ;;  %v987_v12 = vpop.permute.xlu0 %986 }
 0x1e7   : >> { %v1577_v34 = vadd.f32 %v1569_v23, %v972_v16  ;;  %v1571_v36 = vmul.f32 %v1547_v31, %v949_v63  ;;  %v997_v37 = vmax.f32 %v989_v26, 0.0  ;;  %v991_v39 = vadd.f32 %v977_v32, %v963_v28 }
 0x1e8   : >> { %v1584_v38 = vmax.f32 %v1576_v27, 0.0  ;;  %v1578_v40 = vadd.f32 %v1570_v29, %v977_v32  ;;  %v998_v41 = vmax.f32 %v990_v33, 0.0  ;;  %v992_v43 = vadd.f32 %v977_v32, %v964_v35 }
 0x1e9   : >> { %v1585_v42 = vmax.f32 %v1577_v34, 0.0  ;;  %v1579_v44 = vadd.f32 %v1571_v36, %v977_v32  ;;  %v999_v47 = vmax.f32 %v991_v39, 0.0 }
 0x1ea   : >> { %v1592_v45 = vmax.f32 %v997_v37, %v1584_v38  ;;  %v1586_v48 = vmax.f32 %v1578_v40, 0.0  ;;  %v1000_v50 = vmax.f32 %v992_v43, 0.0  ;;  %v924_v52 = vpop.f32.mrb[4].mxu0 }
 0x1eb   : >> { %v1593_v49 = vmax.f32 %v998_v41, %v1585_v42  ;;  %v1587_v51 = vmax.f32 %v1579_v44, 0.0  ;;  %v1551_v53 = vpop.f32.mrb[4].mxu1  ;;  %v965_v56 = vmul.f32 %v954_v14, %v924_v52  ;;  %v926_v58 = vpop.f32.mrb[5].mxu0 }
 0x1ec   : >> { %v1594_v55 = vmax.f32 %v999_v47, %v1586_v48  ;;  %v1572_v57 = vmul.f32 %v1551_v53, %v954_v14  ;;  %v1553_v59 = vpop.f32.mrb[5].mxu1  ;;  %v966_v62 = vmul.f32 %v954_v14, %v926_v58  ;;  %v928_v13 = vpop.f32.mrb[6].mxu0 }
 0x1ed   : >> { %v1795_v60 = vpack.c.bf16 %v1593_v49, %v1592_v45  ;;  %v1595_v61 = vmax.f32 %v1000_v50, %v1587_v51  ;;  %v1573_v63 = vmul.f32 %v1553_v59, %v954_v14  ;;  %v1555_v16 = vpop.f32.mrb[6].mxu1  ;;  %v993_v17 = vadd.f32 %v982_v46, %v965_v56  ;;  %v930_v21 = vpop.f32.mrb[7].mxu0 }
 0x1ee   : >> { %v1580_v18 = vadd.f32 %v1572_v57, %v982_v46  ;;  %v967_v19 = vmul.f32 %v2301_v15, %v928_v13  ;;  %v1574_v20 = vmul.f32 %v1555_v16, %v2301_v15  ;;  %v1557_v22 = vpop.f32.mrb[7].mxu1  ;;  %v994_v24 = vadd.f32 %v982_v46, %v966_v62 }
 0x1ef   : >> { %1630 = vst.msk [vmem:[%s2306_s10] sm:$0xff] %vm2310_vm5, %v1795_v60  ;;  %v1796_v23 = vpack.c.bf16 %v1595_v61, %v1594_v55  ;;  %v1581_v25 = vadd.f32 %v1573_v63, %v982_v46  ;;  %v968_v14 = vmul.f32 %v2301_v15, %v930_v21  ;;  %v1001_v26 = vmax.f32 %v993_v17, 0.0 }
 0x1f0   : >> { %v1588_v27 = vmax.f32 %v1580_v18, 0.0  ;;  %v995_v28 = vadd.f32 %v987_v12, %v967_v19  ;;  %v1582_v29 = vadd.f32 %v1574_v20, %v987_v12  ;;  %v1002_v30 = vmax.f32 %v994_v24, 0.0 }
 0x1f1   : >> { %1631 = vst.msk [vmem:[%s2306_s10 + $0x8] sm:$0xff] %vm2310_vm5, %v1796_v23  ;;  %v1589_v31 = vmax.f32 %v1581_v25, 0.0  ;;  %v996_v32 = vadd.f32 %v987_v12, %v968_v14  ;;  %v1575_v33 = vmul.f32 %v1557_v22, %v2301_v15 }
 0x1f2   : >> { %v1596_v34 = vmax.f32 %v1001_v26, %v1588_v27  ;;  %v1003_v35 = vmax.f32 %v995_v28, 0.0  ;;  %v1590_v36 = vmax.f32 %v1582_v29, 0.0 }
 0x1f3   : >> { %v1597_v37 = vmax.f32 %v1002_v30, %v1589_v31  ;;  %v1004_v38 = vmax.f32 %v996_v32, 0.0  ;;  %v1583_v39 = vadd.f32 %v1575_v33, %v987_v12 }
 0x1f4   : >> { %v1598_v40 = vmax.f32 %v1003_v35, %v1590_v36 }
 0x1f5   : >> { %v1797_v41 = vpack.c.bf16 %v1597_v37, %v1596_v34  ;;  %v1591_v42 = vmax.f32 %v1583_v39, 0.0  ;;  %215 = sbr.rel (!%p213_p4) target bundleno = 17 (0x11), region = 78 }
 0x1f7   : >> { %1632 = vst.msk [vmem:[%s2306_s10 + $0x10] sm:$0xff] %vm2310_vm5, %v1797_v41  ;;  %v1599_v43 = vmax.f32 %v1004_v38, %v1591_v42 }
 0x1f9   : >> { %v1798_v44 = vpack.c.bf16 %v1599_v43, %v1598_v40 }
 0x1fb   : >> { %1633 = vst.msk [vmem:[%s2306_s10 + $0x18] sm:$0xff] %vm2310_vm5, %v1798_v44 }
 0x1fc PF: > { %s14_s15 = sadd.s32 1, %s1979_s15  }
 0x1fd   : > { %p11_p5 = scmp.ge.s32.totalorder %s14_s15, 4  }
 0x1ff   :  { %13 = sbr.rel (!%p11_p5) target bundleno = 1 (0x1), region = 89 }

// kernel: forward.11
= control target key start
LH: loop header
LB: loop body
LE: loop exit
PB: predicated region body
PF: predicated region fallthrough
CT: control target
= control target key end

     0   :  { %v802_v47 = vmov 1983009808   ;;  %v154_v49 = vlaneseq  ;;  %s1248_s0 = inlined_call_operand.vmem [shape: f32[2,1024], index: 0, kind: input, shape index: {}]   ;;  %s1249_s1 = inlined_call_operand.vmem [shape: f32[1024,4], index: 1, kind: input, shape index: {}]   ;;  %s1250_s2 = inlined_call_operand.vmem [shape: f32[1,4], index: 2, kind: input, shape index: {}]   ;;  %s1251_s3 = inlined_call_operand.vmem [shape: f32[1,4], index: 3, kind: input, shape index: {}]   ;;  %s1252_s4 = inlined_call_operand.hbm [shape: f32[2,4], index: 4, kind: output, shape index: {}]  }
   0x1   :  { %v36_v0 = vld [vmem:[%s1249_s1 + $0x80] sm:$0xff]  ;;  %v37_v1 = vld [vmem:[%s1249_s1 + $0x88] sm:$0xff]  ;;  %v38_v11 = vld [vmem:[%s1249_s1 + $0x90] sm:$0xff]  ;;  %v152_v48 = vunpack.c.l.s4 %v802_v47 }
   0x2   :  { %v68_v2 = vld [vmem:[%s1249_s1 + $0x180] sm:$0xff]  ;;  %v646_v3 = vpack.c.bf16 %v37_v1, %v36_v0  ;;  %v69_v4 = vld [vmem:[%s1249_s1 + $0x188] sm:$0xff]  ;;  %v39_v13 = vld [vmem:[%s1249_s1 + $0x98] sm:$0xff]  ;;  %v155_v0 = vshrl.u32 %v154_v49, 7 }
   0x3   :  { %v20_v5 = vld [vmem:[%s1249_s1] sm:$0xff]  ;;  %v21_v6 = vld [vmem:[%s1249_s1 + $0x8] sm:$0xff]  ;;  %v678_v7 = vpack.c.bf16 %v69_v4, %v68_v2  ;;  %v70_v14 = vld [vmem:[%s1249_s1 + $0x190] sm:$0xff]  ;;  %v650_v16 = vpack.c.bf16 %v39_v13, %v38_v11  ;;  %v153_v63 = vunpack.c.0.s8 %v152_v48 }
   0x4   :  { %v648_v8 = vpack.c.bf16 %v21_v6, %v20_v5  ;;  %v52_v9 = vld [vmem:[%s1249_s1 + $0x100] sm:$0xff]  ;;  %v53_v10 = vld [vmem:[%s1249_s1 + $0x108] sm:$0xff]  ;;  %647 = vmatprep.subr.bf16.mxu0 %v646_v3  ;;  %v71_v15 = vld [vmem:[%s1249_s1 + $0x198] sm:$0xff] }
   0x5   :  { %v680_v12 = vpack.c.bf16 %v53_v10, %v52_v9  ;;  %679 = vmatprep.subr.bf16.mxu1 %v678_v7  ;;  %v682_v17 = vpack.c.bf16 %v71_v15, %v70_v14  ;;  %v22_v18 = vld [vmem:[%s1249_s1 + $0x10] sm:$0xff]  ;;  %v23_v19 = vld [vmem:[%s1249_s1 + $0x18] sm:$0xff]  ;;  %v40_v23 = vld [vmem:[%s1249_s1 + $0xa0] sm:$0xff]  ;;  %v979_v13 = vsub.s32 %v153_v63, %v155_v0 }
   0x6   :  { %649 = vmatpush3.bf16.msra.mxu0 %v648_v8  ;;  %v54_v20 = vld [vmem:[%s1249_s1 + $0x110] sm:$0xff]  ;;  %v652_v21 = vpack.c.bf16 %v23_v19, %v22_v18  ;;  %v55_v22 = vld [vmem:[%s1249_s1 + $0x118] sm:$0xff]  ;;  %v41_v24 = vld [vmem:[%s1249_s1 + $0xa8] sm:$0xff] }
   0x7   :  { %681 = vmatpush3.bf16.msra.mxu1 %v680_v12  ;;  %651 = vmatprep.subr.bf16.mxu0 %v650_v16  ;;  %v684_v25 = vpack.c.bf16 %v55_v22, %v54_v20  ;;  %v654_v26 = vpack.c.bf16 %v41_v24, %v40_v23  ;;  %v72_v27 = vld [vmem:[%s1249_s1 + $0x1a0] sm:$0xff]  ;;  %v73_v28 = vld [vmem:[%s1249_s1 + $0x1a8] sm:$0xff]  ;;  %v42_v35 = vld [vmem:[%s1249_s1 + $0xb0] sm:$0xff] }
   0x8   :  { %683 = vmatprep.subr.bf16.mxu1 %v682_v17  ;;  %v24_v29 = vld [vmem:[%s1249_s1 + $0x20] sm:$0xff]  ;;  %v686_v30 = vpack.c.bf16 %v73_v28, %v72_v27  ;;  %v25_v31 = vld [vmem:[%s1249_s1 + $0x28] sm:$0xff]  ;;  %v43_v36 = vld [vmem:[%s1249_s1 + $0xb8] sm:$0xff] }
   0x9   :  { %v56_v32 = vld [vmem:[%s1249_s1 + $0x120] sm:$0xff]  ;;  %v57_v33 = vld [vmem:[%s1249_s1 + $0x128] sm:$0xff]  ;;  %v656_v34 = vpack.c.bf16 %v25_v31, %v24_v29  ;;  %v74_v37 = vld [vmem:[%s1249_s1 + $0x1b0] sm:$0xff]  ;;  %v658_v39 = vpack.c.bf16 %v43_v36, %v42_v35 }
   0xa   :  { %653 = vmatpush3.bf16.msra.mxu0 %v652_v21  ;;  %v688_v38 = vpack.c.bf16 %v57_v33, %v56_v32  ;;  %v75_v40 = vld [vmem:[%s1249_s1 + $0x1b8] sm:$0xff]  ;;  %v26_v41 = vld [vmem:[%s1249_s1 + $0x30] sm:$0xff]  ;;  %v44_v46 = vld [vmem:[%s1249_s1 + $0xc0] sm:$0xff] }
   0xb   :  { %685 = vmatpush3.bf16.msra.mxu1 %v684_v25  ;;  %655 = vmatprep.subr.bf16.mxu0 %v654_v26  ;;  %v27_v42 = vld [vmem:[%s1249_s1 + $0x38] sm:$0xff]  ;;  %v690_v43 = vpack.c.bf16 %v75_v40, %v74_v37  ;;  %v58_v44 = vld [vmem:[%s1249_s1 + $0x130] sm:$0xff]  ;;  %v45_v50 = vld [vmem:[%s1249_s1 + $0xc8] sm:$0xff] }
   0xc   :  { %687 = vmatprep.subr.bf16.mxu1 %v686_v30  ;;  %v59_v45 = vld [vmem:[%s1249_s1 + $0x138] sm:$0xff]  ;;  %v76_v51 = vld [vmem:[%s1249_s1 + $0x1c0] sm:$0xff]  ;;  %v77_v52 = vld [vmem:[%s1249_s1 + $0x1c8] sm:$0xff]  ;;  %v660_v53 = vpack.c.bf16 %v27_v42, %v26_v41  ;;  %v662_v55 = vpack.c.bf16 %v45_v50, %v44_v46 }
   0xd   :  { %v692_v54 = vpack.c.bf16 %v59_v45, %v58_v44  ;;  %v28_v56 = vld [vmem:[%s1249_s1 + $0x40] sm:$0xff]  ;;  %v29_v57 = vld [vmem:[%s1249_s1 + $0x48] sm:$0xff]  ;;  %v694_v59 = vpack.c.bf16 %v77_v52, %v76_v51  ;;  %v46_v61 = vld [vmem:[%s1249_s1 + $0xd0] sm:$0xff] }
   0xe   :  { %657 = vmatpush3.bf16.msra.mxu0 %v656_v34  ;;  %v60_v58 = vld [vmem:[%s1249_s1 + $0x140] sm:$0xff]  ;;  %v61_v60 = vld [vmem:[%s1249_s1 + $0x148] sm:$0xff]  ;;  %v47_v62 = vld [vmem:[%s1249_s1 + $0xd8] sm:$0xff]  ;;  %v664_v3 = vpack.c.bf16 %v29_v57, %v28_v56 }
   0xf   :  { %689 = vmatpush3.bf16.msra.mxu1 %v688_v38  ;;  %659 = vmatprep.subr.bf16.mxu0 %v658_v39  ;;  %v78_v1 = vld [vmem:[%s1249_s1 + $0x1d0] sm:$0xff]  ;;  %v79_v2 = vld [vmem:[%s1249_s1 + $0x1d8] sm:$0xff]  ;;  %v696_v4 = vpack.c.bf16 %v61_v60, %v60_v58  ;;  %v666_v5 = vpack.c.bf16 %v47_v62, %v46_v61  ;;  %v48_v11 = vld [vmem:[%s1249_s1 + $0xe0] sm:$0xff] }
  0x10   :  { %691 = vmatprep.subr.bf16.mxu1 %v690_v43  ;;  %v30_v6 = vld [vmem:[%s1249_s1 + $0x50] sm:$0xff]  ;;  %v31_v7 = vld [vmem:[%s1249_s1 + $0x58] sm:$0xff]  ;;  %v698_v9 = vpack.c.bf16 %v79_v2, %v78_v1  ;;  %v49_v12 = vld [vmem:[%s1249_s1 + $0xe8] sm:$0xff] }
  0x11   :  { %v62_v8 = vld [vmem:[%s1249_s1 + $0x150] sm:$0xff]  ;;  %v63_v10 = vld [vmem:[%s1249_s1 + $0x158] sm:$0xff]  ;;  %v80_v14 = vld [vmem:[%s1249_s1 + $0x1e0] sm:$0xff]  ;;  %v668_v16 = vpack.c.bf16 %v31_v7, %v30_v6  ;;  %v670_v19 = vpack.c.bf16 %v49_v12, %v48_v11 }
  0x12   :  { %661 = vmatpush3.bf16.msra.mxu0 %v660_v53  ;;  %v81_v15 = vld [vmem:[%s1249_s1 + $0x1e8] sm:$0xff]  ;;  %v32_v17 = vld [vmem:[%s1249_s1 + $0x60] sm:$0xff]  ;;  %v700_v18 = vpack.c.bf16 %v63_v10, %v62_v8  ;;  %v50_v25 = vld [vmem:[%s1249_s1 + $0xf0] sm:$0xff] }
  0x13   :  { %693 = vmatpush3.bf16.msra.mxu1 %v692_v54  ;;  %663 = vmatprep.subr.bf16.mxu0 %v662_v55  ;;  %v33_v20 = vld [vmem:[%s1249_s1 + $0x68] sm:$0xff]  ;;  %v64_v21 = vld [vmem:[%s1249_s1 + $0x160] sm:$0xff]  ;;  %v702_v23 = vpack.c.bf16 %v81_v15, %v80_v14  ;;  %v51_v26 = vld [vmem:[%s1249_s1 + $0xf8] sm:$0xff] }
  0x14   :  { %695 = vmatprep.subr.bf16.mxu1 %v694_v59  ;;  %v18_v22 = vld [vmem:[%s1248_s0] sm:$0xff]  ;;  %v65_v24 = vld [vmem:[%s1249_s1 + $0x168] sm:$0xff]  ;;  %v82_v29 = vld [vmem:[%s1249_s1 + $0x1f0] sm:$0xff]  ;;  %v672_v31 = vpack.c.bf16 %v33_v20, %v32_v17  ;;  %v674_v35 = vpack.c.bf16 %v51_v26, %v50_v25 }
  0x15   :  { %v157_v27 = vrot.slane %v18_v22, %v979_v13  ;;  %v150_v28 = vcombine.high %v18_v22, %v18_v22  ;;  %v83_v30 = vld [vmem:[%s1249_s1 + $0x1f8] sm:$0xff]  ;;  %v704_v34 = vpack.c.bf16 %v65_v24, %v64_v21  ;;  %v34_v36 = vld [vmem:[%s1249_s1 + $0x70] sm:$0xff]  ;;  %v100_v42 = vld [vmem:[%s1249_s1 + $0x280] sm:$0xff] }
  0x16   :  { %665 = vmatpush3.bf16.msra.mxu0 %v664_v3  ;;  %v35_v37 = vld [vmem:[%s1249_s1 + $0x78] sm:$0xff]  ;;  %v66_v38 = vld [vmem:[%s1249_s1 + $0x170] sm:$0xff]  ;;  %v706_v39 = vpack.c.bf16 %v83_v30, %v82_v29  ;;  %v101_v43 = vld [vmem:[%s1249_s1 + $0x288] sm:$0xff] }
  0x17   :  { %697 = vmatpush3.bf16.msra.mxu1 %v696_v4  ;;  %667 = vmatprep.subr.bf16.mxu0 %v666_v5  ;;  %v165_v32 = vcombine.high %v157_v27, %v157_v27  ;;  %v164_v33 = vrot.slane %v150_v28, %v979_v13  ;;  %v67_v40 = vld [vmem:[%s1249_s1 + $0x178] sm:$0xff]  ;;  %v132_v44 = vld [vmem:[%s1249_s1 + $0x380] sm:$0xff]  ;;  %v133_v45 = vld [vmem:[%s1249_s1 + $0x388] sm:$0xff]  ;;  %v676_v46 = vpack.c.bf16 %v35_v37, %v34_v36 }
  0x18   :  { %699 = vmatprep.subr.bf16.mxu1 %v698_v9  ;;  %v708_v47 = vpack.c.bf16 %v67_v40, %v66_v38  ;;  %v710_v48 = vpack.c.bf16 %v101_v43, %v100_v42  ;;  %v84_v49 = vld [vmem:[%s1249_s1 + $0x200] sm:$0xff]  ;;  %v85_v50 = vld [vmem:[%s1249_s1 + $0x208] sm:$0xff]  ;;  %v742_v52 = vpack.c.bf16 %v133_v45, %v132_v44  ;;  %v102_v54 = vld [vmem:[%s1249_s1 + $0x290] sm:$0xff] }
  0x19   :  { %256 = vmatprep.mubr.f32.mxu0 %v165_v32  ;;  %v166_v41 = vcombine.high %v164_v33, %v164_v33  ;;  %v116_v51 = vld [vmem:[%s1249_s1 + $0x300] sm:$0xff]  ;;  %v117_v53 = vld [vmem:[%s1249_s1 + $0x308] sm:$0xff]  ;;  %v103_v55 = vld [vmem:[%s1249_s1 + $0x298] sm:$0xff]  ;;  %v712_v58 = vpack.c.bf16 %v85_v50, %v84_v49 }
  0x1a   :  { %669 = vmatpush3.bf16.msra.mxu0 %v668_v16  ;;  %v134_v56 = vld [vmem:[%s1249_s1 + $0x390] sm:$0xff]  ;;  %v135_v57 = vld [vmem:[%s1249_s1 + $0x398] sm:$0xff]  ;;  %v744_v59 = vpack.c.bf16 %v117_v53, %v116_v51  ;;  %v714_v60 = vpack.c.bf16 %v103_v55, %v102_v54  ;;  %v104_v2 = vld [vmem:[%s1249_s1 + $0x2a0] sm:$0xff] }
  0x1b   :  { %701 = vmatpush3.bf16.msra.mxu1 %v700_v18  ;;  %671 = vmatprep.subr.bf16.mxu0 %v670_v19  ;;  %v86_v61 = vld [vmem:[%s1249_s1 + $0x210] sm:$0xff]  ;;  %v87_v62 = vld [vmem:[%s1249_s1 + $0x218] sm:$0xff]  ;;  %v746_v0 = vpack.c.bf16 %v135_v57, %v134_v56  ;;  %v105_v3 = vld [vmem:[%s1249_s1 + $0x2a8] sm:$0xff] }
  0x1c   :  { %703 = vmatprep.subr.bf16.mxu1 %v702_v23  ;;  %326 = vmatprep.mubr.f32.mxu1 %v166_v41  ;;  %v118_v63 = vld [vmem:[%s1249_s1 + $0x310] sm:$0xff]  ;;  %v119_v1 = vld [vmem:[%s1249_s1 + $0x318] sm:$0xff]  ;;  %v136_v4 = vld [vmem:[%s1249_s1 + $0x3a0] sm:$0xff]  ;;  %v716_v6 = vpack.c.bf16 %v87_v62, %v86_v61  ;;  %v718_v8 = vpack.c.bf16 %v105_v3, %v104_v2 }
  0x1d   :  { %v137_v5 = vld [vmem:[%s1249_s1 + $0x3a8] sm:$0xff]  ;;  %v748_v7 = vpack.c.bf16 %v119_v1, %v118_v63  ;;  %v88_v9 = vld [vmem:[%s1249_s1 + $0x220] sm:$0xff]  ;;  %v106_v15 = vld [vmem:[%s1249_s1 + $0x2b0] sm:$0xff] }
  0x1e   :  { %673 = vmatpush3.bf16.msra.mxu0 %v672_v31  ;;  %v89_v10 = vld [vmem:[%s1249_s1 + $0x228] sm:$0xff]  ;;  %v120_v11 = vld [vmem:[%s1249_s1 + $0x320] sm:$0xff]  ;;  %v750_v12 = vpack.c.bf16 %v137_v5, %v136_v4  ;;  %v107_v16 = vld [vmem:[%s1249_s1 + $0x2b8] sm:$0xff] }
  0x1f   :  { %705 = vmatpush3.bf16.msra.mxu1 %v704_v34  ;;  %675 = vmatprep.subr.bf16.mxu0 %v674_v35  ;;  %v121_v14 = vld [vmem:[%s1249_s1 + $0x328] sm:$0xff]  ;;  %v138_v17 = vld [vmem:[%s1249_s1 + $0x3b0] sm:$0xff]  ;;  %v139_v18 = vld [vmem:[%s1249_s1 + $0x3b8] sm:$0xff]  ;;  %v720_v19 = vpack.c.bf16 %v89_v10, %v88_v9  ;;  %v722_v22 = vpack.c.bf16 %v107_v16, %v106_v15 }
  0x20   :  { %707 = vmatprep.subr.bf16.mxu1 %v706_v39  ;;  %v90_v20 = vld [vmem:[%s1249_s1 + $0x230] sm:$0xff]  ;;  %v752_v21 = vpack.c.bf16 %v121_v14, %v120_v11  ;;  %v91_v23 = vld [vmem:[%s1249_s1 + $0x238] sm:$0xff]  ;;  %v754_v26 = vpack.c.bf16 %v139_v18, %v138_v17  ;;  %v109_v28 = vld [vmem:[%s1249_s1 + $0x2c8] sm:$0xff] }
  0x21   :  { %v122_v24 = vld [vmem:[%s1249_s1 + $0x330] sm:$0xff]  ;;  %v123_v25 = vld [vmem:[%s1249_s1 + $0x338] sm:$0xff]  ;;  %v140_v29 = vld [vmem:[%s1249_s1 + $0x3c0] sm:$0xff] }
  0x22   :  { %677 = vmatpush3.bf16.msra.mxu0 %v676_v46  ;;  %v141_v30 = vld [vmem:[%s1249_s1 + $0x3c8] sm:$0xff] }
  0x23   :  { %709 = vmatpush3.bf16.msra.mxu1 %v708_v47  ;;  %711 = vmatprep.subr.bf16.mxu0 %v710_v48  ;;  %v19_v31 = vld [vmem:[%s1248_s0 + $0x8] sm:$0xff] }
  0x24   :  { %743 = vmatprep.subr.bf16.mxu1 %v742_v52 }
  0x25   :  { %257 = vmatmul.mubr.f32.vlgmr.msra.gmra.mrb[0].mxu0 %v157_v27  ;;  %v108_v27 = vld [vmem:[%s1249_s1 + $0x2c0] sm:$0xff] }
  0x26   :  { %327 = vmatmul.mubr.f32.vlgmr.msra.gmra.mrb[0].mxu1 %v164_v33  ;;  %713 = vmatpush3.bf16.msra.mxu0 %v712_v58 }
  0x27   :  { %745 = vmatpush3.bf16.msra.mxu1 %v744_v59  ;;  %715 = vmatprep.subr.bf16.mxu0 %v714_v60 }
  0x28   :  { %747 = vmatprep.subr.bf16.mxu1 %v746_v0 }
  0x2a   :  { %717 = vmatpush3.bf16.msra.mxu0 %v716_v6 }
  0x2b   :  { %749 = vmatpush3.bf16.msra.mxu1 %v748_v7  ;;  %719 = vmatprep.subr.bf16.mxu0 %v718_v8 }
  0x2c   :  { %751 = vmatprep.subr.bf16.mxu1 %v750_v12 }
  0x2d   :  { %9 = vsyncpa [#allocation3], 0  ;;  %v724_v32 = vpack.c.bf16 %v91_v23, %v90_v20  ;;  %v1140_v33 = vrot.slane %v19_v31, %v979_v13  ;;  %v167_v34 = vcombine.high %v19_v31, %v19_v31  ;;  %v756_v35 = vpack.c.bf16 %v123_v25, %v122_v24  ;;  %v92_v37 = vld [vmem:[%s1249_s1 + $0x240] sm:$0xff]  ;;  %v93_v38 = vld [vmem:[%s1249_s1 + $0x248] sm:$0xff]  ;;  %s803_s15 = smov [#allocation2]  }
  0x2e   :  { %721 = vmatpush3.bf16.msra.mxu0 %v720_v19  ;;  %v726_v36 = vpack.c.bf16 %v109_v28, %v108_v27  ;;  %v124_v39 = vld [vmem:[%s1249_s1 + $0x340] sm:$0xff]  ;;  %v758_v40 = vpack.c.bf16 %v141_v30, %v140_v29  ;;  %v125_v41 = vld [vmem:[%s1249_s1 + $0x348] sm:$0xff]  ;;  %v110_v42 = vld [vmem:[%s1249_s1 + $0x2d0] sm:$0xff]  ;;  %v728_v48 = vpack.c.bf16 %v93_v38, %v92_v37  ;;  %s496_s16 = sshll.u32 %s803_s15, 4  ;;  %vm488_vm0 = vcmask 25600   ;;  %s497_s16 = int_to_ptr.vmem [resolvable:$true] %s496_s16 }
  0x2f   :  { %753 = vmatpush3.bf16.msra.mxu1 %v752_v21  ;;  %723 = vmatprep.subr.bf16.mxu0 %v722_v22  ;;  %v111_v43 = vld [vmem:[%s1249_s1 + $0x2d8] sm:$0xff]  ;;  %v182_v44 = vcombine.high %v1140_v33, %v1140_v33  ;;  %v181_v45 = vrot.slane %v167_v34, %v979_v13  ;;  %v142_v46 = vld [vmem:[%s1249_s1 + $0x3d0] sm:$0xff]  ;;  %v760_v50 = vpack.c.bf16 %v125_v41, %v124_v39  ;;  %v112_v56 = vld [vmem:[%s1249_s1 + $0x2e0] sm:$0xff]  ;;  %s778_s17 = scalar_lea.vmem %s497_s16, 32  ;;  %p783_p1 = scmp.lt.s32.totalorder %s497_s16, %s497_s16 }
  0x30   :  { %755 = vmatprep.subr.bf16.mxu1 %v754_v26  ;;  %v143_v47 = vld [vmem:[%s1249_s1 + $0x3d8] sm:$0xff]  ;;  %v730_v51 = vpack.c.bf16 %v111_v43, %v110_v42  ;;  %v94_v13 = vld [vmem:[%s1249_s1 + $0x250] sm:$0xff]  ;;  %v113_v57 = vld [vmem:[%s1249_s1 + $0x2e8] sm:$0xff]  ;;  %p779_p0 = scmp.ne.s32.totalorder %s497_s16, %s778_s17  ;;  %p784_p2 = scmp.lt.s32.totalorder %s778_s17, %s778_s17 }
  0x31   :  { %396 = vmatprep.mubr.f32.mxu0 %v182_v44  ;;  %v183_v49 = vcombine.high %v181_v45, %v181_v45  ;;  %v95_v52 = vld [vmem:[%s1249_s1 + $0x258] sm:$0xff]  ;;  %v126_v53 = vld [vmem:[%s1249_s1 + $0x350] sm:$0xff]  ;;  %v762_v54 = vpack.c.bf16 %v143_v47, %v142_v46  ;;  %v144_v58 = vld [vmem:[%s1249_s1 + $0x3e0] sm:$0xff]  ;;  %v734_v62 = vpack.c.bf16 %v113_v57, %v112_v56 }
  0x32   :  { %725 = vmatpush3.bf16.msra.mxu0 %v724_v32  ;;  %v127_v55 = vld [vmem:[%s1249_s1 + $0x358] sm:$0xff]  ;;  %v145_v59 = vld [vmem:[%s1249_s1 + $0x3e8] sm:$0xff]  ;;  %v732_v60 = vpack.c.bf16 %v95_v52, %v94_v13  ;;  %v96_v63 = vld [vmem:[%s1249_s1 + $0x260] sm:$0xff]  ;;  %p785_p3 = por %p784_p2, %p783_p1 }
  0x33   :  { %757 = vmatpush3.bf16.msra.mxu1 %v756_v35  ;;  %727 = vmatprep.subr.bf16.mxu0 %v726_v36  ;;  %v764_v61 = vpack.c.bf16 %v127_v55, %v126_v53  ;;  %v97_v0 = vld [vmem:[%s1249_s1 + $0x268] sm:$0xff]  ;;  %v128_v1 = vld [vmem:[%s1249_s1 + $0x360] sm:$0xff]  ;;  %v766_v2 = vpack.c.bf16 %v145_v59, %v144_v58  ;;  %v114_v4 = vld [vmem:[%s1249_s1 + $0x2f0] sm:$0xff] }
  0x34   :  { %759 = vmatprep.subr.bf16.mxu1 %v758_v40  ;;  %466 = vmatprep.mubr.f32.mxu1 %v183_v49  ;;  %v129_v3 = vld [vmem:[%s1249_s1 + $0x368] sm:$0xff]  ;;  %v115_v5 = vld [vmem:[%s1249_s1 + $0x2f8] sm:$0xff]  ;;  %v146_v6 = vld [vmem:[%s1249_s1 + $0x3f0] sm:$0xff]  ;;  %v736_v8 = vpack.c.bf16 %v97_v0, %v96_v63  ;;  %p786_p4 = pnand %p785_p3, %p779_p0 }
  0x35   :  { %v147_v7 = vld [vmem:[%s1249_s1 + $0x3f8] sm:$0xff]  ;;  %v768_v9 = vpack.c.bf16 %v129_v3, %v128_v1  ;;  %v738_v10 = vpack.c.bf16 %v115_v5, %v114_v4  ;;  %v98_v11 = vld [vmem:[%s1249_s1 + $0x270] sm:$0xff]  ;;  %v504_v34 = vld [vmem:[%s1250_s2] ss:$0 sm:$0xff] }
  0x36   :  { %729 = vmatpush3.bf16.msra.mxu0 %v728_v48  ;;  %v99_v12 = vld [vmem:[%s1249_s1 + $0x278] sm:$0xff]  ;;  %v770_v14 = vpack.c.bf16 %v147_v7, %v146_v6  ;;  %v130_v15 = vld [vmem:[%s1249_s1 + $0x370] sm:$0xff]  ;;  %v505_v35 = vld [vmem:[%s1251_s3] ss:$0 sm:$0xff] }
  0x37   :  { %761 = vmatpush3.bf16.msra.mxu1 %v760_v50  ;;  %731 = vmatprep.subr.bf16.mxu0 %v730_v51  ;;  %v131_v16 = vld [vmem:[%s1249_s1 + $0x378] sm:$0xff]  ;;  %v740_v17 = vpack.c.bf16 %v99_v12, %v98_v11 }
  0x38   :  { %763 = vmatprep.subr.bf16.mxu1 %v762_v54  ;;  %v772_v18 = vpack.c.bf16 %v131_v16, %v130_v15 }
  0x3a   :  { %733 = vmatpush3.bf16.msra.mxu0 %v732_v60 }
  0x3b   :  { %765 = vmatpush3.bf16.msra.mxu1 %v764_v61  ;;  %735 = vmatprep.subr.bf16.mxu0 %v734_v62 }
  0x3c   :  { %767 = vmatprep.subr.bf16.mxu1 %v766_v2 }
  0x3e   :  { %737 = vmatpush3.bf16.msra.mxu0 %v736_v8 }
  0x3f   :  { %769 = vmatpush3.bf16.msra.mxu1 %v768_v9  ;;  %739 = vmatprep.subr.bf16.mxu0 %v738_v10 }
  0x40   :  { %771 = vmatprep.subr.bf16.mxu1 %v770_v14 }
  0x42   :  { %741 = vmatpush3.bf16.msra.mxu0 %v740_v17 }
  0x43   :  { %773 = vmatpush3.bf16.msra.mxu1 %v772_v18 }
  0x45   :  { %397 = vmatmul.mubr.f32.vlgmr.msra.gmra.mrb[2].mxu0 %v1140_v33 }
  0x46   :  { %467 = vmatmul.mubr.f32.vlgmr.msra.gmra.mrb[2].mxu1 %v181_v45 }
  0xf8   :  { %v538_v19 = vpop.f32.mrb[0].mxu0 }
  0xf9   :  { %v573_v20 = vpop.f32.mrb[0].mxu1  ;;  %v539_v21 = vpop.f32.mrb[1].mxu0 }
  0xfa   :  { %v540_v22 = vadd.f32 %v539_v21, %v538_v19  ;;  %v574_v23 = vpop.f32.mrb[1].mxu1 }
  0xfb   :  { %v575_v24 = vadd.f32 %v574_v23, %v573_v20 }
  0xfd   :  { %v329_v25 = vadd.f32 %v575_v24, %v540_v22 }
 0x118   :  { %v608_v26 = vpop.f32.mrb[2].mxu0 }
 0x119   :  { %v609_v27 = vpop.f32.mrb[3].mxu0  ;;  %v643_v28 = vpop.f32.mrb[2].mxu1 }
 0x11a   :  { %v610_v29 = vadd.f32 %v609_v27, %v608_v26  ;;  %v644_v30 = vpop.f32.mrb[3].mxu1 }
 0x11b   :  { %v645_v31 = vadd.f32 %v644_v30, %v643_v28 }
 0x11c   :  { %v399_v32 = vadd.f32 %v610_v29, %v329_v25 }
 0x11e   :  { %v469_v33 = vadd.f32 %v645_v31, %v399_v32 }
 0x120   :  { %v479_v36 = vmul.f32 %v504_v34, %v469_v33 }
 0x122   :  { %v487_v37 = vadd.f32 %v505_v35, %v479_v36 }
 0x124   :  { %489 = vst.msk [vmem:[#allocation2] sm:$0x3] %vm488_vm0, %v487_v37 }
 0x125   :  { %789 = shalt.err (!%p786_p4)
}
 0x126   :  { %s790_s19 = scalar_lea.hbm %s1252_s4, 32 }
 0x127   :  { %p791_p5 = scmp.ne.s32.totalorder %s1252_s4, %s790_s19  ;;  %p794_p6 = scmp.lt.u32.totalorder %s790_s19, %s1252_s4 }
 0x129   :  { %p796_p7 = pnand %p794_p6, %p791_p5 }
 0x12b   :  { %799 = shalt.err (!%p796_p7)
}
 0x12c   :  { %499 = dma.vmem_to_hbm [thread:$0]  %s497_s16, 32, %s1252_s4, [#allocation3]  }
 0x12d   :  { %800 = dma.done.wait [#allocation3], 32  }
 0x12e   :  { %801 = vsyncadd [#allocation3], 4294967264 }
 0x12f   :  { %503 = vsyncpa [#allocation3], 1 }

// kernel: forward.10
= control target key start
LH: loop header
LB: loop body
LE: loop exit
PB: predicated region body
PF: predicated region fallthrough
CT: control target
= control target key end

     0   :  { %9 = vsyncpa [#allocation4], 0  ;;  %s11057_s0 = inlined_call_operand.vmem [shape: bf16[2,50176], index: 0, kind: input, shape index: {}]   ;;  %s11058_s1 = inlined_call_operand.hbm [shape: bf16[50176,1024], index: 1, kind: input, shape index: {}]   ;;  %s11059_s2 = inlined_call_operand.vmem [shape: f32[1,1024], index: 2, kind: input, shape index: {}]   ;;  %s11060_s3 = inlined_call_operand.vmem [shape: f32[1,1024], index: 3, kind: input, shape index: {}]   ;;  %s11061_s4 = inlined_call_operand.vmem [shape: f32[2,1024], index: 4, kind: output, shape index: {}]  }
   0x1   :  { %11 = vsyncpa [#allocation4 + $0x1], 0  ;;  %s9829_s15 = smov 0   ;;  %s9831_s16 = smov 0  }
   0x2   :  { %s9833_s17 = smov 0   ;;  %s9835_s18 = smov 0  }
   0x3   :  { %s9837_s19 = smov 0   ;;  %s9839_s20 = smov 0  }
   0x4   :  { %s9841_s21 = smov 0   ;;  %s9843_s22 = smov 0  }
   0x5 LB: > { %s7253_s23 = sadd.s32 4294967295, %s9795_s22   ;;  %s29_s24 = sadd.s32 1, %s9787_s20  ;;  %s9795_s22 = sphi %s9843_s22, %s17_s22   ;;  %s9791_s21 = sphi %s9841_s21, %s11071_s21   ;;  %s9787_s20 = sphi %s9839_s20, %s11070_s20   ;;  %s9783_s19 = sphi %s9837_s19, %s11069_s19   ;;  %s9779_s18 = sphi %s9835_s18, %s11068_s18   ;;  %s9775_s17 = sphi %s9833_s17, %s11067_s17   ;;  %s9771_s16 = sphi %s9831_s16, %s11066_s16   ;;  %s9767_s15 = sphi %s9829_s15, %s11065_s15  }
   0x6   : > { %p30_p0 = scmp.ge.s32.totalorder %s29_s24, 14  ;;  %s32_s25 = sadd.s32 1, %s9791_s21 }
   0x7   : > { %s71_s26 = sadd.s32 1, %s9775_s17  ;;  %p78_p1 = scmp.ne.s32.totalorder %s9775_s17, %s9771_s16 }
   0x8   : > { %s11073_s24 = smov (%p30_p0, %s29_s24), 0  ;;  %s11075_s25 = smov (!%p30_p0, %s32_s25), %s9791_s21 }
   0x9   : > { %s66_s27 = ssub.s32 %s9787_s20, %s11073_s24  ;;  %p79_p2 = scmp.eq.s32.totalorder %s9795_s22, 0 }
   0xa   : > { %p34_p3 = scmp.ge.s32.totalorder %s11075_s25, 2  ;;  %p84_p4 = scmp.ne.s32.totalorder %s9771_s16, %s9767_s15 }
   0xb   : > { %p9880_p5 = por %p79_p2, %p78_p1  ;;  %p85_p6 = scmp.eq.s32.totalorder %s7253_s23, 0 }
   0xc   : > { %s11077_s25 = smov (%p34_p3, %s11075_s25), 0  ;;  %p8279_p8 = scmp.lt.s32.totalorder %s9795_s22, 28 }
   0xd   : > { %p9886_p7 = por %p85_p6, %p84_p4  ;;  %s67_s30 = ssub.s32 %s9791_s21, %s11077_s25 }
   0xe   : > { %s68_s5 = sor.u32 %s67_s30, %s66_s27  ;;  %s194_s6 = sand.u32 1, %s9775_s17  }
   0xf   : > { %p69_p9 = scmp.eq.s32.totalorder %s68_s5, 0  ;;  %s8271_s7 = smul.u32 7168, %s194_s6 }
  0x10   : > { %s7257_s8 = sshll.u32 %s9791_s21, 2  ;;  %s8166_s10 = smul.u32 3584, %s9787_s20 }
  0x11   : > { %s9896_s9 = scalar_select %p69_p9, %s9775_s17, %s71_s26  }
  0x12   : > { %s198_s11 = scalar_lea.vmem [#allocation3], %s8271_s7  ;;  %p9901_p10 = pnand %p8279_p8, %p9880_p5 }
  0x13   : > { %s208_s12 = sshll.u32 %s198_s11, 4  ;;  %s205_s14 = sadd.s32 %s8166_s10, %s7257_s8  ;;  %s9905_s12 = int_to_ptr.vmem [resolvable:$true] %s208_s12 }
  0x14   : > { %s7259_s15 = sshll.u32 %s205_s14, 6  ;;  %s9912_s26 = scalar_lea.sflag [#allocation4], %s194_s6 }
  0x15   : > { %s9910_s30 = scalar_lea.hbm %s11058_s1, %s7259_s15  ;;  %p9701_p12 = pneg %p9901_p10 }
  0x16   : > { %s9699_s28 = scalar_lea.hbm %s9910_s30, 114688  ;;  %s9704_s8 = scalar_lea.hbm %s11058_s1, 3211264 }
  0x17   : > { %p9700_p11 = scmp.ne.s32.totalorder %s9910_s30, %s9699_s28  ;;  %p9705_p1 = scmp.lt.u32.totalorder %s9910_s30, %s11058_s1 }
  0x18   : > { %p9706_p2 = scmp.lt.u32.totalorder %s9704_s8, %s9699_s28  ;;  %p9708_p4 = scmp.lt.u32.totalorder %s9699_s28, %s9910_s30 }
  0x19   : > { %p9702_p13 = pnand %p9701_p12, %p9700_p11 }
  0x1a   : > { %p9707_p3 = por %p9706_p2, %p9705_p1 }
  0x1b   : > { %p9703_p0 = pneg %p9702_p13 }
  0x1c   : > { %p9709_p5 = por %p9708_p4, %p9707_p3 }
  0x1e   : > { %p9710_p6 = pnand %p9709_p5, %p9703_p0 }
  0x20   : > { %9713 = shalt.err (!%p9710_p6)
}
  0x21   : > { %s9714_s6 = scalar_lea.vmem %s9905_s12, 114688  ;;  %s9797_s14 = smov [#allocation3]  }
  0x22   : > { %p9715_p8 = scmp.ne.s32.totalorder %s9905_s12, %s9714_s6  ;;  %s9719_s15 = sshll.u32 %s9797_s14, 4  ;;  %s9720_s15 = int_to_ptr.vmem [resolvable:$false] %s9719_s15 }
  0x23   : > { %s9721_s23 = scalar_lea.vmem %s9720_s15, 229376  ;;  %p9722_p13 = scmp.lt.s32.totalorder %s9905_s12, %s9720_s15 }
  0x24   : > { %p9717_p9 = pnand %p9715_p8, %p9701_p12  ;;  %p9723_p1 = scmp.lt.s32.totalorder %s9721_s23, %s9714_s6 }
  0x26   : > { %p9718_p11 = pneg %p9717_p9  ;;  %p9724_p2 = por %p9723_p1, %p9722_p13 }
  0x28   : > { %p9725_p3 = pnand %p9724_p2, %p9718_p11 }
  0x2a   : > { %9728 = shalt.err (!%p9725_p3)
}
  0x2b   : > { %s9798_s27 = smov 512   ;;  %s9799_s28 = smov 256  }
  0x2c   : > { %s9800_s5 = smov 16   ;;  %p7260_p12 = scmp.ge.s32.totalorder %s9795_s22, 1 }
  0x2d   : > { %8278 = dma.hbm_to_vmem [thread:$0]  (!%p9901_p10), %s9910_s30, 114688, %s9905_s12, %s9912_s26, %s9798_s27, %s9799_s28, %s9800_s5  }
  0x2e   : > { %p232_p0 = scmp.lt.s32.totalorder %s9795_s22, 29 }
  0x30   : > { %p233_p4 = pnand %p7260_p12, %p232_p0 }
  0x31   : > { %s238_s7 = sand.u32 (!%p233_p4), 1, %s9771_s16  }
  0x32   : > { %236 = sbr.rel (%p233_p4) target bundleno = 1201 (0x4b1), region = 36  ;;  %s239_s10 = scalar_lea.sflag (!%p233_p4), [#allocation4], %s238_s7 }
  0x33   : > { %s8272_s8 = smul.u32 (!%p233_p4), 7168, %s238_s7 }
  0x35   : > { %s9943_s11 = scalar_lea.vmem (!%p233_p4), [#allocation3], %s8272_s8 }
  0x39   : > { %9762 = dma.done.wait (%p9886_p7), %s239_s10, 114688  }
  0x3a   : > { %9764 = vsyncadd (%p9886_p7), %s239_s10, 4294852608  ;;  %s279_s13 = smul.u32 28, %s9779_s18  ;;  %s7261_s12 = sshll.u32 %s9783_s19, 2 }
  0x3b   : > { %p287_p10 = scmp.lt.s32.totalorder %s7261_s12, 7  ;;  %p7265_p7 = scmp.ne.s32.totalorder %s9779_s18, 0 }
  0x3c   : > { %p280_p5 = scmp.lt.s32.totalorder %s279_s13, 391  ;;  %v9801_v0 = vmov (!%p7265_p7), 0.0  }
  0x3d   : > { %s11079_s12 = smov (!%p287_p10, %s7261_s12), 7  ;;  %305 = sbr.rel (%p7265_p7) target bundleno = 68 (0x44), region = 44 }
  0x3e   : > { %s11081_s13 = smov (!%p280_p5, %s279_s13), 391  ;;  %s289_s6 = scalar_lea.vmem %s11059_s2, %s11079_s12  ;;  %306 = vst [vmem:[#allocation2] sm:$0xff] (!%p7265_p7), %v9801_v0 }
  0x3f   : > { %s294_s29 = scalar_lea.vmem %s11060_s3, %s11079_s12  ;;  %s9964_s19 = scalar_lea.vmem %s11057_s0, %s11081_s13 }
  0x40   : > { %s7264_s28 = sshll.u32 %s11079_s12, 1 }
  0x41   : > { %s9970_s8 = scalar_lea.vmem %s11061_s4, %s7264_s28 }
  0x44 PF: > { %v8350_v1 = vld [vmem:[%s9943_s11 + $0x4] ss:$16 sps:$4 sm:$0xff]   ;;  %v8352_v2 = vld [vmem:[%s9943_s11 + $0xc] ss:$16 sps:$4 sm:$0xff]   ;;  %v8354_v3 = vld [vmem:[%s9943_s11] ss:$16 sps:$4 sm:$0xff]   ;;  %v1216_v39 = vlaneseq }
  0x45   : > { %5891 = vmatprep.subr.bf16.mxu0 %v8350_v1  ;;  %v8355_v4 = vld [vmem:[%s9943_s11 + $0x8] ss:$16 sps:$4 sm:$0xff]   ;;  %6465 = vmatprep.subr.bf16.mxu1 %v8352_v2  ;;  %v8356_v5 = vld [vmem:[%s9943_s11 + $0x24] ss:$16 sps:$4 sm:$0xff]   ;;  %v8358_v6 = vld [vmem:[%s9943_s11 + $0x2c] ss:$16 sps:$4 sm:$0xff]  }
  0x46   : > { %5892 = vmatpush1.bf16.msra.mxu0 %v8354_v3  ;;  %6466 = vmatpush1.bf16.msra.mxu1 %v8355_v4  ;;  %v8360_v7 = vld [vmem:[%s9943_s11 + $0x20] ss:$16 sps:$4 sm:$0xff]   ;;  %v8361_v8 = vld [vmem:[%s9943_s11 + $0x28] ss:$16 sps:$4 sm:$0xff]   ;;  %v8362_v9 = vld [vmem:[%s9943_s11 + $0x44] ss:$16 sps:$4 sm:$0xff]  }
  0x47   : > { %5893 = vmatprep.subr.bf16.mxu0 %v8356_v5  ;;  %6467 = vmatprep.subr.bf16.mxu1 %v8358_v6  ;;  %v8364_v10 = vld [vmem:[%s9943_s11 + $0x4c] ss:$16 sps:$4 sm:$0xff]   ;;  %v8366_v11 = vld [vmem:[%s9943_s11 + $0x40] ss:$16 sps:$4 sm:$0xff]   ;;  %v8367_v12 = vld [vmem:[%s9943_s11 + $0x48] ss:$16 sps:$4 sm:$0xff]  }
  0x48   : > { %v8368_v13 = vld [vmem:[%s9943_s11 + $0x64] ss:$16 sps:$4 sm:$0xff]   ;;  %v8370_v14 = vld [vmem:[%s9943_s11 + $0x6c] ss:$16 sps:$4 sm:$0xff]   ;;  %v8372_v15 = vld [vmem:[%s9943_s11 + $0x60] ss:$16 sps:$4 sm:$0xff]  }
  0x49   : > { %v8373_v16 = vld [vmem:[%s9943_s11 + $0x68] ss:$16 sps:$4 sm:$0xff]   ;;  %v8374_v17 = vld [vmem:[%s9943_s11 + $0x84] ss:$16 sps:$4 sm:$0xff]   ;;  %v8376_v18 = vld [vmem:[%s9943_s11 + $0x8c] ss:$16 sps:$4 sm:$0xff]  }
  0x4a   : > { %5894 = vmatpush1.bf16.msra.mxu0 %v8360_v7  ;;  %6468 = vmatpush1.bf16.msra.mxu1 %v8361_v8  ;;  %v8378_v19 = vld [vmem:[%s9943_s11 + $0x80] ss:$16 sps:$4 sm:$0xff]   ;;  %v8379_v20 = vld [vmem:[%s9943_s11 + $0x88] ss:$16 sps:$4 sm:$0xff]   ;;  %v8380_v21 = vld [vmem:[%s9943_s11 + $0xa4] ss:$16 sps:$4 sm:$0xff]  }
  0x4b   : > { %5895 = vmatprep.subr.bf16.mxu0 %v8362_v9  ;;  %6469 = vmatprep.subr.bf16.mxu1 %v8364_v10  ;;  %v8382_v22 = vld [vmem:[%s9943_s11 + $0xac] ss:$16 sps:$4 sm:$0xff]   ;;  %v8384_v23 = vld [vmem:[%s9943_s11 + $0xa0] ss:$16 sps:$4 sm:$0xff]   ;;  %v8385_v24 = vld [vmem:[%s9943_s11 + $0xa8] ss:$16 sps:$4 sm:$0xff]  }
  0x4c   : > { %v8386_v25 = vld [vmem:[%s9943_s11 + $0xc4] ss:$16 sps:$4 sm:$0xff]   ;;  %v8388_v26 = vld [vmem:[%s9943_s11 + $0xcc] ss:$16 sps:$4 sm:$0xff]   ;;  %v8390_v27 = vld [vmem:[%s9943_s11 + $0xc0] ss:$16 sps:$4 sm:$0xff]  }
  0x4d   : > { %v8391_v28 = vld [vmem:[%s9943_s11 + $0xc8] ss:$16 sps:$4 sm:$0xff]   ;;  %v8392_v29 = vld [vmem:[%s9943_s11 + $0xe4] ss:$16 sps:$4 sm:$0xff]   ;;  %v8394_v30 = vld [vmem:[%s9943_s11 + $0xec] ss:$16 sps:$4 sm:$0xff]  }
  0x4e   : > { %5896 = vmatpush1.bf16.msra.mxu0 %v8366_v11  ;;  %6470 = vmatpush1.bf16.msra.mxu1 %v8367_v12  ;;  %v8396_v31 = vld [vmem:[%s9943_s11 + $0xe0] ss:$16 sps:$4 sm:$0xff]   ;;  %v8397_v32 = vld [vmem:[%s9943_s11 + $0xe8] ss:$16 sps:$4 sm:$0xff]   ;;  %v8398_v33 = vld [vmem:[%s9943_s11 + $0x104] ss:$16 sps:$4 sm:$0xff]  }
  0x4f   : > { %5897 = vmatprep.subr.bf16.mxu0 %v8368_v13  ;;  %6471 = vmatprep.subr.bf16.mxu1 %v8370_v14  ;;  %v8400_v34 = vld [vmem:[%s9943_s11 + $0x10c] ss:$16 sps:$4 sm:$0xff]   ;;  %v8402_v35 = vld [vmem:[%s9943_s11 + $0x100] ss:$16 sps:$4 sm:$0xff]   ;;  %v8403_v36 = vld [vmem:[%s9943_s11 + $0x108] ss:$16 sps:$4 sm:$0xff]  }
  0x50   : > { %v9802_v37 = vmov 1966171168   ;;  %v8404_v40 = vld [vmem:[%s9943_s11 + $0x124] ss:$16 sps:$4 sm:$0xff]   ;;  %v8406_v41 = vld [vmem:[%s9943_s11 + $0x12c] ss:$16 sps:$4 sm:$0xff]  }
  0x51   : > { %v1214_v38 = vunpack.c.l.s4 %v9802_v37  ;;  %v8408_v42 = vld [vmem:[%s9943_s11 + $0x120] ss:$16 sps:$4 sm:$0xff]   ;;  %v10012_v44 = vshrl.u32 %v1216_v39, 7  ;;  %v8409_v45 = vld [vmem:[%s9943_s11 + $0x128] ss:$16 sps:$4 sm:$0xff]   ;;  %p8163_p6 = scmp.ne.s32.totalorder %s9779_s18, 13 }
  0x52   : > { %5898 = vmatpush1.bf16.msra.mxu0 %v8372_v15  ;;  %6472 = vmatpush1.bf16.msra.mxu1 %v8373_v16  ;;  %v8410_v46 = vld [vmem:[%s9943_s11 + $0x144] ss:$16 sps:$4 sm:$0xff]   ;;  %v8412_v47 = vld [vmem:[%s9943_s11 + $0x14c] ss:$16 sps:$4 sm:$0xff]   ;;  %v8414_v48 = vld [vmem:[%s9943_s11 + $0x140] ss:$16 sps:$4 sm:$0xff]  }
  0x53   : > { %5899 = vmatprep.subr.bf16.mxu0 %v8374_v17  ;;  %6473 = vmatprep.subr.bf16.mxu1 %v8376_v18  ;;  %v1215_v43 = vunpack.c.0.s8 %v1214_v38  ;;  %v8415_v49 = vld [vmem:[%s9943_s11 + $0x148] ss:$16 sps:$4 sm:$0xff]   ;;  %v8416_v51 = vld [vmem:[%s9943_s11 + $0x164] ss:$16 sps:$4 sm:$0xff]   ;;  %v8418_v52 = vld [vmem:[%s9943_s11 + $0x16c] ss:$16 sps:$4 sm:$0xff]  }
  0x54   : > { %v10025_v53 = vld [vmem:[%s9964_s19] sm:$0xff]  ;;  %v8420_v54 = vld [vmem:[%s9943_s11 + $0x160] ss:$16 sps:$4 sm:$0xff]   ;;  %v8422_v57 = vld [vmem:[%s9943_s11 + $0x184] ss:$16 sps:$4 sm:$0xff]  }
  0x55   : > { %v10020_v50 = vsub.s32 %v1215_v43, %v10012_v44  ;;  %v8421_v56 = vld [vmem:[%s9943_s11 + $0x168] ss:$16 sps:$4 sm:$0xff]   ;;  %v8424_v58 = vld [vmem:[%s9943_s11 + $0x18c] ss:$16 sps:$4 sm:$0xff]   ;;  %v8426_v60 = vld [vmem:[%s9943_s11 + $0x180] ss:$16 sps:$4 sm:$0xff]  }
  0x56   : > { %5900 = vmatpush1.bf16.msra.mxu0 %v8378_v19  ;;  %6474 = vmatpush1.bf16.msra.mxu1 %v8379_v20  ;;  %v8427_v62 = vld [vmem:[%s9943_s11 + $0x188] ss:$16 sps:$4 sm:$0xff]   ;;  %v8428_v63 = vld [vmem:[%s9943_s11 + $0x1a4] ss:$16 sps:$4 sm:$0xff]   ;;  %v8430_v0 = vld [vmem:[%s9943_s11 + $0x1ac] ss:$16 sps:$4 sm:$0xff]  }
  0x57   : > { %5901 = vmatprep.subr.bf16.mxu0 %v8380_v21  ;;  %6475 = vmatprep.subr.bf16.mxu1 %v8382_v22  ;;  %v1219_v55 = vrot.slane %v10025_v53, %v10020_v50  ;;  %v8432_v1 = vld [vmem:[%s9943_s11 + $0x1a0] ss:$16 sps:$4 sm:$0xff]   ;;  %v8433_v2 = vld [vmem:[%s9943_s11 + $0x1a8] ss:$16 sps:$4 sm:$0xff]   ;;  %v8434_v3 = vld [vmem:[%s9943_s11 + $0x1c4] ss:$16 sps:$4 sm:$0xff]  }
  0x58   : > { %v8436_v4 = vld [vmem:[%s9943_s11 + $0x1cc] ss:$16 sps:$4 sm:$0xff]   ;;  %v8438_v5 = vld [vmem:[%s9943_s11 + $0x1c0] ss:$16 sps:$4 sm:$0xff]   ;;  %v8439_v6 = vld [vmem:[%s9943_s11 + $0x1c8] ss:$16 sps:$4 sm:$0xff]  }
  0x59   : > { %v1227_v59 = vcombine.high %v1219_v55, %v1219_v55  ;;  %v8440_v7 = vld [vmem:[%s9943_s11 + $0x1e4] ss:$16 sps:$4 sm:$0xff]   ;;  %v8442_v8 = vld [vmem:[%s9943_s11 + $0x1ec] ss:$16 sps:$4 sm:$0xff]   ;;  %v8444_v9 = vld [vmem:[%s9943_s11 + $0x1e0] ss:$16 sps:$4 sm:$0xff]   ;;  %v10052_v14 = vrot.slane %v1219_v55, %v10020_v50 }
  0x5a   : > { %5902 = vmatpush1.bf16.msra.mxu0 %v8384_v23  ;;  %6476 = vmatpush1.bf16.msra.mxu1 %v8385_v24  ;;  %v8445_v10 = vld [vmem:[%s9943_s11 + $0x1e8] ss:$16 sps:$4 sm:$0xff]   ;;  %v8448_v11 = vld [vmem:[%s9943_s11 + $0x204] ss:$16 sps:$4 sm:$0xff]   ;;  %v8451_v12 = vld [vmem:[%s9943_s11 + $0x20c] ss:$16 sps:$4 sm:$0xff]  }
  0x5b   : > { %5903 = vmatprep.subr.bf16.mxu0 %v8386_v25  ;;  %6477 = vmatprep.subr.bf16.mxu1 %v8388_v26  ;;  %v1249_v61 = vrot.slane %v1227_v59, %v10020_v50  ;;  %v8446_v13 = vld [vmem:[%s9943_s11 + $0x200] ss:$16 sps:$4 sm:$0xff]   ;;  %v8449_v15 = vld [vmem:[%s9943_s11 + $0x208] ss:$16 sps:$4 sm:$0xff]   ;;  %v8454_v16 = vld [vmem:[%s9943_s11 + $0x224] ss:$16 sps:$4 sm:$0xff]  }
  0x5c   : > { %v8457_v17 = vld [vmem:[%s9943_s11 + $0x22c] ss:$16 sps:$4 sm:$0xff]   ;;  %v8452_v19 = vld [vmem:[%s9943_s11 + $0x220] ss:$16 sps:$4 sm:$0xff]   ;;  %v8455_v20 = vld [vmem:[%s9943_s11 + $0x228] ss:$16 sps:$4 sm:$0xff]  }
  0x5d   : > { %5923 = vmatprep.mubr.bf16.mxu0 %v1249_v61  ;;  %6497 = vmatprep.mubr.bf16.mxu1 %v1249_v61  ;;  %v1259_v18 = vcombine.high %v1249_v61, %v1249_v61  ;;  %v8460_v21 = vld [vmem:[%s9943_s11 + $0x244] ss:$16 sps:$4 sm:$0xff]   ;;  %v8463_v22 = vld [vmem:[%s9943_s11 + $0x24c] ss:$16 sps:$4 sm:$0xff]   ;;  %v8458_v23 = vld [vmem:[%s9943_s11 + $0x240] ss:$16 sps:$4 sm:$0xff]  }
  0x5e   : > { %5904 = vmatpush1.bf16.msra.mxu0 %v8390_v27  ;;  %6478 = vmatpush1.bf16.msra.mxu1 %v8391_v28  ;;  %v8461_v24 = vld [vmem:[%s9943_s11 + $0x248] ss:$16 sps:$4 sm:$0xff]   ;;  %v8466_v25 = vld [vmem:[%s9943_s11 + $0x264] ss:$16 sps:$4 sm:$0xff]   ;;  %v8469_v26 = vld [vmem:[%s9943_s11 + $0x26c] ss:$16 sps:$4 sm:$0xff]  }
  0x5f   : > { %5905 = vmatprep.subr.bf16.mxu0 %v8392_v29  ;;  %6479 = vmatprep.subr.bf16.mxu1 %v8394_v30  ;;  %v8464_v27 = vld [vmem:[%s9943_s11 + $0x260] ss:$16 sps:$4 sm:$0xff]   ;;  %v8467_v28 = vld [vmem:[%s9943_s11 + $0x268] ss:$16 sps:$4 sm:$0xff]   ;;  %v8472_v29 = vld [vmem:[%s9943_s11 + $0x284] ss:$16 sps:$4 sm:$0xff]  }
  0x60   : > { %v8475_v30 = vld [vmem:[%s9943_s11 + $0x28c] ss:$16 sps:$4 sm:$0xff]   ;;  %v8484_v37 = vld [vmem:[%s9943_s11 + $0x2c4] ss:$16 sps:$4 sm:$0xff]   ;;  %v8482_v39 = vld [vmem:[%s9943_s11 + $0x2c0] ss:$16 sps:$4 sm:$0xff]  }
  0x61   : > { %v8487_v38 = vld [vmem:[%s9943_s11 + $0x2cc] ss:$16 sps:$4 sm:$0xff]   ;;  %v8488_v43 = vld [vmem:[%s9943_s11 + $0x2e0] ss:$16 sps:$4 sm:$0xff]   ;;  %v8503_v55 = vld [vmem:[%s9943_s11 + $0x328] ss:$16 sps:$4 sm:$0xff]  }
  0x62   : > { %5906 = vmatpush1.bf16.msra.mxu0 %v8396_v31  ;;  %6480 = vmatpush1.bf16.msra.mxu1 %v8397_v32  ;;  %v8470_v31 = vld [vmem:[%s9943_s11 + $0x280] ss:$16 sps:$4 sm:$0xff]   ;;  %v8473_v32 = vld [vmem:[%s9943_s11 + $0x288] ss:$16 sps:$4 sm:$0xff]   ;;  %v8517_v61 = vld [vmem:[%s9943_s11 + $0x36c] ss:$16 sps:$4 sm:$0xff]  }
  0x63   : > { %5907 = vmatprep.subr.bf16.mxu0 %v8398_v33  ;;  %6481 = vmatprep.subr.bf16.mxu1 %v8400_v34  ;;  %v8478_v33 = vld [vmem:[%s9943_s11 + $0x2a4] ss:$16 sps:$4 sm:$0xff]   ;;  %v8481_v34 = vld [vmem:[%s9943_s11 + $0x2ac] ss:$16 sps:$4 sm:$0xff]   ;;  %v8509_v59 = vld [vmem:[%s9943_s11 + $0x348] ss:$16 sps:$4 sm:$0xff]  }
  0x66   : > { %5908 = vmatpush1.bf16.msra.mxu0 %v8402_v35  ;;  %6482 = vmatpush1.bf16.msra.mxu1 %v8403_v36  ;;  %v8476_v35 = vld [vmem:[%s9943_s11 + $0x2a0] ss:$16 sps:$4 sm:$0xff]   ;;  %v8479_v36 = vld [vmem:[%s9943_s11 + $0x2a8] ss:$16 sps:$4 sm:$0xff]  }
  0x67   : > { %5909 = vmatprep.subr.bf16.mxu0 %v8404_v40  ;;  %6483 = vmatprep.subr.bf16.mxu1 %v8406_v41  ;;  %v8485_v40 = vld [vmem:[%s9943_s11 + $0x2c8] ss:$16 sps:$4 sm:$0xff]   ;;  %v8490_v41 = vld [vmem:[%s9943_s11 + $0x2e4] ss:$16 sps:$4 sm:$0xff]  }
  0x6a   : > { %5910 = vmatpush1.bf16.msra.mxu0 %v8408_v42  ;;  %6484 = vmatpush1.bf16.msra.mxu1 %v8409_v45  ;;  %v8493_v42 = vld [vmem:[%s9943_s11 + $0x2ec] ss:$16 sps:$4 sm:$0xff]   ;;  %v8491_v45 = vld [vmem:[%s9943_s11 + $0x2e8] ss:$16 sps:$4 sm:$0xff]  }
  0x6b   : > { %5911 = vmatprep.subr.bf16.mxu0 %v8410_v46  ;;  %6485 = vmatprep.subr.bf16.mxu1 %v8412_v47  ;;  %v8496_v46 = vld [vmem:[%s9943_s11 + $0x304] ss:$16 sps:$4 sm:$0xff]   ;;  %v8499_v47 = vld [vmem:[%s9943_s11 + $0x30c] ss:$16 sps:$4 sm:$0xff]  }
  0x6e   : > { %5912 = vmatpush1.bf16.msra.mxu0 %v8414_v48  ;;  %6486 = vmatpush1.bf16.msra.mxu1 %v8415_v49  ;;  %v8494_v48 = vld [vmem:[%s9943_s11 + $0x300] ss:$16 sps:$4 sm:$0xff]   ;;  %v8497_v49 = vld [vmem:[%s9943_s11 + $0x308] ss:$16 sps:$4 sm:$0xff]  }
  0x6f   : > { %5913 = vmatprep.subr.bf16.mxu0 %v8416_v51  ;;  %6487 = vmatprep.subr.bf16.mxu1 %v8418_v52  ;;  %v8502_v51 = vld [vmem:[%s9943_s11 + $0x324] ss:$16 sps:$4 sm:$0xff]   ;;  %v8505_v52 = vld [vmem:[%s9943_s11 + $0x32c] ss:$16 sps:$4 sm:$0xff]  }
  0x72   : > { %5914 = vmatpush1.bf16.msra.mxu0 %v8420_v54  ;;  %6488 = vmatpush1.bf16.msra.mxu1 %v8421_v56  ;;  %v8500_v54 = vld [vmem:[%s9943_s11 + $0x320] ss:$16 sps:$4 sm:$0xff]   ;;  %v8508_v56 = vld [vmem:[%s9943_s11 + $0x344] ss:$16 sps:$4 sm:$0xff]  }
  0x73   : > { %5915 = vmatprep.subr.bf16.mxu0 %v8422_v57  ;;  %6489 = vmatprep.subr.bf16.mxu1 %v8424_v58  ;;  %v8511_v57 = vld [vmem:[%s9943_s11 + $0x34c] ss:$16 sps:$4 sm:$0xff]   ;;  %v8506_v58 = vld [vmem:[%s9943_s11 + $0x340] ss:$16 sps:$4 sm:$0xff]  }
  0x76   : > { %5916 = vmatpush1.bf16.msra.mxu0 %v8426_v60  ;;  %6490 = vmatpush1.bf16.msra.mxu1 %v8427_v62  ;;  %v8514_v60 = vld [vmem:[%s9943_s11 + $0x364] ss:$16 sps:$4 sm:$0xff]   ;;  %v8512_v62 = vld [vmem:[%s9943_s11 + $0x360] ss:$16 sps:$4 sm:$0xff]  }
  0x77   : > { %5917 = vmatprep.subr.bf16.mxu0 %v8428_v63  ;;  %6491 = vmatprep.subr.bf16.mxu1 %v8430_v0  ;;  %v8515_v63 = vld [vmem:[%s9943_s11 + $0x368] ss:$16 sps:$4 sm:$0xff]   ;;  %v8520_v0 = vld [vmem:[%s9943_s11 + $0x384] ss:$16 sps:$4 sm:$0xff]  }
  0x7a   : > { %5918 = vmatpush1.bf16.msra.mxu0 %v8432_v1  ;;  %6492 = vmatpush1.bf16.msra.mxu1 %v8433_v2  ;;  %v8523_v1 = vld [vmem:[%s9943_s11 + $0x38c] ss:$16 sps:$4 sm:$0xff]   ;;  %v8518_v2 = vld [vmem:[%s9943_s11 + $0x380] ss:$16 sps:$4 sm:$0xff]  }
  0x7b   : > { %5919 = vmatprep.subr.bf16.mxu0 %v8434_v3  ;;  %6493 = vmatprep.subr.bf16.mxu1 %v8436_v4  ;;  %v8521_v3 = vld [vmem:[%s9943_s11 + $0x388] ss:$16 sps:$4 sm:$0xff]   ;;  %v8526_v4 = vld [vmem:[%s9943_s11 + $0x3a4] ss:$16 sps:$4 sm:$0xff]  }
  0x7e   : > { %5920 = vmatpush1.bf16.msra.mxu0 %v8438_v5  ;;  %6494 = vmatpush1.bf16.msra.mxu1 %v8439_v6  ;;  %v8529_v5 = vld [vmem:[%s9943_s11 + $0x3ac] ss:$16 sps:$4 sm:$0xff]   ;;  %v8524_v6 = vld [vmem:[%s9943_s11 + $0x3a0] ss:$16 sps:$4 sm:$0xff]  }
  0x7f   : > { %5921 = vmatprep.subr.bf16.mxu0 %v8440_v7  ;;  %6495 = vmatprep.subr.bf16.mxu1 %v8442_v8  ;;  %v8527_v7 = vld [vmem:[%s9943_s11 + $0x3a8] ss:$16 sps:$4 sm:$0xff]   ;;  %v8532_v8 = vld [vmem:[%s9943_s11 + $0x3c4] ss:$16 sps:$4 sm:$0xff]  }
  0x82   : > { %5922 = vmatpush1.bf16.msra.mxu0 %v8444_v9  ;;  %6496 = vmatpush1.bf16.msra.mxu1 %v8445_v10  ;;  %v8535_v9 = vld [vmem:[%s9943_s11 + $0x3cc] ss:$16 sps:$4 sm:$0xff]   ;;  %v1212_v10 = vcombine.high %v10025_v53, %v10025_v53  ;;  %v8539_v53 = vld [vmem:[%s9943_s11 + $0x3e8] ss:$16 sps:$4 sm:$0xff]  }
  0x83   : > { %5932 = vmatprep.subr.bf16.mxu0 %v8448_v11  ;;  %6506 = vmatprep.subr.bf16.mxu1 %v8451_v12  ;;  %v8530_v11 = vld [vmem:[%s9943_s11 + $0x3c0] ss:$16 sps:$4 sm:$0xff]   ;;  %v8533_v12 = vld [vmem:[%s9943_s11 + $0x3c8] ss:$16 sps:$4 sm:$0xff]  }
  0x85   : > { %5924 = vmatmul.mubr.bf16.vlgmr.msra.gmra.mrb[0].mxu0 %v10052_v14  ;;  %6498 = vmatmul.mubr.bf16.vlgmr.msra.gmra.mrb[0].mxu1 %v10052_v14 }
  0x86   : > { %5933 = vmatpush1.bf16.msra.mxu0 %v8446_v13  ;;  %6507 = vmatpush1.bf16.msra.mxu1 %v8449_v15  ;;  %v8538_v13 = vld [vmem:[%s9943_s11 + $0x3e4] ss:$16 sps:$4 sm:$0xff]   ;;  %v8541_v15 = vld [vmem:[%s9943_s11 + $0x3ec] ss:$16 sps:$4 sm:$0xff]  }
  0x87   : > { %5934 = vmatprep.subr.bf16.mxu0 %v8454_v16  ;;  %6508 = vmatprep.subr.bf16.mxu1 %v8457_v17  ;;  %v10118_v16 = vrot.slane %v1212_v10, %v10020_v50  ;;  %v8536_v17 = vld [vmem:[%s9943_s11 + $0x3e0] ss:$16 sps:$4 sm:$0xff]   ;;  %v8617_v10 = vld [vmem:[%s9943_s11 + $0x588] ss:$16 sps:$4 sm:$0xff]  }
  0x88   : > { %5964 = vmatprep.mubr.bf16.mxu0 %v1259_v18  ;;  %6538 = vmatprep.mubr.bf16.mxu1 %v1259_v18  ;;  %v8544_v18 = vld [vmem:[%s9943_s11 + $0x404] ss:$16 sps:$4 sm:$0xff]  }
  0x8a   : > { %5935 = vmatpush1.bf16.msra.mxu0 %v8452_v19  ;;  %6509 = vmatpush1.bf16.msra.mxu1 %v8455_v20  ;;  %v8547_v19 = vld [vmem:[%s9943_s11 + $0x40c] ss:$16 sps:$4 sm:$0xff]   ;;  %v1228_v20 = vcombine.high %v10118_v16, %v10118_v16 }
  0x8b   : > { %5936 = vmatprep.subr.bf16.mxu0 %v8460_v21  ;;  %6510 = vmatprep.subr.bf16.mxu1 %v8463_v22  ;;  %v8542_v21 = vld [vmem:[%s9943_s11 + $0x400] ss:$16 sps:$4 sm:$0xff]   ;;  %v1257_v22 = vcombine.high %v10052_v14, %v10052_v14  ;;  %v8551_v14 = vld [vmem:[%s9943_s11 + $0x428] ss:$16 sps:$4 sm:$0xff]  }
  0x8e   : > { %5937 = vmatpush1.bf16.msra.mxu0 %v8458_v23  ;;  %6511 = vmatpush1.bf16.msra.mxu1 %v8461_v24  ;;  %v8545_v23 = vld [vmem:[%s9943_s11 + $0x408] ss:$16 sps:$4 sm:$0xff]   ;;  %v8550_v24 = vld [vmem:[%s9943_s11 + $0x424] ss:$16 sps:$4 sm:$0xff]  }
  0x8f   : > { %5938 = vmatprep.subr.bf16.mxu0 %v8466_v25  ;;  %6512 = vmatprep.subr.bf16.mxu1 %v8469_v26  ;;  %v8553_v25 = vld [vmem:[%s9943_s11 + $0x42c] ss:$16 sps:$4 sm:$0xff]   ;;  %v10133_v26 = vrot.slane %v1228_v20, %v10020_v50  ;;  %v8634_v20 = vld [vmem:[%s9943_s11 + $0x5e4] ss:$16 sps:$4 sm:$0xff]  }
  0x92   : > { %5939 = vmatpush1.bf16.msra.mxu0 %v8464_v27  ;;  %6513 = vmatpush1.bf16.msra.mxu1 %v8467_v28  ;;  %v8548_v27 = vld [vmem:[%s9943_s11 + $0x420] ss:$16 sps:$4 sm:$0xff]   ;;  %v8556_v28 = vld [vmem:[%s9943_s11 + $0x444] ss:$16 sps:$4 sm:$0xff]  }
  0x93   : > { %5940 = vmatprep.subr.bf16.mxu0 %v8472_v29  ;;  %6514 = vmatprep.subr.bf16.mxu1 %v8475_v30  ;;  %v8559_v29 = vld [vmem:[%s9943_s11 + $0x44c] ss:$16 sps:$4 sm:$0xff]   ;;  %v8554_v30 = vld [vmem:[%s9943_s11 + $0x440] ss:$16 sps:$4 sm:$0xff]  }
  0x96   : > { %5941 = vmatpush1.bf16.msra.mxu0 %v8470_v31  ;;  %6515 = vmatpush1.bf16.msra.mxu1 %v8473_v32  ;;  %v8557_v31 = vld [vmem:[%s9943_s11 + $0x448] ss:$16 sps:$4 sm:$0xff]   ;;  %v8562_v32 = vld [vmem:[%s9943_s11 + $0x464] ss:$16 sps:$4 sm:$0xff]  }
  0x97   : > { %5942 = vmatprep.subr.bf16.mxu0 %v8478_v33  ;;  %6516 = vmatprep.subr.bf16.mxu1 %v8481_v34  ;;  %v8565_v33 = vld [vmem:[%s9943_s11 + $0x46c] ss:$16 sps:$4 sm:$0xff]   ;;  %v8560_v34 = vld [vmem:[%s9943_s11 + $0x460] ss:$16 sps:$4 sm:$0xff]  }
  0x9a   : > { %5943 = vmatpush1.bf16.msra.mxu0 %v8476_v35  ;;  %6517 = vmatpush1.bf16.msra.mxu1 %v8479_v36  ;;  %v8563_v35 = vld [vmem:[%s9943_s11 + $0x468] ss:$16 sps:$4 sm:$0xff]   ;;  %v8568_v36 = vld [vmem:[%s9943_s11 + $0x484] ss:$16 sps:$4 sm:$0xff]  }
  0x9b   : > { %5944 = vmatprep.subr.bf16.mxu0 %v8484_v37  ;;  %6518 = vmatprep.subr.bf16.mxu1 %v8487_v38  ;;  %v8571_v37 = vld [vmem:[%s9943_s11 + $0x48c] ss:$16 sps:$4 sm:$0xff]   ;;  %v8566_v38 = vld [vmem:[%s9943_s11 + $0x480] ss:$16 sps:$4 sm:$0xff]  }
  0x9e   : > { %5945 = vmatpush1.bf16.msra.mxu0 %v8482_v39  ;;  %6519 = vmatpush1.bf16.msra.mxu1 %v8485_v40  ;;  %v8569_v39 = vld [vmem:[%s9943_s11 + $0x488] ss:$16 sps:$4 sm:$0xff]   ;;  %v8574_v40 = vld [vmem:[%s9943_s11 + $0x4a4] ss:$16 sps:$4 sm:$0xff]  }
  0x9f   : > { %5946 = vmatprep.subr.bf16.mxu0 %v8490_v41  ;;  %6520 = vmatprep.subr.bf16.mxu1 %v8493_v42  ;;  %v8577_v41 = vld [vmem:[%s9943_s11 + $0x4ac] ss:$16 sps:$4 sm:$0xff]   ;;  %v8572_v42 = vld [vmem:[%s9943_s11 + $0x4a0] ss:$16 sps:$4 sm:$0xff]  }
  0xa2   : > { %5947 = vmatpush1.bf16.msra.mxu0 %v8488_v43  ;;  %6521 = vmatpush1.bf16.msra.mxu1 %v8491_v45  ;;  %v8575_v43 = vld [vmem:[%s9943_s11 + $0x4a8] ss:$16 sps:$4 sm:$0xff]   ;;  %v8580_v45 = vld [vmem:[%s9943_s11 + $0x4c4] ss:$16 sps:$4 sm:$0xff]  }
  0xa3   : > { %5948 = vmatprep.subr.bf16.mxu0 %v8496_v46  ;;  %6522 = vmatprep.subr.bf16.mxu1 %v8499_v47  ;;  %v8583_v46 = vld [vmem:[%s9943_s11 + $0x4cc] ss:$16 sps:$4 sm:$0xff]   ;;  %v8578_v47 = vld [vmem:[%s9943_s11 + $0x4c0] ss:$16 sps:$4 sm:$0xff]  }
  0xa6   : > { %5949 = vmatpush1.bf16.msra.mxu0 %v8494_v48  ;;  %6523 = vmatpush1.bf16.msra.mxu1 %v8497_v49  ;;  %v8581_v48 = vld [vmem:[%s9943_s11 + $0x4c8] ss:$16 sps:$4 sm:$0xff]   ;;  %v8586_v49 = vld [vmem:[%s9943_s11 + $0x4e4] ss:$16 sps:$4 sm:$0xff]  }
  0xa7   : > { %5950 = vmatprep.subr.bf16.mxu0 %v8502_v51  ;;  %6524 = vmatprep.subr.bf16.mxu1 %v8505_v52  ;;  %v8589_v51 = vld [vmem:[%s9943_s11 + $0x4ec] ss:$16 sps:$4 sm:$0xff]   ;;  %v8584_v52 = vld [vmem:[%s9943_s11 + $0x4e0] ss:$16 sps:$4 sm:$0xff]  }
  0xaa   : > { %5951 = vmatpush1.bf16.msra.mxu0 %v8500_v54  ;;  %6525 = vmatpush1.bf16.msra.mxu1 %v8503_v55  ;;  %v8587_v54 = vld [vmem:[%s9943_s11 + $0x4e8] ss:$16 sps:$4 sm:$0xff]   ;;  %v8592_v55 = vld [vmem:[%s9943_s11 + $0x504] ss:$16 sps:$4 sm:$0xff]  }
  0xab   : > { %5952 = vmatprep.subr.bf16.mxu0 %v8508_v56  ;;  %6526 = vmatprep.subr.bf16.mxu1 %v8511_v57  ;;  %v8595_v56 = vld [vmem:[%s9943_s11 + $0x50c] ss:$16 sps:$4 sm:$0xff]   ;;  %v8590_v57 = vld [vmem:[%s9943_s11 + $0x500] ss:$16 sps:$4 sm:$0xff]  }
  0xae   : > { %5953 = vmatpush1.bf16.msra.mxu0 %v8506_v58  ;;  %6527 = vmatpush1.bf16.msra.mxu1 %v8509_v59  ;;  %v8593_v58 = vld [vmem:[%s9943_s11 + $0x508] ss:$16 sps:$4 sm:$0xff]   ;;  %v8598_v59 = vld [vmem:[%s9943_s11 + $0x524] ss:$16 sps:$4 sm:$0xff]  }
  0xaf   : > { %5954 = vmatprep.subr.bf16.mxu0 %v8514_v60  ;;  %6528 = vmatprep.subr.bf16.mxu1 %v8517_v61  ;;  %v8601_v60 = vld [vmem:[%s9943_s11 + $0x52c] ss:$16 sps:$4 sm:$0xff]   ;;  %v8596_v61 = vld [vmem:[%s9943_s11 + $0x520] ss:$16 sps:$4 sm:$0xff]  }
  0xb2   : > { %5955 = vmatpush1.bf16.msra.mxu0 %v8512_v62  ;;  %6529 = vmatpush1.bf16.msra.mxu1 %v8515_v63  ;;  %v8599_v62 = vld [vmem:[%s9943_s11 + $0x528] ss:$16 sps:$4 sm:$0xff]   ;;  %v8604_v63 = vld [vmem:[%s9943_s11 + $0x544] ss:$16 sps:$4 sm:$0xff]  }
  0xb3   : > { %5956 = vmatprep.subr.bf16.mxu0 %v8520_v0  ;;  %6530 = vmatprep.subr.bf16.mxu1 %v8523_v1  ;;  %v8607_v0 = vld [vmem:[%s9943_s11 + $0x54c] ss:$16 sps:$4 sm:$0xff]   ;;  %v8602_v1 = vld [vmem:[%s9943_s11 + $0x540] ss:$16 sps:$4 sm:$0xff]  }
  0xb6   : > { %5957 = vmatpush1.bf16.msra.mxu0 %v8518_v2  ;;  %6531 = vmatpush1.bf16.msra.mxu1 %v8521_v3  ;;  %v8605_v2 = vld [vmem:[%s9943_s11 + $0x548] ss:$16 sps:$4 sm:$0xff]   ;;  %v8610_v3 = vld [vmem:[%s9943_s11 + $0x564] ss:$16 sps:$4 sm:$0xff]  }
  0xb7   : > { %5958 = vmatprep.subr.bf16.mxu0 %v8526_v4  ;;  %6532 = vmatprep.subr.bf16.mxu1 %v8529_v5  ;;  %v8613_v4 = vld [vmem:[%s9943_s11 + $0x56c] ss:$16 sps:$4 sm:$0xff]   ;;  %v8608_v5 = vld [vmem:[%s9943_s11 + $0x560] ss:$16 sps:$4 sm:$0xff]  }
  0xba   : > { %5959 = vmatpush1.bf16.msra.mxu0 %v8524_v6  ;;  %6533 = vmatpush1.bf16.msra.mxu1 %v8527_v7  ;;  %v8611_v6 = vld [vmem:[%s9943_s11 + $0x568] ss:$16 sps:$4 sm:$0xff]   ;;  %v8616_v7 = vld [vmem:[%s9943_s11 + $0x584] ss:$16 sps:$4 sm:$0xff]  }
  0xbb   : > { %5960 = vmatprep.subr.bf16.mxu0 %v8532_v8  ;;  %6534 = vmatprep.subr.bf16.mxu1 %v8535_v9  ;;  %v8619_v8 = vld [vmem:[%s9943_s11 + $0x58c] ss:$16 sps:$4 sm:$0xff]   ;;  %v8614_v9 = vld [vmem:[%s9943_s11 + $0x580] ss:$16 sps:$4 sm:$0xff]  }
  0xbe   : > { %5961 = vmatpush1.bf16.msra.mxu0 %v8530_v11  ;;  %6535 = vmatpush1.bf16.msra.mxu1 %v8533_v12  ;;  %v8622_v11 = vld [vmem:[%s9943_s11 + $0x5a4] ss:$16 sps:$4 sm:$0xff]   ;;  %v8625_v12 = vld [vmem:[%s9943_s11 + $0x5ac] ss:$16 sps:$4 sm:$0xff]  }
  0xbf   : > { %5962 = vmatprep.subr.bf16.mxu0 %v8538_v13  ;;  %6536 = vmatprep.subr.bf16.mxu1 %v8541_v15  ;;  %v8620_v13 = vld [vmem:[%s9943_s11 + $0x5a0] ss:$16 sps:$4 sm:$0xff]   ;;  %v8623_v15 = vld [vmem:[%s9943_s11 + $0x5a8] ss:$16 sps:$4 sm:$0xff]  }
  0xc2   : > { %5963 = vmatpush1.bf16.msra.mxu0 %v8536_v17  ;;  %6537 = vmatpush1.bf16.msra.mxu1 %v8539_v53  ;;  %v8628_v17 = vld [vmem:[%s9943_s11 + $0x5c4] ss:$16 sps:$4 sm:$0xff]   ;;  %v8631_v53 = vld [vmem:[%s9943_s11 + $0x5cc] ss:$16 sps:$4 sm:$0xff]  }
  0xc3   : > { %5973 = vmatprep.subr.bf16.mxu0 %v8544_v18  ;;  %6547 = vmatprep.subr.bf16.mxu1 %v8547_v19  ;;  %v8626_v18 = vld [vmem:[%s9943_s11 + $0x5c0] ss:$16 sps:$4 sm:$0xff]   ;;  %v8629_v19 = vld [vmem:[%s9943_s11 + $0x5c8] ss:$16 sps:$4 sm:$0xff]  }
  0xc5   : > { %5965 = vmatmul.mubr.bf16.vlgmr.msra.gmra.mrb[0].mxu0 %v1257_v22  ;;  %6539 = vmatmul.mubr.bf16.vlgmr.msra.gmra.mrb[0].mxu1 %v1257_v22  ;;  %v8632_v22 = vld [vmem:[%s9943_s11 + $0x5e0] ss:$16 sps:$4 sm:$0xff]  }
  0xc6   : > { %5974 = vmatpush1.bf16.msra.mxu0 %v8542_v21  ;;  %6548 = vmatpush1.bf16.msra.mxu1 %v8545_v23  ;;  %v8637_v21 = vld [vmem:[%s9943_s11 + $0x5ec] ss:$16 sps:$4 sm:$0xff]   ;;  %v8635_v23 = vld [vmem:[%s9943_s11 + $0x5e8] ss:$16 sps:$4 sm:$0xff]  }
  0xc7   : > { %5975 = vmatprep.subr.bf16.mxu0 %v8550_v24  ;;  %6549 = vmatprep.subr.bf16.mxu1 %v8553_v25  ;;  %v8641_v24 = vld [vmem:[%s9943_s11 + $0x604] ss:$16 sps:$4 sm:$0xff]   ;;  %v8644_v25 = vld [vmem:[%s9943_s11 + $0x60c] ss:$16 sps:$4 sm:$0xff]  }
  0xc8   : > { %6005 = vmatprep.mubr.bf16.mxu0 %v10133_v26  ;;  %6579 = vmatprep.mubr.bf16.mxu1 %v10133_v26 }
  0xca   : > { %5976 = vmatpush1.bf16.msra.mxu0 %v8548_v27  ;;  %6550 = vmatpush1.bf16.msra.mxu1 %v8551_v14  ;;  %v8639_v27 = vld [vmem:[%s9943_s11 + $0x600] ss:$16 sps:$4 sm:$0xff]   ;;  %v10200_v14 = vrot.slane %v10118_v16, %v10020_v50 }
  0xcb   : > { %5977 = vmatprep.subr.bf16.mxu0 %v8556_v28  ;;  %6551 = vmatprep.subr.bf16.mxu1 %v8559_v29  ;;  %v8642_v28 = vld [vmem:[%s9943_s11 + $0x608] ss:$16 sps:$4 sm:$0xff]   ;;  %v8647_v29 = vld [vmem:[%s9943_s11 + $0x624] ss:$16 sps:$4 sm:$0xff]   ;;  %v8645_v16 = vld [vmem:[%s9943_s11 + $0x620] ss:$16 sps:$4 sm:$0xff]  }
  0xce   : > { %5978 = vmatpush1.bf16.msra.mxu0 %v8554_v30  ;;  %6552 = vmatpush1.bf16.msra.mxu1 %v8557_v31  ;;  %v8650_v30 = vld [vmem:[%s9943_s11 + $0x62c] ss:$16 sps:$4 sm:$0xff]   ;;  %v1260_v31 = vcombine.high %v10133_v26, %v10133_v26  ;;  %v8651_v26 = vld [vmem:[%s9943_s11 + $0x640] ss:$16 sps:$4 sm:$0xff]  }
  0xcf   : > { %5979 = vmatprep.subr.bf16.mxu0 %v8562_v32  ;;  %6553 = vmatprep.subr.bf16.mxu1 %v8565_v33  ;;  %v8648_v32 = vld [vmem:[%s9943_s11 + $0x628] ss:$16 sps:$4 sm:$0xff]   ;;  %v8653_v33 = vld [vmem:[%s9943_s11 + $0x644] ss:$16 sps:$4 sm:$0xff]  }
  0xd2   : > { %5980 = vmatpush1.bf16.msra.mxu0 %v8560_v34  ;;  %6554 = vmatpush1.bf16.msra.mxu1 %v8563_v35  ;;  %v8656_v34 = vld [vmem:[%s9943_s11 + $0x64c] ss:$16 sps:$4 sm:$0xff]   ;;  %v8654_v35 = vld [vmem:[%s9943_s11 + $0x648] ss:$16 sps:$4 sm:$0xff]  }
  0xd3   : > { %5981 = vmatprep.subr.bf16.mxu0 %v8568_v36  ;;  %6555 = vmatprep.subr.bf16.mxu1 %v8571_v37  ;;  %v8659_v36 = vld [vmem:[%s9943_s11 + $0x664] ss:$16 sps:$4 sm:$0xff]   ;;  %v8662_v37 = vld [vmem:[%s9943_s11 + $0x66c] ss:$16 sps:$4 sm:$0xff]  }
  0xd6   : > { %5982 = vmatpush1.bf16.msra.mxu0 %v8566_v38  ;;  %6556 = vmatpush1.bf16.msra.mxu1 %v8569_v39  ;;  %v8657_v38 = vld [vmem:[%s9943_s11 + $0x660] ss:$16 sps:$4 sm:$0xff]   ;;  %v8660_v39 = vld [vmem:[%s9943_s11 + $0x668] ss:$16 sps:$4 sm:$0xff]  }
  0xd7   : > { %5983 = vmatprep.subr.bf16.mxu0 %v8574_v40  ;;  %6557 = vmatprep.subr.bf16.mxu1 %v8577_v41  ;;  %v8665_v40 = vld [vmem:[%s9943_s11 + $0x684] ss:$16 sps:$4 sm:$0xff]   ;;  %v8668_v41 = vld [vmem:[%s9943_s11 + $0x68c] ss:$16 sps:$4 sm:$0xff]  }
  0xda   : > { %5984 = vmatpush1.bf16.msra.mxu0 %v8572_v42  ;;  %6558 = vmatpush1.bf16.msra.mxu1 %v8575_v43  ;;  %v8663_v42 = vld [vmem:[%s9943_s11 + $0x680] ss:$16 sps:$4 sm:$0xff]   ;;  %v8666_v43 = vld [vmem:[%s9943_s11 + $0x688] ss:$16 sps:$4 sm:$0xff]  }
  0xdb   : > { %5985 = vmatprep.subr.bf16.mxu0 %v8580_v45  ;;  %6559 = vmatprep.subr.bf16.mxu1 %v8583_v46  ;;  %v8671_v45 = vld [vmem:[%s9943_s11 + $0x6a4] ss:$16 sps:$4 sm:$0xff]   ;;  %v8674_v46 = vld [vmem:[%s9943_s11 + $0x6ac] ss:$16 sps:$4 sm:$0xff]  }
  0xde   : > { %5986 = vmatpush1.bf16.msra.mxu0 %v8578_v47  ;;  %6560 = vmatpush1.bf16.msra.mxu1 %v8581_v48  ;;  %v8669_v47 = vld [vmem:[%s9943_s11 + $0x6a0] ss:$16 sps:$4 sm:$0xff]   ;;  %v8672_v48 = vld [vmem:[%s9943_s11 + $0x6a8] ss:$16 sps:$4 sm:$0xff]  }
  0xdf   : > { %5987 = vmatprep.subr.bf16.mxu0 %v8586_v49  ;;  %6561 = vmatprep.subr.bf16.mxu1 %v8589_v51  ;;  %v8677_v49 = vld [vmem:[%s9943_s11 + $0x6c4] ss:$16 sps:$4 sm:$0xff]   ;;  %v8680_v51 = vld [vmem:[%s9943_s11 + $0x6cc] ss:$16 sps:$4 sm:$0xff]  }
  0xe2   : > { %5988 = vmatpush1.bf16.msra.mxu0 %v8584_v52  ;;  %6562 = vmatpush1.bf16.msra.mxu1 %v8587_v54  ;;  %v8675_v52 = vld [vmem:[%s9943_s11 + $0x6c0] ss:$16 sps:$4 sm:$0xff]   ;;  %v8678_v54 = vld [vmem:[%s9943_s11 + $0x6c8] ss:$16 sps:$4 sm:$0xff]  }
  0xe3   : > { %5989 = vmatprep.subr.bf16.mxu0 %v8592_v55  ;;  %6563 = vmatprep.subr.bf16.mxu1 %v8595_v56  ;;  %v8683_v55 = vld [vmem:[%s9943_s11 + $0x6e4] ss:$16 sps:$4 sm:$0xff]   ;;  %v8686_v56 = vld [vmem:[%s9943_s11 + $0x6ec] ss:$16 sps:$4 sm:$0xff]  }
  0xe6   : > { %5990 = vmatpush1.bf16.msra.mxu0 %v8590_v57  ;;  %6564 = vmatpush1.bf16.msra.mxu1 %v8593_v58  ;;  %v8681_v57 = vld [vmem:[%s9943_s11 + $0x6e0] ss:$16 sps:$4 sm:$0xff]   ;;  %v8684_v58 = vld [vmem:[%s9943_s11 + $0x6e8] ss:$16 sps:$4 sm:$0xff]  }
  0xe7   : > { %5991 = vmatprep.subr.bf16.mxu0 %v8598_v59  ;;  %6565 = vmatprep.subr.bf16.mxu1 %v8601_v60  ;;  %v8689_v59 = vld [vmem:[%s9943_s11 + $0x704] ss:$16 sps:$4 sm:$0xff]   ;;  %v8692_v60 = vld [vmem:[%s9943_s11 + $0x70c] ss:$16 sps:$4 sm:$0xff]  }
  0xea   : > { %5992 = vmatpush1.bf16.msra.mxu0 %v8596_v61  ;;  %6566 = vmatpush1.bf16.msra.mxu1 %v8599_v62  ;;  %v8687_v61 = vld [vmem:[%s9943_s11 + $0x700] ss:$16 sps:$4 sm:$0xff]   ;;  %v8690_v62 = vld [vmem:[%s9943_s11 + $0x708] ss:$16 sps:$4 sm:$0xff]  }
  0xeb   : > { %5993 = vmatprep.subr.bf16.mxu0 %v8604_v63  ;;  %6567 = vmatprep.subr.bf16.mxu1 %v8607_v0  ;;  %v8695_v63 = vld [vmem:[%s9943_s11 + $0x724] ss:$16 sps:$4 sm:$0xff]   ;;  %v8698_v0 = vld [vmem:[%s9943_s11 + $0x72c] ss:$16 sps:$4 sm:$0xff]  }
  0xee   : > { %5994 = vmatpush1.bf16.msra.mxu0 %v8602_v1  ;;  %6568 = vmatpush1.bf16.msra.mxu1 %v8605_v2  ;;  %v8693_v1 = vld [vmem:[%s9943_s11 + $0x720] ss:$16 sps:$4 sm:$0xff]   ;;  %v8696_v2 = vld [vmem:[%s9943_s11 + $0x728] ss:$16 sps:$4 sm:$0xff]  }
  0xef   : > { %5995 = vmatprep.subr.bf16.mxu0 %v8610_v3  ;;  %6569 = vmatprep.subr.bf16.mxu1 %v8613_v4  ;;  %v8701_v3 = vld [vmem:[%s9943_s11 + $0x744] ss:$16 sps:$4 sm:$0xff]   ;;  %v8704_v4 = vld [vmem:[%s9943_s11 + $0x74c] ss:$16 sps:$4 sm:$0xff]  }
  0xf2   : > { %5996 = vmatpush1.bf16.msra.mxu0 %v8608_v5  ;;  %6570 = vmatpush1.bf16.msra.mxu1 %v8611_v6  ;;  %v8699_v5 = vld [vmem:[%s9943_s11 + $0x740] ss:$16 sps:$4 sm:$0xff]   ;;  %v8702_v6 = vld [vmem:[%s9943_s11 + $0x748] ss:$16 sps:$4 sm:$0xff]  }
  0xf3   : > { %5997 = vmatprep.subr.bf16.mxu0 %v8616_v7  ;;  %6571 = vmatprep.subr.bf16.mxu1 %v8619_v8  ;;  %v8707_v7 = vld [vmem:[%s9943_s11 + $0x764] ss:$16 sps:$4 sm:$0xff]   ;;  %v8710_v8 = vld [vmem:[%s9943_s11 + $0x76c] ss:$16 sps:$4 sm:$0xff]  }
  0xf6   : > { %5998 = vmatpush1.bf16.msra.mxu0 %v8614_v9  ;;  %6572 = vmatpush1.bf16.msra.mxu1 %v8617_v10  ;;  %v8705_v9 = vld [vmem:[%s9943_s11 + $0x760] ss:$16 sps:$4 sm:$0xff]   ;;  %v8708_v10 = vld [vmem:[%s9943_s11 + $0x768] ss:$16 sps:$4 sm:$0xff]  }
  0xf7   : > { %5999 = vmatprep.subr.bf16.mxu0 %v8622_v11  ;;  %6573 = vmatprep.subr.bf16.mxu1 %v8625_v12  ;;  %v8713_v11 = vld [vmem:[%s9943_s11 + $0x784] ss:$16 sps:$4 sm:$0xff]   ;;  %v8716_v12 = vld [vmem:[%s9943_s11 + $0x78c] ss:$16 sps:$4 sm:$0xff]  }
  0xfa   : > { %6000 = vmatpush1.bf16.msra.mxu0 %v8620_v13  ;;  %6574 = vmatpush1.bf16.msra.mxu1 %v8623_v15  ;;  %v8711_v13 = vld [vmem:[%s9943_s11 + $0x780] ss:$16 sps:$4 sm:$0xff]   ;;  %v8714_v15 = vld [vmem:[%s9943_s11 + $0x788] ss:$16 sps:$4 sm:$0xff]  }
  0xfb   : > { %6001 = vmatprep.subr.bf16.mxu0 %v8628_v17  ;;  %6575 = vmatprep.subr.bf16.mxu1 %v8631_v53  ;;  %v8719_v17 = vld [vmem:[%s9943_s11 + $0x7a4] ss:$16 sps:$4 sm:$0xff]   ;;  %v8722_v53 = vld [vmem:[%s9943_s11 + $0x7ac] ss:$16 sps:$4 sm:$0xff]  }
  0xfe   : > { %6002 = vmatpush1.bf16.msra.mxu0 %v8626_v18  ;;  %6576 = vmatpush1.bf16.msra.mxu1 %v8629_v19  ;;  %v8717_v18 = vld [vmem:[%s9943_s11 + $0x7a0] ss:$16 sps:$4 sm:$0xff]   ;;  %v8720_v19 = vld [vmem:[%s9943_s11 + $0x7a8] ss:$16 sps:$4 sm:$0xff]  }
  0xff   : > { %6003 = vmatprep.subr.bf16.mxu0 %v8634_v20  ;;  %6577 = vmatprep.subr.bf16.mxu1 %v8637_v21  ;;  %v8725_v20 = vld [vmem:[%s9943_s11 + $0x7c4] ss:$16 sps:$4 sm:$0xff]   ;;  %v8728_v21 = vld [vmem:[%s9943_s11 + $0x7cc] ss:$16 sps:$4 sm:$0xff]  }
 0x102   : > { %6004 = vmatpush1.bf16.msra.mxu0 %v8632_v22  ;;  %6578 = vmatpush1.bf16.msra.mxu1 %v8635_v23  ;;  %v10262_v22 = vld.sshfl [vmem:[%s9964_s19 + $0x8] sm:$0xff pattern:$0x75316420] }
 0x103   : > { %6014 = vmatprep.subr.bf16.mxu0 %v8641_v24  ;;  %6588 = vmatprep.subr.bf16.mxu1 %v8644_v25  ;;  %v8723_v23 = vld [vmem:[%s9943_s11 + $0x7c0] ss:$16 sps:$4 sm:$0xff]   ;;  %v8726_v24 = vld [vmem:[%s9943_s11 + $0x7c8] ss:$16 sps:$4 sm:$0xff]   ;;  %v8731_v25 = vld [vmem:[%s9943_s11 + $0x7e4] ss:$16 sps:$4 sm:$0xff]  }
 0x105   : > { %6006 = vmatmul.mubr.bf16.vlgmr.msra.gmra.mrb[0].mxu0 %v10200_v14  ;;  %6580 = vmatmul.mubr.bf16.vlgmr.msra.gmra.mrb[0].mxu1 %v10200_v14 }
 0x106   : > { %6015 = vmatpush1.bf16.msra.mxu0 %v8639_v27  ;;  %6589 = vmatpush1.bf16.msra.mxu1 %v8642_v28  ;;  %v8734_v27 = vld [vmem:[%s9943_s11 + $0x7ec] ss:$16 sps:$4 sm:$0xff]   ;;  %v8729_v28 = vld [vmem:[%s9943_s11 + $0x7e0] ss:$16 sps:$4 sm:$0xff]  }
 0x107   : > { %6016 = vmatprep.subr.bf16.mxu0 %v8647_v29  ;;  %6590 = vmatprep.subr.bf16.mxu1 %v8650_v30  ;;  %v8732_v29 = vld [vmem:[%s9943_s11 + $0x7e8] ss:$16 sps:$4 sm:$0xff]   ;;  %v8737_v30 = vld [vmem:[%s9943_s11 + $0x804] ss:$16 sps:$4 sm:$0xff]  }
 0x108   : > { %6046 = vmatprep.mubr.bf16.mxu0 %v1260_v31  ;;  %6620 = vmatprep.mubr.bf16.mxu1 %v1260_v31  ;;  %v8740_v31 = vld [vmem:[%s9943_s11 + $0x80c] ss:$16 sps:$4 sm:$0xff]  }
 0x10a   : > { %6017 = vmatpush1.bf16.msra.mxu0 %v8645_v16  ;;  %6591 = vmatpush1.bf16.msra.mxu1 %v8648_v32  ;;  %v1276_v16 = vcombine.high %v10262_v22, %v10262_v22  ;;  %v1258_v32 = vcombine.high %v10200_v14, %v10200_v14  ;;  %v8741_v14 = vld [vmem:[%s9943_s11 + $0x820] ss:$16 sps:$4 sm:$0xff]  }
 0x10b   : > { %6018 = vmatprep.subr.bf16.mxu0 %v8653_v33  ;;  %6592 = vmatprep.subr.bf16.mxu1 %v8656_v34  ;;  %v8735_v33 = vld [vmem:[%s9943_s11 + $0x800] ss:$16 sps:$4 sm:$0xff]   ;;  %v8738_v34 = vld [vmem:[%s9943_s11 + $0x808] ss:$16 sps:$4 sm:$0xff]  }
 0x10e   : > { %6019 = vmatpush1.bf16.msra.mxu0 %v8651_v26  ;;  %6593 = vmatpush1.bf16.msra.mxu1 %v8654_v35  ;;  %v8743_v26 = vld [vmem:[%s9943_s11 + $0x824] ss:$16 sps:$4 sm:$0xff]   ;;  %v8746_v35 = vld [vmem:[%s9943_s11 + $0x82c] ss:$16 sps:$4 sm:$0xff]  }
 0x10f   : > { %6020 = vmatprep.subr.bf16.mxu0 %v8659_v36  ;;  %6594 = vmatprep.subr.bf16.mxu1 %v8662_v37  ;;  %v10281_v36 = vrot.slane %v1276_v16, %v10020_v50  ;;  %v8744_v37 = vld [vmem:[%s9943_s11 + $0x828] ss:$16 sps:$4 sm:$0xff]   ;;  %v8827_v16 = vld [vmem:[%s9943_s11 + $0x9e4] ss:$16 sps:$4 sm:$0xff]  }
 0x112   : > { %6021 = vmatpush1.bf16.msra.mxu0 %v8657_v38  ;;  %6595 = vmatpush1.bf16.msra.mxu1 %v8660_v39  ;;  %v8749_v38 = vld [vmem:[%s9943_s11 + $0x844] ss:$16 sps:$4 sm:$0xff]   ;;  %v8752_v39 = vld [vmem:[%s9943_s11 + $0x84c] ss:$16 sps:$4 sm:$0xff]  }
 0x113   : > { %6022 = vmatprep.subr.bf16.mxu0 %v8665_v40  ;;  %6596 = vmatprep.subr.bf16.mxu1 %v8668_v41  ;;  %v8747_v40 = vld [vmem:[%s9943_s11 + $0x840] ss:$16 sps:$4 sm:$0xff]   ;;  %v8750_v41 = vld [vmem:[%s9943_s11 + $0x848] ss:$16 sps:$4 sm:$0xff]  }
 0x116   : > { %6023 = vmatpush1.bf16.msra.mxu0 %v8663_v42  ;;  %6597 = vmatpush1.bf16.msra.mxu1 %v8666_v43  ;;  %v8755_v42 = vld [vmem:[%s9943_s11 + $0x864] ss:$16 sps:$4 sm:$0xff]   ;;  %v8758_v43 = vld [vmem:[%s9943_s11 + $0x86c] ss:$16 sps:$4 sm:$0xff]  }
 0x117   : > { %6024 = vmatprep.subr.bf16.mxu0 %v8671_v45  ;;  %6598 = vmatprep.subr.bf16.mxu1 %v8674_v46  ;;  %v8753_v45 = vld [vmem:[%s9943_s11 + $0x860] ss:$16 sps:$4 sm:$0xff]   ;;  %v8756_v46 = vld [vmem:[%s9943_s11 + $0x868] ss:$16 sps:$4 sm:$0xff]  }
 0x11a   : > { %6025 = vmatpush1.bf16.msra.mxu0 %v8669_v47  ;;  %6599 = vmatpush1.bf16.msra.mxu1 %v8672_v48  ;;  %v8761_v47 = vld [vmem:[%s9943_s11 + $0x884] ss:$16 sps:$4 sm:$0xff]   ;;  %v8764_v48 = vld [vmem:[%s9943_s11 + $0x88c] ss:$16 sps:$4 sm:$0xff]  }
 0x11b   : > { %6026 = vmatprep.subr.bf16.mxu0 %v8677_v49  ;;  %6600 = vmatprep.subr.bf16.mxu1 %v8680_v51  ;;  %v8759_v49 = vld [vmem:[%s9943_s11 + $0x880] ss:$16 sps:$4 sm:$0xff]   ;;  %v8762_v51 = vld [vmem:[%s9943_s11 + $0x888] ss:$16 sps:$4 sm:$0xff]  }
 0x11e   : > { %6027 = vmatpush1.bf16.msra.mxu0 %v8675_v52  ;;  %6601 = vmatpush1.bf16.msra.mxu1 %v8678_v54  ;;  %v8767_v52 = vld [vmem:[%s9943_s11 + $0x8a4] ss:$16 sps:$4 sm:$0xff]   ;;  %v8770_v54 = vld [vmem:[%s9943_s11 + $0x8ac] ss:$16 sps:$4 sm:$0xff]  }
 0x11f   : > { %6028 = vmatprep.subr.bf16.mxu0 %v8683_v55  ;;  %6602 = vmatprep.subr.bf16.mxu1 %v8686_v56  ;;  %v8765_v55 = vld [vmem:[%s9943_s11 + $0x8a0] ss:$16 sps:$4 sm:$0xff]   ;;  %v8768_v56 = vld [vmem:[%s9943_s11 + $0x8a8] ss:$16 sps:$4 sm:$0xff]  }
 0x122   : > { %6029 = vmatpush1.bf16.msra.mxu0 %v8681_v57  ;;  %6603 = vmatpush1.bf16.msra.mxu1 %v8684_v58  ;;  %v8773_v57 = vld [vmem:[%s9943_s11 + $0x8c4] ss:$16 sps:$4 sm:$0xff]   ;;  %v8776_v58 = vld [vmem:[%s9943_s11 + $0x8cc] ss:$16 sps:$4 sm:$0xff]  }
 0x123   : > { %6030 = vmatprep.subr.bf16.mxu0 %v8689_v59  ;;  %6604 = vmatprep.subr.bf16.mxu1 %v8692_v60  ;;  %v8771_v59 = vld [vmem:[%s9943_s11 + $0x8c0] ss:$16 sps:$4 sm:$0xff]   ;;  %v8774_v60 = vld [vmem:[%s9943_s11 + $0x8c8] ss:$16 sps:$4 sm:$0xff]  }
 0x126   : > { %6031 = vmatpush1.bf16.msra.mxu0 %v8687_v61  ;;  %6605 = vmatpush1.bf16.msra.mxu1 %v8690_v62  ;;  %v8779_v61 = vld [vmem:[%s9943_s11 + $0x8e4] ss:$16 sps:$4 sm:$0xff]   ;;  %v8782_v62 = vld [vmem:[%s9943_s11 + $0x8ec] ss:$16 sps:$4 sm:$0xff]  }
 0x127   : > { %6032 = vmatprep.subr.bf16.mxu0 %v8695_v63  ;;  %6606 = vmatprep.subr.bf16.mxu1 %v8698_v0  ;;  %v8777_v63 = vld [vmem:[%s9943_s11 + $0x8e0] ss:$16 sps:$4 sm:$0xff]   ;;  %v8780_v0 = vld [vmem:[%s9943_s11 + $0x8e8] ss:$16 sps:$4 sm:$0xff]  }
 0x12a   : > { %6033 = vmatpush1.bf16.msra.mxu0 %v8693_v1  ;;  %6607 = vmatpush1.bf16.msra.mxu1 %v8696_v2  ;;  %v8785_v1 = vld [vmem:[%s9943_s11 + $0x904] ss:$16 sps:$4 sm:$0xff]   ;;  %v8788_v2 = vld [vmem:[%s9943_s11 + $0x90c] ss:$16 sps:$4 sm:$0xff]  }
 0x12b   : > { %6034 = vmatprep.subr.bf16.mxu0 %v8701_v3  ;;  %6608 = vmatprep.subr.bf16.mxu1 %v8704_v4  ;;  %v8783_v3 = vld [vmem:[%s9943_s11 + $0x900] ss:$16 sps:$4 sm:$0xff]   ;;  %v8786_v4 = vld [vmem:[%s9943_s11 + $0x908] ss:$16 sps:$4 sm:$0xff]  }
 0x12e   : > { %6035 = vmatpush1.bf16.msra.mxu0 %v8699_v5  ;;  %6609 = vmatpush1.bf16.msra.mxu1 %v8702_v6  ;;  %v8791_v5 = vld [vmem:[%s9943_s11 + $0x924] ss:$16 sps:$4 sm:$0xff]   ;;  %v8794_v6 = vld [vmem:[%s9943_s11 + $0x92c] ss:$16 sps:$4 sm:$0xff]  }
 0x12f   : > { %6036 = vmatprep.subr.bf16.mxu0 %v8707_v7  ;;  %6610 = vmatprep.subr.bf16.mxu1 %v8710_v8  ;;  %v8789_v7 = vld [vmem:[%s9943_s11 + $0x920] ss:$16 sps:$4 sm:$0xff]   ;;  %v8792_v8 = vld [vmem:[%s9943_s11 + $0x928] ss:$16 sps:$4 sm:$0xff]  }
 0x132   : > { %6037 = vmatpush1.bf16.msra.mxu0 %v8705_v9  ;;  %6611 = vmatpush1.bf16.msra.mxu1 %v8708_v10  ;;  %v8797_v9 = vld [vmem:[%s9943_s11 + $0x944] ss:$16 sps:$4 sm:$0xff]   ;;  %v8800_v10 = vld [vmem:[%s9943_s11 + $0x94c] ss:$16 sps:$4 sm:$0xff]  }
 0x133   : > { %6038 = vmatprep.subr.bf16.mxu0 %v8713_v11  ;;  %6612 = vmatprep.subr.bf16.mxu1 %v8716_v12  ;;  %v8795_v11 = vld [vmem:[%s9943_s11 + $0x940] ss:$16 sps:$4 sm:$0xff]   ;;  %v8798_v12 = vld [vmem:[%s9943_s11 + $0x948] ss:$16 sps:$4 sm:$0xff]  }
 0x136   : > { %6039 = vmatpush1.bf16.msra.mxu0 %v8711_v13  ;;  %6613 = vmatpush1.bf16.msra.mxu1 %v8714_v15  ;;  %v8803_v13 = vld [vmem:[%s9943_s11 + $0x964] ss:$16 sps:$4 sm:$0xff]   ;;  %v8806_v15 = vld [vmem:[%s9943_s11 + $0x96c] ss:$16 sps:$4 sm:$0xff]  }
 0x137   : > { %6040 = vmatprep.subr.bf16.mxu0 %v8719_v17  ;;  %6614 = vmatprep.subr.bf16.mxu1 %v8722_v53  ;;  %v8801_v17 = vld [vmem:[%s9943_s11 + $0x960] ss:$16 sps:$4 sm:$0xff]   ;;  %v8804_v53 = vld [vmem:[%s9943_s11 + $0x968] ss:$16 sps:$4 sm:$0xff]  }
 0x13a   : > { %6041 = vmatpush1.bf16.msra.mxu0 %v8717_v18  ;;  %6615 = vmatpush1.bf16.msra.mxu1 %v8720_v19  ;;  %v8809_v18 = vld [vmem:[%s9943_s11 + $0x984] ss:$16 sps:$4 sm:$0xff]   ;;  %v8812_v19 = vld [vmem:[%s9943_s11 + $0x98c] ss:$16 sps:$4 sm:$0xff]  }
 0x13b   : > { %6042 = vmatprep.subr.bf16.mxu0 %v8725_v20  ;;  %6616 = vmatprep.subr.bf16.mxu1 %v8728_v21  ;;  %v8807_v20 = vld [vmem:[%s9943_s11 + $0x980] ss:$16 sps:$4 sm:$0xff]   ;;  %v8810_v21 = vld [vmem:[%s9943_s11 + $0x988] ss:$16 sps:$4 sm:$0xff]  }
 0x13e   : > { %6043 = vmatpush1.bf16.msra.mxu0 %v8723_v23  ;;  %6617 = vmatpush1.bf16.msra.mxu1 %v8726_v24  ;;  %v8815_v23 = vld [vmem:[%s9943_s11 + $0x9a4] ss:$16 sps:$4 sm:$0xff]   ;;  %v8818_v24 = vld [vmem:[%s9943_s11 + $0x9ac] ss:$16 sps:$4 sm:$0xff]  }
 0x13f   : > { %6044 = vmatprep.subr.bf16.mxu0 %v8731_v25  ;;  %6618 = vmatprep.subr.bf16.mxu1 %v8734_v27  ;;  %v8813_v25 = vld [vmem:[%s9943_s11 + $0x9a0] ss:$16 sps:$4 sm:$0xff]   ;;  %v8816_v27 = vld [vmem:[%s9943_s11 + $0x9a8] ss:$16 sps:$4 sm:$0xff]  }
 0x142   : > { %6045 = vmatpush1.bf16.msra.mxu0 %v8729_v28  ;;  %6619 = vmatpush1.bf16.msra.mxu1 %v8732_v29  ;;  %v8821_v28 = vld [vmem:[%s9943_s11 + $0x9c4] ss:$16 sps:$4 sm:$0xff]   ;;  %v8824_v29 = vld [vmem:[%s9943_s11 + $0x9cc] ss:$16 sps:$4 sm:$0xff]  }
 0x143   : > { %6055 = vmatprep.subr.bf16.mxu0 %v8737_v30  ;;  %6629 = vmatprep.subr.bf16.mxu1 %v8740_v31  ;;  %v8819_v30 = vld [vmem:[%s9943_s11 + $0x9c0] ss:$16 sps:$4 sm:$0xff]   ;;  %v8822_v31 = vld [vmem:[%s9943_s11 + $0x9c8] ss:$16 sps:$4 sm:$0xff]  }
 0x145   : > { %6047 = vmatmul.mubr.bf16.vlgmr.msra.gmra.mrb[0].mxu0 %v1258_v32  ;;  %6621 = vmatmul.mubr.bf16.vlgmr.msra.gmra.mrb[0].mxu1 %v1258_v32  ;;  %v8830_v32 = vld [vmem:[%s9943_s11 + $0x9ec] ss:$16 sps:$4 sm:$0xff]  }
 0x146   : > { %6056 = vmatpush1.bf16.msra.mxu0 %v8735_v33  ;;  %6630 = vmatpush1.bf16.msra.mxu1 %v8738_v34  ;;  %v8825_v33 = vld [vmem:[%s9943_s11 + $0x9e0] ss:$16 sps:$4 sm:$0xff]   ;;  %v8828_v34 = vld [vmem:[%s9943_s11 + $0x9e8] ss:$16 sps:$4 sm:$0xff]  }
 0x147   : > { %6057 = vmatprep.subr.bf16.mxu0 %v8743_v26  ;;  %6631 = vmatprep.subr.bf16.mxu1 %v8746_v35  ;;  %v8833_v26 = vld [vmem:[%s9943_s11 + $0xa04] ss:$16 sps:$4 sm:$0xff]   ;;  %v8836_v35 = vld [vmem:[%s9943_s11 + $0xa0c] ss:$16 sps:$4 sm:$0xff]  }
 0x148   : > { %6087 = vmatprep.mubr.bf16.mxu0 %v10281_v36  ;;  %6661 = vmatprep.mubr.bf16.mxu1 %v10281_v36 }
 0x14a   : > { %6058 = vmatpush1.bf16.msra.mxu0 %v8741_v14  ;;  %6632 = vmatpush1.bf16.msra.mxu1 %v8744_v37  ;;  %v10347_v14 = vrot.slane %v10262_v22, %v10020_v50  ;;  %v8831_v37 = vld [vmem:[%s9943_s11 + $0xa00] ss:$16 sps:$4 sm:$0xff]  }
 0x14b   : > { %6059 = vmatprep.subr.bf16.mxu0 %v8749_v38  ;;  %6633 = vmatprep.subr.bf16.mxu1 %v8752_v39  ;;  %v8834_v38 = vld [vmem:[%s9943_s11 + $0xa08] ss:$16 sps:$4 sm:$0xff]   ;;  %v8839_v39 = vld [vmem:[%s9943_s11 + $0xa24] ss:$16 sps:$4 sm:$0xff]   ;;  %v8837_v22 = vld [vmem:[%s9943_s11 + $0xa20] ss:$16 sps:$4 sm:$0xff]  }
 0x14e   : > { %6060 = vmatpush1.bf16.msra.mxu0 %v8747_v40  ;;  %6634 = vmatpush1.bf16.msra.mxu1 %v8750_v41  ;;  %v8842_v40 = vld [vmem:[%s9943_s11 + $0xa2c] ss:$16 sps:$4 sm:$0xff]   ;;  %v1308_v41 = vcombine.high %v10281_v36, %v10281_v36  ;;  %v8843_v36 = vld [vmem:[%s9943_s11 + $0xa40] ss:$16 sps:$4 sm:$0xff]  }
 0x14f   : > { %6061 = vmatprep.subr.bf16.mxu0 %v8755_v42  ;;  %6635 = vmatprep.subr.bf16.mxu1 %v8758_v43  ;;  %v8840_v42 = vld [vmem:[%s9943_s11 + $0xa28] ss:$16 sps:$4 sm:$0xff]   ;;  %v8845_v43 = vld [vmem:[%s9943_s11 + $0xa44] ss:$16 sps:$4 sm:$0xff]  }
 0x152   : > { %6062 = vmatpush1.bf16.msra.mxu0 %v8753_v45  ;;  %6636 = vmatpush1.bf16.msra.mxu1 %v8756_v46  ;;  %v8848_v45 = vld [vmem:[%s9943_s11 + $0xa4c] ss:$16 sps:$4 sm:$0xff]   ;;  %v8846_v46 = vld [vmem:[%s9943_s11 + $0xa48] ss:$16 sps:$4 sm:$0xff]  }
 0x153   : > { %6063 = vmatprep.subr.bf16.mxu0 %v8761_v47  ;;  %6637 = vmatprep.subr.bf16.mxu1 %v8764_v48  ;;  %v8851_v47 = vld [vmem:[%s9943_s11 + $0xa64] ss:$16 sps:$4 sm:$0xff]   ;;  %v8854_v48 = vld [vmem:[%s9943_s11 + $0xa6c] ss:$16 sps:$4 sm:$0xff]  }
 0x156   : > { %6064 = vmatpush1.bf16.msra.mxu0 %v8759_v49  ;;  %6638 = vmatpush1.bf16.msra.mxu1 %v8762_v51  ;;  %v8849_v49 = vld [vmem:[%s9943_s11 + $0xa60] ss:$16 sps:$4 sm:$0xff]   ;;  %v8852_v51 = vld [vmem:[%s9943_s11 + $0xa68] ss:$16 sps:$4 sm:$0xff]  }
 0x157   : > { %6065 = vmatprep.subr.bf16.mxu0 %v8767_v52  ;;  %6639 = vmatprep.subr.bf16.mxu1 %v8770_v54  ;;  %v8857_v52 = vld [vmem:[%s9943_s11 + $0xa84] ss:$16 sps:$4 sm:$0xff]   ;;  %v8860_v54 = vld [vmem:[%s9943_s11 + $0xa8c] ss:$16 sps:$4 sm:$0xff]  }
 0x15a   : > { %6066 = vmatpush1.bf16.msra.mxu0 %v8765_v55  ;;  %6640 = vmatpush1.bf16.msra.mxu1 %v8768_v56  ;;  %v8855_v55 = vld [vmem:[%s9943_s11 + $0xa80] ss:$16 sps:$4 sm:$0xff]   ;;  %v8858_v56 = vld [vmem:[%s9943_s11 + $0xa88] ss:$16 sps:$4 sm:$0xff]  }
 0x15b   : > { %6067 = vmatprep.subr.bf16.mxu0 %v8773_v57  ;;  %6641 = vmatprep.subr.bf16.mxu1 %v8776_v58  ;;  %v8863_v57 = vld [vmem:[%s9943_s11 + $0xaa4] ss:$16 sps:$4 sm:$0xff]   ;;  %v8866_v58 = vld [vmem:[%s9943_s11 + $0xaac] ss:$16 sps:$4 sm:$0xff]  }
 0x15e   : > { %6068 = vmatpush1.bf16.msra.mxu0 %v8771_v59  ;;  %6642 = vmatpush1.bf16.msra.mxu1 %v8774_v60  ;;  %v8861_v59 = vld [vmem:[%s9943_s11 + $0xaa0] ss:$16 sps:$4 sm:$0xff]   ;;  %v8864_v60 = vld [vmem:[%s9943_s11 + $0xaa8] ss:$16 sps:$4 sm:$0xff]  }
 0x15f   : > { %6069 = vmatprep.subr.bf16.mxu0 %v8779_v61  ;;  %6643 = vmatprep.subr.bf16.mxu1 %v8782_v62  ;;  %v8869_v61 = vld [vmem:[%s9943_s11 + $0xac4] ss:$16 sps:$4 sm:$0xff]   ;;  %v8872_v62 = vld [vmem:[%s9943_s11 + $0xacc] ss:$16 sps:$4 sm:$0xff]  }
 0x162   : > { %6070 = vmatpush1.bf16.msra.mxu0 %v8777_v63  ;;  %6644 = vmatpush1.bf16.msra.mxu1 %v8780_v0  ;;  %v8867_v63 = vld [vmem:[%s9943_s11 + $0xac0] ss:$16 sps:$4 sm:$0xff]   ;;  %v8870_v0 = vld [vmem:[%s9943_s11 + $0xac8] ss:$16 sps:$4 sm:$0xff]  }
 0x163   : > { %6071 = vmatprep.subr.bf16.mxu0 %v8785_v1  ;;  %6645 = vmatprep.subr.bf16.mxu1 %v8788_v2  ;;  %v8875_v1 = vld [vmem:[%s9943_s11 + $0xae4] ss:$16 sps:$4 sm:$0xff]   ;;  %v8878_v2 = vld [vmem:[%s9943_s11 + $0xaec] ss:$16 sps:$4 sm:$0xff]  }
 0x166   : > { %6072 = vmatpush1.bf16.msra.mxu0 %v8783_v3  ;;  %6646 = vmatpush1.bf16.msra.mxu1 %v8786_v4  ;;  %v8873_v3 = vld [vmem:[%s9943_s11 + $0xae0] ss:$16 sps:$4 sm:$0xff]   ;;  %v8876_v4 = vld [vmem:[%s9943_s11 + $0xae8] ss:$16 sps:$4 sm:$0xff]  }
 0x167   : > { %6073 = vmatprep.subr.bf16.mxu0 %v8791_v5  ;;  %6647 = vmatprep.subr.bf16.mxu1 %v8794_v6  ;;  %v8881_v5 = vld [vmem:[%s9943_s11 + $0xb04] ss:$16 sps:$4 sm:$0xff]   ;;  %v8884_v6 = vld [vmem:[%s9943_s11 + $0xb0c] ss:$16 sps:$4 sm:$0xff]  }
 0x16a   : > { %6074 = vmatpush1.bf16.msra.mxu0 %v8789_v7  ;;  %6648 = vmatpush1.bf16.msra.mxu1 %v8792_v8  ;;  %v8879_v7 = vld [vmem:[%s9943_s11 + $0xb00] ss:$16 sps:$4 sm:$0xff]   ;;  %v8882_v8 = vld [vmem:[%s9943_s11 + $0xb08] ss:$16 sps:$4 sm:$0xff]  }
 0x16b   : > { %6075 = vmatprep.subr.bf16.mxu0 %v8797_v9  ;;  %6649 = vmatprep.subr.bf16.mxu1 %v8800_v10  ;;  %v8887_v9 = vld [vmem:[%s9943_s11 + $0xb24] ss:$16 sps:$4 sm:$0xff]   ;;  %v8890_v10 = vld [vmem:[%s9943_s11 + $0xb2c] ss:$16 sps:$4 sm:$0xff]  }
 0x16e   : > { %6076 = vmatpush1.bf16.msra.mxu0 %v8795_v11  ;;  %6650 = vmatpush1.bf16.msra.mxu1 %v8798_v12  ;;  %v8885_v11 = vld [vmem:[%s9943_s11 + $0xb20] ss:$16 sps:$4 sm:$0xff]   ;;  %v8888_v12 = vld [vmem:[%s9943_s11 + $0xb28] ss:$16 sps:$4 sm:$0xff]  }
 0x16f   : > { %6077 = vmatprep.subr.bf16.mxu0 %v8803_v13  ;;  %6651 = vmatprep.subr.bf16.mxu1 %v8806_v15  ;;  %v8893_v13 = vld [vmem:[%s9943_s11 + $0xb44] ss:$16 sps:$4 sm:$0xff]   ;;  %v8896_v15 = vld [vmem:[%s9943_s11 + $0xb4c] ss:$16 sps:$4 sm:$0xff]  }
 0x172   : > { %6078 = vmatpush1.bf16.msra.mxu0 %v8801_v17  ;;  %6652 = vmatpush1.bf16.msra.mxu1 %v8804_v53  ;;  %v8891_v17 = vld [vmem:[%s9943_s11 + $0xb40] ss:$16 sps:$4 sm:$0xff]   ;;  %v8894_v53 = vld [vmem:[%s9943_s11 + $0xb48] ss:$16 sps:$4 sm:$0xff]  }
 0x173   : > { %6079 = vmatprep.subr.bf16.mxu0 %v8809_v18  ;;  %6653 = vmatprep.subr.bf16.mxu1 %v8812_v19  ;;  %v8899_v18 = vld [vmem:[%s9943_s11 + $0xb64] ss:$16 sps:$4 sm:$0xff]   ;;  %v8902_v19 = vld [vmem:[%s9943_s11 + $0xb6c] ss:$16 sps:$4 sm:$0xff]  }
 0x176   : > { %6080 = vmatpush1.bf16.msra.mxu0 %v8807_v20  ;;  %6654 = vmatpush1.bf16.msra.mxu1 %v8810_v21  ;;  %v8897_v20 = vld [vmem:[%s9943_s11 + $0xb60] ss:$16 sps:$4 sm:$0xff]   ;;  %v8900_v21 = vld [vmem:[%s9943_s11 + $0xb68] ss:$16 sps:$4 sm:$0xff]  }
 0x177   : > { %6081 = vmatprep.subr.bf16.mxu0 %v8815_v23  ;;  %6655 = vmatprep.subr.bf16.mxu1 %v8818_v24  ;;  %v8905_v23 = vld [vmem:[%s9943_s11 + $0xb84] ss:$16 sps:$4 sm:$0xff]   ;;  %v8908_v24 = vld [vmem:[%s9943_s11 + $0xb8c] ss:$16 sps:$4 sm:$0xff]  }
 0x17a   : > { %6082 = vmatpush1.bf16.msra.mxu0 %v8813_v25  ;;  %6656 = vmatpush1.bf16.msra.mxu1 %v8816_v27  ;;  %v8903_v25 = vld [vmem:[%s9943_s11 + $0xb80] ss:$16 sps:$4 sm:$0xff]   ;;  %v8906_v27 = vld [vmem:[%s9943_s11 + $0xb88] ss:$16 sps:$4 sm:$0xff]  }
 0x17b   : > { %6083 = vmatprep.subr.bf16.mxu0 %v8821_v28  ;;  %6657 = vmatprep.subr.bf16.mxu1 %v8824_v29  ;;  %v8911_v28 = vld [vmem:[%s9943_s11 + $0xba4] ss:$16 sps:$4 sm:$0xff]   ;;  %v8914_v29 = vld [vmem:[%s9943_s11 + $0xbac] ss:$16 sps:$4 sm:$0xff]  }
 0x17e   : > { %6084 = vmatpush1.bf16.msra.mxu0 %v8819_v30  ;;  %6658 = vmatpush1.bf16.msra.mxu1 %v8822_v31  ;;  %v8909_v30 = vld [vmem:[%s9943_s11 + $0xba0] ss:$16 sps:$4 sm:$0xff]   ;;  %v8912_v31 = vld [vmem:[%s9943_s11 + $0xba8] ss:$16 sps:$4 sm:$0xff]  }
 0x17f   : > { %6085 = vmatprep.subr.bf16.mxu0 %v8827_v16  ;;  %6659 = vmatprep.subr.bf16.mxu1 %v8830_v32  ;;  %v8917_v16 = vld [vmem:[%s9943_s11 + $0xbc4] ss:$16 sps:$4 sm:$0xff]   ;;  %v8920_v32 = vld [vmem:[%s9943_s11 + $0xbcc] ss:$16 sps:$4 sm:$0xff]  }
 0x182   : > { %6086 = vmatpush1.bf16.msra.mxu0 %v8825_v33  ;;  %6660 = vmatpush1.bf16.msra.mxu1 %v8828_v34  ;;  %v9697_v33 = vld [vmem:[%s9964_s19 + $0x8] sm:$0xff] }
 0x183   : > { %6096 = vmatprep.subr.bf16.mxu0 %v8833_v26  ;;  %6670 = vmatprep.subr.bf16.mxu1 %v8836_v35  ;;  %v1261_v34 = vcombine.high %v9697_v33, %v9697_v33  ;;  %v8915_v26 = vld [vmem:[%s9943_s11 + $0xbc0] ss:$16 sps:$4 sm:$0xff]   ;;  %v8918_v35 = vld [vmem:[%s9943_s11 + $0xbc8] ss:$16 sps:$4 sm:$0xff]  }
 0x184   : > { %v8999_v33 = vld [vmem:[%s9943_s11 + $0xd80] ss:$16 sps:$4 sm:$0xff]  }
 0x185   : > { %6088 = vmatmul.mubr.bf16.vlgmr.msra.gmra.mrb[0].mxu0 %v10347_v14  ;;  %6662 = vmatmul.mubr.bf16.vlgmr.msra.gmra.mrb[0].mxu1 %v10347_v14 }
 0x186   : > { %6097 = vmatpush1.bf16.msra.mxu0 %v8831_v37  ;;  %6671 = vmatpush1.bf16.msra.mxu1 %v8834_v38  ;;  %v8923_v37 = vld [vmem:[%s9943_s11 + $0xbe4] ss:$16 sps:$4 sm:$0xff]   ;;  %v8926_v38 = vld [vmem:[%s9943_s11 + $0xbec] ss:$16 sps:$4 sm:$0xff]  }
 0x187   : > { %6098 = vmatprep.subr.bf16.mxu0 %v8839_v39  ;;  %6672 = vmatprep.subr.bf16.mxu1 %v8842_v40  ;;  %v10415_v39 = vrot.slane %v1261_v34, %v10020_v50  ;;  %v8921_v40 = vld [vmem:[%s9943_s11 + $0xbe0] ss:$16 sps:$4 sm:$0xff]   ;;  %v9002_v34 = vld [vmem:[%s9943_s11 + $0xd88] ss:$16 sps:$4 sm:$0xff]  }
 0x188   : > { %6128 = vmatprep.mubr.bf16.mxu0 %v1308_v41  ;;  %6702 = vmatprep.mubr.bf16.mxu1 %v1308_v41  ;;  %v8924_v41 = vld [vmem:[%s9943_s11 + $0xbe8] ss:$16 sps:$4 sm:$0xff]  }
 0x18a   : > { %6099 = vmatpush1.bf16.msra.mxu0 %v8837_v22  ;;  %6673 = vmatpush1.bf16.msra.mxu1 %v8840_v42  ;;  %v8929_v22 = vld [vmem:[%s9943_s11 + $0xc04] ss:$16 sps:$4 sm:$0xff]   ;;  %v8932_v42 = vld [vmem:[%s9943_s11 + $0xc0c] ss:$16 sps:$4 sm:$0xff]  }
 0x18b   : > { %6100 = vmatprep.subr.bf16.mxu0 %v8845_v43  ;;  %6674 = vmatprep.subr.bf16.mxu1 %v8848_v45  ;;  %v1277_v43 = vcombine.high %v10415_v39, %v10415_v39  ;;  %v1306_v45 = vcombine.high %v10347_v14, %v10347_v14  ;;  %v8933_v14 = vld [vmem:[%s9943_s11 + $0xc20] ss:$16 sps:$4 sm:$0xff]  }
 0x18e   : > { %6101 = vmatpush1.bf16.msra.mxu0 %v8843_v36  ;;  %6675 = vmatpush1.bf16.msra.mxu1 %v8846_v46  ;;  %v8927_v36 = vld [vmem:[%s9943_s11 + $0xc00] ss:$16 sps:$4 sm:$0xff]   ;;  %v8930_v46 = vld [vmem:[%s9943_s11 + $0xc08] ss:$16 sps:$4 sm:$0xff]  }
 0x18f   : > { %6102 = vmatprep.subr.bf16.mxu0 %v8851_v47  ;;  %6676 = vmatprep.subr.bf16.mxu1 %v8854_v48  ;;  %v8935_v47 = vld [vmem:[%s9943_s11 + $0xc24] ss:$16 sps:$4 sm:$0xff]   ;;  %v8938_v48 = vld [vmem:[%s9943_s11 + $0xc2c] ss:$16 sps:$4 sm:$0xff]  }
 0x192   : > { %6103 = vmatpush1.bf16.msra.mxu0 %v8849_v49  ;;  %6677 = vmatpush1.bf16.msra.mxu1 %v8852_v51  ;;  %v10430_v49 = vrot.slane %v1277_v43, %v10020_v50  ;;  %v8936_v51 = vld [vmem:[%s9943_s11 + $0xc28] ss:$16 sps:$4 sm:$0xff]   ;;  %v9019_v43 = vld [vmem:[%s9943_s11 + $0xde4] ss:$16 sps:$4 sm:$0xff]  }
 0x193   : > { %6104 = vmatprep.subr.bf16.mxu0 %v8857_v52  ;;  %6678 = vmatprep.subr.bf16.mxu1 %v8860_v54  ;;  %v8941_v52 = vld [vmem:[%s9943_s11 + $0xc44] ss:$16 sps:$4 sm:$0xff]   ;;  %v8944_v54 = vld [vmem:[%s9943_s11 + $0xc4c] ss:$16 sps:$4 sm:$0xff]  }
 0x196   : > { %6105 = vmatpush1.bf16.msra.mxu0 %v8855_v55  ;;  %6679 = vmatpush1.bf16.msra.mxu1 %v8858_v56  ;;  %v8939_v55 = vld [vmem:[%s9943_s11 + $0xc40] ss:$16 sps:$4 sm:$0xff]   ;;  %v8942_v56 = vld [vmem:[%s9943_s11 + $0xc48] ss:$16 sps:$4 sm:$0xff]  }
 0x197   : > { %6106 = vmatprep.subr.bf16.mxu0 %v8863_v57  ;;  %6680 = vmatprep.subr.bf16.mxu1 %v8866_v58  ;;  %v8947_v57 = vld [vmem:[%s9943_s11 + $0xc64] ss:$16 sps:$4 sm:$0xff]   ;;  %v8950_v58 = vld [vmem:[%s9943_s11 + $0xc6c] ss:$16 sps:$4 sm:$0xff]  }
 0x19a   : > { %6107 = vmatpush1.bf16.msra.mxu0 %v8861_v59  ;;  %6681 = vmatpush1.bf16.msra.mxu1 %v8864_v60  ;;  %v8945_v59 = vld [vmem:[%s9943_s11 + $0xc60] ss:$16 sps:$4 sm:$0xff]   ;;  %v8948_v60 = vld [vmem:[%s9943_s11 + $0xc68] ss:$16 sps:$4 sm:$0xff]  }
 0x19b   : > { %6108 = vmatprep.subr.bf16.mxu0 %v8869_v61  ;;  %6682 = vmatprep.subr.bf16.mxu1 %v8872_v62  ;;  %v8953_v61 = vld [vmem:[%s9943_s11 + $0xc84] ss:$16 sps:$4 sm:$0xff]   ;;  %v8956_v62 = vld [vmem:[%s9943_s11 + $0xc8c] ss:$16 sps:$4 sm:$0xff]  }
 0x19e   : > { %6109 = vmatpush1.bf16.msra.mxu0 %v8867_v63  ;;  %6683 = vmatpush1.bf16.msra.mxu1 %v8870_v0  ;;  %v8951_v63 = vld [vmem:[%s9943_s11 + $0xc80] ss:$16 sps:$4 sm:$0xff]   ;;  %v8954_v0 = vld [vmem:[%s9943_s11 + $0xc88] ss:$16 sps:$4 sm:$0xff]  }
 0x19f   : > { %6110 = vmatprep.subr.bf16.mxu0 %v8875_v1  ;;  %6684 = vmatprep.subr.bf16.mxu1 %v8878_v2  ;;  %v8959_v1 = vld [vmem:[%s9943_s11 + $0xca4] ss:$16 sps:$4 sm:$0xff]   ;;  %v8962_v2 = vld [vmem:[%s9943_s11 + $0xcac] ss:$16 sps:$4 sm:$0xff]  }
 0x1a2   : > { %6111 = vmatpush1.bf16.msra.mxu0 %v8873_v3  ;;  %6685 = vmatpush1.bf16.msra.mxu1 %v8876_v4  ;;  %v8957_v3 = vld [vmem:[%s9943_s11 + $0xca0] ss:$16 sps:$4 sm:$0xff]   ;;  %v8960_v4 = vld [vmem:[%s9943_s11 + $0xca8] ss:$16 sps:$4 sm:$0xff]  }
 0x1a3   : > { %6112 = vmatprep.subr.bf16.mxu0 %v8881_v5  ;;  %6686 = vmatprep.subr.bf16.mxu1 %v8884_v6  ;;  %v8965_v5 = vld [vmem:[%s9943_s11 + $0xcc4] ss:$16 sps:$4 sm:$0xff]   ;;  %v8968_v6 = vld [vmem:[%s9943_s11 + $0xccc] ss:$16 sps:$4 sm:$0xff]  }
 0x1a6   : > { %6113 = vmatpush1.bf16.msra.mxu0 %v8879_v7  ;;  %6687 = vmatpush1.bf16.msra.mxu1 %v8882_v8  ;;  %v8963_v7 = vld [vmem:[%s9943_s11 + $0xcc0] ss:$16 sps:$4 sm:$0xff]   ;;  %v8966_v8 = vld [vmem:[%s9943_s11 + $0xcc8] ss:$16 sps:$4 sm:$0xff]  }
 0x1a7   : > { %6114 = vmatprep.subr.bf16.mxu0 %v8887_v9  ;;  %6688 = vmatprep.subr.bf16.mxu1 %v8890_v10  ;;  %v8971_v9 = vld [vmem:[%s9943_s11 + $0xce4] ss:$16 sps:$4 sm:$0xff]   ;;  %v8974_v10 = vld [vmem:[%s9943_s11 + $0xcec] ss:$16 sps:$4 sm:$0xff]  }
 0x1aa   : > { %6115 = vmatpush1.bf16.msra.mxu0 %v8885_v11  ;;  %6689 = vmatpush1.bf16.msra.mxu1 %v8888_v12  ;;  %v8969_v11 = vld [vmem:[%s9943_s11 + $0xce0] ss:$16 sps:$4 sm:$0xff]   ;;  %v8972_v12 = vld [vmem:[%s9943_s11 + $0xce8] ss:$16 sps:$4 sm:$0xff]  }
 0x1ab   : > { %6116 = vmatprep.subr.bf16.mxu0 %v8893_v13  ;;  %6690 = vmatprep.subr.bf16.mxu1 %v8896_v15  ;;  %v8977_v13 = vld [vmem:[%s9943_s11 + $0xd04] ss:$16 sps:$4 sm:$0xff]   ;;  %v8980_v15 = vld [vmem:[%s9943_s11 + $0xd0c] ss:$16 sps:$4 sm:$0xff]  }
 0x1ae   : > { %6117 = vmatpush1.bf16.msra.mxu0 %v8891_v17  ;;  %6691 = vmatpush1.bf16.msra.mxu1 %v8894_v53  ;;  %v8975_v17 = vld [vmem:[%s9943_s11 + $0xd00] ss:$16 sps:$4 sm:$0xff]   ;;  %v8978_v53 = vld [vmem:[%s9943_s11 + $0xd08] ss:$16 sps:$4 sm:$0xff]  }
 0x1af   : > { %6118 = vmatprep.subr.bf16.mxu0 %v8899_v18  ;;  %6692 = vmatprep.subr.bf16.mxu1 %v8902_v19  ;;  %v8983_v18 = vld [vmem:[%s9943_s11 + $0xd24] ss:$16 sps:$4 sm:$0xff]   ;;  %v8986_v19 = vld [vmem:[%s9943_s11 + $0xd2c] ss:$16 sps:$4 sm:$0xff]  }
 0x1b2   : > { %6119 = vmatpush1.bf16.msra.mxu0 %v8897_v20  ;;  %6693 = vmatpush1.bf16.msra.mxu1 %v8900_v21  ;;  %v8981_v20 = vld [vmem:[%s9943_s11 + $0xd20] ss:$16 sps:$4 sm:$0xff]   ;;  %v8984_v21 = vld [vmem:[%s9943_s11 + $0xd28] ss:$16 sps:$4 sm:$0xff]  }
 0x1b3   : > { %6120 = vmatprep.subr.bf16.mxu0 %v8905_v23  ;;  %6694 = vmatprep.subr.bf16.mxu1 %v8908_v24  ;;  %v8989_v23 = vld [vmem:[%s9943_s11 + $0xd44] ss:$16 sps:$4 sm:$0xff]   ;;  %v8992_v24 = vld [vmem:[%s9943_s11 + $0xd4c] ss:$16 sps:$4 sm:$0xff]  }
 0x1b6   : > { %6121 = vmatpush1.bf16.msra.mxu0 %v8903_v25  ;;  %6695 = vmatpush1.bf16.msra.mxu1 %v8906_v27  ;;  %v8987_v25 = vld [vmem:[%s9943_s11 + $0xd40] ss:$16 sps:$4 sm:$0xff]   ;;  %v8990_v27 = vld [vmem:[%s9943_s11 + $0xd48] ss:$16 sps:$4 sm:$0xff]  }
 0x1b7   : > { %6122 = vmatprep.subr.bf16.mxu0 %v8911_v28  ;;  %6696 = vmatprep.subr.bf16.mxu1 %v8914_v29  ;;  %v8995_v28 = vld [vmem:[%s9943_s11 + $0xd64] ss:$16 sps:$4 sm:$0xff]   ;;  %v8998_v29 = vld [vmem:[%s9943_s11 + $0xd6c] ss:$16 sps:$4 sm:$0xff]  }
 0x1ba   : > { %6123 = vmatpush1.bf16.msra.mxu0 %v8909_v30  ;;  %6697 = vmatpush1.bf16.msra.mxu1 %v8912_v31  ;;  %v8993_v30 = vld [vmem:[%s9943_s11 + $0xd60] ss:$16 sps:$4 sm:$0xff]   ;;  %v8996_v31 = vld [vmem:[%s9943_s11 + $0xd68] ss:$16 sps:$4 sm:$0xff]  }
 0x1bb   : > { %6124 = vmatprep.subr.bf16.mxu0 %v8917_v16  ;;  %6698 = vmatprep.subr.bf16.mxu1 %v8920_v32  ;;  %v9001_v16 = vld [vmem:[%s9943_s11 + $0xd84] ss:$16 sps:$4 sm:$0xff]   ;;  %v9004_v32 = vld [vmem:[%s9943_s11 + $0xd8c] ss:$16 sps:$4 sm:$0xff]  }
 0x1be   : > { %6125 = vmatpush1.bf16.msra.mxu0 %v8915_v26  ;;  %6699 = vmatpush1.bf16.msra.mxu1 %v8918_v35  ;;  %v9007_v26 = vld [vmem:[%s9943_s11 + $0xda4] ss:$16 sps:$4 sm:$0xff]   ;;  %v9010_v35 = vld [vmem:[%s9943_s11 + $0xdac] ss:$16 sps:$4 sm:$0xff]  }
 0x1bf   : > { %6126 = vmatprep.subr.bf16.mxu0 %v8923_v37  ;;  %6700 = vmatprep.subr.bf16.mxu1 %v8926_v38  ;;  %v9005_v37 = vld [vmem:[%s9943_s11 + $0xda0] ss:$16 sps:$4 sm:$0xff]   ;;  %v9008_v38 = vld [vmem:[%s9943_s11 + $0xda8] ss:$16 sps:$4 sm:$0xff]  }
 0x1c2   : > { %6127 = vmatpush1.bf16.msra.mxu0 %v8921_v40  ;;  %6701 = vmatpush1.bf16.msra.mxu1 %v8924_v41  ;;  %v9013_v40 = vld [vmem:[%s9943_s11 + $0xdc4] ss:$16 sps:$4 sm:$0xff]   ;;  %v9016_v41 = vld [vmem:[%s9943_s11 + $0xdcc] ss:$16 sps:$4 sm:$0xff]  }
 0x1c3   : > { %6137 = vmatprep.subr.bf16.mxu0 %v8929_v22  ;;  %6711 = vmatprep.subr.bf16.mxu1 %v8932_v42  ;;  %v9011_v22 = vld [vmem:[%s9943_s11 + $0xdc0] ss:$16 sps:$4 sm:$0xff]   ;;  %v9014_v42 = vld [vmem:[%s9943_s11 + $0xdc8] ss:$16 sps:$4 sm:$0xff]  }
 0x1c5   : > { %6129 = vmatmul.mubr.bf16.vlgmr.msra.gmra.mrb[0].mxu0 %v1306_v45  ;;  %6703 = vmatmul.mubr.bf16.vlgmr.msra.gmra.mrb[0].mxu1 %v1306_v45  ;;  %v9022_v45 = vld [vmem:[%s9943_s11 + $0xdec] ss:$16 sps:$4 sm:$0xff]  }
 0x1c6   : > { %6138 = vmatpush1.bf16.msra.mxu0 %v8927_v36  ;;  %6712 = vmatpush1.bf16.msra.mxu1 %v8930_v46  ;;  %v9017_v36 = vld [vmem:[%s9943_s11 + $0xde0] ss:$16 sps:$4 sm:$0xff]   ;;  %v9020_v46 = vld [vmem:[%s9943_s11 + $0xde8] ss:$16 sps:$4 sm:$0xff]  }
 0x1c7   : > { %6139 = vmatprep.subr.bf16.mxu0 %v8935_v47  ;;  %6713 = vmatprep.subr.bf16.mxu1 %v8938_v48  ;;  %v9026_v47 = vld [vmem:[%s9943_s11 + $0xe04] ss:$16 sps:$4 sm:$0xff]   ;;  %v9029_v48 = vld [vmem:[%s9943_s11 + $0xe0c] ss:$16 sps:$4 sm:$0xff]  }
 0x1c8   : > { %6169 = vmatprep.mubr.bf16.mxu0 %v10430_v49  ;;  %6743 = vmatprep.mubr.bf16.mxu1 %v10430_v49 }
 0x1ca   : > { %6140 = vmatpush1.bf16.msra.mxu0 %v8933_v14  ;;  %6714 = vmatpush1.bf16.msra.mxu1 %v8936_v51  ;;  %v10496_v14 = vrot.slane %v10415_v39, %v10020_v50  ;;  %v9024_v51 = vld [vmem:[%s9943_s11 + $0xe00] ss:$16 sps:$4 sm:$0xff]  }
 0x1cb   : > { %6141 = vmatprep.subr.bf16.mxu0 %v8941_v52  ;;  %6715 = vmatprep.subr.bf16.mxu1 %v8944_v54  ;;  %v9027_v52 = vld [vmem:[%s9943_s11 + $0xe08] ss:$16 sps:$4 sm:$0xff]   ;;  %v9032_v54 = vld [vmem:[%s9943_s11 + $0xe24] ss:$16 sps:$4 sm:$0xff]   ;;  %v9030_v39 = vld [vmem:[%s9943_s11 + $0xe20] ss:$16 sps:$4 sm:$0xff]  }
 0x1ce   : > { %6142 = vmatpush1.bf16.msra.mxu0 %v8939_v55  ;;  %6716 = vmatpush1.bf16.msra.mxu1 %v8942_v56  ;;  %v9035_v55 = vld [vmem:[%s9943_s11 + $0xe2c] ss:$16 sps:$4 sm:$0xff]   ;;  %v1309_v56 = vcombine.high %v10430_v49, %v10430_v49  ;;  %v9036_v49 = vld [vmem:[%s9943_s11 + $0xe40] ss:$16 sps:$4 sm:$0xff]  }
 0x1cf   : > { %6143 = vmatprep.subr.bf16.mxu0 %v8947_v57  ;;  %6717 = vmatprep.subr.bf16.mxu1 %v8950_v58  ;;  %v9033_v57 = vld [vmem:[%s9943_s11 + $0xe28] ss:$16 sps:$4 sm:$0xff]   ;;  %v9038_v58 = vld [vmem:[%s9943_s11 + $0xe44] ss:$16 sps:$4 sm:$0xff]  }
 0x1d2   : > { %6144 = vmatpush1.bf16.msra.mxu0 %v8945_v59  ;;  %6718 = vmatpush1.bf16.msra.mxu1 %v8948_v60  ;;  %v9041_v59 = vld [vmem:[%s9943_s11 + $0xe4c] ss:$16 sps:$4 sm:$0xff]   ;;  %v9039_v60 = vld [vmem:[%s9943_s11 + $0xe48] ss:$16 sps:$4 sm:$0xff]  }
 0x1d3   : > { %6145 = vmatprep.subr.bf16.mxu0 %v8953_v61  ;;  %6719 = vmatprep.subr.bf16.mxu1 %v8956_v62  ;;  %v9044_v61 = vld [vmem:[%s9943_s11 + $0xe64] ss:$16 sps:$4 sm:$0xff]   ;;  %v9047_v62 = vld [vmem:[%s9943_s11 + $0xe6c] ss:$16 sps:$4 sm:$0xff]  }
 0x1d6   : > { %6146 = vmatpush1.bf16.msra.mxu0 %v8951_v63  ;;  %6720 = vmatpush1.bf16.msra.mxu1 %v8954_v0  ;;  %v9042_v63 = vld [vmem:[%s9943_s11 + $0xe60] ss:$16 sps:$4 sm:$0xff]   ;;  %v9045_v0 = vld [vmem:[%s9943_s11 + $0xe68] ss:$16 sps:$4 sm:$0xff]  }
 0x1d7   : > { %6147 = vmatprep.subr.bf16.mxu0 %v8959_v1  ;;  %6721 = vmatprep.subr.bf16.mxu1 %v8962_v2  ;;  %v9050_v1 = vld [vmem:[%s9943_s11 + $0xe84] ss:$16 sps:$4 sm:$0xff]   ;;  %v9053_v2 = vld [vmem:[%s9943_s11 + $0xe8c] ss:$16 sps:$4 sm:$0xff]  }
 0x1da   : > { %6148 = vmatpush1.bf16.msra.mxu0 %v8957_v3  ;;  %6722 = vmatpush1.bf16.msra.mxu1 %v8960_v4  ;;  %v9048_v3 = vld [vmem:[%s9943_s11 + $0xe80] ss:$16 sps:$4 sm:$0xff]   ;;  %v9051_v4 = vld [vmem:[%s9943_s11 + $0xe88] ss:$16 sps:$4 sm:$0xff]  }
 0x1db   : > { %6149 = vmatprep.subr.bf16.mxu0 %v8965_v5  ;;  %6723 = vmatprep.subr.bf16.mxu1 %v8968_v6  ;;  %v9056_v5 = vld [vmem:[%s9943_s11 + $0xea4] ss:$16 sps:$4 sm:$0xff]   ;;  %v9059_v6 = vld [vmem:[%s9943_s11 + $0xeac] ss:$16 sps:$4 sm:$0xff]  }
 0x1de   : > { %6150 = vmatpush1.bf16.msra.mxu0 %v8963_v7  ;;  %6724 = vmatpush1.bf16.msra.mxu1 %v8966_v8  ;;  %v9054_v7 = vld [vmem:[%s9943_s11 + $0xea0] ss:$16 sps:$4 sm:$0xff]   ;;  %v9057_v8 = vld [vmem:[%s9943_s11 + $0xea8] ss:$16 sps:$4 sm:$0xff]  }
 0x1df   : > { %6151 = vmatprep.subr.bf16.mxu0 %v8971_v9  ;;  %6725 = vmatprep.subr.bf16.mxu1 %v8974_v10  ;;  %v9062_v9 = vld [vmem:[%s9943_s11 + $0xec4] ss:$16 sps:$4 sm:$0xff]   ;;  %v9065_v10 = vld [vmem:[%s9943_s11 + $0xecc] ss:$16 sps:$4 sm:$0xff]  }
 0x1e2   : > { %6152 = vmatpush1.bf16.msra.mxu0 %v8969_v11  ;;  %6726 = vmatpush1.bf16.msra.mxu1 %v8972_v12  ;;  %v9060_v11 = vld [vmem:[%s9943_s11 + $0xec0] ss:$16 sps:$4 sm:$0xff]   ;;  %v9063_v12 = vld [vmem:[%s9943_s11 + $0xec8] ss:$16 sps:$4 sm:$0xff]  }
 0x1e3   : > { %6153 = vmatprep.subr.bf16.mxu0 %v8977_v13  ;;  %6727 = vmatprep.subr.bf16.mxu1 %v8980_v15  ;;  %v9068_v13 = vld [vmem:[%s9943_s11 + $0xee4] ss:$16 sps:$4 sm:$0xff]   ;;  %v9071_v15 = vld [vmem:[%s9943_s11 + $0xeec] ss:$16 sps:$4 sm:$0xff]  }
 0x1e6   : > { %6154 = vmatpush1.bf16.msra.mxu0 %v8975_v17  ;;  %6728 = vmatpush1.bf16.msra.mxu1 %v8978_v53  ;;  %v9066_v17 = vld [vmem:[%s9943_s11 + $0xee0] ss:$16 sps:$4 sm:$0xff]   ;;  %v9069_v53 = vld [vmem:[%s9943_s11 + $0xee8] ss:$16 sps:$4 sm:$0xff]  }
 0x1e7   : > { %6155 = vmatprep.subr.bf16.mxu0 %v8983_v18  ;;  %6729 = vmatprep.subr.bf16.mxu1 %v8986_v19  ;;  %v9074_v18 = vld [vmem:[%s9943_s11 + $0xf04] ss:$16 sps:$4 sm:$0xff]   ;;  %v9077_v19 = vld [vmem:[%s9943_s11 + $0xf0c] ss:$16 sps:$4 sm:$0xff]  }
 0x1ea   : > { %6156 = vmatpush1.bf16.msra.mxu0 %v8981_v20  ;;  %6730 = vmatpush1.bf16.msra.mxu1 %v8984_v21  ;;  %v9072_v20 = vld [vmem:[%s9943_s11 + $0xf00] ss:$16 sps:$4 sm:$0xff]   ;;  %v9075_v21 = vld [vmem:[%s9943_s11 + $0xf08] ss:$16 sps:$4 sm:$0xff]  }
 0x1eb   : > { %6157 = vmatprep.subr.bf16.mxu0 %v8989_v23  ;;  %6731 = vmatprep.subr.bf16.mxu1 %v8992_v24  ;;  %v9080_v23 = vld [vmem:[%s9943_s11 + $0xf24] ss:$16 sps:$4 sm:$0xff]   ;;  %v9083_v24 = vld [vmem:[%s9943_s11 + $0xf2c] ss:$16 sps:$4 sm:$0xff]  }
 0x1ee   : > { %6158 = vmatpush1.bf16.msra.mxu0 %v8987_v25  ;;  %6732 = vmatpush1.bf16.msra.mxu1 %v8990_v27  ;;  %v9078_v25 = vld [vmem:[%s9943_s11 + $0xf20] ss:$16 sps:$4 sm:$0xff]   ;;  %v9081_v27 = vld [vmem:[%s9943_s11 + $0xf28] ss:$16 sps:$4 sm:$0xff]  }
 0x1ef   : > { %6159 = vmatprep.subr.bf16.mxu0 %v8995_v28  ;;  %6733 = vmatprep.subr.bf16.mxu1 %v8998_v29  ;;  %v9086_v28 = vld [vmem:[%s9943_s11 + $0xf44] ss:$16 sps:$4 sm:$0xff]   ;;  %v9089_v29 = vld [vmem:[%s9943_s11 + $0xf4c] ss:$16 sps:$4 sm:$0xff]  }
 0x1f2   : > { %6160 = vmatpush1.bf16.msra.mxu0 %v8993_v30  ;;  %6734 = vmatpush1.bf16.msra.mxu1 %v8996_v31  ;;  %v9084_v30 = vld [vmem:[%s9943_s11 + $0xf40] ss:$16 sps:$4 sm:$0xff]   ;;  %v9087_v31 = vld [vmem:[%s9943_s11 + $0xf48] ss:$16 sps:$4 sm:$0xff]  }
 0x1f3   : > { %6161 = vmatprep.subr.bf16.mxu0 %v9001_v16  ;;  %6735 = vmatprep.subr.bf16.mxu1 %v9004_v32  ;;  %v9092_v16 = vld [vmem:[%s9943_s11 + $0xf64] ss:$16 sps:$4 sm:$0xff]   ;;  %v9095_v32 = vld [vmem:[%s9943_s11 + $0xf6c] ss:$16 sps:$4 sm:$0xff]  }
 0x1f6   : > { %6162 = vmatpush1.bf16.msra.mxu0 %v8999_v33  ;;  %6736 = vmatpush1.bf16.msra.mxu1 %v9002_v34  ;;  %v9090_v33 = vld [vmem:[%s9943_s11 + $0xf60] ss:$16 sps:$4 sm:$0xff]   ;;  %v9093_v34 = vld [vmem:[%s9943_s11 + $0xf68] ss:$16 sps:$4 sm:$0xff]  }
 0x1f7   : > { %6163 = vmatprep.subr.bf16.mxu0 %v9007_v26  ;;  %6737 = vmatprep.subr.bf16.mxu1 %v9010_v35  ;;  %v9098_v26 = vld [vmem:[%s9943_s11 + $0xf84] ss:$16 sps:$4 sm:$0xff]   ;;  %v9101_v35 = vld [vmem:[%s9943_s11 + $0xf8c] ss:$16 sps:$4 sm:$0xff]  }
 0x1fa   : > { %6164 = vmatpush1.bf16.msra.mxu0 %v9005_v37  ;;  %6738 = vmatpush1.bf16.msra.mxu1 %v9008_v38  ;;  %v9096_v37 = vld [vmem:[%s9943_s11 + $0xf80] ss:$16 sps:$4 sm:$0xff]   ;;  %v9099_v38 = vld [vmem:[%s9943_s11 + $0xf88] ss:$16 sps:$4 sm:$0xff]  }
 0x1fb   : > { %6165 = vmatprep.subr.bf16.mxu0 %v9013_v40  ;;  %6739 = vmatprep.subr.bf16.mxu1 %v9016_v41  ;;  %v9104_v40 = vld [vmem:[%s9943_s11 + $0xfa4] ss:$16 sps:$4 sm:$0xff]   ;;  %v9107_v41 = vld [vmem:[%s9943_s11 + $0xfac] ss:$16 sps:$4 sm:$0xff]  }
 0x1fe   : > { %6166 = vmatpush1.bf16.msra.mxu0 %v9011_v22  ;;  %6740 = vmatpush1.bf16.msra.mxu1 %v9014_v42  ;;  %v9102_v22 = vld [vmem:[%s9943_s11 + $0xfa0] ss:$16 sps:$4 sm:$0xff]   ;;  %v9105_v42 = vld [vmem:[%s9943_s11 + $0xfa8] ss:$16 sps:$4 sm:$0xff]  }
 0x1ff   : > { %6167 = vmatprep.subr.bf16.mxu0 %v9019_v43  ;;  %6741 = vmatprep.subr.bf16.mxu1 %v9022_v45  ;;  %v9110_v43 = vld [vmem:[%s9943_s11 + $0xfc4] ss:$16 sps:$4 sm:$0xff]   ;;  %v9113_v45 = vld [vmem:[%s9943_s11 + $0xfcc] ss:$16 sps:$4 sm:$0xff]  }
 0x202   : > { %6168 = vmatpush1.bf16.msra.mxu0 %v9017_v36  ;;  %6742 = vmatpush1.bf16.msra.mxu1 %v9020_v46  ;;  %v10559_v36 = vld [vmem:[%s9964_s19 + $0x10] sm:$0xff]  ;;  %v9108_v46 = vld [vmem:[%s9943_s11 + $0xfc0] ss:$16 sps:$4 sm:$0xff]  }
 0x203   : > { %6178 = vmatprep.subr.bf16.mxu0 %v9026_v47  ;;  %6752 = vmatprep.subr.bf16.mxu1 %v9029_v48  ;;  %v9111_v47 = vld [vmem:[%s9943_s11 + $0xfc8] ss:$16 sps:$4 sm:$0xff]   ;;  %v9116_v48 = vld [vmem:[%s9943_s11 + $0xfe4] ss:$16 sps:$4 sm:$0xff]  }
 0x205   : > { %6170 = vmatmul.mubr.bf16.vlgmr.msra.gmra.mrb[0].mxu0 %v10496_v14  ;;  %6744 = vmatmul.mubr.bf16.vlgmr.msra.gmra.mrb[0].mxu1 %v10496_v14 }
 0x206   : > { %6179 = vmatpush1.bf16.msra.mxu0 %v9024_v51  ;;  %6753 = vmatpush1.bf16.msra.mxu1 %v9027_v52  ;;  %v9119_v51 = vld [vmem:[%s9943_s11 + $0xfec] ss:$16 sps:$4 sm:$0xff]   ;;  %v10567_v52 = vrot.slane %v10559_v36, %v10020_v50 }
 0x207   : > { %6180 = vmatprep.subr.bf16.mxu0 %v9032_v54  ;;  %6754 = vmatprep.subr.bf16.mxu1 %v9035_v55  ;;  %v9114_v54 = vld [vmem:[%s9943_s11 + $0xfe0] ss:$16 sps:$4 sm:$0xff]   ;;  %v9117_v55 = vld [vmem:[%s9943_s11 + $0xfe8] ss:$16 sps:$4 sm:$0xff]  }
 0x208   : > { %6210 = vmatprep.mubr.bf16.mxu0 %v1309_v56  ;;  %6784 = vmatprep.mubr.bf16.mxu1 %v1309_v56  ;;  %v9122_v56 = vld [vmem:[%s9943_s11 + $0x1004] ss:$16 sps:$4 sm:$0xff]  }
 0x20a   : > { %6181 = vmatpush1.bf16.msra.mxu0 %v9030_v39  ;;  %6755 = vmatpush1.bf16.msra.mxu1 %v9033_v57  ;;  %v9125_v39 = vld [vmem:[%s9943_s11 + $0x100c] ss:$16 sps:$4 sm:$0xff]   ;;  %v1325_v57 = vcombine.high %v10567_v52, %v10567_v52 }
 0x20b   : > { %6182 = vmatprep.subr.bf16.mxu0 %v9038_v58  ;;  %6756 = vmatprep.subr.bf16.mxu1 %v9041_v59  ;;  %v1307_v58 = vcombine.high %v10496_v14, %v10496_v14  ;;  %v9120_v59 = vld [vmem:[%s9943_s11 + $0x1000] ss:$16 sps:$4 sm:$0xff]  }
 0x20c   : > { %v9126_v14 = vld [vmem:[%s9943_s11 + $0x1020] ss:$16 sps:$4 sm:$0xff]  }
 0x20e   : > { %6183 = vmatpush1.bf16.msra.mxu0 %v9036_v49  ;;  %6757 = vmatpush1.bf16.msra.mxu1 %v9039_v60  ;;  %v9123_v49 = vld [vmem:[%s9943_s11 + $0x1008] ss:$16 sps:$4 sm:$0xff]   ;;  %v9128_v60 = vld [vmem:[%s9943_s11 + $0x1024] ss:$16 sps:$4 sm:$0xff]  }
 0x20f   : > { %6184 = vmatprep.subr.bf16.mxu0 %v9044_v61  ;;  %6758 = vmatprep.subr.bf16.mxu1 %v9047_v62  ;;  %v9131_v61 = vld [vmem:[%s9943_s11 + $0x102c] ss:$16 sps:$4 sm:$0xff]   ;;  %v10582_v62 = vrot.slane %v1325_v57, %v10020_v50  ;;  %v9207_v57 = vld [vmem:[%s9943_s11 + $0x11c8] ss:$16 sps:$4 sm:$0xff]  }
 0x212   : > { %6185 = vmatpush1.bf16.msra.mxu0 %v9042_v63  ;;  %6759 = vmatpush1.bf16.msra.mxu1 %v9045_v0  ;;  %v9129_v63 = vld [vmem:[%s9943_s11 + $0x1028] ss:$16 sps:$4 sm:$0xff]   ;;  %v9134_v0 = vld [vmem:[%s9943_s11 + $0x1044] ss:$16 sps:$4 sm:$0xff]  }
 0x213   : > { %6186 = vmatprep.subr.bf16.mxu0 %v9050_v1  ;;  %6760 = vmatprep.subr.bf16.mxu1 %v9053_v2  ;;  %v9137_v1 = vld [vmem:[%s9943_s11 + $0x104c] ss:$16 sps:$4 sm:$0xff]   ;;  %v9132_v2 = vld [vmem:[%s9943_s11 + $0x1040] ss:$16 sps:$4 sm:$0xff]  }
 0x216   : > { %6187 = vmatpush1.bf16.msra.mxu0 %v9048_v3  ;;  %6761 = vmatpush1.bf16.msra.mxu1 %v9051_v4  ;;  %v9135_v3 = vld [vmem:[%s9943_s11 + $0x1048] ss:$16 sps:$4 sm:$0xff]   ;;  %v9140_v4 = vld [vmem:[%s9943_s11 + $0x1064] ss:$16 sps:$4 sm:$0xff]  }
 0x217   : > { %6188 = vmatprep.subr.bf16.mxu0 %v9056_v5  ;;  %6762 = vmatprep.subr.bf16.mxu1 %v9059_v6  ;;  %v9143_v5 = vld [vmem:[%s9943_s11 + $0x106c] ss:$16 sps:$4 sm:$0xff]   ;;  %v9138_v6 = vld [vmem:[%s9943_s11 + $0x1060] ss:$16 sps:$4 sm:$0xff]  }
 0x21a   : > { %6189 = vmatpush1.bf16.msra.mxu0 %v9054_v7  ;;  %6763 = vmatpush1.bf16.msra.mxu1 %v9057_v8  ;;  %v9141_v7 = vld [vmem:[%s9943_s11 + $0x1068] ss:$16 sps:$4 sm:$0xff]   ;;  %v9146_v8 = vld [vmem:[%s9943_s11 + $0x1084] ss:$16 sps:$4 sm:$0xff]  }
 0x21b   : > { %6190 = vmatprep.subr.bf16.mxu0 %v9062_v9  ;;  %6764 = vmatprep.subr.bf16.mxu1 %v9065_v10  ;;  %v9149_v9 = vld [vmem:[%s9943_s11 + $0x108c] ss:$16 sps:$4 sm:$0xff]   ;;  %v9144_v10 = vld [vmem:[%s9943_s11 + $0x1080] ss:$16 sps:$4 sm:$0xff]  }
 0x21e   : > { %6191 = vmatpush1.bf16.msra.mxu0 %v9060_v11  ;;  %6765 = vmatpush1.bf16.msra.mxu1 %v9063_v12  ;;  %v9147_v11 = vld [vmem:[%s9943_s11 + $0x1088] ss:$16 sps:$4 sm:$0xff]   ;;  %v9152_v12 = vld [vmem:[%s9943_s11 + $0x10a4] ss:$16 sps:$4 sm:$0xff]  }
 0x21f   : > { %6192 = vmatprep.subr.bf16.mxu0 %v9068_v13  ;;  %6766 = vmatprep.subr.bf16.mxu1 %v9071_v15  ;;  %v9155_v13 = vld [vmem:[%s9943_s11 + $0x10ac] ss:$16 sps:$4 sm:$0xff]   ;;  %v9150_v15 = vld [vmem:[%s9943_s11 + $0x10a0] ss:$16 sps:$4 sm:$0xff]  }
 0x222   : > { %6193 = vmatpush1.bf16.msra.mxu0 %v9066_v17  ;;  %6767 = vmatpush1.bf16.msra.mxu1 %v9069_v53  ;;  %v9153_v17 = vld [vmem:[%s9943_s11 + $0x10a8] ss:$16 sps:$4 sm:$0xff]   ;;  %v9158_v53 = vld [vmem:[%s9943_s11 + $0x10c4] ss:$16 sps:$4 sm:$0xff]  }
 0x223   : > { %6194 = vmatprep.subr.bf16.mxu0 %v9074_v18  ;;  %6768 = vmatprep.subr.bf16.mxu1 %v9077_v19  ;;  %v9161_v18 = vld [vmem:[%s9943_s11 + $0x10cc] ss:$16 sps:$4 sm:$0xff]   ;;  %v9156_v19 = vld [vmem:[%s9943_s11 + $0x10c0] ss:$16 sps:$4 sm:$0xff]  }
 0x226   : > { %6195 = vmatpush1.bf16.msra.mxu0 %v9072_v20  ;;  %6769 = vmatpush1.bf16.msra.mxu1 %v9075_v21  ;;  %v9159_v20 = vld [vmem:[%s9943_s11 + $0x10c8] ss:$16 sps:$4 sm:$0xff]   ;;  %v9164_v21 = vld [vmem:[%s9943_s11 + $0x10e4] ss:$16 sps:$4 sm:$0xff]  }
 0x227   : > { %6196 = vmatprep.subr.bf16.mxu0 %v9080_v23  ;;  %6770 = vmatprep.subr.bf16.mxu1 %v9083_v24  ;;  %v9167_v23 = vld [vmem:[%s9943_s11 + $0x10ec] ss:$16 sps:$4 sm:$0xff]   ;;  %v9162_v24 = vld [vmem:[%s9943_s11 + $0x10e0] ss:$16 sps:$4 sm:$0xff]  }
 0x22a   : > { %6197 = vmatpush1.bf16.msra.mxu0 %v9078_v25  ;;  %6771 = vmatpush1.bf16.msra.mxu1 %v9081_v27  ;;  %v9165_v25 = vld [vmem:[%s9943_s11 + $0x10e8] ss:$16 sps:$4 sm:$0xff]   ;;  %v9170_v27 = vld [vmem:[%s9943_s11 + $0x1104] ss:$16 sps:$4 sm:$0xff]  }
 0x22b   : > { %6198 = vmatprep.subr.bf16.mxu0 %v9086_v28  ;;  %6772 = vmatprep.subr.bf16.mxu1 %v9089_v29  ;;  %v9173_v28 = vld [vmem:[%s9943_s11 + $0x110c] ss:$16 sps:$4 sm:$0xff]   ;;  %v9168_v29 = vld [vmem:[%s9943_s11 + $0x1100] ss:$16 sps:$4 sm:$0xff]  }
 0x22e   : > { %6199 = vmatpush1.bf16.msra.mxu0 %v9084_v30  ;;  %6773 = vmatpush1.bf16.msra.mxu1 %v9087_v31  ;;  %v9171_v30 = vld [vmem:[%s9943_s11 + $0x1108] ss:$16 sps:$4 sm:$0xff]   ;;  %v9176_v31 = vld [vmem:[%s9943_s11 + $0x1124] ss:$16 sps:$4 sm:$0xff]  }
 0x22f   : > { %6200 = vmatprep.subr.bf16.mxu0 %v9092_v16  ;;  %6774 = vmatprep.subr.bf16.mxu1 %v9095_v32  ;;  %v9179_v16 = vld [vmem:[%s9943_s11 + $0x112c] ss:$16 sps:$4 sm:$0xff]   ;;  %v9174_v32 = vld [vmem:[%s9943_s11 + $0x1120] ss:$16 sps:$4 sm:$0xff]  }
 0x232   : > { %6201 = vmatpush1.bf16.msra.mxu0 %v9090_v33  ;;  %6775 = vmatpush1.bf16.msra.mxu1 %v9093_v34  ;;  %v9177_v33 = vld [vmem:[%s9943_s11 + $0x1128] ss:$16 sps:$4 sm:$0xff]   ;;  %v9182_v34 = vld [vmem:[%s9943_s11 + $0x1144] ss:$16 sps:$4 sm:$0xff]  }
 0x233   : > { %6202 = vmatprep.subr.bf16.mxu0 %v9098_v26  ;;  %6776 = vmatprep.subr.bf16.mxu1 %v9101_v35  ;;  %v9185_v26 = vld [vmem:[%s9943_s11 + $0x114c] ss:$16 sps:$4 sm:$0xff]   ;;  %v9180_v35 = vld [vmem:[%s9943_s11 + $0x1140] ss:$16 sps:$4 sm:$0xff]  }
 0x236   : > { %6203 = vmatpush1.bf16.msra.mxu0 %v9096_v37  ;;  %6777 = vmatpush1.bf16.msra.mxu1 %v9099_v38  ;;  %v9183_v37 = vld [vmem:[%s9943_s11 + $0x1148] ss:$16 sps:$4 sm:$0xff]   ;;  %v9188_v38 = vld [vmem:[%s9943_s11 + $0x1164] ss:$16 sps:$4 sm:$0xff]  }
 0x237   : > { %6204 = vmatprep.subr.bf16.mxu0 %v9104_v40  ;;  %6778 = vmatprep.subr.bf16.mxu1 %v9107_v41  ;;  %v9191_v40 = vld [vmem:[%s9943_s11 + $0x116c] ss:$16 sps:$4 sm:$0xff]   ;;  %v9186_v41 = vld [vmem:[%s9943_s11 + $0x1160] ss:$16 sps:$4 sm:$0xff]  }
 0x23a   : > { %6205 = vmatpush1.bf16.msra.mxu0 %v9102_v22  ;;  %6779 = vmatpush1.bf16.msra.mxu1 %v9105_v42  ;;  %v9189_v22 = vld [vmem:[%s9943_s11 + $0x1168] ss:$16 sps:$4 sm:$0xff]   ;;  %v9194_v42 = vld [vmem:[%s9943_s11 + $0x1184] ss:$16 sps:$4 sm:$0xff]  }
 0x23b   : > { %6206 = vmatprep.subr.bf16.mxu0 %v9110_v43  ;;  %6780 = vmatprep.subr.bf16.mxu1 %v9113_v45  ;;  %v9197_v43 = vld [vmem:[%s9943_s11 + $0x118c] ss:$16 sps:$4 sm:$0xff]   ;;  %v9192_v45 = vld [vmem:[%s9943_s11 + $0x1180] ss:$16 sps:$4 sm:$0xff]  }
 0x23e   : > { %6207 = vmatpush1.bf16.msra.mxu0 %v9108_v46  ;;  %6781 = vmatpush1.bf16.msra.mxu1 %v9111_v47  ;;  %v9195_v46 = vld [vmem:[%s9943_s11 + $0x1188] ss:$16 sps:$4 sm:$0xff]   ;;  %v9200_v47 = vld [vmem:[%s9943_s11 + $0x11a4] ss:$16 sps:$4 sm:$0xff]  }
 0x23f   : > { %6208 = vmatprep.subr.bf16.mxu0 %v9116_v48  ;;  %6782 = vmatprep.subr.bf16.mxu1 %v9119_v51  ;;  %v9203_v48 = vld [vmem:[%s9943_s11 + $0x11ac] ss:$16 sps:$4 sm:$0xff]   ;;  %v9198_v51 = vld [vmem:[%s9943_s11 + $0x11a0] ss:$16 sps:$4 sm:$0xff]  }
 0x242   : > { %6209 = vmatpush1.bf16.msra.mxu0 %v9114_v54  ;;  %6783 = vmatpush1.bf16.msra.mxu1 %v9117_v55  ;;  %v9201_v54 = vld [vmem:[%s9943_s11 + $0x11a8] ss:$16 sps:$4 sm:$0xff]   ;;  %v9206_v55 = vld [vmem:[%s9943_s11 + $0x11c4] ss:$16 sps:$4 sm:$0xff]  }
 0x243   : > { %6219 = vmatprep.subr.bf16.mxu0 %v9122_v56  ;;  %6793 = vmatprep.subr.bf16.mxu1 %v9125_v39  ;;  %v9209_v56 = vld [vmem:[%s9943_s11 + $0x11cc] ss:$16 sps:$4 sm:$0xff]   ;;  %v9204_v39 = vld [vmem:[%s9943_s11 + $0x11c0] ss:$16 sps:$4 sm:$0xff]  }
 0x245   : > { %6211 = vmatmul.mubr.bf16.vlgmr.msra.gmra.mrb[0].mxu0 %v1307_v58  ;;  %6785 = vmatmul.mubr.bf16.vlgmr.msra.gmra.mrb[0].mxu1 %v1307_v58  ;;  %v9212_v58 = vld [vmem:[%s9943_s11 + $0x11e4] ss:$16 sps:$4 sm:$0xff]  }
 0x246   : > { %6220 = vmatpush1.bf16.msra.mxu0 %v9120_v59  ;;  %6794 = vmatpush1.bf16.msra.mxu1 %v9123_v49  ;;  %v9215_v59 = vld [vmem:[%s9943_s11 + $0x11ec] ss:$16 sps:$4 sm:$0xff]   ;;  %v9210_v49 = vld [vmem:[%s9943_s11 + $0x11e0] ss:$16 sps:$4 sm:$0xff]  }
 0x247   : > { %6221 = vmatprep.subr.bf16.mxu0 %v9128_v60  ;;  %6795 = vmatprep.subr.bf16.mxu1 %v9131_v61  ;;  %v9213_v60 = vld [vmem:[%s9943_s11 + $0x11e8] ss:$16 sps:$4 sm:$0xff]   ;;  %v9218_v61 = vld [vmem:[%s9943_s11 + $0x1204] ss:$16 sps:$4 sm:$0xff]  }
 0x248   : > { %6251 = vmatprep.mubr.bf16.mxu0 %v10582_v62  ;;  %6825 = vmatprep.mubr.bf16.mxu1 %v10582_v62 }
 0x24a   : > { %6222 = vmatpush1.bf16.msra.mxu0 %v9126_v14  ;;  %6796 = vmatpush1.bf16.msra.mxu1 %v9129_v63  ;;  %v9221_v14 = vld [vmem:[%s9943_s11 + $0x120c] ss:$16 sps:$4 sm:$0xff]   ;;  %v10648_v63 = vrot.slane %v10567_v52, %v10020_v50  ;;  %v9222_v52 = vld [vmem:[%s9943_s11 + $0x1220] ss:$16 sps:$4 sm:$0xff]  }
 0x24b   : > { %6223 = vmatprep.subr.bf16.mxu0 %v9134_v0  ;;  %6797 = vmatprep.subr.bf16.mxu1 %v9137_v1  ;;  %v9216_v0 = vld [vmem:[%s9943_s11 + $0x1200] ss:$16 sps:$4 sm:$0xff]   ;;  %v9219_v1 = vld [vmem:[%s9943_s11 + $0x1208] ss:$16 sps:$4 sm:$0xff]  }
 0x24e   : > { %6224 = vmatpush1.bf16.msra.mxu0 %v9132_v2  ;;  %6798 = vmatpush1.bf16.msra.mxu1 %v9135_v3  ;;  %v9224_v2 = vld [vmem:[%s9943_s11 + $0x1224] ss:$16 sps:$4 sm:$0xff]   ;;  %v9227_v3 = vld [vmem:[%s9943_s11 + $0x122c] ss:$16 sps:$4 sm:$0xff]  }
 0x24f   : > { %6225 = vmatprep.subr.bf16.mxu0 %v9140_v4  ;;  %6799 = vmatprep.subr.bf16.mxu1 %v9143_v5  ;;  %v1357_v4 = vcombine.high %v10582_v62, %v10582_v62  ;;  %v9225_v5 = vld [vmem:[%s9943_s11 + $0x1228] ss:$16 sps:$4 sm:$0xff]   ;;  %v9228_v62 = vld [vmem:[%s9943_s11 + $0x1240] ss:$16 sps:$4 sm:$0xff]  }
 0x252   : > { %6226 = vmatpush1.bf16.msra.mxu0 %v9138_v6  ;;  %6800 = vmatpush1.bf16.msra.mxu1 %v9141_v7  ;;  %v9230_v6 = vld [vmem:[%s9943_s11 + $0x1244] ss:$16 sps:$4 sm:$0xff]   ;;  %v9233_v7 = vld [vmem:[%s9943_s11 + $0x124c] ss:$16 sps:$4 sm:$0xff]  }
 0x253   : > { %6227 = vmatprep.subr.bf16.mxu0 %v9146_v8  ;;  %6801 = vmatprep.subr.bf16.mxu1 %v9149_v9  ;;  %v9231_v8 = vld [vmem:[%s9943_s11 + $0x1248] ss:$16 sps:$4 sm:$0xff]   ;;  %v9236_v9 = vld [vmem:[%s9943_s11 + $0x1264] ss:$16 sps:$4 sm:$0xff]  }
 0x256   : > { %6228 = vmatpush1.bf16.msra.mxu0 %v9144_v10  ;;  %6802 = vmatpush1.bf16.msra.mxu1 %v9147_v11  ;;  %v9239_v10 = vld [vmem:[%s9943_s11 + $0x126c] ss:$16 sps:$4 sm:$0xff]   ;;  %v9234_v11 = vld [vmem:[%s9943_s11 + $0x1260] ss:$16 sps:$4 sm:$0xff]  }
 0x257   : > { %6229 = vmatprep.subr.bf16.mxu0 %v9152_v12  ;;  %6803 = vmatprep.subr.bf16.mxu1 %v9155_v13  ;;  %v9237_v12 = vld [vmem:[%s9943_s11 + $0x1268] ss:$16 sps:$4 sm:$0xff]   ;;  %v9242_v13 = vld [vmem:[%s9943_s11 + $0x1284] ss:$16 sps:$4 sm:$0xff]  }
 0x25a   : > { %6230 = vmatpush1.bf16.msra.mxu0 %v9150_v15  ;;  %6804 = vmatpush1.bf16.msra.mxu1 %v9153_v17  ;;  %v9245_v15 = vld [vmem:[%s9943_s11 + $0x128c] ss:$16 sps:$4 sm:$0xff]   ;;  %v9240_v17 = vld [vmem:[%s9943_s11 + $0x1280] ss:$16 sps:$4 sm:$0xff]  }
 0x25b   : > { %6231 = vmatprep.subr.bf16.mxu0 %v9158_v53  ;;  %6805 = vmatprep.subr.bf16.mxu1 %v9161_v18  ;;  %v9243_v53 = vld [vmem:[%s9943_s11 + $0x1288] ss:$16 sps:$4 sm:$0xff]   ;;  %v9248_v18 = vld [vmem:[%s9943_s11 + $0x12a4] ss:$16 sps:$4 sm:$0xff]  }
 0x25e   : > { %6232 = vmatpush1.bf16.msra.mxu0 %v9156_v19  ;;  %6806 = vmatpush1.bf16.msra.mxu1 %v9159_v20  ;;  %v9251_v19 = vld [vmem:[%s9943_s11 + $0x12ac] ss:$16 sps:$4 sm:$0xff]   ;;  %v9246_v20 = vld [vmem:[%s9943_s11 + $0x12a0] ss:$16 sps:$4 sm:$0xff]  }
 0x25f   : > { %6233 = vmatprep.subr.bf16.mxu0 %v9164_v21  ;;  %6807 = vmatprep.subr.bf16.mxu1 %v9167_v23  ;;  %v9249_v21 = vld [vmem:[%s9943_s11 + $0x12a8] ss:$16 sps:$4 sm:$0xff]   ;;  %v9254_v23 = vld [vmem:[%s9943_s11 + $0x12c4] ss:$16 sps:$4 sm:$0xff]  }
 0x262   : > { %6234 = vmatpush1.bf16.msra.mxu0 %v9162_v24  ;;  %6808 = vmatpush1.bf16.msra.mxu1 %v9165_v25  ;;  %v9257_v24 = vld [vmem:[%s9943_s11 + $0x12cc] ss:$16 sps:$4 sm:$0xff]   ;;  %v9252_v25 = vld [vmem:[%s9943_s11 + $0x12c0] ss:$16 sps:$4 sm:$0xff]  }
 0x263   : > { %6235 = vmatprep.subr.bf16.mxu0 %v9170_v27  ;;  %6809 = vmatprep.subr.bf16.mxu1 %v9173_v28  ;;  %v9255_v27 = vld [vmem:[%s9943_s11 + $0x12c8] ss:$16 sps:$4 sm:$0xff]   ;;  %v9260_v28 = vld [vmem:[%s9943_s11 + $0x12e4] ss:$16 sps:$4 sm:$0xff]  }
 0x266   : > { %6236 = vmatpush1.bf16.msra.mxu0 %v9168_v29  ;;  %6810 = vmatpush1.bf16.msra.mxu1 %v9171_v30  ;;  %v9263_v29 = vld [vmem:[%s9943_s11 + $0x12ec] ss:$16 sps:$4 sm:$0xff]   ;;  %v9258_v30 = vld [vmem:[%s9943_s11 + $0x12e0] ss:$16 sps:$4 sm:$0xff]  }
 0x267   : > { %6237 = vmatprep.subr.bf16.mxu0 %v9176_v31  ;;  %6811 = vmatprep.subr.bf16.mxu1 %v9179_v16  ;;  %v9261_v31 = vld [vmem:[%s9943_s11 + $0x12e8] ss:$16 sps:$4 sm:$0xff]   ;;  %v9266_v16 = vld [vmem:[%s9943_s11 + $0x1304] ss:$16 sps:$4 sm:$0xff]  }
 0x26a   : > { %6238 = vmatpush1.bf16.msra.mxu0 %v9174_v32  ;;  %6812 = vmatpush1.bf16.msra.mxu1 %v9177_v33  ;;  %v9269_v32 = vld [vmem:[%s9943_s11 + $0x130c] ss:$16 sps:$4 sm:$0xff]   ;;  %v9264_v33 = vld [vmem:[%s9943_s11 + $0x1300] ss:$16 sps:$4 sm:$0xff]  }
 0x26b   : > { %6239 = vmatprep.subr.bf16.mxu0 %v9182_v34  ;;  %6813 = vmatprep.subr.bf16.mxu1 %v9185_v26  ;;  %v9267_v34 = vld [vmem:[%s9943_s11 + $0x1308] ss:$16 sps:$4 sm:$0xff]   ;;  %v9272_v26 = vld [vmem:[%s9943_s11 + $0x1324] ss:$16 sps:$4 sm:$0xff]  }
 0x26e   : > { %6240 = vmatpush1.bf16.msra.mxu0 %v9180_v35  ;;  %6814 = vmatpush1.bf16.msra.mxu1 %v9183_v37  ;;  %v9275_v35 = vld [vmem:[%s9943_s11 + $0x132c] ss:$16 sps:$4 sm:$0xff]   ;;  %v9270_v37 = vld [vmem:[%s9943_s11 + $0x1320] ss:$16 sps:$4 sm:$0xff]  }
 0x26f   : > { %6241 = vmatprep.subr.bf16.mxu0 %v9188_v38  ;;  %6815 = vmatprep.subr.bf16.mxu1 %v9191_v40  ;;  %v9273_v38 = vld [vmem:[%s9943_s11 + $0x1328] ss:$16 sps:$4 sm:$0xff]   ;;  %v9278_v40 = vld [vmem:[%s9943_s11 + $0x1344] ss:$16 sps:$4 sm:$0xff]  }
 0x272   : > { %6242 = vmatpush1.bf16.msra.mxu0 %v9186_v41  ;;  %6816 = vmatpush1.bf16.msra.mxu1 %v9189_v22  ;;  %v9281_v41 = vld [vmem:[%s9943_s11 + $0x134c] ss:$16 sps:$4 sm:$0xff]   ;;  %v9276_v22 = vld [vmem:[%s9943_s11 + $0x1340] ss:$16 sps:$4 sm:$0xff]  }
 0x273   : > { %6243 = vmatprep.subr.bf16.mxu0 %v9194_v42  ;;  %6817 = vmatprep.subr.bf16.mxu1 %v9197_v43  ;;  %v9279_v42 = vld [vmem:[%s9943_s11 + $0x1348] ss:$16 sps:$4 sm:$0xff]   ;;  %v9284_v43 = vld [vmem:[%s9943_s11 + $0x1364] ss:$16 sps:$4 sm:$0xff]  }
 0x276   : > { %6244 = vmatpush1.bf16.msra.mxu0 %v9192_v45  ;;  %6818 = vmatpush1.bf16.msra.mxu1 %v9195_v46  ;;  %v9287_v45 = vld [vmem:[%s9943_s11 + $0x136c] ss:$16 sps:$4 sm:$0xff]   ;;  %v9282_v46 = vld [vmem:[%s9943_s11 + $0x1360] ss:$16 sps:$4 sm:$0xff]  }
 0x277   : > { %6245 = vmatprep.subr.bf16.mxu0 %v9200_v47  ;;  %6819 = vmatprep.subr.bf16.mxu1 %v9203_v48  ;;  %v9285_v47 = vld [vmem:[%s9943_s11 + $0x1368] ss:$16 sps:$4 sm:$0xff]   ;;  %v9290_v48 = vld [vmem:[%s9943_s11 + $0x1384] ss:$16 sps:$4 sm:$0xff]  }
 0x27a   : > { %6246 = vmatpush1.bf16.msra.mxu0 %v9198_v51  ;;  %6820 = vmatpush1.bf16.msra.mxu1 %v9201_v54  ;;  %v9293_v51 = vld [vmem:[%s9943_s11 + $0x138c] ss:$16 sps:$4 sm:$0xff]   ;;  %v9288_v54 = vld [vmem:[%s9943_s11 + $0x1380] ss:$16 sps:$4 sm:$0xff]  }
 0x27b   : > { %6247 = vmatprep.subr.bf16.mxu0 %v9206_v55  ;;  %6821 = vmatprep.subr.bf16.mxu1 %v9209_v56  ;;  %v9291_v55 = vld [vmem:[%s9943_s11 + $0x1388] ss:$16 sps:$4 sm:$0xff]   ;;  %v9296_v56 = vld [vmem:[%s9943_s11 + $0x13a4] ss:$16 sps:$4 sm:$0xff]  }
 0x27e   : > { %6248 = vmatpush1.bf16.msra.mxu0 %v9204_v39  ;;  %6822 = vmatpush1.bf16.msra.mxu1 %v9207_v57  ;;  %v9299_v39 = vld [vmem:[%s9943_s11 + $0x13ac] ss:$16 sps:$4 sm:$0xff]   ;;  %v9294_v57 = vld [vmem:[%s9943_s11 + $0x13a0] ss:$16 sps:$4 sm:$0xff]  }
 0x27f   : > { %6249 = vmatprep.subr.bf16.mxu0 %v9212_v58  ;;  %6823 = vmatprep.subr.bf16.mxu1 %v9215_v59  ;;  %v9297_v58 = vld [vmem:[%s9943_s11 + $0x13a8] ss:$16 sps:$4 sm:$0xff]   ;;  %v9302_v59 = vld [vmem:[%s9943_s11 + $0x13c4] ss:$16 sps:$4 sm:$0xff]  }
 0x282   : > { %6250 = vmatpush1.bf16.msra.mxu0 %v9210_v49  ;;  %6824 = vmatpush1.bf16.msra.mxu1 %v9213_v60  ;;  %v9305_v49 = vld [vmem:[%s9943_s11 + $0x13cc] ss:$16 sps:$4 sm:$0xff]   ;;  %v1310_v60 = vcombine.high %v10559_v36, %v10559_v36  ;;  %v9306_v36 = vld [vmem:[%s9943_s11 + $0x13e0] ss:$16 sps:$4 sm:$0xff]  }
 0x283   : > { %6260 = vmatprep.subr.bf16.mxu0 %v9218_v61  ;;  %6834 = vmatprep.subr.bf16.mxu1 %v9221_v14  ;;  %v9300_v61 = vld [vmem:[%s9943_s11 + $0x13c0] ss:$16 sps:$4 sm:$0xff]   ;;  %v9303_v14 = vld [vmem:[%s9943_s11 + $0x13c8] ss:$16 sps:$4 sm:$0xff]  }
 0x285   : > { %6252 = vmatmul.mubr.bf16.vlgmr.msra.gmra.mrb[0].mxu0 %v10648_v63  ;;  %6826 = vmatmul.mubr.bf16.vlgmr.msra.gmra.mrb[0].mxu1 %v10648_v63 }
 0x286   : > { %6261 = vmatpush1.bf16.msra.mxu0 %v9216_v0  ;;  %6835 = vmatpush1.bf16.msra.mxu1 %v9219_v1  ;;  %v9308_v0 = vld [vmem:[%s9943_s11 + $0x13e4] ss:$16 sps:$4 sm:$0xff]   ;;  %v9311_v1 = vld [vmem:[%s9943_s11 + $0x13ec] ss:$16 sps:$4 sm:$0xff]  }
 0x287   : > { %6262 = vmatprep.subr.bf16.mxu0 %v9224_v2  ;;  %6836 = vmatprep.subr.bf16.mxu1 %v9227_v3  ;;  %v10717_v2 = vrot.slane %v1310_v60, %v10020_v50  ;;  %v9309_v3 = vld [vmem:[%s9943_s11 + $0x13e8] ss:$16 sps:$4 sm:$0xff]  }
 0x288   : > { %6292 = vmatprep.mubr.bf16.mxu0 %v1357_v4  ;;  %6866 = vmatprep.mubr.bf16.mxu1 %v1357_v4  ;;  %v9314_v4 = vld [vmem:[%s9943_s11 + $0x1404] ss:$16 sps:$4 sm:$0xff]   ;;  %v9387_v60 = vld [vmem:[%s9943_s11 + $0x1588] ss:$16 sps:$4 sm:$0xff]  }
 0x28a   : > { %6263 = vmatpush1.bf16.msra.mxu0 %v9222_v52  ;;  %6837 = vmatpush1.bf16.msra.mxu1 %v9225_v5  ;;  %v9317_v52 = vld [vmem:[%s9943_s11 + $0x140c] ss:$16 sps:$4 sm:$0xff]   ;;  %v1326_v5 = vcombine.high %v10717_v2, %v10717_v2 }
 0x28b   : > { %6264 = vmatprep.subr.bf16.mxu0 %v9230_v6  ;;  %6838 = vmatprep.subr.bf16.mxu1 %v9233_v7  ;;  %v1355_v6 = vcombine.high %v10648_v63, %v10648_v63  ;;  %v9312_v7 = vld [vmem:[%s9943_s11 + $0x1400] ss:$16 sps:$4 sm:$0xff]  }
 0x28c   : > { %v9318_v63 = vld [vmem:[%s9943_s11 + $0x1420] ss:$16 sps:$4 sm:$0xff]  }
 0x28e   : > { %6265 = vmatpush1.bf16.msra.mxu0 %v9228_v62  ;;  %6839 = vmatpush1.bf16.msra.mxu1 %v9231_v8  ;;  %v9315_v62 = vld [vmem:[%s9943_s11 + $0x1408] ss:$16 sps:$4 sm:$0xff]   ;;  %v9320_v8 = vld [vmem:[%s9943_s11 + $0x1424] ss:$16 sps:$4 sm:$0xff]  }
 0x28f   : > { %6266 = vmatprep.subr.bf16.mxu0 %v9236_v9  ;;  %6840 = vmatprep.subr.bf16.mxu1 %v9239_v10  ;;  %v9323_v9 = vld [vmem:[%s9943_s11 + $0x142c] ss:$16 sps:$4 sm:$0xff]   ;;  %v10732_v10 = vrot.slane %v1326_v5, %v10020_v50  ;;  %v9404_v5 = vld [vmem:[%s9943_s11 + $0x15e4] ss:$16 sps:$4 sm:$0xff]  }
 0x292   : > { %6267 = vmatpush1.bf16.msra.mxu0 %v9234_v11  ;;  %6841 = vmatpush1.bf16.msra.mxu1 %v9237_v12  ;;  %v9321_v11 = vld [vmem:[%s9943_s11 + $0x1428] ss:$16 sps:$4 sm:$0xff]   ;;  %v9326_v12 = vld [vmem:[%s9943_s11 + $0x1444] ss:$16 sps:$4 sm:$0xff]  }
 0x293   : > { %6268 = vmatprep.subr.bf16.mxu0 %v9242_v13  ;;  %6842 = vmatprep.subr.bf16.mxu1 %v9245_v15  ;;  %v9329_v13 = vld [vmem:[%s9943_s11 + $0x144c] ss:$16 sps:$4 sm:$0xff]   ;;  %v9324_v15 = vld [vmem:[%s9943_s11 + $0x1440] ss:$16 sps:$4 sm:$0xff]  }
 0x296   : > { %6269 = vmatpush1.bf16.msra.mxu0 %v9240_v17  ;;  %6843 = vmatpush1.bf16.msra.mxu1 %v9243_v53  ;;  %v9327_v17 = vld [vmem:[%s9943_s11 + $0x1448] ss:$16 sps:$4 sm:$0xff]   ;;  %v9332_v53 = vld [vmem:[%s9943_s11 + $0x1464] ss:$16 sps:$4 sm:$0xff]  }
 0x297   : > { %6270 = vmatprep.subr.bf16.mxu0 %v9248_v18  ;;  %6844 = vmatprep.subr.bf16.mxu1 %v9251_v19  ;;  %v9335_v18 = vld [vmem:[%s9943_s11 + $0x146c] ss:$16 sps:$4 sm:$0xff]   ;;  %v9330_v19 = vld [vmem:[%s9943_s11 + $0x1460] ss:$16 sps:$4 sm:$0xff]  }
 0x29a   : > { %6271 = vmatpush1.bf16.msra.mxu0 %v9246_v20  ;;  %6845 = vmatpush1.bf16.msra.mxu1 %v9249_v21  ;;  %v9333_v20 = vld [vmem:[%s9943_s11 + $0x1468] ss:$16 sps:$4 sm:$0xff]   ;;  %v9338_v21 = vld [vmem:[%s9943_s11 + $0x1484] ss:$16 sps:$4 sm:$0xff]  }
 0x29b   : > { %6272 = vmatprep.subr.bf16.mxu0 %v9254_v23  ;;  %6846 = vmatprep.subr.bf16.mxu1 %v9257_v24  ;;  %v9341_v23 = vld [vmem:[%s9943_s11 + $0x148c] ss:$16 sps:$4 sm:$0xff]   ;;  %v9336_v24 = vld [vmem:[%s9943_s11 + $0x1480] ss:$16 sps:$4 sm:$0xff]  }
 0x29e   : > { %6273 = vmatpush1.bf16.msra.mxu0 %v9252_v25  ;;  %6847 = vmatpush1.bf16.msra.mxu1 %v9255_v27  ;;  %v9339_v25 = vld [vmem:[%s9943_s11 + $0x1488] ss:$16 sps:$4 sm:$0xff]   ;;  %v9344_v27 = vld [vmem:[%s9943_s11 + $0x14a4] ss:$16 sps:$4 sm:$0xff]  }
 0x29f   : > { %6274 = vmatprep.subr.bf16.mxu0 %v9260_v28  ;;  %6848 = vmatprep.subr.bf16.mxu1 %v9263_v29  ;;  %v9347_v28 = vld [vmem:[%s9943_s11 + $0x14ac] ss:$16 sps:$4 sm:$0xff]   ;;  %v9342_v29 = vld [vmem:[%s9943_s11 + $0x14a0] ss:$16 sps:$4 sm:$0xff]  }
 0x2a2   : > { %6275 = vmatpush1.bf16.msra.mxu0 %v9258_v30  ;;  %6849 = vmatpush1.bf16.msra.mxu1 %v9261_v31  ;;  %v9345_v30 = vld [vmem:[%s9943_s11 + $0x14a8] ss:$16 sps:$4 sm:$0xff]   ;;  %v9350_v31 = vld [vmem:[%s9943_s11 + $0x14c4] ss:$16 sps:$4 sm:$0xff]  }
 0x2a3   : > { %6276 = vmatprep.subr.bf16.mxu0 %v9266_v16  ;;  %6850 = vmatprep.subr.bf16.mxu1 %v9269_v32  ;;  %v9353_v16 = vld [vmem:[%s9943_s11 + $0x14cc] ss:$16 sps:$4 sm:$0xff]   ;;  %v9348_v32 = vld [vmem:[%s9943_s11 + $0x14c0] ss:$16 sps:$4 sm:$0xff]  }
 0x2a6   : > { %6277 = vmatpush1.bf16.msra.mxu0 %v9264_v33  ;;  %6851 = vmatpush1.bf16.msra.mxu1 %v9267_v34  ;;  %v9351_v33 = vld [vmem:[%s9943_s11 + $0x14c8] ss:$16 sps:$4 sm:$0xff]   ;;  %v9356_v34 = vld [vmem:[%s9943_s11 + $0x14e4] ss:$16 sps:$4 sm:$0xff]  }
 0x2a7   : > { %6278 = vmatprep.subr.bf16.mxu0 %v9272_v26  ;;  %6852 = vmatprep.subr.bf16.mxu1 %v9275_v35  ;;  %v9359_v26 = vld [vmem:[%s9943_s11 + $0x14ec] ss:$16 sps:$4 sm:$0xff]   ;;  %v9354_v35 = vld [vmem:[%s9943_s11 + $0x14e0] ss:$16 sps:$4 sm:$0xff]  }
 0x2aa   : > { %6279 = vmatpush1.bf16.msra.mxu0 %v9270_v37  ;;  %6853 = vmatpush1.bf16.msra.mxu1 %v9273_v38  ;;  %v9357_v37 = vld [vmem:[%s9943_s11 + $0x14e8] ss:$16 sps:$4 sm:$0xff]   ;;  %v9362_v38 = vld [vmem:[%s9943_s11 + $0x1504] ss:$16 sps:$4 sm:$0xff]  }
 0x2ab   : > { %6280 = vmatprep.subr.bf16.mxu0 %v9278_v40  ;;  %6854 = vmatprep.subr.bf16.mxu1 %v9281_v41  ;;  %v9365_v40 = vld [vmem:[%s9943_s11 + $0x150c] ss:$16 sps:$4 sm:$0xff]   ;;  %v9360_v41 = vld [vmem:[%s9943_s11 + $0x1500] ss:$16 sps:$4 sm:$0xff]  }
 0x2ae   : > { %6281 = vmatpush1.bf16.msra.mxu0 %v9276_v22  ;;  %6855 = vmatpush1.bf16.msra.mxu1 %v9279_v42  ;;  %v9363_v22 = vld [vmem:[%s9943_s11 + $0x1508] ss:$16 sps:$4 sm:$0xff]   ;;  %v9368_v42 = vld [vmem:[%s9943_s11 + $0x1524] ss:$16 sps:$4 sm:$0xff]  }
 0x2af   : > { %6282 = vmatprep.subr.bf16.mxu0 %v9284_v43  ;;  %6856 = vmatprep.subr.bf16.mxu1 %v9287_v45  ;;  %v9371_v43 = vld [vmem:[%s9943_s11 + $0x152c] ss:$16 sps:$4 sm:$0xff]   ;;  %v9366_v45 = vld [vmem:[%s9943_s11 + $0x1520] ss:$16 sps:$4 sm:$0xff]  }
 0x2b2   : > { %6283 = vmatpush1.bf16.msra.mxu0 %v9282_v46  ;;  %6857 = vmatpush1.bf16.msra.mxu1 %v9285_v47  ;;  %v9369_v46 = vld [vmem:[%s9943_s11 + $0x1528] ss:$16 sps:$4 sm:$0xff]   ;;  %v9374_v47 = vld [vmem:[%s9943_s11 + $0x1544] ss:$16 sps:$4 sm:$0xff]  }
 0x2b3   : > { %6284 = vmatprep.subr.bf16.mxu0 %v9290_v48  ;;  %6858 = vmatprep.subr.bf16.mxu1 %v9293_v51  ;;  %v9377_v48 = vld [vmem:[%s9943_s11 + $0x154c] ss:$16 sps:$4 sm:$0xff]   ;;  %v9372_v51 = vld [vmem:[%s9943_s11 + $0x1540] ss:$16 sps:$4 sm:$0xff]  }
 0x2b6   : > { %6285 = vmatpush1.bf16.msra.mxu0 %v9288_v54  ;;  %6859 = vmatpush1.bf16.msra.mxu1 %v9291_v55  ;;  %v9375_v54 = vld [vmem:[%s9943_s11 + $0x1548] ss:$16 sps:$4 sm:$0xff]   ;;  %v9380_v55 = vld [vmem:[%s9943_s11 + $0x1564] ss:$16 sps:$4 sm:$0xff]  }
 0x2b7   : > { %6286 = vmatprep.subr.bf16.mxu0 %v9296_v56  ;;  %6860 = vmatprep.subr.bf16.mxu1 %v9299_v39  ;;  %v9383_v56 = vld [vmem:[%s9943_s11 + $0x156c] ss:$16 sps:$4 sm:$0xff]   ;;  %v9378_v39 = vld [vmem:[%s9943_s11 + $0x1560] ss:$16 sps:$4 sm:$0xff]  }
 0x2ba   : > { %6287 = vmatpush1.bf16.msra.mxu0 %v9294_v57  ;;  %6861 = vmatpush1.bf16.msra.mxu1 %v9297_v58  ;;  %v9381_v57 = vld [vmem:[%s9943_s11 + $0x1568] ss:$16 sps:$4 sm:$0xff]   ;;  %v9386_v58 = vld [vmem:[%s9943_s11 + $0x1584] ss:$16 sps:$4 sm:$0xff]  }
 0x2bb   : > { %6288 = vmatprep.subr.bf16.mxu0 %v9302_v59  ;;  %6862 = vmatprep.subr.bf16.mxu1 %v9305_v49  ;;  %v9389_v59 = vld [vmem:[%s9943_s11 + $0x158c] ss:$16 sps:$4 sm:$0xff]   ;;  %v9384_v49 = vld [vmem:[%s9943_s11 + $0x1580] ss:$16 sps:$4 sm:$0xff]  }
 0x2be   : > { %6289 = vmatpush1.bf16.msra.mxu0 %v9300_v61  ;;  %6863 = vmatpush1.bf16.msra.mxu1 %v9303_v14  ;;  %v9392_v61 = vld [vmem:[%s9943_s11 + $0x15a4] ss:$16 sps:$4 sm:$0xff]   ;;  %v9395_v14 = vld [vmem:[%s9943_s11 + $0x15ac] ss:$16 sps:$4 sm:$0xff]  }
 0x2bf   : > { %6290 = vmatprep.subr.bf16.mxu0 %v9308_v0  ;;  %6864 = vmatprep.subr.bf16.mxu1 %v9311_v1  ;;  %v9390_v0 = vld [vmem:[%s9943_s11 + $0x15a0] ss:$16 sps:$4 sm:$0xff]   ;;  %v9393_v1 = vld [vmem:[%s9943_s11 + $0x15a8] ss:$16 sps:$4 sm:$0xff]  }
 0x2c2   : > { %6291 = vmatpush1.bf16.msra.mxu0 %v9306_v36  ;;  %6865 = vmatpush1.bf16.msra.mxu1 %v9309_v3  ;;  %v9398_v36 = vld [vmem:[%s9943_s11 + $0x15c4] ss:$16 sps:$4 sm:$0xff]   ;;  %v9401_v3 = vld [vmem:[%s9943_s11 + $0x15cc] ss:$16 sps:$4 sm:$0xff]  }
 0x2c3   : > { %6301 = vmatprep.subr.bf16.mxu0 %v9314_v4  ;;  %6875 = vmatprep.subr.bf16.mxu1 %v9317_v52  ;;  %v9396_v4 = vld [vmem:[%s9943_s11 + $0x15c0] ss:$16 sps:$4 sm:$0xff]   ;;  %v9399_v52 = vld [vmem:[%s9943_s11 + $0x15c8] ss:$16 sps:$4 sm:$0xff]  }
 0x2c5   : > { %6293 = vmatmul.mubr.bf16.vlgmr.msra.gmra.mrb[0].mxu0 %v1355_v6  ;;  %6867 = vmatmul.mubr.bf16.vlgmr.msra.gmra.mrb[0].mxu1 %v1355_v6  ;;  %v9407_v6 = vld [vmem:[%s9943_s11 + $0x15ec] ss:$16 sps:$4 sm:$0xff]  }
 0x2c6   : > { %6302 = vmatpush1.bf16.msra.mxu0 %v9312_v7  ;;  %6876 = vmatpush1.bf16.msra.mxu1 %v9315_v62  ;;  %v9402_v7 = vld [vmem:[%s9943_s11 + $0x15e0] ss:$16 sps:$4 sm:$0xff]   ;;  %v9405_v62 = vld [vmem:[%s9943_s11 + $0x15e8] ss:$16 sps:$4 sm:$0xff]  }
 0x2c7   : > { %6303 = vmatprep.subr.bf16.mxu0 %v9320_v8  ;;  %6877 = vmatprep.subr.bf16.mxu1 %v9323_v9  ;;  %v9411_v8 = vld [vmem:[%s9943_s11 + $0x1604] ss:$16 sps:$4 sm:$0xff]   ;;  %v9414_v9 = vld [vmem:[%s9943_s11 + $0x160c] ss:$16 sps:$4 sm:$0xff]  }
 0x2c8   : > { %6333 = vmatprep.mubr.bf16.mxu0 %v10732_v10  ;;  %6907 = vmatprep.mubr.bf16.mxu1 %v10732_v10 }
 0x2ca   : > { %6304 = vmatpush1.bf16.msra.mxu0 %v9318_v63  ;;  %6878 = vmatpush1.bf16.msra.mxu1 %v9321_v11  ;;  %v10798_v63 = vrot.slane %v10717_v2, %v10020_v50  ;;  %v9409_v11 = vld [vmem:[%s9943_s11 + $0x1600] ss:$16 sps:$4 sm:$0xff]  }
 0x2cb   : > { %6305 = vmatprep.subr.bf16.mxu0 %v9326_v12  ;;  %6879 = vmatprep.subr.bf16.mxu1 %v9329_v13  ;;  %v9412_v12 = vld [vmem:[%s9943_s11 + $0x1608] ss:$16 sps:$4 sm:$0xff]   ;;  %v9417_v13 = vld [vmem:[%s9943_s11 + $0x1624] ss:$16 sps:$4 sm:$0xff]   ;;  %v9415_v2 = vld [vmem:[%s9943_s11 + $0x1620] ss:$16 sps:$4 sm:$0xff]  }
 0x2ce   : > { %6306 = vmatpush1.bf16.msra.mxu0 %v9324_v15  ;;  %6880 = vmatpush1.bf16.msra.mxu1 %v9327_v17  ;;  %v9420_v15 = vld [vmem:[%s9943_s11 + $0x162c] ss:$16 sps:$4 sm:$0xff]   ;;  %v1358_v17 = vcombine.high %v10732_v10, %v10732_v10  ;;  %v9421_v10 = vld [vmem:[%s9943_s11 + $0x1640] ss:$16 sps:$4 sm:$0xff]  }
 0x2cf   : > { %6307 = vmatprep.subr.bf16.mxu0 %v9332_v53  ;;  %6881 = vmatprep.subr.bf16.mxu1 %v9335_v18  ;;  %v9418_v53 = vld [vmem:[%s9943_s11 + $0x1628] ss:$16 sps:$4 sm:$0xff]   ;;  %v9423_v18 = vld [vmem:[%s9943_s11 + $0x1644] ss:$16 sps:$4 sm:$0xff]  }
 0x2d2   : > { %6308 = vmatpush1.bf16.msra.mxu0 %v9330_v19  ;;  %6882 = vmatpush1.bf16.msra.mxu1 %v9333_v20  ;;  %v9426_v19 = vld [vmem:[%s9943_s11 + $0x164c] ss:$16 sps:$4 sm:$0xff]   ;;  %v9424_v20 = vld [vmem:[%s9943_s11 + $0x1648] ss:$16 sps:$4 sm:$0xff]  }
 0x2d3   : > { %6309 = vmatprep.subr.bf16.mxu0 %v9338_v21  ;;  %6883 = vmatprep.subr.bf16.mxu1 %v9341_v23  ;;  %v9429_v21 = vld [vmem:[%s9943_s11 + $0x1664] ss:$16 sps:$4 sm:$0xff]   ;;  %v9432_v23 = vld [vmem:[%s9943_s11 + $0x166c] ss:$16 sps:$4 sm:$0xff]  }
 0x2d6   : > { %6310 = vmatpush1.bf16.msra.mxu0 %v9336_v24  ;;  %6884 = vmatpush1.bf16.msra.mxu1 %v9339_v25  ;;  %v9427_v24 = vld [vmem:[%s9943_s11 + $0x1660] ss:$16 sps:$4 sm:$0xff]   ;;  %v9430_v25 = vld [vmem:[%s9943_s11 + $0x1668] ss:$16 sps:$4 sm:$0xff]  }
 0x2d7   : > { %6311 = vmatprep.subr.bf16.mxu0 %v9344_v27  ;;  %6885 = vmatprep.subr.bf16.mxu1 %v9347_v28  ;;  %v9435_v27 = vld [vmem:[%s9943_s11 + $0x1684] ss:$16 sps:$4 sm:$0xff]   ;;  %v9438_v28 = vld [vmem:[%s9943_s11 + $0x168c] ss:$16 sps:$4 sm:$0xff]  }
 0x2da   : > { %6312 = vmatpush1.bf16.msra.mxu0 %v9342_v29  ;;  %6886 = vmatpush1.bf16.msra.mxu1 %v9345_v30  ;;  %v9433_v29 = vld [vmem:[%s9943_s11 + $0x1680] ss:$16 sps:$4 sm:$0xff]   ;;  %v9436_v30 = vld [vmem:[%s9943_s11 + $0x1688] ss:$16 sps:$4 sm:$0xff]  }
 0x2db   : > { %6313 = vmatprep.subr.bf16.mxu0 %v9350_v31  ;;  %6887 = vmatprep.subr.bf16.mxu1 %v9353_v16  ;;  %v9441_v31 = vld [vmem:[%s9943_s11 + $0x16a4] ss:$16 sps:$4 sm:$0xff]   ;;  %v9444_v16 = vld [vmem:[%s9943_s11 + $0x16ac] ss:$16 sps:$4 sm:$0xff]  }
 0x2de   : > { %6314 = vmatpush1.bf16.msra.mxu0 %v9348_v32  ;;  %6888 = vmatpush1.bf16.msra.mxu1 %v9351_v33  ;;  %v9439_v32 = vld [vmem:[%s9943_s11 + $0x16a0] ss:$16 sps:$4 sm:$0xff]   ;;  %v9442_v33 = vld [vmem:[%s9943_s11 + $0x16a8] ss:$16 sps:$4 sm:$0xff]  }
 0x2df   : > { %6315 = vmatprep.subr.bf16.mxu0 %v9356_v34  ;;  %6889 = vmatprep.subr.bf16.mxu1 %v9359_v26  ;;  %v9447_v34 = vld [vmem:[%s9943_s11 + $0x16c4] ss:$16 sps:$4 sm:$0xff]   ;;  %v9450_v26 = vld [vmem:[%s9943_s11 + $0x16cc] ss:$16 sps:$4 sm:$0xff]  }
 0x2e2   : > { %6316 = vmatpush1.bf16.msra.mxu0 %v9354_v35  ;;  %6890 = vmatpush1.bf16.msra.mxu1 %v9357_v37  ;;  %v9445_v35 = vld [vmem:[%s9943_s11 + $0x16c0] ss:$16 sps:$4 sm:$0xff]   ;;  %v9448_v37 = vld [vmem:[%s9943_s11 + $0x16c8] ss:$16 sps:$4 sm:$0xff]  }
 0x2e3   : > { %6317 = vmatprep.subr.bf16.mxu0 %v9362_v38  ;;  %6891 = vmatprep.subr.bf16.mxu1 %v9365_v40  ;;  %v9453_v38 = vld [vmem:[%s9943_s11 + $0x16e4] ss:$16 sps:$4 sm:$0xff]   ;;  %v9456_v40 = vld [vmem:[%s9943_s11 + $0x16ec] ss:$16 sps:$4 sm:$0xff]  }
 0x2e6   : > { %6318 = vmatpush1.bf16.msra.mxu0 %v9360_v41  ;;  %6892 = vmatpush1.bf16.msra.mxu1 %v9363_v22  ;;  %v9451_v41 = vld [vmem:[%s9943_s11 + $0x16e0] ss:$16 sps:$4 sm:$0xff]   ;;  %v9454_v22 = vld [vmem:[%s9943_s11 + $0x16e8] ss:$16 sps:$4 sm:$0xff]  }
 0x2e7   : > { %6319 = vmatprep.subr.bf16.mxu0 %v9368_v42  ;;  %6893 = vmatprep.subr.bf16.mxu1 %v9371_v43  ;;  %v9459_v42 = vld [vmem:[%s9943_s11 + $0x1704] ss:$16 sps:$4 sm:$0xff]   ;;  %v9462_v43 = vld [vmem:[%s9943_s11 + $0x170c] ss:$16 sps:$4 sm:$0xff]  }
 0x2ea   : > { %6320 = vmatpush1.bf16.msra.mxu0 %v9366_v45  ;;  %6894 = vmatpush1.bf16.msra.mxu1 %v9369_v46  ;;  %v9457_v45 = vld [vmem:[%s9943_s11 + $0x1700] ss:$16 sps:$4 sm:$0xff]   ;;  %v9460_v46 = vld [vmem:[%s9943_s11 + $0x1708] ss:$16 sps:$4 sm:$0xff]  }
 0x2eb   : > { %6321 = vmatprep.subr.bf16.mxu0 %v9374_v47  ;;  %6895 = vmatprep.subr.bf16.mxu1 %v9377_v48  ;;  %v9465_v47 = vld [vmem:[%s9943_s11 + $0x1724] ss:$16 sps:$4 sm:$0xff]   ;;  %v9468_v48 = vld [vmem:[%s9943_s11 + $0x172c] ss:$16 sps:$4 sm:$0xff]  }
 0x2ee   : > { %6322 = vmatpush1.bf16.msra.mxu0 %v9372_v51  ;;  %6896 = vmatpush1.bf16.msra.mxu1 %v9375_v54  ;;  %v9463_v51 = vld [vmem:[%s9943_s11 + $0x1720] ss:$16 sps:$4 sm:$0xff]   ;;  %v9466_v54 = vld [vmem:[%s9943_s11 + $0x1728] ss:$16 sps:$4 sm:$0xff]  }
 0x2ef   : > { %6323 = vmatprep.subr.bf16.mxu0 %v9380_v55  ;;  %6897 = vmatprep.subr.bf16.mxu1 %v9383_v56  ;;  %v9471_v55 = vld [vmem:[%s9943_s11 + $0x1744] ss:$16 sps:$4 sm:$0xff]   ;;  %v9474_v56 = vld [vmem:[%s9943_s11 + $0x174c] ss:$16 sps:$4 sm:$0xff]  }
 0x2f2   : > { %6324 = vmatpush1.bf16.msra.mxu0 %v9378_v39  ;;  %6898 = vmatpush1.bf16.msra.mxu1 %v9381_v57  ;;  %v9469_v39 = vld [vmem:[%s9943_s11 + $0x1740] ss:$16 sps:$4 sm:$0xff]   ;;  %v9472_v57 = vld [vmem:[%s9943_s11 + $0x1748] ss:$16 sps:$4 sm:$0xff]  }
 0x2f3   : > { %6325 = vmatprep.subr.bf16.mxu0 %v9386_v58  ;;  %6899 = vmatprep.subr.bf16.mxu1 %v9389_v59  ;;  %v9477_v58 = vld [vmem:[%s9943_s11 + $0x1764] ss:$16 sps:$4 sm:$0xff]   ;;  %v9480_v59 = vld [vmem:[%s9943_s11 + $0x176c] ss:$16 sps:$4 sm:$0xff]  }
 0x2f6   : > { %6326 = vmatpush1.bf16.msra.mxu0 %v9384_v49  ;;  %6900 = vmatpush1.bf16.msra.mxu1 %v9387_v60  ;;  %v9475_v49 = vld [vmem:[%s9943_s11 + $0x1760] ss:$16 sps:$4 sm:$0xff]   ;;  %v9478_v60 = vld [vmem:[%s9943_s11 + $0x1768] ss:$16 sps:$4 sm:$0xff]  }
 0x2f7   : > { %6327 = vmatprep.subr.bf16.mxu0 %v9392_v61  ;;  %6901 = vmatprep.subr.bf16.mxu1 %v9395_v14  ;;  %v9483_v61 = vld [vmem:[%s9943_s11 + $0x1784] ss:$16 sps:$4 sm:$0xff]   ;;  %v9486_v14 = vld [vmem:[%s9943_s11 + $0x178c] ss:$16 sps:$4 sm:$0xff]  }
 0x2fa   : > { %6328 = vmatpush1.bf16.msra.mxu0 %v9390_v0  ;;  %6902 = vmatpush1.bf16.msra.mxu1 %v9393_v1  ;;  %v9481_v0 = vld [vmem:[%s9943_s11 + $0x1780] ss:$16 sps:$4 sm:$0xff]   ;;  %v9484_v1 = vld [vmem:[%s9943_s11 + $0x1788] ss:$16 sps:$4 sm:$0xff]  }
 0x2fb   : > { %6329 = vmatprep.subr.bf16.mxu0 %v9398_v36  ;;  %6903 = vmatprep.subr.bf16.mxu1 %v9401_v3  ;;  %v9489_v36 = vld [vmem:[%s9943_s11 + $0x17a4] ss:$16 sps:$4 sm:$0xff]   ;;  %v9492_v3 = vld [vmem:[%s9943_s11 + $0x17ac] ss:$16 sps:$4 sm:$0xff]  }
 0x2fe   : > { %6330 = vmatpush1.bf16.msra.mxu0 %v9396_v4  ;;  %6904 = vmatpush1.bf16.msra.mxu1 %v9399_v52  ;;  %v9487_v4 = vld [vmem:[%s9943_s11 + $0x17a0] ss:$16 sps:$4 sm:$0xff]   ;;  %v9490_v52 = vld [vmem:[%s9943_s11 + $0x17a8] ss:$16 sps:$4 sm:$0xff]  }
 0x2ff   : > { %6331 = vmatprep.subr.bf16.mxu0 %v9404_v5  ;;  %6905 = vmatprep.subr.bf16.mxu1 %v9407_v6  ;;  %v9495_v5 = vld [vmem:[%s9943_s11 + $0x17c4] ss:$16 sps:$4 sm:$0xff]   ;;  %v9498_v6 = vld [vmem:[%s9943_s11 + $0x17cc] ss:$16 sps:$4 sm:$0xff]  }
 0x302   : > { %6332 = vmatpush1.bf16.msra.mxu0 %v9402_v7  ;;  %6906 = vmatpush1.bf16.msra.mxu1 %v9405_v62  ;;  %v9493_v7 = vld [vmem:[%s9943_s11 + $0x17c0] ss:$16 sps:$4 sm:$0xff]   ;;  %v9496_v62 = vld [vmem:[%s9943_s11 + $0x17c8] ss:$16 sps:$4 sm:$0xff]  }
 0x303   : > { %6342 = vmatprep.subr.bf16.mxu0 %v9411_v8  ;;  %6916 = vmatprep.subr.bf16.mxu1 %v9414_v9  ;;  %v9501_v8 = vld [vmem:[%s9943_s11 + $0x17e4] ss:$16 sps:$4 sm:$0xff]   ;;  %v9504_v9 = vld [vmem:[%s9943_s11 + $0x17ec] ss:$16 sps:$4 sm:$0xff]  }
 0x305   : > { %6334 = vmatmul.mubr.bf16.vlgmr.msra.gmra.mrb[0].mxu0 %v10798_v63  ;;  %6908 = vmatmul.mubr.bf16.vlgmr.msra.gmra.mrb[0].mxu1 %v10798_v63 }
 0x306   : > { %6343 = vmatpush1.bf16.msra.mxu0 %v9409_v11  ;;  %6917 = vmatpush1.bf16.msra.mxu1 %v9412_v12  ;;  %v10865_v11 = vld.sshfl [vmem:[%s9964_s19 + $0x18] sm:$0x33 pattern:$0x75316420] }
 0x307   : > { %6344 = vmatprep.subr.bf16.mxu0 %v9417_v13  ;;  %6918 = vmatprep.subr.bf16.mxu1 %v9420_v15  ;;  %v9499_v12 = vld [vmem:[%s9943_s11 + $0x17e0] ss:$16 sps:$4 sm:$0xff]   ;;  %v9502_v13 = vld [vmem:[%s9943_s11 + $0x17e8] ss:$16 sps:$4 sm:$0xff]   ;;  %v9507_v15 = vld [vmem:[%s9943_s11 + $0x1804] ss:$16 sps:$4 sm:$0xff]  }
 0x308   : > { %6374 = vmatprep.mubr.bf16.mxu0 %v1358_v17  ;;  %6948 = vmatprep.mubr.bf16.mxu1 %v1358_v17  ;;  %v9510_v17 = vld [vmem:[%s9943_s11 + $0x180c] ss:$16 sps:$4 sm:$0xff]  }
 0x30a   : > { %6345 = vmatpush1.bf16.msra.mxu0 %v9415_v2  ;;  %6919 = vmatpush1.bf16.msra.mxu1 %v9418_v53  ;;  %v1366_v2 = vcombine.high %v10865_v11, %v10865_v11  ;;  %v1356_v53 = vcombine.high %v10798_v63, %v10798_v63  ;;  %v9511_v63 = vld [vmem:[%s9943_s11 + $0x1820] ss:$16 sps:$4 sm:$0xff]  }
 0x30b   : > { %6346 = vmatprep.subr.bf16.mxu0 %v9423_v18  ;;  %6920 = vmatprep.subr.bf16.mxu1 %v9426_v19  ;;  %v9505_v18 = vld [vmem:[%s9943_s11 + $0x1800] ss:$16 sps:$4 sm:$0xff]   ;;  %v9508_v19 = vld [vmem:[%s9943_s11 + $0x1808] ss:$16 sps:$4 sm:$0xff]  }
 0x30e   : > { %6347 = vmatpush1.bf16.msra.mxu0 %v9421_v10  ;;  %6921 = vmatpush1.bf16.msra.mxu1 %v9424_v20  ;;  %v9513_v10 = vld [vmem:[%s9943_s11 + $0x1824] ss:$16 sps:$4 sm:$0xff]   ;;  %v9516_v20 = vld [vmem:[%s9943_s11 + $0x182c] ss:$16 sps:$4 sm:$0xff]  }
 0x30f   : > { %6348 = vmatprep.subr.bf16.mxu0 %v9429_v21  ;;  %6922 = vmatprep.subr.bf16.mxu1 %v9432_v23  ;;  %v10880_v21 = vrot.slane %v1366_v2, %v10020_v50  ;;  %v9514_v23 = vld [vmem:[%s9943_s11 + $0x1828] ss:$16 sps:$4 sm:$0xff]   ;;  %v9597_v2 = vld [vmem:[%s9943_s11 + $0x19e4] ss:$16 sps:$4 sm:$0xff]  }
 0x312   : > { %6349 = vmatpush1.bf16.msra.mxu0 %v9427_v24  ;;  %6923 = vmatpush1.bf16.msra.mxu1 %v9430_v25  ;;  %v9519_v24 = vld [vmem:[%s9943_s11 + $0x1844] ss:$16 sps:$4 sm:$0xff]   ;;  %v9522_v25 = vld [vmem:[%s9943_s11 + $0x184c] ss:$16 sps:$4 sm:$0xff]  }
 0x313   : > { %6350 = vmatprep.subr.bf16.mxu0 %v9435_v27  ;;  %6924 = vmatprep.subr.bf16.mxu1 %v9438_v28  ;;  %v9517_v27 = vld [vmem:[%s9943_s11 + $0x1840] ss:$16 sps:$4 sm:$0xff]   ;;  %v9520_v28 = vld [vmem:[%s9943_s11 + $0x1848] ss:$16 sps:$4 sm:$0xff]  }
 0x316   : > { %6351 = vmatpush1.bf16.msra.mxu0 %v9433_v29  ;;  %6925 = vmatpush1.bf16.msra.mxu1 %v9436_v30  ;;  %v9525_v29 = vld [vmem:[%s9943_s11 + $0x1864] ss:$16 sps:$4 sm:$0xff]   ;;  %v9528_v30 = vld [vmem:[%s9943_s11 + $0x186c] ss:$16 sps:$4 sm:$0xff]  }
 0x317   : > { %6352 = vmatprep.subr.bf16.mxu0 %v9441_v31  ;;  %6926 = vmatprep.subr.bf16.mxu1 %v9444_v16  ;;  %v9523_v31 = vld [vmem:[%s9943_s11 + $0x1860] ss:$16 sps:$4 sm:$0xff]   ;;  %v9526_v16 = vld [vmem:[%s9943_s11 + $0x1868] ss:$16 sps:$4 sm:$0xff]  }
 0x31a   : > { %6353 = vmatpush1.bf16.msra.mxu0 %v9439_v32  ;;  %6927 = vmatpush1.bf16.msra.mxu1 %v9442_v33  ;;  %v9531_v32 = vld [vmem:[%s9943_s11 + $0x1884] ss:$16 sps:$4 sm:$0xff]   ;;  %v9534_v33 = vld [vmem:[%s9943_s11 + $0x188c] ss:$16 sps:$4 sm:$0xff]  }
 0x31b   : > { %6354 = vmatprep.subr.bf16.mxu0 %v9447_v34  ;;  %6928 = vmatprep.subr.bf16.mxu1 %v9450_v26  ;;  %v9529_v34 = vld [vmem:[%s9943_s11 + $0x1880] ss:$16 sps:$4 sm:$0xff]   ;;  %v9532_v26 = vld [vmem:[%s9943_s11 + $0x1888] ss:$16 sps:$4 sm:$0xff]  }
 0x31e   : > { %6355 = vmatpush1.bf16.msra.mxu0 %v9445_v35  ;;  %6929 = vmatpush1.bf16.msra.mxu1 %v9448_v37  ;;  %v9537_v35 = vld [vmem:[%s9943_s11 + $0x18a4] ss:$16 sps:$4 sm:$0xff]   ;;  %v9540_v37 = vld [vmem:[%s9943_s11 + $0x18ac] ss:$16 sps:$4 sm:$0xff]  }
 0x31f   : > { %6356 = vmatprep.subr.bf16.mxu0 %v9453_v38  ;;  %6930 = vmatprep.subr.bf16.mxu1 %v9456_v40  ;;  %v9535_v38 = vld [vmem:[%s9943_s11 + $0x18a0] ss:$16 sps:$4 sm:$0xff]   ;;  %v9538_v40 = vld [vmem:[%s9943_s11 + $0x18a8] ss:$16 sps:$4 sm:$0xff]  }
 0x322   : > { %6357 = vmatpush1.bf16.msra.mxu0 %v9451_v41  ;;  %6931 = vmatpush1.bf16.msra.mxu1 %v9454_v22  ;;  %v9543_v41 = vld [vmem:[%s9943_s11 + $0x18c4] ss:$16 sps:$4 sm:$0xff]   ;;  %v9546_v22 = vld [vmem:[%s9943_s11 + $0x18cc] ss:$16 sps:$4 sm:$0xff]  }
 0x323   : > { %6358 = vmatprep.subr.bf16.mxu0 %v9459_v42  ;;  %6932 = vmatprep.subr.bf16.mxu1 %v9462_v43  ;;  %v9541_v42 = vld [vmem:[%s9943_s11 + $0x18c0] ss:$16 sps:$4 sm:$0xff]   ;;  %v9544_v43 = vld [vmem:[%s9943_s11 + $0x18c8] ss:$16 sps:$4 sm:$0xff]  }
 0x326   : > { %6359 = vmatpush1.bf16.msra.mxu0 %v9457_v45  ;;  %6933 = vmatpush1.bf16.msra.mxu1 %v9460_v46  ;;  %v9549_v45 = vld [vmem:[%s9943_s11 + $0x18e4] ss:$16 sps:$4 sm:$0xff]   ;;  %v9552_v46 = vld [vmem:[%s9943_s11 + $0x18ec] ss:$16 sps:$4 sm:$0xff]  }
 0x327   : > { %6360 = vmatprep.subr.bf16.mxu0 %v9465_v47  ;;  %6934 = vmatprep.subr.bf16.mxu1 %v9468_v48  ;;  %v9547_v47 = vld [vmem:[%s9943_s11 + $0x18e0] ss:$16 sps:$4 sm:$0xff]   ;;  %v9550_v48 = vld [vmem:[%s9943_s11 + $0x18e8] ss:$16 sps:$4 sm:$0xff]  }
 0x32a   : > { %6361 = vmatpush1.bf16.msra.mxu0 %v9463_v51  ;;  %6935 = vmatpush1.bf16.msra.mxu1 %v9466_v54  ;;  %v9555_v51 = vld [vmem:[%s9943_s11 + $0x1904] ss:$16 sps:$4 sm:$0xff]   ;;  %v9558_v54 = vld [vmem:[%s9943_s11 + $0x190c] ss:$16 sps:$4 sm:$0xff]  }
 0x32b   : > { %6362 = vmatprep.subr.bf16.mxu0 %v9471_v55  ;;  %6936 = vmatprep.subr.bf16.mxu1 %v9474_v56  ;;  %v9553_v55 = vld [vmem:[%s9943_s11 + $0x1900] ss:$16 sps:$4 sm:$0xff]   ;;  %v9556_v56 = vld [vmem:[%s9943_s11 + $0x1908] ss:$16 sps:$4 sm:$0xff]  }
 0x32e   : > { %6363 = vmatpush1.bf16.msra.mxu0 %v9469_v39  ;;  %6937 = vmatpush1.bf16.msra.mxu1 %v9472_v57  ;;  %v9561_v39 = vld [vmem:[%s9943_s11 + $0x1924] ss:$16 sps:$4 sm:$0xff]   ;;  %v9564_v57 = vld [vmem:[%s9943_s11 + $0x192c] ss:$16 sps:$4 sm:$0xff]  }
 0x32f   : > { %6364 = vmatprep.subr.bf16.mxu0 %v9477_v58  ;;  %6938 = vmatprep.subr.bf16.mxu1 %v9480_v59  ;;  %v9559_v58 = vld [vmem:[%s9943_s11 + $0x1920] ss:$16 sps:$4 sm:$0xff]   ;;  %v9562_v59 = vld [vmem:[%s9943_s11 + $0x1928] ss:$16 sps:$4 sm:$0xff]  }
 0x332   : > { %6365 = vmatpush1.bf16.msra.mxu0 %v9475_v49  ;;  %6939 = vmatpush1.bf16.msra.mxu1 %v9478_v60  ;;  %v9567_v49 = vld [vmem:[%s9943_s11 + $0x1944] ss:$16 sps:$4 sm:$0xff]   ;;  %v9570_v60 = vld [vmem:[%s9943_s11 + $0x194c] ss:$16 sps:$4 sm:$0xff]  }
 0x333   : > { %6366 = vmatprep.subr.bf16.mxu0 %v9483_v61  ;;  %6940 = vmatprep.subr.bf16.mxu1 %v9486_v14  ;;  %v9565_v61 = vld [vmem:[%s9943_s11 + $0x1940] ss:$16 sps:$4 sm:$0xff]   ;;  %v9568_v14 = vld [vmem:[%s9943_s11 + $0x1948] ss:$16 sps:$4 sm:$0xff]  }
 0x336   : > { %6367 = vmatpush1.bf16.msra.mxu0 %v9481_v0  ;;  %6941 = vmatpush1.bf16.msra.mxu1 %v9484_v1  ;;  %v9573_v0 = vld [vmem:[%s9943_s11 + $0x1964] ss:$16 sps:$4 sm:$0xff]   ;;  %v9576_v1 = vld [vmem:[%s9943_s11 + $0x196c] ss:$16 sps:$4 sm:$0xff]  }
 0x337   : > { %6368 = vmatprep.subr.bf16.mxu0 %v9489_v36  ;;  %6942 = vmatprep.subr.bf16.mxu1 %v9492_v3  ;;  %v9571_v36 = vld [vmem:[%s9943_s11 + $0x1960] ss:$16 sps:$4 sm:$0xff]   ;;  %v9574_v3 = vld [vmem:[%s9943_s11 + $0x1968] ss:$16 sps:$4 sm:$0xff]  }
 0x33a   : > { %6369 = vmatpush1.bf16.msra.mxu0 %v9487_v4  ;;  %6943 = vmatpush1.bf16.msra.mxu1 %v9490_v52  ;;  %v9579_v4 = vld [vmem:[%s9943_s11 + $0x1984] ss:$16 sps:$4 sm:$0xff]   ;;  %v9582_v52 = vld [vmem:[%s9943_s11 + $0x198c] ss:$16 sps:$4 sm:$0xff]  }
 0x33b   : > { %6370 = vmatprep.subr.bf16.mxu0 %v9495_v5  ;;  %6944 = vmatprep.subr.bf16.mxu1 %v9498_v6  ;;  %v9577_v5 = vld [vmem:[%s9943_s11 + $0x1980] ss:$16 sps:$4 sm:$0xff]   ;;  %v9580_v6 = vld [vmem:[%s9943_s11 + $0x1988] ss:$16 sps:$4 sm:$0xff]  }
 0x33e   : > { %6371 = vmatpush1.bf16.msra.mxu0 %v9493_v7  ;;  %6945 = vmatpush1.bf16.msra.mxu1 %v9496_v62  ;;  %v9585_v7 = vld [vmem:[%s9943_s11 + $0x19a4] ss:$16 sps:$4 sm:$0xff]   ;;  %v9588_v62 = vld [vmem:[%s9943_s11 + $0x19ac] ss:$16 sps:$4 sm:$0xff]  }
 0x33f   : > { %6372 = vmatprep.subr.bf16.mxu0 %v9501_v8  ;;  %6946 = vmatprep.subr.bf16.mxu1 %v9504_v9  ;;  %v9583_v8 = vld [vmem:[%s9943_s11 + $0x19a0] ss:$16 sps:$4 sm:$0xff]   ;;  %v9586_v9 = vld [vmem:[%s9943_s11 + $0x19a8] ss:$16 sps:$4 sm:$0xff]  }
 0x342   : > { %6373 = vmatpush1.bf16.msra.mxu0 %v9499_v12  ;;  %6947 = vmatpush1.bf16.msra.mxu1 %v9502_v13  ;;  %v9591_v12 = vld [vmem:[%s9943_s11 + $0x19c4] ss:$16 sps:$4 sm:$0xff]   ;;  %v9594_v13 = vld [vmem:[%s9943_s11 + $0x19cc] ss:$16 sps:$4 sm:$0xff]  }
 0x343   : > { %6383 = vmatprep.subr.bf16.mxu0 %v9507_v15  ;;  %6957 = vmatprep.subr.bf16.mxu1 %v9510_v17  ;;  %v9589_v15 = vld [vmem:[%s9943_s11 + $0x19c0] ss:$16 sps:$4 sm:$0xff]   ;;  %v9592_v17 = vld [vmem:[%s9943_s11 + $0x19c8] ss:$16 sps:$4 sm:$0xff]  }
 0x345   : > { %6375 = vmatmul.mubr.bf16.vlgmr.msra.gmra.mrb[0].mxu0 %v1356_v53  ;;  %6949 = vmatmul.mubr.bf16.vlgmr.msra.gmra.mrb[0].mxu1 %v1356_v53  ;;  %v9600_v53 = vld [vmem:[%s9943_s11 + $0x19ec] ss:$16 sps:$4 sm:$0xff]  }
 0x346   : > { %6384 = vmatpush1.bf16.msra.mxu0 %v9505_v18  ;;  %6958 = vmatpush1.bf16.msra.mxu1 %v9508_v19  ;;  %v9595_v18 = vld [vmem:[%s9943_s11 + $0x19e0] ss:$16 sps:$4 sm:$0xff]   ;;  %v9598_v19 = vld [vmem:[%s9943_s11 + $0x19e8] ss:$16 sps:$4 sm:$0xff]  }
 0x347   : > { %6385 = vmatprep.subr.bf16.mxu0 %v9513_v10  ;;  %6959 = vmatprep.subr.bf16.mxu1 %v9516_v20  ;;  %v9603_v10 = vld [vmem:[%s9943_s11 + $0x1a04] ss:$16 sps:$4 sm:$0xff]   ;;  %v9606_v20 = vld [vmem:[%s9943_s11 + $0x1a0c] ss:$16 sps:$4 sm:$0xff]  }
 0x348   : > { %6415 = vmatprep.mubr.bf16.mxu0 %v10880_v21  ;;  %6989 = vmatprep.mubr.bf16.mxu1 %v10880_v21 }
 0x34a   : > { %6386 = vmatpush1.bf16.msra.mxu0 %v9511_v63  ;;  %6960 = vmatpush1.bf16.msra.mxu1 %v9514_v23  ;;  %v10946_v63 = vrot.slane %v10865_v11, %v10020_v50  ;;  %v9601_v23 = vld [vmem:[%s9943_s11 + $0x1a00] ss:$16 sps:$4 sm:$0xff]   ;;  %v9610_v11 = vld [vmem:[%s9943_s11 + $0x1a28] ss:$16 sps:$4 sm:$0xff]  }
 0x34b   : > { %6387 = vmatprep.subr.bf16.mxu0 %v9519_v24  ;;  %6961 = vmatprep.subr.bf16.mxu1 %v9522_v25  ;;  %v9604_v24 = vld [vmem:[%s9943_s11 + $0x1a08] ss:$16 sps:$4 sm:$0xff]   ;;  %v9609_v25 = vld [vmem:[%s9943_s11 + $0x1a24] ss:$16 sps:$4 sm:$0xff]   ;;  %v9607_v50 = vld [vmem:[%s9943_s11 + $0x1a20] ss:$16 sps:$4 sm:$0xff]  }
 0x34e   : > { %6388 = vmatpush1.bf16.msra.mxu0 %v9517_v27  ;;  %6962 = vmatpush1.bf16.msra.mxu1 %v9520_v28  ;;  %v9612_v27 = vld [vmem:[%s9943_s11 + $0x1a2c] ss:$16 sps:$4 sm:$0xff]   ;;  %v1382_v28 = vcombine.high %v10880_v21, %v10880_v21  ;;  %v9613_v21 = vld [vmem:[%s9943_s11 + $0x1a40] ss:$16 sps:$4 sm:$0xff]  }
 0x34f   : > { %6389 = vmatprep.subr.bf16.mxu0 %v9525_v29  ;;  %6963 = vmatprep.subr.bf16.mxu1 %v9528_v30  ;;  %v9615_v29 = vld [vmem:[%s9943_s11 + $0x1a44] ss:$16 sps:$4 sm:$0xff]   ;;  %v9618_v30 = vld [vmem:[%s9943_s11 + $0x1a4c] ss:$16 sps:$4 sm:$0xff]  }
 0x352   : > { %6390 = vmatpush1.bf16.msra.mxu0 %v9523_v31  ;;  %6964 = vmatpush1.bf16.msra.mxu1 %v9526_v16  ;;  %v9616_v31 = vld [vmem:[%s9943_s11 + $0x1a48] ss:$16 sps:$4 sm:$0xff]   ;;  %v9621_v16 = vld [vmem:[%s9943_s11 + $0x1a64] ss:$16 sps:$4 sm:$0xff]  }
 0x353   : > { %6391 = vmatprep.subr.bf16.mxu0 %v9531_v32  ;;  %6965 = vmatprep.subr.bf16.mxu1 %v9534_v33  ;;  %v9624_v32 = vld [vmem:[%s9943_s11 + $0x1a6c] ss:$16 sps:$4 sm:$0xff]   ;;  %v9619_v33 = vld [vmem:[%s9943_s11 + $0x1a60] ss:$16 sps:$4 sm:$0xff]  }
 0x356   : > { %6392 = vmatpush1.bf16.msra.mxu0 %v9529_v34  ;;  %6966 = vmatpush1.bf16.msra.mxu1 %v9532_v26  ;;  %v9622_v34 = vld [vmem:[%s9943_s11 + $0x1a68] ss:$16 sps:$4 sm:$0xff]   ;;  %v9627_v26 = vld [vmem:[%s9943_s11 + $0x1a84] ss:$16 sps:$4 sm:$0xff]  }
 0x357   : > { %6393 = vmatprep.subr.bf16.mxu0 %v9537_v35  ;;  %6967 = vmatprep.subr.bf16.mxu1 %v9540_v37  ;;  %v9630_v35 = vld [vmem:[%s9943_s11 + $0x1a8c] ss:$16 sps:$4 sm:$0xff]   ;;  %v9625_v37 = vld [vmem:[%s9943_s11 + $0x1a80] ss:$16 sps:$4 sm:$0xff]  }
 0x35a   : > { %6394 = vmatpush1.bf16.msra.mxu0 %v9535_v38  ;;  %6968 = vmatpush1.bf16.msra.mxu1 %v9538_v40  ;;  %v9628_v38 = vld [vmem:[%s9943_s11 + $0x1a88] ss:$16 sps:$4 sm:$0xff]   ;;  %v9633_v40 = vld [vmem:[%s9943_s11 + $0x1aa4] ss:$16 sps:$4 sm:$0xff]  }
 0x35b   : > { %6395 = vmatprep.subr.bf16.mxu0 %v9543_v41  ;;  %6969 = vmatprep.subr.bf16.mxu1 %v9546_v22  ;;  %v9636_v41 = vld [vmem:[%s9943_s11 + $0x1aac] ss:$16 sps:$4 sm:$0xff]   ;;  %v9631_v22 = vld [vmem:[%s9943_s11 + $0x1aa0] ss:$16 sps:$4 sm:$0xff]  }
 0x35e   : > { %6396 = vmatpush1.bf16.msra.mxu0 %v9541_v42  ;;  %6970 = vmatpush1.bf16.msra.mxu1 %v9544_v43  ;;  %v9634_v42 = vld [vmem:[%s9943_s11 + $0x1aa8] ss:$16 sps:$4 sm:$0xff]   ;;  %v9639_v43 = vld [vmem:[%s9943_s11 + $0x1ac4] ss:$16 sps:$4 sm:$0xff]  }
 0x35f   : > { %6397 = vmatprep.subr.bf16.mxu0 %v9549_v45  ;;  %6971 = vmatprep.subr.bf16.mxu1 %v9552_v46  ;;  %v9642_v45 = vld [vmem:[%s9943_s11 + $0x1acc] ss:$16 sps:$4 sm:$0xff]   ;;  %v9637_v46 = vld [vmem:[%s9943_s11 + $0x1ac0] ss:$16 sps:$4 sm:$0xff]  }
 0x362   : > { %6398 = vmatpush1.bf16.msra.mxu0 %v9547_v47  ;;  %6972 = vmatpush1.bf16.msra.mxu1 %v9550_v48  ;;  %v9640_v47 = vld [vmem:[%s9943_s11 + $0x1ac8] ss:$16 sps:$4 sm:$0xff]   ;;  %v9645_v48 = vld [vmem:[%s9943_s11 + $0x1ae4] ss:$16 sps:$4 sm:$0xff]  }
 0x363   : > { %6399 = vmatprep.subr.bf16.mxu0 %v9555_v51  ;;  %6973 = vmatprep.subr.bf16.mxu1 %v9558_v54  ;;  %v9648_v51 = vld [vmem:[%s9943_s11 + $0x1aec] ss:$16 sps:$4 sm:$0xff]   ;;  %v9643_v54 = vld [vmem:[%s9943_s11 + $0x1ae0] ss:$16 sps:$4 sm:$0xff]  }
 0x366   : > { %6400 = vmatpush1.bf16.msra.mxu0 %v9553_v55  ;;  %6974 = vmatpush1.bf16.msra.mxu1 %v9556_v56  ;;  %v9646_v55 = vld [vmem:[%s9943_s11 + $0x1ae8] ss:$16 sps:$4 sm:$0xff]   ;;  %v9651_v56 = vld [vmem:[%s9943_s11 + $0x1b04] ss:$16 sps:$4 sm:$0xff]  }
 0x367   : > { %6401 = vmatprep.subr.bf16.mxu0 %v9561_v39  ;;  %6975 = vmatprep.subr.bf16.mxu1 %v9564_v57  ;;  %v9654_v39 = vld [vmem:[%s9943_s11 + $0x1b0c] ss:$16 sps:$4 sm:$0xff]   ;;  %v9649_v57 = vld [vmem:[%s9943_s11 + $0x1b00] ss:$16 sps:$4 sm:$0xff]  }
 0x36a   : > { %6402 = vmatpush1.bf16.msra.mxu0 %v9559_v58  ;;  %6976 = vmatpush1.bf16.msra.mxu1 %v9562_v59  ;;  %v9652_v58 = vld [vmem:[%s9943_s11 + $0x1b08] ss:$16 sps:$4 sm:$0xff]   ;;  %v9657_v59 = vld [vmem:[%s9943_s11 + $0x1b24] ss:$16 sps:$4 sm:$0xff]  }
 0x36b   : > { %6403 = vmatprep.subr.bf16.mxu0 %v9567_v49  ;;  %6977 = vmatprep.subr.bf16.mxu1 %v9570_v60  ;;  %v9660_v49 = vld [vmem:[%s9943_s11 + $0x1b2c] ss:$16 sps:$4 sm:$0xff]   ;;  %v9655_v60 = vld [vmem:[%s9943_s11 + $0x1b20] ss:$16 sps:$4 sm:$0xff]  }
 0x36e   : > { %6404 = vmatpush1.bf16.msra.mxu0 %v9565_v61  ;;  %6978 = vmatpush1.bf16.msra.mxu1 %v9568_v14  ;;  %v9658_v61 = vld [vmem:[%s9943_s11 + $0x1b28] ss:$16 sps:$4 sm:$0xff]   ;;  %v9663_v14 = vld [vmem:[%s9943_s11 + $0x1b44] ss:$16 sps:$4 sm:$0xff]  }
 0x36f   : > { %6405 = vmatprep.subr.bf16.mxu0 %v9573_v0  ;;  %6979 = vmatprep.subr.bf16.mxu1 %v9576_v1  ;;  %v9666_v0 = vld [vmem:[%s9943_s11 + $0x1b4c] ss:$16 sps:$4 sm:$0xff]   ;;  %v9661_v1 = vld [vmem:[%s9943_s11 + $0x1b40] ss:$16 sps:$4 sm:$0xff]  }
 0x372   : > { %6406 = vmatpush1.bf16.msra.mxu0 %v9571_v36  ;;  %6980 = vmatpush1.bf16.msra.mxu1 %v9574_v3  ;;  %v9664_v36 = vld [vmem:[%s9943_s11 + $0x1b48] ss:$16 sps:$4 sm:$0xff]   ;;  %v9669_v3 = vld [vmem:[%s9943_s11 + $0x1b64] ss:$16 sps:$4 sm:$0xff]  }
 0x373   : > { %6407 = vmatprep.subr.bf16.mxu0 %v9579_v4  ;;  %6981 = vmatprep.subr.bf16.mxu1 %v9582_v52  ;;  %v9672_v4 = vld [vmem:[%s9943_s11 + $0x1b6c] ss:$16 sps:$4 sm:$0xff]   ;;  %v9667_v52 = vld [vmem:[%s9943_s11 + $0x1b60] ss:$16 sps:$4 sm:$0xff]  }
 0x376   : > { %6408 = vmatpush1.bf16.msra.mxu0 %v9577_v5  ;;  %6982 = vmatpush1.bf16.msra.mxu1 %v9580_v6  ;;  %v9670_v5 = vld [vmem:[%s9943_s11 + $0x1b68] ss:$16 sps:$4 sm:$0xff]   ;;  %v9675_v6 = vld [vmem:[%s9943_s11 + $0x1b84] ss:$16 sps:$4 sm:$0xff]  }
 0x377   : > { %6409 = vmatprep.subr.bf16.mxu0 %v9585_v7  ;;  %6983 = vmatprep.subr.bf16.mxu1 %v9588_v62  ;;  %v9678_v7 = vld [vmem:[%s9943_s11 + $0x1b8c] ss:$16 sps:$4 sm:$0xff]   ;;  %v9673_v62 = vld [vmem:[%s9943_s11 + $0x1b80] ss:$16 sps:$4 sm:$0xff]  }
 0x37a   : > { %6410 = vmatpush1.bf16.msra.mxu0 %v9583_v8  ;;  %6984 = vmatpush1.bf16.msra.mxu1 %v9586_v9  ;;  %v9676_v8 = vld [vmem:[%s9943_s11 + $0x1b88] ss:$16 sps:$4 sm:$0xff]   ;;  %v9681_v9 = vld [vmem:[%s9943_s11 + $0x1ba4] ss:$16 sps:$4 sm:$0xff]  }
 0x37b   : > { %6411 = vmatprep.subr.bf16.mxu0 %v9591_v12  ;;  %6985 = vmatprep.subr.bf16.mxu1 %v9594_v13  ;;  %v9684_v12 = vld [vmem:[%s9943_s11 + $0x1bac] ss:$16 sps:$4 sm:$0xff]   ;;  %v9679_v13 = vld [vmem:[%s9943_s11 + $0x1ba0] ss:$16 sps:$4 sm:$0xff]  }
 0x37e   : > { %6412 = vmatpush1.bf16.msra.mxu0 %v9589_v15  ;;  %6986 = vmatpush1.bf16.msra.mxu1 %v9592_v17  ;;  %v9682_v15 = vld [vmem:[%s9943_s11 + $0x1ba8] ss:$16 sps:$4 sm:$0xff]   ;;  %v9687_v17 = vld [vmem:[%s9943_s11 + $0x1bc4] ss:$16 sps:$4 sm:$0xff]  }
 0x37f   : > { %6413 = vmatprep.subr.bf16.mxu0 %v9597_v2  ;;  %6987 = vmatprep.subr.bf16.mxu1 %v9600_v53  ;;  %v9690_v2 = vld [vmem:[%s9943_s11 + $0x1bcc] ss:$16 sps:$4 sm:$0xff]   ;;  %v9685_v53 = vld [vmem:[%s9943_s11 + $0x1bc0] ss:$16 sps:$4 sm:$0xff]  }
 0x382   : > { %6414 = vmatpush1.bf16.msra.mxu0 %v9595_v18  ;;  %6988 = vmatpush1.bf16.msra.mxu1 %v9598_v19  ;;  %v9688_v18 = vld [vmem:[%s9943_s11 + $0x1bc8] ss:$16 sps:$4 sm:$0xff]   ;;  %v9693_v19 = vld [vmem:[%s9943_s11 + $0x1be4] ss:$16 sps:$4 sm:$0xff]  }
 0x383   : > { %6424 = vmatprep.subr.bf16.mxu0 %v9603_v10  ;;  %6998 = vmatprep.subr.bf16.mxu1 %v9606_v20  ;;  %v9696_v10 = vld [vmem:[%s9943_s11 + $0x1bec] ss:$16 sps:$4 sm:$0xff]   ;;  %v9691_v20 = vld [vmem:[%s9943_s11 + $0x1be0] ss:$16 sps:$4 sm:$0xff]  }
 0x385   : > { %6416 = vmatmul.mubr.bf16.vlgmr.msra.gmra.mrb[0].mxu0 %v10946_v63  ;;  %6990 = vmatmul.mubr.bf16.vlgmr.msra.gmra.mrb[0].mxu1 %v10946_v63 }
 0x386   : > { %6425 = vmatpush1.bf16.msra.mxu0 %v9601_v23  ;;  %6999 = vmatpush1.bf16.msra.mxu1 %v9604_v24  ;;  %v9694_v23 = vld [vmem:[%s9943_s11 + $0x1be8] ss:$16 sps:$4 sm:$0xff]   ;;  %v1381_v24 = vcombine.high %v10946_v63, %v10946_v63 }
 0x387   : > { %6426 = vmatprep.subr.bf16.mxu0 %v9609_v25  ;;  %7000 = vmatprep.subr.bf16.mxu1 %v9612_v27  ;;  %v9803_v25 = vmov 1983009808  }
 0x388   : > { %6456 = vmatprep.mubr.bf16.mxu0 %v1382_v28  ;;  %7030 = vmatprep.mubr.bf16.mxu1 %v1382_v28  ;;  %v7046_v27 = vunpack.c.l.s4 %v9803_v25 }
 0x38a   : > { %6427 = vmatpush1.bf16.msra.mxu0 %v9607_v50  ;;  %7001 = vmatpush1.bf16.msra.mxu1 %v9610_v11  ;;  %v7047_v28 = vunpack.c.0.s8 %v7046_v27 }
 0x38b   : > { %6428 = vmatprep.subr.bf16.mxu0 %v9615_v29  ;;  %7002 = vmatprep.subr.bf16.mxu1 %v9618_v30 }
 0x38c   : > { %v7050_v29 = vsub.s32 %v7047_v28, %v10012_v44 }
 0x38e   : > { %6429 = vmatpush1.bf16.msra.mxu0 %v9613_v21  ;;  %7003 = vmatpush1.bf16.msra.mxu1 %v9616_v31 }
 0x38f   : > { %6430 = vmatprep.subr.bf16.mxu0 %v9621_v16  ;;  %7004 = vmatprep.subr.bf16.mxu1 %v9624_v32 }
 0x392   : > { %6431 = vmatpush1.bf16.msra.mxu0 %v9619_v33  ;;  %7005 = vmatpush1.bf16.msra.mxu1 %v9622_v34 }
 0x393   : > { %6432 = vmatprep.subr.bf16.mxu0 %v9627_v26  ;;  %7006 = vmatprep.subr.bf16.mxu1 %v9630_v35 }
 0x396   : > { %6433 = vmatpush1.bf16.msra.mxu0 %v9625_v37  ;;  %7007 = vmatpush1.bf16.msra.mxu1 %v9628_v38  ;;  %v307_v37 = vld [vmem:[#allocation2] sm:$0xff] }
 0x397   : > { %6434 = vmatprep.subr.bf16.mxu0 %v9633_v40  ;;  %7008 = vmatprep.subr.bf16.mxu1 %v9636_v41  ;;  %v7068_v41 = vld [vmem:[%s289_s6] sm:$0xf] (!%p8163_p6) }
 0x39a   : > { %6435 = vmatpush1.bf16.msra.mxu0 %v9631_v22  ;;  %7009 = vmatpush1.bf16.msra.mxu1 %v9634_v42  ;;  %v7072_v22 = vsub.s32 (!%p8163_p6), 0, %v10012_v44  ;;  %v7076_v42 = vsub.s32 (!%p8163_p6), 1, %v10012_v44 }
 0x39b   : > { %6436 = vmatprep.subr.bf16.mxu0 %v9639_v43  ;;  %7010 = vmatprep.subr.bf16.mxu1 %v9642_v45  ;;  %v7080_v43 = vsub.s32 (!%p8163_p6), 2, %v10012_v44  ;;  %v7084_v45 = vsub.s32 (!%p8163_p6), 3, %v10012_v44 }
 0x39e   : > { %6437 = vmatpush1.bf16.msra.mxu0 %v9637_v46  ;;  %7011 = vmatpush1.bf16.msra.mxu1 %v9640_v47  ;;  %v7105_v46 = vld [vmem:[%s294_s29] sm:$0xf] (!%p8163_p6)  ;;  %v7073_v47 = vrot.slane (!%p8163_p6), %v7068_v41, %v7072_v22 }
 0x39f   : > { %6438 = vmatprep.subr.bf16.mxu0 %v9645_v48  ;;  %7012 = vmatprep.subr.bf16.mxu1 %v9648_v51  ;;  %v7077_v48 = vrot.slane (!%p8163_p6), %v7068_v41, %v7076_v42  ;;  %v7081_v51 = vrot.slane (!%p8163_p6), %v7068_v41, %v7080_v43 }
 0x3a2   : > { %6439 = vmatpush1.bf16.msra.mxu0 %v9643_v54  ;;  %7013 = vmatpush1.bf16.msra.mxu1 %v9646_v55  ;;  %v7110_v54 = vrot.slane (!%p8163_p6), %v7105_v46, %v7072_v22  ;;  %v7085_v55 = vrot.slane (!%p8163_p6), %v7068_v41, %v7084_v45 }
 0x3a3   : > { %6440 = vmatprep.subr.bf16.mxu0 %v9651_v56  ;;  %7014 = vmatprep.subr.bf16.mxu1 %v9654_v39  ;;  %v7114_v56 = vrot.slane (!%p8163_p6), %v7105_v46, %v7076_v42  ;;  %v7118_v39 = vrot.slane (!%p8163_p6), %v7105_v46, %v7080_v43 }
 0x3a6   : > { %6441 = vmatpush1.bf16.msra.mxu0 %v9649_v57  ;;  %7015 = vmatpush1.bf16.msra.mxu1 %v9652_v58  ;;  %v7122_v57 = vrot.slane (!%p8163_p6), %v7105_v46, %v7084_v45  ;;  %v7086_v58 = vcombine.low (!%p8163_p6), %v7073_v47, %v7077_v48 }
 0x3a7   : > { %6442 = vmatprep.subr.bf16.mxu0 %v9657_v59  ;;  %7016 = vmatprep.subr.bf16.mxu1 %v9660_v49  ;;  %v7087_v59 = vcombine.low (!%p8163_p6), %v7081_v51, %v7085_v55  ;;  %v7123_v49 = vcombine.low (!%p8163_p6), %v7110_v54, %v7114_v56 }
 0x3a9   : > { %v7101_v44 = vrot.slane (!%p8163_p6), %v7087_v59, %v7050_v29 }
 0x3aa   : > { %6443 = vmatpush1.bf16.msra.mxu0 %v9655_v60  ;;  %7017 = vmatpush1.bf16.msra.mxu1 %v9658_v61  ;;  %v7124_v60 = vcombine.low (!%p8163_p6), %v7118_v39, %v7122_v57  ;;  %v7094_v61 = vrot.slane (!%p8163_p6), %v7086_v58, %v7050_v29 }
 0x3ab   : > { %6444 = vmatprep.subr.bf16.mxu0 %v9663_v14  ;;  %7018 = vmatprep.subr.bf16.mxu1 %v9666_v0  ;;  %v7131_v14 = vrot.slane (!%p8163_p6), %v7123_v49, %v7050_v29 }
 0x3ac   : > { %v7138_v0 = vrot.slane (!%p8163_p6), %v7124_v60, %v7050_v29 }
 0x3ae   : > { %6445 = vmatpush1.bf16.msra.mxu0 %v9661_v1  ;;  %7019 = vmatpush1.bf16.msra.mxu1 %v9664_v36  ;;  %v7102_v36 = vcombine.low (!%p8163_p6), %v7094_v61, %v7101_v44 }
 0x3af   : > { %6446 = vmatprep.subr.bf16.mxu0 %v9669_v3  ;;  %7020 = vmatprep.subr.bf16.mxu1 %v9672_v4  ;;  %v7139_v3 = vcombine.low (!%p8163_p6), %v7131_v14, %v7138_v0 }
 0x3b2   : > { %6447 = vmatpush1.bf16.msra.mxu0 %v9667_v52  ;;  %7021 = vmatpush1.bf16.msra.mxu1 %v9670_v5 }
 0x3b3   : > { %6448 = vmatprep.subr.bf16.mxu0 %v9675_v6  ;;  %7022 = vmatprep.subr.bf16.mxu1 %v9678_v7 }
 0x3b6   : > { %6449 = vmatpush1.bf16.msra.mxu0 %v9673_v62  ;;  %7023 = vmatpush1.bf16.msra.mxu1 %v9676_v8 }
 0x3b7   : > { %6450 = vmatprep.subr.bf16.mxu0 %v9681_v9  ;;  %7024 = vmatprep.subr.bf16.mxu1 %v9684_v12 }
 0x3ba   : > { %6451 = vmatpush1.bf16.msra.mxu0 %v9679_v13  ;;  %7025 = vmatpush1.bf16.msra.mxu1 %v9682_v15 }
 0x3bb   : > { %6452 = vmatprep.subr.bf16.mxu0 %v9687_v17  ;;  %7026 = vmatprep.subr.bf16.mxu1 %v9690_v2 }
 0x3be   : > { %6453 = vmatpush1.bf16.msra.mxu0 %v9685_v53  ;;  %7027 = vmatpush1.bf16.msra.mxu1 %v9688_v18 }
 0x3bf   : > { %6454 = vmatprep.subr.bf16.mxu0 %v9693_v19  ;;  %7028 = vmatprep.subr.bf16.mxu1 %v9696_v10 }
 0x3c2   : > { %6455 = vmatpush1.bf16.msra.mxu0 %v9691_v20  ;;  %7029 = vmatpush1.bf16.msra.mxu1 %v9694_v23 }
 0x3c5   : > { %6457 = vmatmul.mubr.bf16.vlgmr.msra.gmra.mrb[0].mxu0 %v1381_v24  ;;  %7031 = vmatmul.mubr.bf16.vlgmr.msra.gmra.mrb[0].mxu1 %v1381_v24 }
 0x498   : > { %v6458_v50 = vpop.f32.mrb[0].mxu0  ;;  %v7032_v11 = vpop.f32.mrb[0].mxu1 }
 0x499   : > { %v6460_v30 = vpop.f32.mrb[1].mxu0  ;;  %v7034_v21 = vpop.f32.mrb[1].mxu1 }
 0x49a   : > { %v7043_v31 = vcombine.low %v6458_v50, %v6460_v30  ;;  %v7044_v16 = vcombine.low %v7032_v11, %v7034_v21  ;;  %v6462_v32 = vpop.f32.mrb[2].mxu0  ;;  %v7036_v33 = vpop.f32.mrb[2].mxu1 }
 0x49b   : > { %v6463_v34 = vpop.f32.mrb[3].mxu0  ;;  %v7037_v26 = vpop.f32.mrb[3].mxu1 }
 0x49c   : > { %v7051_v63 = vrot.slane %v7043_v31, %v7050_v29  ;;  %v7058_v35 = vrot.slane %v7044_v16, %v7050_v29  ;;  %7066 = sbr.rel (%p8163_p6) target bundleno = 1201 (0x4b1), region = 48 }
 0x49e   : > { %v7059_v38 = vcombine.low %v7051_v63, %v7058_v35 }
 0x4a0   : > { %v7061_v40 = vadd.f32 %v7059_v38, %v307_v37 }
 0x4a2   : > { %7062 = vst [vmem:[#allocation2] sm:$0xff] %v7061_v40 }
 0x4a9   : > { %v7067_v1 = vld [vmem:[#allocation2] sm:$0xff] }
 0x4aa   : > { %v7104_v4 = vmul.f32 %v7102_v36, %v7067_v1 }
 0x4ac   : > { %v7141_v52 = vadd.f32 %v7139_v3, %v7104_v4 }
 0x4ae   : > { %v7142_v5 = vmax.f32 %v7141_v52, 0.0 }
 0x4b0   : > { %7143 = vst [vmem:[%s9970_s8] sm:$0xff] %v7142_v5 }
 0x4b1 PF: > { %s17_s22 = sadd.s32 1, %s9795_s22   ;;  %s11065_s15 = smov %s9771_s16 }
 0x4b2   : > { %p14_p8 = scmp.ge.s32.totalorder %s17_s22, 30   ;;  %s11066_s16 = smov %s9775_s17 }
 0x4b3   : > { %s11067_s17 = smov %s9896_s9  ;;  %s11068_s18 = smov %s9787_s20 }
 0x4b4   : > { %s11069_s19 = smov %s9791_s21  ;;  %s11070_s20 = smov %s11073_s24 }
 0x4b5   : > { %s11071_s21 = smov %s11077_s25  ;;  %16 = sbr.rel (!%p14_p8) target bundleno = 5 (0x5), region = 93 }
 0x4bc   :  { %7166 = vsyncpa [#allocation4], 1 }
 0x4bd   :  { %7168 = vsyncpa [#allocation4 + $0x1], 1 }

</bundles_post_ra>
